<compile_context>
chip_gen: v5e
topology: v5e:2x2
jax: 0.10.0
libtpu: 0.0.40
codegen_flags: <defaults>
</compile_context>

<pallas_src>
import functools

import jax
import jax.numpy as jnp
import numpy as np
from jax.experimental import pallas as pl
from jax.experimental.pallas import tpu as pltpu


def _leaky(a):
    # nn.LeakyReLU() default negative_slope = 0.01
    return jnp.where(a >= 0, a, 0.01 * a)


def _gather_patches(src_ref, btile, osz, cin):
    # In-kernel im2col: 9 stride-2 shifted windows of the zero-padded NHWC
    # activation resident in VMEM, flattened to GEMM rows (b, h, w) and
    # concatenated along channels -> (B*osz*osz, 9*cin) bf16 MXU operand.
    taps = [src_ref[:, pl.ds(kh, osz, 2), pl.ds(kw, osz, 2), :]
            .reshape(btile * osz * osz, cin)
            for kh in range(3) for kw in range(3)]
    return jnp.concatenate(taps, axis=-1).astype(jnp.bfloat16)


# ----------------------------------------------------------------------------
# Fused whole-network kernel: B_TILE images per grid step.
# ----------------------------------------------------------------------------
def _disc_fused_kernel(x1_ref, w1_ref, b1_ref, w2_ref, b2_ref, w3_ref, b3_ref,
                       wl_ref, bl_ref, o_ref, xp2_ref, xp3_ref, *, dim, btile):
    f32 = jnp.float32

    # ---- conv1: host-side im2col, one MXU GEMM with M = 256*B. ----
    p1 = x1_ref[...].reshape(btile * 256, 32)                     # bf16
    a1 = jnp.dot(p1, w1_ref[...], preferred_element_type=f32)
    a1 = _leaky(a1 + b1_ref[...])                                 # (256B, D) f32

    # Zero only the 1-px pad borders; the interior is fully overwritten.
    xp2_ref[:, 0:1, :, :] = jnp.zeros((btile, 1, 18, dim), f32)
    xp2_ref[:, 17:18, :, :] = jnp.zeros((btile, 1, 18, dim), f32)
    xp2_ref[:, :, 0:1, :] = jnp.zeros((btile, 18, 1, dim), f32)
    xp2_ref[:, :, 17:18, :] = jnp.zeros((btile, 18, 1, dim), f32)
    xp2_ref[:, 1:17, 1:17, :] = a1.reshape(btile, 16, 16, dim)

    # ---- conv2: in-kernel im2col, M = 64*B. ----
    p2 = _gather_patches(xp2_ref, btile, 8, dim)                  # (64B, 9D)
    a2 = jnp.dot(p2, w2_ref[...], preferred_element_type=f32)
    a2 = _leaky(a2 + b2_ref[...])                                 # (64B, 2D) f32

    xp3_ref[:, 0:1, :, :] = jnp.zeros((btile, 1, 10, 2 * dim), f32)
    xp3_ref[:, 9:10, :, :] = jnp.zeros((btile, 1, 10, 2 * dim), f32)
    xp3_ref[:, :, 0:1, :] = jnp.zeros((btile, 10, 1, 2 * dim), f32)
    xp3_ref[:, :, 9:10, :] = jnp.zeros((btile, 10, 1, 2 * dim), f32)
    xp3_ref[:, 1:9, 1:9, :] = a2.reshape(btile, 8, 8, 2 * dim)

    # ---- conv3 as ONE GEMM (M = 16*B); Linear(4*4*4D, 1) fused as a VPU
    # multiply+reduce epilogue (wl pre-permuted to (h, w, c) on the host). ----
    p3 = _gather_patches(xp3_ref, btile, 4, 2 * dim)              # (16B, 18D)
    a3 = jnp.dot(p3, w3_ref[...], preferred_element_type=f32)
    a3 = _leaky(a3 + b3_ref[...])                                 # (16B, 4D) f32

    lin = a3.reshape(btile, 16, 4 * dim) * wl_ref[...]            # (B, 16, 4D)
    scores = jnp.sum(jnp.sum(lin, axis=-1), axis=-1, keepdims=True)   # (B, 1)
    o_ref[...] = (scores + bl_ref[...]).astype(o_ref.dtype)


# ----------------------------------------------------------------------------
# Wrapper: host-side glue is layout-only (conv1 im2col, one-time weight
# reshuffles, batch padding).  Everything else runs inside the single kernel.
# ----------------------------------------------------------------------------
def discriminator_forward(x_nchw, params, b_tile=8):
    n, c, h, w = x_nchw.shape
    assert (c, h, w) == (3, 32, 32), "Discriminator expects CIFAR-10 NCHW input"
    dim = params["w1"].shape[0]
    f32, bf16 = jnp.float32, jnp.bfloat16

    # Grid sizing: B_TILE images/step; even step count so both v7x TensorCores
    # get equal work under dimension_semantics=("parallel",).
    steps = -(-n // b_tile)
    if steps > 1 and steps % 2 == 1:
        steps += 1
    n_pad = steps * b_tile

    # Host-side im2col for conv1: 9 stride-2 taps of the padded NHWC image,
    # (N, 256, 27) -> K padded to 32 with zeros, bf16 (lane-aligned operand).
    xpad = jnp.pad(jnp.transpose(x_nchw, (0, 2, 3, 1)).astype(f32),
                   ((0, 0), (1, 1), (1, 1), (0, 0)))              # (N, 34, 34, 3)
    taps = [xpad[:, kh:kh + 32:2, kw:kw + 32:2, :]
            for kh in range(3) for kw in range(3)]
    x1 = jnp.concatenate(taps, axis=-1).reshape(n, 256, 27)
    x1 = jnp.pad(x1, ((0, n_pad - n), (0, 0), (0, 5))).astype(bf16)

    def conv_w(wk):       # (Cout, Cin, 3, 3) -> (9*Cin, Cout), bf16 for the MXU
        cout, cin, _, _ = wk.shape
        return jnp.transpose(wk, (2, 3, 1, 0)).reshape(9 * cin, cout).astype(bf16)

    w1 = jnp.pad(conv_w(params["w1"]), ((0, 5), (0, 0)))   # zero rows: padded K
    b1 = params["b1"].reshape(1, dim).astype(f32)
    w2, b2 = conv_w(params["w2"]), params["b2"].reshape(1, 2 * dim).astype(f32)
    w3, b3 = conv_w(params["w3"]), params["b3"].reshape(1, 4 * dim).astype(f32)
    # PyTorch flattens NCHW as (c, h, w); permute the linear weight once to
    # (h, w, c) so the kernel consumes NHWC conv3 rows directly.
    wl = jnp.transpose(params["wl"].reshape(4 * dim, 4, 4),
                       (1, 2, 0)).reshape(16, 4 * dim).astype(f32)
    bl = params["bl"].reshape(1, 1).astype(f32)

    kernel = functools.partial(_disc_fused_kernel, dim=dim, btile=b_tile)
    grid_spec = pltpu.PrefetchScalarGridSpec(
        num_scalar_prefetch=0,
        grid=(steps,),
        in_specs=[
            pl.BlockSpec((b_tile, 256, 32), lambda b: (b, 0, 0)),
            # Weights / biases: constant block index -> DMA'd once, resident.
            pl.BlockSpec((32, dim), lambda b: (0, 0)),
            pl.BlockSpec((1, dim), lambda b: (0, 0)),
            pl.BlockSpec((9 * dim, 2 * dim), lambda b: (0, 0)),
            pl.BlockSpec((1, 2 * dim), lambda b: (0, 0)),
            pl.BlockSpec((18 * dim, 4 * dim), lambda b: (0, 0)),
            pl.BlockSpec((1, 4 * dim), lambda b: (0, 0)),
            pl.BlockSpec((16, 4 * dim), lambda b: (0, 0)),
            pl.BlockSpec((1, 1), lambda b: (0, 0)),
        ],
        out_specs=pl.BlockSpec((b_tile, 1), lambda b: (b, 0)),
        scratch_shapes=[
            pltpu.VMEM((b_tile, 18, 18, dim), f32),        # conv1 out, padded
            pltpu.VMEM((b_tile, 10, 10, 2 * dim), f32),    # conv2 out, padded
        ],
    )
    out = pl.pallas_call(
        kernel,
        out_shape=jax.ShapeDtypeStruct((n_pad, 1), f32),
        grid_spec=grid_spec,
        compiler_params=pltpu.CompilerParams(
            dimension_semantics=("parallel",),     # batch steps sharded over TCs
            vmem_limit_bytes=48 * 1024 * 1024,     # v7x-safe (64 MiB physical)
        ),
    )(x1, w1, b1, w2, b2, w3, b3, wl, bl)
    return out[:n]
    # TODO(synk): store xp2/xp3 scratch in bf16 (halves scratch traffic and
    # drops the 9x re-cast of gathered taps) once strided sublane loads of
    # packed bf16 are verified on the target Mosaic version; numerics would
    # be unchanged (the reference also rounds each conv's input to bf16).


# ----------------------------------------------------------------------------
# Params (PyTorch-shaped) and a pure-XLA reference mirroring the kernel's
# bf16-operand / f32-accumulate numerics.
# ----------------------------------------------------------------------------
def init_params(key, dim):
    ks = jax.random.split(key, 8)

    def conv_w(k, cout, cin):
        fan_in = cin * 9
        return (jax.random.normal(k, (cout, cin, 3, 3), jnp.float32)
                / jnp.sqrt(fan_in))

    feat = 4 * 4 * 4 * dim
    return {
        "w1": conv_w(ks[0], dim, 3),
        "b1": 0.01 * jax.random.normal(ks[1], (dim,), jnp.float32),
        "w2": conv_w(ks[2], 2 * dim, dim),
        "b2": 0.01 * jax.random.normal(ks[3], (2 * dim,), jnp.float32),
        "w3": conv_w(ks[4], 4 * dim, 2 * dim),
        "b3": 0.01 * jax.random.normal(ks[5], (4 * dim,), jnp.float32),
        "wl": (jax.random.normal(ks[6], (1, feat), jnp.float32)
               / jnp.sqrt(feat)),
        "bl": 0.01 * jax.random.normal(ks[7], (1,), jnp.float32),
    }


def reference_forward(x_nchw, params):
    """XLA reference using PyTorch conv/linear layouts, with the same bf16
    rounding points as the kernel (f32 accumulation)."""
    f32 = jnp.float32
    rd = lambda t: t.astype(jnp.bfloat16).astype(f32)
    act = x_nchw.astype(f32)
    for wk, bk in (("w1", "b1"), ("w2", "b2"), ("w3", "b3")):
        act = jax.lax.conv_general_dilated(
            rd(act), rd(params[wk]), window_strides=(2, 2),
            padding=((1, 1), (1, 1)),
            dimension_numbers=("NCHW", "OIHW", "NCHW"),
            precision=jax.lax.Precision.HIGHEST)
        act = act + params[bk][None, :, None, None]
        act = jnp.where(act >= 0, act, 0.01 * act)
    flat = act.reshape(act.shape[0], -1)        # NCHW flatten == view(-1, ...)
    y = jnp.einsum("nf,f->n", flat, params["wl"][0],
                   precision=jax.lax.Precision.HIGHEST)
    return y[:, None] + params["bl"][None, :]


if __name__ == "__main__":
    DIM = 16          # small DIM; spatial must be 32 (CIFAR-10) so the
    BATCH = 10        # 4*4*4*DIM flatten matches the module. 10 imgs ->
                      # 2 grid steps of B_TILE=8 (batch zero-padded to 16).

    key = jax.random.PRNGKey(0)
    k_x, k_p = jax.random.split(key)
    x = jax.random.normal(k_x, (BATCH, 3, 32, 32), jnp.float32)   # NCHW input
    params = init_params(k_p, DIM)

    fwd = jax.jit(discriminator_forward)
    out = fwd(x, params)
    jax.block_until_ready(out)
    assert out.shape == (BATCH, 1) and out.dtype == jnp.float32

    ref = jax.jit(reference_forward)(x, params)
    np.testing.assert_allclose(np.asarray(out), np.asarray(ref),
                               rtol=5e-3, atol=5e-3)
    print("KERNEL_OK")
</pallas_src>

<mosaic_0001>
module attributes {stable_mosaic.version = 11 : i64} {
  func.func @_disc_fused_kernel(%arg0: i32, %arg1: memref<8x256x32xbf16, #tpu.memory_space<vmem>>, %arg2: memref<32x16xbf16, #tpu.memory_space<vmem>>, %arg3: memref<1x16xf32, #tpu.memory_space<vmem>>, %arg4: memref<144x32xbf16, #tpu.memory_space<vmem>>, %arg5: memref<1x32xf32, #tpu.memory_space<vmem>>, %arg6: memref<288x64xbf16, #tpu.memory_space<vmem>>, %arg7: memref<1x64xf32, #tpu.memory_space<vmem>>, %arg8: memref<16x64xf32, #tpu.memory_space<vmem>>, %arg9: memref<1x1xf32, #tpu.memory_space<vmem>>, %arg10: memref<8x1xf32, #tpu.memory_space<vmem>>, %arg11: memref<8x18x18x16xf32, #tpu.memory_space<vmem>>, %arg12: memref<8x10x10x32xf32, #tpu.memory_space<vmem>>) attributes {dimension_semantics = [#tpu.dimension_semantics<parallel>], iteration_bounds = array<i64: 2>, scalar_prefetch = 0 : i64, scratch_operands = 2 : i64, tpu.core_type = #tpu.core_type<tc>, window_params = [{transform_indices = @transform_0, window_bounds = array<i64: 8, 256, 32>}, {pipeline_mode = #tpu.pipeline_mode<synchronous>, transform_indices = @transform_1, window_bounds = array<i64: 32, 16>}, {pipeline_mode = #tpu.pipeline_mode<synchronous>, transform_indices = @transform_2, window_bounds = array<i64: 1, 16>}, {pipeline_mode = #tpu.pipeline_mode<synchronous>, transform_indices = @transform_3, window_bounds = array<i64: 144, 32>}, {pipeline_mode = #tpu.pipeline_mode<synchronous>, transform_indices = @transform_4, window_bounds = array<i64: 1, 32>}, {pipeline_mode = #tpu.pipeline_mode<synchronous>, transform_indices = @transform_5, window_bounds = array<i64: 288, 64>}, {pipeline_mode = #tpu.pipeline_mode<synchronous>, transform_indices = @transform_6, window_bounds = array<i64: 1, 64>}, {pipeline_mode = #tpu.pipeline_mode<synchronous>, transform_indices = @transform_7, window_bounds = array<i64: 16, 64>}, {pipeline_mode = #tpu.pipeline_mode<synchronous>, transform_indices = @transform_8, window_bounds = array<i64: 1, 1>}, {transform_indices = @transform_9, window_bounds = array<i64: 8, 1>}]} {
    %c0 = arith.constant 0 : index
    %c0_0 = arith.constant 0 : index
    %c0_1 = arith.constant 0 : index
    %0 = vector.load %arg1[%c0, %c0_0, %c0_1] : memref<8x256x32xbf16, #tpu.memory_space<vmem>>, vector<8x256x32xbf16>
    %1 = vector.shape_cast %0 : vector<8x256x32xbf16> to vector<2048x32xbf16>
    %c0_2 = arith.constant 0 : index
    %c0_3 = arith.constant 0 : index
    %2 = vector.load %arg2[%c0_2, %c0_3] : memref<32x16xbf16, #tpu.memory_space<vmem>>, vector<32x16xbf16>
    %cst = arith.constant dense<0.000000e+00> : vector<2048x16xf32>
    %3 = tpu.matmul %1, %2, %cst {dimension_numbers = #tpu.dot_dimension_numbers<[1], [0], [0], [1], [0, 0, 1, 1], [], []>} : vector<2048x32xbf16>, vector<32x16xbf16>, vector<2048x16xf32> -> vector<2048x16xf32>
    %c0_4 = arith.constant 0 : index
    %c0_5 = arith.constant 0 : index
    %4 = vector.load %arg3[%c0_4, %c0_5] : memref<1x16xf32, #tpu.memory_space<vmem>>, vector<1x16xf32>
    %5 = vector.broadcast %4 : vector<1x16xf32> to vector<2048x16xf32>
    %6 = arith.addf %3, %5 : vector<2048x16xf32>
    %cst_6 = arith.constant 0.000000e+00 : f32
    %7 = vector.broadcast %cst_6 : f32 to vector<2048x16xf32>
    %8 = arith.cmpf oge, %6, %7 : vector<2048x16xf32>
    %cst_7 = arith.constant 0.00999999977 : f32
    %9 = vector.broadcast %cst_7 : f32 to vector<2048x16xf32>
    %10 = arith.mulf %9, %6 : vector<2048x16xf32>
    %11 = arith.select %8, %6, %10 : vector<2048x16xi1>, vector<2048x16xf32>
    %cst_8 = arith.constant 0.000000e+00 : f32
    %12 = vector.broadcast %cst_8 : f32 to vector<8x1x18x16xf32>
    %c0_9 = arith.constant 0 : index
    %c0_10 = arith.constant 0 : index
    %c0_11 = arith.constant 0 : index
    %c0_12 = arith.constant 0 : index
    %13 = vector.load %arg11[%c0_9, %c0_10, %c0_11, %c0_12] : memref<8x18x18x16xf32, #tpu.memory_space<vmem>>, vector<8x1x18x16xf32>
    tpu.vector_store %arg11[%c0_9, %c0_10, %c0_11, %c0_12], %12 {strides = array<i32>} : memref<8x18x18x16xf32, #tpu.memory_space<vmem>>, vector<8x1x18x16xf32>,
    %cst_13 = arith.constant 0.000000e+00 : f32
    %14 = vector.broadcast %cst_13 : f32 to vector<8x1x18x16xf32>
    %c0_14 = arith.constant 0 : index
    %c17 = arith.constant 17 : index
    %c0_15 = arith.constant 0 : index
    %c0_16 = arith.constant 0 : index
    %15 = vector.load %arg11[%c0_14, %c17, %c0_15, %c0_16] : memref<8x18x18x16xf32, #tpu.memory_space<vmem>>, vector<8x1x18x16xf32>
    tpu.vector_store %arg11[%c0_14, %c17, %c0_15, %c0_16], %14 {strides = array<i32>} : memref<8x18x18x16xf32, #tpu.memory_space<vmem>>, vector<8x1x18x16xf32>,
    %cst_17 = arith.constant 0.000000e+00 : f32
    %16 = vector.broadcast %cst_17 : f32 to vector<8x18x1x16xf32>
    %c0_18 = arith.constant 0 : index
    %c0_19 = arith.constant 0 : index
    %c0_20 = arith.constant 0 : index
    %c0_21 = arith.constant 0 : index
    %17 = vector.load %arg11[%c0_18, %c0_19, %c0_20, %c0_21] : memref<8x18x18x16xf32, #tpu.memory_space<vmem>>, vector<8x18x1x16xf32>
    tpu.vector_store %arg11[%c0_18, %c0_19, %c0_20, %c0_21], %16 {strides = array<i32>} : memref<8x18x18x16xf32, #tpu.memory_space<vmem>>, vector<8x18x1x16xf32>,
    %cst_22 = arith.constant 0.000000e+00 : f32
    %18 = vector.broadcast %cst_22 : f32 to vector<8x18x1x16xf32>
    %c0_23 = arith.constant 0 : index
    %c0_24 = arith.constant 0 : index
    %c17_25 = arith.constant 17 : index
    %c0_26 = arith.constant 0 : index
    %19 = vector.load %arg11[%c0_23, %c0_24, %c17_25, %c0_26] : memref<8x18x18x16xf32, #tpu.memory_space<vmem>>, vector<8x18x1x16xf32>
    tpu.vector_store %arg11[%c0_23, %c0_24, %c17_25, %c0_26], %18 {strides = array<i32>} : memref<8x18x18x16xf32, #tpu.memory_space<vmem>>, vector<8x18x1x16xf32>,
    %20 = vector.shape_cast %11 : vector<2048x16xf32> to vector<8x16x16x16xf32>
    %c0_27 = arith.constant 0 : index
    %c1 = arith.constant 1 : index
    %c1_28 = arith.constant 1 : index
    %c0_29 = arith.constant 0 : index
    %21 = vector.load %arg11[%c0_27, %c1, %c1_28, %c0_29] : memref<8x18x18x16xf32, #tpu.memory_space<vmem>>, vector<8x16x16x16xf32>
    tpu.vector_store %arg11[%c0_27, %c1, %c1_28, %c0_29], %20 {strides = array<i32>} : memref<8x18x18x16xf32, #tpu.memory_space<vmem>>, vector<8x16x16x16xf32>,
    %c0_30 = arith.constant 0 : index
    %c0_31 = arith.constant 0 : index
    %c0_32 = arith.constant 0 : index
    %c0_33 = arith.constant 0 : index
    %22 = tpu.strided_load %arg11[%c0_30, %c0_31, %c0_32, %c0_33] {strides = array<i32: 1, 2, 2, 1>} : memref<8x18x18x16xf32, #tpu.memory_space<vmem>>, vector<8x8x8x16xf32>
    %23 = vector.shape_cast %22 : vector<8x8x8x16xf32> to vector<512x16xf32>
    %c0_34 = arith.constant 0 : index
    %c0_35 = arith.constant 0 : index
    %c1_36 = arith.constant 1 : index
    %c0_37 = arith.constant 0 : index
    %24 = tpu.strided_load %arg11[%c0_34, %c0_35, %c1_36, %c0_37] {strides = array<i32: 1, 2, 2, 1>} : memref<8x18x18x16xf32, #tpu.memory_space<vmem>>, vector<8x8x8x16xf32>
    %25 = vector.shape_cast %24 : vector<8x8x8x16xf32> to vector<512x16xf32>
    %c0_38 = arith.constant 0 : index
    %c0_39 = arith.constant 0 : index
    %c2 = arith.constant 2 : index
    %c0_40 = arith.constant 0 : index
    %26 = tpu.strided_load %arg11[%c0_38, %c0_39, %c2, %c0_40] {strides = array<i32: 1, 2, 2, 1>} : memref<8x18x18x16xf32, #tpu.memory_space<vmem>>, vector<8x8x8x16xf32>
    %27 = vector.shape_cast %26 : vector<8x8x8x16xf32> to vector<512x16xf32>
    %c0_41 = arith.constant 0 : index
    %c1_42 = arith.constant 1 : index
    %c0_43 = arith.constant 0 : index
    %c0_44 = arith.constant 0 : index
    %28 = tpu.strided_load %arg11[%c0_41, %c1_42, %c0_43, %c0_44] {strides = array<i32: 1, 2, 2, 1>} : memref<8x18x18x16xf32, #tpu.memory_space<vmem>>, vector<8x8x8x16xf32>
    %29 = vector.shape_cast %28 : vector<8x8x8x16xf32> to vector<512x16xf32>
    %c0_45 = arith.constant 0 : index
    %c1_46 = arith.constant 1 : index
    %c1_47 = arith.constant 1 : index
    %c0_48 = arith.constant 0 : index
    %30 = tpu.strided_load %arg11[%c0_45, %c1_46, %c1_47, %c0_48] {strides = array<i32: 1, 2, 2, 1>} : memref<8x18x18x16xf32, #tpu.memory_space<vmem>>, vector<8x8x8x16xf32>
    %31 = vector.shape_cast %30 : vector<8x8x8x16xf32> to vector<512x16xf32>
    %c0_49 = arith.constant 0 : index
    %c1_50 = arith.constant 1 : index
    %c2_51 = arith.constant 2 : index
    %c0_52 = arith.constant 0 : index
    %32 = tpu.strided_load %arg11[%c0_49, %c1_50, %c2_51, %c0_52] {strides = array<i32: 1, 2, 2, 1>} : memref<8x18x18x16xf32, #tpu.memory_space<vmem>>, vector<8x8x8x16xf32>
    %33 = vector.shape_cast %32 : vector<8x8x8x16xf32> to vector<512x16xf32>
    %c0_53 = arith.constant 0 : index
    %c2_54 = arith.constant 2 : index
    %c0_55 = arith.constant 0 : index
    %c0_56 = arith.constant 0 : index
    %34 = tpu.strided_load %arg11[%c0_53, %c2_54, %c0_55, %c0_56] {strides = array<i32: 1, 2, 2, 1>} : memref<8x18x18x16xf32, #tpu.memory_space<vmem>>, vector<8x8x8x16xf32>
    %35 = vector.shape_cast %34 : vector<8x8x8x16xf32> to vector<512x16xf32>
    %c0_57 = arith.constant 0 : index
    %c2_58 = arith.constant 2 : index
    %c1_59 = arith.constant 1 : index
    %c0_60 = arith.constant 0 : index
    %36 = tpu.strided_load %arg11[%c0_57, %c2_58, %c1_59, %c0_60] {strides = array<i32: 1, 2, 2, 1>} : memref<8x18x18x16xf32, #tpu.memory_space<vmem>>, vector<8x8x8x16xf32>
    %37 = vector.shape_cast %36 : vector<8x8x8x16xf32> to vector<512x16xf32>
    %c0_61 = arith.constant 0 : index
    %c2_62 = arith.constant 2 : index
    %c2_63 = arith.constant 2 : index
    %c0_64 = arith.constant 0 : index
    %38 = tpu.strided_load %arg11[%c0_61, %c2_62, %c2_63, %c0_64] {strides = array<i32: 1, 2, 2, 1>} : memref<8x18x18x16xf32, #tpu.memory_space<vmem>>, vector<8x8x8x16xf32>
    %39 = vector.shape_cast %38 : vector<8x8x8x16xf32> to vector<512x16xf32>
    %40 = tpu.concatenate %23, %25, %27, %29, %31, %33, %35, %37, %39 in 1 : vector<512x16xf32>, vector<512x16xf32>, vector<512x16xf32>, vector<512x16xf32>, vector<512x16xf32>, vector<512x16xf32>, vector<512x16xf32>, vector<512x16xf32>, vector<512x16xf32> -> vector<512x144xf32>
    %41 = arith.truncf %40 : vector<512x144xf32> to vector<512x144xbf16>
    %c0_65 = arith.constant 0 : index
    %c0_66 = arith.constant 0 : index
    %42 = vector.load %arg4[%c0_65, %c0_66] : memref<144x32xbf16, #tpu.memory_space<vmem>>, vector<144x32xbf16>
    %cst_67 = arith.constant dense<0.000000e+00> : vector<512x32xf32>
    %43 = tpu.matmul %41, %42, %cst_67 {dimension_numbers = #tpu.dot_dimension_numbers<[1], [0], [0], [1], [0, 0, 1, 1], [], []>} : vector<512x144xbf16>, vector<144x32xbf16>, vector<512x32xf32> -> vector<512x32xf32>
    %c0_68 = arith.constant 0 : index
    %c0_69 = arith.constant 0 : index
    %44 = vector.load %arg5[%c0_68, %c0_69] : memref<1x32xf32, #tpu.memory_space<vmem>>, vector<1x32xf32>
    %45 = vector.broadcast %44 : vector<1x32xf32> to vector<512x32xf32>
    %46 = arith.addf %43, %45 : vector<512x32xf32>
    %cst_70 = arith.constant 0.000000e+00 : f32
    %47 = vector.broadcast %cst_70 : f32 to vector<512x32xf32>
    %48 = arith.cmpf oge, %46, %47 : vector<512x32xf32>
    %cst_71 = arith.constant 0.00999999977 : f32
    %49 = vector.broadcast %cst_71 : f32 to vector<512x32xf32>
    %50 = arith.mulf %49, %46 : vector<512x32xf32>
    %51 = arith.select %48, %46, %50 : vector<512x32xi1>, vector<512x32xf32>
    %cst_72 = arith.constant 0.000000e+00 : f32
    %52 = vector.broadcast %cst_72 : f32 to vector<8x1x10x32xf32>
    %c0_73 = arith.constant 0 : index
    %c0_74 = arith.constant 0 : index
    %c0_75 = arith.constant 0 : index
    %c0_76 = arith.constant 0 : index
    %53 = vector.load %arg12[%c0_73, %c0_74, %c0_75, %c0_76] : memref<8x10x10x32xf32, #tpu.memory_space<vmem>>, vector<8x1x10x32xf32>
    tpu.vector_store %arg12[%c0_73, %c0_74, %c0_75, %c0_76], %52 {strides = array<i32>} : memref<8x10x10x32xf32, #tpu.memory_space<vmem>>, vector<8x1x10x32xf32>,
    %cst_77 = arith.constant 0.000000e+00 : f32
    %54 = vector.broadcast %cst_77 : f32 to vector<8x1x10x32xf32>
    %c0_78 = arith.constant 0 : index
    %c9 = arith.constant 9 : index
    %c0_79 = arith.constant 0 : index
    %c0_80 = arith.constant 0 : index
    %55 = vector.load %arg12[%c0_78, %c9, %c0_79, %c0_80] : memref<8x10x10x32xf32, #tpu.memory_space<vmem>>, vector<8x1x10x32xf32>
    tpu.vector_store %arg12[%c0_78, %c9, %c0_79, %c0_80], %54 {strides = array<i32>} : memref<8x10x10x32xf32, #tpu.memory_space<vmem>>, vector<8x1x10x32xf32>,
    %cst_81 = arith.constant 0.000000e+00 : f32
    %56 = vector.broadcast %cst_81 : f32 to vector<8x10x1x32xf32>
    %c0_82 = arith.constant 0 : index
    %c0_83 = arith.constant 0 : index
    %c0_84 = arith.constant 0 : index
    %c0_85 = arith.constant 0 : index
    %57 = vector.load %arg12[%c0_82, %c0_83, %c0_84, %c0_85] : memref<8x10x10x32xf32, #tpu.memory_space<vmem>>, vector<8x10x1x32xf32>
    tpu.vector_store %arg12[%c0_82, %c0_83, %c0_84, %c0_85], %56 {strides = array<i32>} : memref<8x10x10x32xf32, #tpu.memory_space<vmem>>, vector<8x10x1x32xf32>,
    %cst_86 = arith.constant 0.000000e+00 : f32
    %58 = vector.broadcast %cst_86 : f32 to vector<8x10x1x32xf32>
    %c0_87 = arith.constant 0 : index
    %c0_88 = arith.constant 0 : index
    %c9_89 = arith.constant 9 : index
    %c0_90 = arith.constant 0 : index
    %59 = vector.load %arg12[%c0_87, %c0_88, %c9_89, %c0_90] : memref<8x10x10x32xf32, #tpu.memory_space<vmem>>, vector<8x10x1x32xf32>
    tpu.vector_store %arg12[%c0_87, %c0_88, %c9_89, %c0_90], %58 {strides = array<i32>} : memref<8x10x10x32xf32, #tpu.memory_space<vmem>>, vector<8x10x1x32xf32>,
    %60 = vector.shape_cast %51 : vector<512x32xf32> to vector<8x8x8x32xf32>
    %c0_91 = arith.constant 0 : index
    %c1_92 = arith.constant 1 : index
    %c1_93 = arith.constant 1 : index
    %c0_94 = arith.constant 0 : index
    %61 = vector.load %arg12[%c0_91, %c1_92, %c1_93, %c0_94] : memref<8x10x10x32xf32, #tpu.memory_space<vmem>>, vector<8x8x8x32xf32>
    tpu.vector_store %arg12[%c0_91, %c1_92, %c1_93, %c0_94], %60 {strides = array<i32>} : memref<8x10x10x32xf32, #tpu.memory_space<vmem>>, vector<8x8x8x32xf32>,
    %c0_95 = arith.constant 0 : index
    %c0_96 = arith.constant 0 : index
    %c0_97 = arith.constant 0 : index
    %c0_98 = arith.constant 0 : index
    %62 = tpu.strided_load %arg12[%c0_95, %c0_96, %c0_97, %c0_98] {strides = array<i32: 1, 2, 2, 1>} : memref<8x10x10x32xf32, #tpu.memory_space<vmem>>, vector<8x4x4x32xf32>
    %63 = vector.shape_cast %62 : vector<8x4x4x32xf32> to vector<128x32xf32>
    %c0_99 = arith.constant 0 : index
    %c0_100 = arith.constant 0 : index
    %c1_101 = arith.constant 1 : index
    %c0_102 = arith.constant 0 : index
    %64 = tpu.strided_load %arg12[%c0_99, %c0_100, %c1_101, %c0_102] {strides = array<i32: 1, 2, 2, 1>} : memref<8x10x10x32xf32, #tpu.memory_space<vmem>>, vector<8x4x4x32xf32>
    %65 = vector.shape_cast %64 : vector<8x4x4x32xf32> to vector<128x32xf32>
    %c0_103 = arith.constant 0 : index
    %c0_104 = arith.constant 0 : index
    %c2_105 = arith.constant 2 : index
    %c0_106 = arith.constant 0 : index
    %66 = tpu.strided_load %arg12[%c0_103, %c0_104, %c2_105, %c0_106] {strides = array<i32: 1, 2, 2, 1>} : memref<8x10x10x32xf32, #tpu.memory_space<vmem>>, vector<8x4x4x32xf32>
    %67 = vector.shape_cast %66 : vector<8x4x4x32xf32> to vector<128x32xf32>
    %c0_107 = arith.constant 0 : index
    %c1_108 = arith.constant 1 : index
    %c0_109 = arith.constant 0 : index
    %c0_110 = arith.constant 0 : index
    %68 = tpu.strided_load %arg12[%c0_107, %c1_108, %c0_109, %c0_110] {strides = array<i32: 1, 2, 2, 1>} : memref<8x10x10x32xf32, #tpu.memory_space<vmem>>, vector<8x4x4x32xf32>
    %69 = vector.shape_cast %68 : vector<8x4x4x32xf32> to vector<128x32xf32>
    %c0_111 = arith.constant 0 : index
    %c1_112 = arith.constant 1 : index
    %c1_113 = arith.constant 1 : index
    %c0_114 = arith.constant 0 : index
    %70 = tpu.strided_load %arg12[%c0_111, %c1_112, %c1_113, %c0_114] {strides = array<i32: 1, 2, 2, 1>} : memref<8x10x10x32xf32, #tpu.memory_space<vmem>>, vector<8x4x4x32xf32>
    %71 = vector.shape_cast %70 : vector<8x4x4x32xf32> to vector<128x32xf32>
    %c0_115 = arith.constant 0 : index
    %c1_116 = arith.constant 1 : index
    %c2_117 = arith.constant 2 : index
    %c0_118 = arith.constant 0 : index
    %72 = tpu.strided_load %arg12[%c0_115, %c1_116, %c2_117, %c0_118] {strides = array<i32: 1, 2, 2, 1>} : memref<8x10x10x32xf32, #tpu.memory_space<vmem>>, vector<8x4x4x32xf32>
    %73 = vector.shape_cast %72 : vector<8x4x4x32xf32> to vector<128x32xf32>
    %c0_119 = arith.constant 0 : index
    %c2_120 = arith.constant 2 : index
    %c0_121 = arith.constant 0 : index
    %c0_122 = arith.constant 0 : index
    %74 = tpu.strided_load %arg12[%c0_119, %c2_120, %c0_121, %c0_122] {strides = array<i32: 1, 2, 2, 1>} : memref<8x10x10x32xf32, #tpu.memory_space<vmem>>, vector<8x4x4x32xf32>
    %75 = vector.shape_cast %74 : vector<8x4x4x32xf32> to vector<128x32xf32>
    %c0_123 = arith.constant 0 : index
    %c2_124 = arith.constant 2 : index
    %c1_125 = arith.constant 1 : index
    %c0_126 = arith.constant 0 : index
    %76 = tpu.strided_load %arg12[%c0_123, %c2_124, %c1_125, %c0_126] {strides = array<i32: 1, 2, 2, 1>} : memref<8x10x10x32xf32, #tpu.memory_space<vmem>>, vector<8x4x4x32xf32>
    %77 = vector.shape_cast %76 : vector<8x4x4x32xf32> to vector<128x32xf32>
    %c0_127 = arith.constant 0 : index
    %c2_128 = arith.constant 2 : index
    %c2_129 = arith.constant 2 : index
    %c0_130 = arith.constant 0 : index
    %78 = tpu.strided_load %arg12[%c0_127, %c2_128, %c2_129, %c0_130] {strides = array<i32: 1, 2, 2, 1>} : memref<8x10x10x32xf32, #tpu.memory_space<vmem>>, vector<8x4x4x32xf32>
    %79 = vector.shape_cast %78 : vector<8x4x4x32xf32> to vector<128x32xf32>
    %80 = tpu.concatenate %63, %65, %67, %69, %71, %73, %75, %77, %79 in 1 : vector<128x32xf32>, vector<128x32xf32>, vector<128x32xf32>, vector<128x32xf32>, vector<128x32xf32>, vector<128x32xf32>, vector<128x32xf32>, vector<128x32xf32>, vector<128x32xf32> -> vector<128x288xf32>
    %81 = arith.truncf %80 : vector<128x288xf32> to vector<128x288xbf16>
    %c0_131 = arith.constant 0 : index
    %c0_132 = arith.constant 0 : index
    %82 = vector.load %arg6[%c0_131, %c0_132] : memref<288x64xbf16, #tpu.memory_space<vmem>>, vector<288x64xbf16>
    %cst_133 = arith.constant dense<0.000000e+00> : vector<128x64xf32>
    %83 = tpu.matmul %81, %82, %cst_133 {dimension_numbers = #tpu.dot_dimension_numbers<[1], [0], [0], [1], [0, 0, 1, 1], [], []>} : vector<128x288xbf16>, vector<288x64xbf16>, vector<128x64xf32> -> vector<128x64xf32>
    %c0_134 = arith.constant 0 : index
    %c0_135 = arith.constant 0 : index
    %84 = vector.load %arg7[%c0_134, %c0_135] : memref<1x64xf32, #tpu.memory_space<vmem>>, vector<1x64xf32>
    %85 = vector.broadcast %84 : vector<1x64xf32> to vector<128x64xf32>
    %86 = arith.addf %83, %85 : vector<128x64xf32>
    %cst_136 = arith.constant 0.000000e+00 : f32
    %87 = vector.broadcast %cst_136 : f32 to vector<128x64xf32>
    %88 = arith.cmpf oge, %86, %87 : vector<128x64xf32>
    %cst_137 = arith.constant 0.00999999977 : f32
    %89 = vector.broadcast %cst_137 : f32 to vector<128x64xf32>
    %90 = arith.mulf %89, %86 : vector<128x64xf32>
    %91 = arith.select %88, %86, %90 : vector<128x64xi1>, vector<128x64xf32>
    %92 = vector.shape_cast %91 : vector<128x64xf32> to vector<8x16x64xf32>
    %c0_138 = arith.constant 0 : index
    %c0_139 = arith.constant 0 : index
    %93 = vector.load %arg8[%c0_138, %c0_139] : memref<16x64xf32, #tpu.memory_space<vmem>>, vector<16x64xf32>
    %94 = vector.shape_cast %93 : vector<16x64xf32> to vector<1x16x64xf32>
    %95 = vector.broadcast %94 : vector<1x16x64xf32> to vector<8x16x64xf32>
    %96 = arith.mulf %92, %95 : vector<8x16x64xf32>
    %cst_140 = arith.constant dense<0.000000e+00> : vector<8x16xf32>
    %97 = vector.multi_reduction <add>, %96, %cst_140 [2] : vector<8x16x64xf32> to vector<8x16xf32>
    %cst_141 = arith.constant dense<0.000000e+00> : vector<8xf32>
    %98 = vector.multi_reduction <add>, %97, %cst_141 [1] : vector<8x16xf32> to vector<8xf32>
    %99 = vector.shape_cast %98 : vector<8xf32> to vector<8x1xf32>
    %c0_142 = arith.constant 0 : index
    %c0_143 = arith.constant 0 : index
    %100 = vector.load %arg9[%c0_142, %c0_143] : memref<1x1xf32, #tpu.memory_space<vmem>>, vector<1x1xf32>
    %101 = vector.broadcast %100 : vector<1x1xf32> to vector<8x1xf32>
    %102 = arith.addf %99, %101 : vector<8x1xf32>
    %c0_144 = arith.constant 0 : index
    %c0_145 = arith.constant 0 : index
    %103 = vector.load %arg10[%c0_144, %c0_145] : memref<8x1xf32, #tpu.memory_space<vmem>>, vector<8x1xf32>
    tpu.vector_store %arg10[%c0_144, %c0_145], %102 {strides = array<i32>} : memref<8x1xf32, #tpu.memory_space<vmem>>, vector<8x1xf32>,
    return
  }
  func.func @transform_0(%arg0: i32) -> (i32, i32, i32) {
    %c0_i32 = arith.constant 0 : i32
    %c0_i32_0 = arith.constant 0 : i32
    %c0_i32_1 = arith.constant 0 : i32
    return %arg0, %c0_i32, %c0_i32_0 : i32, i32, i32
  }
  func.func @transform_1(%arg0: i32) -> (i32, i32) {
    %c0_i32 = arith.constant 0 : i32
    %c0_i32_0 = arith.constant 0 : i32
    %c0_i32_1 = arith.constant 0 : i32
    return %c0_i32, %c0_i32_0 : i32, i32
  }
  func.func @transform_2(%arg0: i32) -> (i32, i32) {
    %c0_i32 = arith.constant 0 : i32
    %c0_i32_0 = arith.constant 0 : i32
    %c0_i32_1 = arith.constant 0 : i32
    return %c0_i32, %c0_i32_0 : i32, i32
  }
  func.func @transform_3(%arg0: i32) -> (i32, i32) {
    %c0_i32 = arith.constant 0 : i32
    %c0_i32_0 = arith.constant 0 : i32
    %c0_i32_1 = arith.constant 0 : i32
    return %c0_i32, %c0_i32_0 : i32, i32
  }
  func.func @transform_4(%arg0: i32) -> (i32, i32) {
    %c0_i32 = arith.constant 0 : i32
    %c0_i32_0 = arith.constant 0 : i32
    %c0_i32_1 = arith.constant 0 : i32
    return %c0_i32, %c0_i32_0 : i32, i32
  }
  func.func @transform_5(%arg0: i32) -> (i32, i32) {
    %c0_i32 = arith.constant 0 : i32
    %c0_i32_0 = arith.constant 0 : i32
    %c0_i32_1 = arith.constant 0 : i32
    return %c0_i32, %c0_i32_0 : i32, i32
  }
  func.func @transform_6(%arg0: i32) -> (i32, i32) {
    %c0_i32 = arith.constant 0 : i32
    %c0_i32_0 = arith.constant 0 : i32
    %c0_i32_1 = arith.constant 0 : i32
    return %c0_i32, %c0_i32_0 : i32, i32
  }
  func.func @transform_7(%arg0: i32) -> (i32, i32) {
    %c0_i32 = arith.constant 0 : i32
    %c0_i32_0 = arith.constant 0 : i32
    %c0_i32_1 = arith.constant 0 : i32
    return %c0_i32, %c0_i32_0 : i32, i32
  }
  func.func @transform_8(%arg0: i32) -> (i32, i32) {
    %c0_i32 = arith.constant 0 : i32
    %c0_i32_0 = arith.constant 0 : i32
    %c0_i32_1 = arith.constant 0 : i32
    return %c0_i32, %c0_i32_0 : i32, i32
  }
  func.func @transform_9(%arg0: i32) -> (i32, i32) {
    %c0_i32 = arith.constant 0 : i32
    %c0_i32_0 = arith.constant 0 : i32
    return %arg0, %c0_i32 : i32, i32
  }
}

</mosaic_0001>

<bundles_post_ra>
// kernel: discriminator_forward.1
= control target key start
LH: loop header
LB: loop body
LE: loop exit
PB: predicated region body
PF: predicated region fallthrough
CT: control target
= control target key end

     0   :  { %s13446_s11 = smov 0   ;;  %s16980_s0 = inlined_call_operand.vmem [shape: bf16[16,256,32], index: 0, kind: input, shape index: {}]   ;;  %s16981_s1 = inlined_call_operand.vmem [shape: bf16[32,16], index: 1, kind: input, shape index: {}]   ;;  %s16982_s2 = inlined_call_operand.vmem [shape: f32[1,16], index: 2, kind: input, shape index: {}]   ;;  %s16983_s3 = inlined_call_operand.vmem [shape: bf16[144,32], index: 3, kind: input, shape index: {}]   ;;  %s16984_s4 = inlined_call_operand.vmem [shape: f32[1,32], index: 4, kind: input, shape index: {}]   ;;  %s16985_s5 = inlined_call_operand.vmem [shape: bf16[288,64], index: 5, kind: input, shape index: {}]   ;;  %s16986_s6 = inlined_call_operand.vmem [shape: f32[1,64], index: 6, kind: input, shape index: {}]   ;;  %s16987_s7 = inlined_call_operand.vmem [shape: f32[16,64], index: 7, kind: input, shape index: {}]   ;;  %s16988_s8 = inlined_call_operand.<no memory space> [shape: f32[1,1], index: 8, kind: input, shape index: {}]   ;;  %s16989_s9 = inlined_call_operand.vmem [shape: f32[16,1], index: 9, kind: output, shape index: {}]  }
   0x1   :  { %v14_v0 = vstv %s16988_s8 }
   0x2   :  { %15 = vst [vmem:[#allocation4] sm:$0x1] %v14_v0 }
   0x3 LB: > { %s13452_s12 = sadd.s32 4294967295, %s13383_s11   ;;  %p11019_p0 = scmp.ge.s32.totalorder %s13383_s11, 1  ;;  %s13383_s11 = sphi %s13446_s11, %s21_s11  }
   0x4   : > { %p291_p1 = scmp.lt.s32.totalorder %s13383_s11, 3 }
   0x6   : > { %p292_p2 = pnand %p11019_p0, %p291_p1 }
   0x8   : > { %295 = sbr.rel (%p292_p2) target bundleno = 2643 (0xa53), region = 56 }
   0xd   : > { %v11952_v1 = vld [vmem:[%s16981_s1 + $0x8] sm:$0xff]  ;;  %s11020_s8 = sshll.u32 %s13452_s12, 3  ;;  %v11951_v2 = vld [vmem:[%s16981_s1] sm:$0xff]  ;;  %vm1255_vm0 = vcmask 261120   ;;  %vm3057_vm1 = vcmask 130048   ;;  %v13385_v35 = vmov 0.0  }
   0xe   : > { %p328_p3 = scmp.lt.s32.totalorder %s11020_s8, 15  ;;  %1646 = vmatpush.bf16.msra.mxu0 %v11952_v1  ;;  %11980 = vmatpush.bf16.msra.mxu1 %v11952_v1  ;;  %3077 = vst.msk [vmem:[#allocation2 + $0xa20] sm:$0xff] %vm3057_vm1, %v13385_v35  ;;  %vm3108_vm2 = vcmask 122880   ;;  %v13561_v36 = vld [vmem:[%s16982_s2] ss:$0 sm:$0xff]  ;;  %s13386_s23 = smov 16  }
   0xf   : > { %11981 = vmatpush.bf16.msra.mxu2 %v11952_v1  ;;  %11982 = vmatpush.bf16.msra.mxu3 %v11952_v1  ;;  %3078 = vst.msk [vmem:[#allocation2 + $0xa28] sm:$0xff] %vm3057_vm1, %v13385_v35  ;;  %s13387_s24 = smov 32   ;;  %s13388_s25 = smov 80  }
  0x10   : > { %s17018_s8 = smov (!%p328_p3, %s11020_s8), 15  ;;  %3217 = vst.msk [vmem:[#allocation2 + $0xa20] sm:$0x1] %vm3108_vm2, %v13385_v35  ;;  %s13389_s26 = smov 48  }
  0x11   : > { %s11822_s17 = sshll.u32 %s17018_s8, 7  ;;  %3058 = vst.msk [vmem:[#allocation2] sm:$0xff] %vm3057_vm1, %v13385_v35  ;;  %s13390_s29 = smov 64  }
  0x12   : > { %1647 = vmatpush.bf16.msra.mxu0 %v11951_v2  ;;  %11983 = vmatpush.bf16.msra.mxu1 %v11951_v2  ;;  %s13466_s20 = scalar_lea.vmem %s16980_s0, %s11822_s17  ;;  %3059 = vst.msk [vmem:[#allocation2 + $0x8] sm:$0xff] %vm3057_vm1, %v13385_v35  ;;  %s13391_s30 = smov 112  }
  0x13   : > { %11984 = vmatpush.bf16.msra.mxu2 %v11951_v2  ;;  %11985 = vmatpush.bf16.msra.mxu3 %v11951_v2  ;;  %v11823_v3 = vld [vmem:[%s13466_s20] sm:$0xff]  ;;  %v11878_v4 = vld [vmem:[%s13466_s20 + $0x1b8] sm:$0xff]  ;;  %v11920_v6 = vld [vmem:[%s13466_s20 + $0x308] sm:$0xff]  ;;  %3062 = vst.msk [vmem:[#allocation2 + $0x1b0] sm:$0xff] %vm3057_vm1, %v13385_v35  ;;  %s13392_s10 = smov 96   ;;  %p334_p4 = scmp.lt.s32.totalorder %s13452_s12, 1 }
  0x14   : > { %v11898_v5 = vld [vmem:[%s13466_s20 + $0x258] sm:$0xff]  ;;  %v11824_v7 = vld [vmem:[%s13466_s20 + $0x8] sm:$0xff]  ;;  %v11879_v8 = vld [vmem:[%s13466_s20 + $0x1c0] sm:$0xff]  ;;  %3063 = vst.msk [vmem:[#allocation2 + $0x1b8] sm:$0xff] %vm3057_vm1, %v13385_v35 }
  0x15   : > { %11544 = vmatmul.msk.bf16.vlgmr.msra.gmra.mxu0 %vm1255_vm0, %v11823_v3  ;;  %11599 = vmatmul.msk.bf16.vlgmr.msra.gmra.mxu1 %vm1255_vm0, %v11878_v4  ;;  %v11899_v9 = vld [vmem:[%s13466_s20 + $0x260] sm:$0xff]  ;;  %v11921_v10 = vld [vmem:[%s13466_s20 + $0x310] sm:$0xff]  ;;  %v11880_v12 = vld [vmem:[%s13466_s20 + $0x1c8] sm:$0xff]  ;;  %3065 = vst.msk [vmem:[#allocation2 + $0x360] sm:$0xff] %vm3057_vm1, %v13385_v35  ;;  %s17020_s12 = smov (!%p334_p4, %s13452_s12), 1 }
  0x16   : > { %11619 = vmatmul.msk.bf16.vlgmr.msra.gmra.mxu2 %vm1255_vm0, %v11898_v5  ;;  %11641 = vmatmul.msk.bf16.vlgmr.msra.gmra.mxu3 %vm1255_vm0, %v11920_v6  ;;  %v11825_v11 = vld [vmem:[%s13466_s20 + $0x10] sm:$0xff]  ;;  %v11900_v13 = vld [vmem:[%s13466_s20 + $0x268] sm:$0xff]  ;;  %v11922_v14 = vld [vmem:[%s13466_s20 + $0x318] sm:$0xff]  ;;  %3066 = vst.msk [vmem:[#allocation2 + $0x368] sm:$0xff] %vm3057_vm1, %v13385_v35 }
  0x17   : > { %v11826_v15 = vld [vmem:[%s13466_s20 + $0x18] sm:$0xff]  ;;  %v11881_v16 = vld [vmem:[%s13466_s20 + $0x1d0] sm:$0xff]  ;;  %v11923_v18 = vld [vmem:[%s13466_s20 + $0x320] sm:$0xff]  ;;  %3068 = vst.msk [vmem:[#allocation2 + $0x510] sm:$0xff] %vm3057_vm1, %v13385_v35 }
  0x18   : > { %v11901_v17 = vld [vmem:[%s13466_s20 + $0x270] sm:$0xff]  ;;  %v11827_v19 = vld [vmem:[%s13466_s20 + $0x20] sm:$0xff]  ;;  %v11882_v20 = vld [vmem:[%s13466_s20 + $0x1d8] sm:$0xff]  ;;  %3069 = vst.msk [vmem:[#allocation2 + $0x518] sm:$0xff] %vm3057_vm1, %v13385_v35 }
  0x19   : > { %v11902_v21 = vld [vmem:[%s13466_s20 + $0x278] sm:$0xff]  ;;  %v11924_v22 = vld [vmem:[%s13466_s20 + $0x328] sm:$0xff]  ;;  %v11883_v24 = vld [vmem:[%s13466_s20 + $0x1e0] sm:$0xff]  ;;  %3071 = vst.msk [vmem:[#allocation2 + $0x6c0] sm:$0xff] %vm3057_vm1, %v13385_v35 }
  0x1a   : > { %v11828_v23 = vld [vmem:[%s13466_s20 + $0x28] sm:$0xff]  ;;  %v11903_v25 = vld [vmem:[%s13466_s20 + $0x280] sm:$0xff]  ;;  %v11925_v26 = vld [vmem:[%s13466_s20 + $0x330] sm:$0xff]  ;;  %3072 = vst.msk [vmem:[#allocation2 + $0x6c8] sm:$0xff] %vm3057_vm1, %v13385_v35 }
  0x1b   : > { %v11829_v27 = vld [vmem:[%s13466_s20 + $0x30] sm:$0xff]  ;;  %v11884_v28 = vld [vmem:[%s13466_s20 + $0x1e8] sm:$0xff]  ;;  %v11926_v30 = vld [vmem:[%s13466_s20 + $0x338] sm:$0xff]  ;;  %3074 = vst.msk [vmem:[#allocation2 + $0x870] sm:$0xff] %vm3057_vm1, %v13385_v35 }
  0x1c   : > { %v11904_v29 = vld [vmem:[%s13466_s20 + $0x288] sm:$0xff]  ;;  %v11830_v31 = vld [vmem:[%s13466_s20 + $0x38] sm:$0xff]  ;;  %v11885_v32 = vld [vmem:[%s13466_s20 + $0x1f0] sm:$0xff]  ;;  %3075 = vst.msk [vmem:[#allocation2 + $0x878] sm:$0xff] %vm3057_vm1, %v13385_v35 }
  0x1d   : > { %v11905_v33 = vld [vmem:[%s13466_s20 + $0x290] sm:$0xff]  ;;  %v11927_v34 = vld [vmem:[%s13466_s20 + $0x340] sm:$0xff]  ;;  %v11886_v38 = vld [vmem:[%s13466_s20 + $0x1f8] sm:$0xff]  ;;  %3080 = vst.msk [vmem:[#allocation2 + $0xbd0] sm:$0xff] %vm3057_vm1, %v13385_v35 }
  0x1e   : > { %v11831_v37 = vld [vmem:[%s13466_s20 + $0x40] sm:$0xff]  ;;  %v11906_v41 = vld [vmem:[%s13466_s20 + $0x298] sm:$0xff]  ;;  %v11928_v42 = vld [vmem:[%s13466_s20 + $0x348] sm:$0xff]  ;;  %3081 = vst.msk [vmem:[#allocation2 + $0xbd8] sm:$0xff] %vm3057_vm1, %v13385_v35 }
  0x1f   : > { %v11832_v3 = vld [vmem:[%s13466_s20 + $0x48] sm:$0xff]  ;;  %v11887_v4 = vld [vmem:[%s13466_s20 + $0x200] sm:$0xff]  ;;  %3110 = vst.msk [vmem:[#allocation2 + $0x18] sm:$0x1] %vm3108_vm2, %v13385_v35 }
  0x20   : > { %3111 = vst.msk [vmem:[#allocation2 + $0x30] sm:$0x1] %vm3108_vm2, %v13385_v35 }
  0x21   : > { %3112 = vst.msk [vmem:[#allocation2 + $0x48] sm:$0x1] %vm3108_vm2, %v13385_v35 }
  0x22   : > { %3113 = vst.msk [vmem:[#allocation2 + $0x60] sm:$0x1] %vm3108_vm2, %v13385_v35 }
  0x23   : > { %3114 = vst.msk [vmem:[#allocation2 + $0x78] sm:$0x1] %vm3108_vm2, %v13385_v35 }
  0x24   : > { %3115 = vst.msk [vmem:[#allocation2 + $0x90] sm:$0x1] %vm3108_vm2, %v13385_v35 }
  0x25   : > { %11545 = vmatmul.msk.bf16.gmra.mxu0 %vm1255_vm0, %v11824_v7  ;;  %11600 = vmatmul.msk.bf16.gmra.mxu1 %vm1255_vm0, %v11879_v8  ;;  %3116 = vst.msk [vmem:[#allocation2 + $0xa8] sm:$0x1] %vm3108_vm2, %v13385_v35 }
  0x26   : > { %11620 = vmatmul.msk.bf16.gmra.mxu2 %vm1255_vm0, %v11899_v9  ;;  %11642 = vmatmul.msk.bf16.gmra.mxu3 %vm1255_vm0, %v11921_v10  ;;  %v11907_v9 = vld [vmem:[%s13466_s20 + $0x2a0] sm:$0xff]  ;;  %v11929_v10 = vld [vmem:[%s13466_s20 + $0x350] sm:$0xff]  ;;  %3117 = vst.msk [vmem:[#allocation2 + $0xc0] sm:$0x1] %vm3108_vm2, %v13385_v35 }
  0x27   : > { %3118 = vst.msk [vmem:[#allocation2 + $0xd8] sm:$0x1] %vm3108_vm2, %v13385_v35 }
  0x28   : > { %3119 = vst.msk [vmem:[#allocation2 + $0xf0] sm:$0x1] %vm3108_vm2, %v13385_v35 }
  0x29   : > { %3120 = vst.msk [vmem:[#allocation2 + $0x108] sm:$0x1] %vm3108_vm2, %v13385_v35 }
  0x2a   : > { %3121 = vst.msk [vmem:[#allocation2 + $0x120] sm:$0x1] %vm3108_vm2, %v13385_v35 }
  0x2b   : > { %3122 = vst.msk [vmem:[#allocation2 + $0x138] sm:$0x1] %vm3108_vm2, %v13385_v35 }
  0x2c   : > { %3123 = vst.msk [vmem:[#allocation2 + $0x150] sm:$0x1] %vm3108_vm2, %v13385_v35 }
  0x2d   : > { %3124 = vst.msk [vmem:[#allocation2 + $0x168] sm:$0x1] %vm3108_vm2, %v13385_v35 }
  0x2e   : > { %3125 = vst.msk [vmem:[#allocation2 + $0x180] sm:$0x1] %vm3108_vm2, %v13385_v35 }
  0x2f   : > { %3128 = vst.msk [vmem:[#allocation2 + $0x1c8] sm:$0x1] %vm3108_vm2, %v13385_v35 }
  0x30   : > { %3129 = vst.msk [vmem:[#allocation2 + $0x1e0] sm:$0x1] %vm3108_vm2, %v13385_v35 }
  0x31   : > { %3130 = vst.msk [vmem:[#allocation2 + $0x1f8] sm:$0x1] %vm3108_vm2, %v13385_v35 }
  0x32   : > { %3131 = vst.msk [vmem:[#allocation2 + $0x210] sm:$0x1] %vm3108_vm2, %v13385_v35 }
  0x33   : > { %3132 = vst.msk [vmem:[#allocation2 + $0x228] sm:$0x1] %vm3108_vm2, %v13385_v35 }
  0x34   : > { %3133 = vst.msk [vmem:[#allocation2 + $0x240] sm:$0x1] %vm3108_vm2, %v13385_v35 }
  0x35   : > { %11546 = vmatmul.msk.bf16.gmra.mxu0 %vm1255_vm0, %v11825_v11  ;;  %11601 = vmatmul.msk.bf16.gmra.mxu1 %vm1255_vm0, %v11880_v12  ;;  %3134 = vst.msk [vmem:[#allocation2 + $0x258] sm:$0x1] %vm3108_vm2, %v13385_v35 }
  0x36   : > { %11621 = vmatmul.msk.bf16.gmra.mxu2 %vm1255_vm0, %v11900_v13  ;;  %11643 = vmatmul.msk.bf16.gmra.mxu3 %vm1255_vm0, %v11922_v14  ;;  %3135 = vst.msk [vmem:[#allocation2 + $0x270] sm:$0x1] %vm3108_vm2, %v13385_v35 }
  0x37   : > { %3136 = vst.msk [vmem:[#allocation2 + $0x288] sm:$0x1] %vm3108_vm2, %v13385_v35 }
  0x38   : > { %3137 = vst.msk [vmem:[#allocation2 + $0x2a0] sm:$0x1] %vm3108_vm2, %v13385_v35 }
  0x39   : > { %3138 = vst.msk [vmem:[#allocation2 + $0x2b8] sm:$0x1] %vm3108_vm2, %v13385_v35 }
  0x3a   : > { %3139 = vst.msk [vmem:[#allocation2 + $0x2d0] sm:$0x1] %vm3108_vm2, %v13385_v35 }
  0x3b   : > { %3140 = vst.msk [vmem:[#allocation2 + $0x2e8] sm:$0x1] %vm3108_vm2, %v13385_v35 }
  0x3c   : > { %3141 = vst.msk [vmem:[#allocation2 + $0x300] sm:$0x1] %vm3108_vm2, %v13385_v35 }
  0x3d   : > { %3142 = vst.msk [vmem:[#allocation2 + $0x318] sm:$0x1] %vm3108_vm2, %v13385_v35 }
  0x3e   : > { %3143 = vst.msk [vmem:[#allocation2 + $0x330] sm:$0x1] %vm3108_vm2, %v13385_v35 }
  0x3f   : > { %3146 = vst.msk [vmem:[#allocation2 + $0x378] sm:$0x1] %vm3108_vm2, %v13385_v35 }
  0x40   : > { %3147 = vst.msk [vmem:[#allocation2 + $0x390] sm:$0x1] %vm3108_vm2, %v13385_v35 }
  0x41   : > { %3148 = vst.msk [vmem:[#allocation2 + $0x3a8] sm:$0x1] %vm3108_vm2, %v13385_v35 }
  0x42   : > { %3149 = vst.msk [vmem:[#allocation2 + $0x3c0] sm:$0x1] %vm3108_vm2, %v13385_v35 }
  0x43   : > { %3150 = vst.msk [vmem:[#allocation2 + $0x3d8] sm:$0x1] %vm3108_vm2, %v13385_v35 }
  0x44   : > { %3151 = vst.msk [vmem:[#allocation2 + $0x3f0] sm:$0x1] %vm3108_vm2, %v13385_v35 }
  0x45   : > { %11547 = vmatmul.msk.bf16.gmra.mxu0 %vm1255_vm0, %v11826_v15  ;;  %11602 = vmatmul.msk.bf16.gmra.mxu1 %vm1255_vm0, %v11881_v16  ;;  %3152 = vst.msk [vmem:[#allocation2 + $0x408] sm:$0x1] %vm3108_vm2, %v13385_v35 }
  0x46   : > { %11622 = vmatmul.msk.bf16.gmra.mxu2 %vm1255_vm0, %v11901_v17  ;;  %11644 = vmatmul.msk.bf16.gmra.mxu3 %vm1255_vm0, %v11923_v18  ;;  %3153 = vst.msk [vmem:[#allocation2 + $0x420] sm:$0x1] %vm3108_vm2, %v13385_v35 }
  0x47   : > { %3154 = vst.msk [vmem:[#allocation2 + $0x438] sm:$0x1] %vm3108_vm2, %v13385_v35 }
  0x48   : > { %3155 = vst.msk [vmem:[#allocation2 + $0x450] sm:$0x1] %vm3108_vm2, %v13385_v35 }
  0x49   : > { %3156 = vst.msk [vmem:[#allocation2 + $0x468] sm:$0x1] %vm3108_vm2, %v13385_v35 }
  0x4a   : > { %3157 = vst.msk [vmem:[#allocation2 + $0x480] sm:$0x1] %vm3108_vm2, %v13385_v35 }
  0x4b   : > { %3158 = vst.msk [vmem:[#allocation2 + $0x498] sm:$0x1] %vm3108_vm2, %v13385_v35 }
  0x4c   : > { %3159 = vst.msk [vmem:[#allocation2 + $0x4b0] sm:$0x1] %vm3108_vm2, %v13385_v35 }
  0x4d   : > { %3160 = vst.msk [vmem:[#allocation2 + $0x4c8] sm:$0x1] %vm3108_vm2, %v13385_v35 }
  0x4e   : > { %3161 = vst.msk [vmem:[#allocation2 + $0x4e0] sm:$0x1] %vm3108_vm2, %v13385_v35 }
  0x4f   : > { %3164 = vst.msk [vmem:[#allocation2 + $0x528] sm:$0x1] %vm3108_vm2, %v13385_v35 }
  0x50   : > { %3165 = vst.msk [vmem:[#allocation2 + $0x540] sm:$0x1] %vm3108_vm2, %v13385_v35 }
  0x51   : > { %3166 = vst.msk [vmem:[#allocation2 + $0x558] sm:$0x1] %vm3108_vm2, %v13385_v35 }
  0x52   : > { %3167 = vst.msk [vmem:[#allocation2 + $0x570] sm:$0x1] %vm3108_vm2, %v13385_v35 }
  0x53   : > { %3168 = vst.msk [vmem:[#allocation2 + $0x588] sm:$0x1] %vm3108_vm2, %v13385_v35 }
  0x54   : > { %3169 = vst.msk [vmem:[#allocation2 + $0x5a0] sm:$0x1] %vm3108_vm2, %v13385_v35 }
  0x55   : > { %11548 = vmatmul.msk.bf16.gmra.mxu0 %vm1255_vm0, %v11827_v19  ;;  %11603 = vmatmul.msk.bf16.gmra.mxu1 %vm1255_vm0, %v11882_v20  ;;  %3170 = vst.msk [vmem:[#allocation2 + $0x5b8] sm:$0x1] %vm3108_vm2, %v13385_v35 }
  0x56   : > { %11623 = vmatmul.msk.bf16.gmra.mxu2 %vm1255_vm0, %v11902_v21  ;;  %11645 = vmatmul.msk.bf16.gmra.mxu3 %vm1255_vm0, %v11924_v22  ;;  %3171 = vst.msk [vmem:[#allocation2 + $0x5d0] sm:$0x1] %vm3108_vm2, %v13385_v35 }
  0x57   : > { %3172 = vst.msk [vmem:[#allocation2 + $0x5e8] sm:$0x1] %vm3108_vm2, %v13385_v35 }
  0x58   : > { %3173 = vst.msk [vmem:[#allocation2 + $0x600] sm:$0x1] %vm3108_vm2, %v13385_v35 }
  0x59   : > { %3174 = vst.msk [vmem:[#allocation2 + $0x618] sm:$0x1] %vm3108_vm2, %v13385_v35 }
  0x5a   : > { %3175 = vst.msk [vmem:[#allocation2 + $0x630] sm:$0x1] %vm3108_vm2, %v13385_v35 }
  0x5b   : > { %3176 = vst.msk [vmem:[#allocation2 + $0x648] sm:$0x1] %vm3108_vm2, %v13385_v35 }
  0x5c   : > { %3177 = vst.msk [vmem:[#allocation2 + $0x660] sm:$0x1] %vm3108_vm2, %v13385_v35 }
  0x5d   : > { %3178 = vst.msk [vmem:[#allocation2 + $0x678] sm:$0x1] %vm3108_vm2, %v13385_v35 }
  0x5e   : > { %3179 = vst.msk [vmem:[#allocation2 + $0x690] sm:$0x1] %vm3108_vm2, %v13385_v35 }
  0x5f   : > { %3182 = vst.msk [vmem:[#allocation2 + $0x6d8] sm:$0x1] %vm3108_vm2, %v13385_v35 }
  0x60   : > { %3183 = vst.msk [vmem:[#allocation2 + $0x6f0] sm:$0x1] %vm3108_vm2, %v13385_v35 }
  0x61   : > { %3184 = vst.msk [vmem:[#allocation2 + $0x708] sm:$0x1] %vm3108_vm2, %v13385_v35 }
  0x62   : > { %3185 = vst.msk [vmem:[#allocation2 + $0x720] sm:$0x1] %vm3108_vm2, %v13385_v35 }
  0x63   : > { %3186 = vst.msk [vmem:[#allocation2 + $0x738] sm:$0x1] %vm3108_vm2, %v13385_v35 }
  0x64   : > { %3187 = vst.msk [vmem:[#allocation2 + $0x750] sm:$0x1] %vm3108_vm2, %v13385_v35 }
  0x65   : > { %11549 = vmatmul.msk.bf16.gmra.mxu0 %vm1255_vm0, %v11828_v23  ;;  %11604 = vmatmul.msk.bf16.gmra.mxu1 %vm1255_vm0, %v11883_v24  ;;  %3188 = vst.msk [vmem:[#allocation2 + $0x768] sm:$0x1] %vm3108_vm2, %v13385_v35 }
  0x66   : > { %11624 = vmatmul.msk.bf16.gmra.mxu2 %vm1255_vm0, %v11903_v25  ;;  %11646 = vmatmul.msk.bf16.gmra.mxu3 %vm1255_vm0, %v11925_v26  ;;  %3189 = vst.msk [vmem:[#allocation2 + $0x780] sm:$0x1] %vm3108_vm2, %v13385_v35 }
  0x67   : > { %3190 = vst.msk [vmem:[#allocation2 + $0x798] sm:$0x1] %vm3108_vm2, %v13385_v35 }
  0x68   : > { %3191 = vst.msk [vmem:[#allocation2 + $0x7b0] sm:$0x1] %vm3108_vm2, %v13385_v35 }
  0x69   : > { %3192 = vst.msk [vmem:[#allocation2 + $0x7c8] sm:$0x1] %vm3108_vm2, %v13385_v35 }
  0x6a   : > { %3193 = vst.msk [vmem:[#allocation2 + $0x7e0] sm:$0x1] %vm3108_vm2, %v13385_v35 }
  0x6b   : > { %3194 = vst.msk [vmem:[#allocation2 + $0x7f8] sm:$0x1] %vm3108_vm2, %v13385_v35 }
  0x6c   : > { %3195 = vst.msk [vmem:[#allocation2 + $0x810] sm:$0x1] %vm3108_vm2, %v13385_v35 }
  0x6d   : > { %3196 = vst.msk [vmem:[#allocation2 + $0x828] sm:$0x1] %vm3108_vm2, %v13385_v35 }
  0x6e   : > { %3197 = vst.msk [vmem:[#allocation2 + $0x840] sm:$0x1] %vm3108_vm2, %v13385_v35 }
  0x6f   : > { %3200 = vst.msk [vmem:[#allocation2 + $0x888] sm:$0x1] %vm3108_vm2, %v13385_v35 }
  0x70   : > { %3201 = vst.msk [vmem:[#allocation2 + $0x8a0] sm:$0x1] %vm3108_vm2, %v13385_v35 }
  0x71   : > { %3202 = vst.msk [vmem:[#allocation2 + $0x8b8] sm:$0x1] %vm3108_vm2, %v13385_v35 }
  0x72   : > { %3203 = vst.msk [vmem:[#allocation2 + $0x8d0] sm:$0x1] %vm3108_vm2, %v13385_v35 }
  0x73   : > { %3204 = vst.msk [vmem:[#allocation2 + $0x8e8] sm:$0x1] %vm3108_vm2, %v13385_v35 }
  0x74   : > { %3205 = vst.msk [vmem:[#allocation2 + $0x900] sm:$0x1] %vm3108_vm2, %v13385_v35 }
  0x75   : > { %11550 = vmatmul.msk.bf16.gmra.mxu0 %vm1255_vm0, %v11829_v27  ;;  %11605 = vmatmul.msk.bf16.gmra.mxu1 %vm1255_vm0, %v11884_v28  ;;  %3206 = vst.msk [vmem:[#allocation2 + $0x918] sm:$0x1] %vm3108_vm2, %v13385_v35 }
  0x76   : > { %11625 = vmatmul.msk.bf16.gmra.mxu2 %vm1255_vm0, %v11904_v29  ;;  %11647 = vmatmul.msk.bf16.gmra.mxu3 %vm1255_vm0, %v11926_v30  ;;  %3207 = vst.msk [vmem:[#allocation2 + $0x930] sm:$0x1] %vm3108_vm2, %v13385_v35 }
  0x77   : > { %3208 = vst.msk [vmem:[#allocation2 + $0x948] sm:$0x1] %vm3108_vm2, %v13385_v35 }
  0x78   : > { %3209 = vst.msk [vmem:[#allocation2 + $0x960] sm:$0x1] %vm3108_vm2, %v13385_v35 }
  0x79   : > { %3210 = vst.msk [vmem:[#allocation2 + $0x978] sm:$0x1] %vm3108_vm2, %v13385_v35 }
  0x7a   : > { %3211 = vst.msk [vmem:[#allocation2 + $0x990] sm:$0x1] %vm3108_vm2, %v13385_v35 }
  0x7b   : > { %3212 = vst.msk [vmem:[#allocation2 + $0x9a8] sm:$0x1] %vm3108_vm2, %v13385_v35 }
  0x7c   : > { %3213 = vst.msk [vmem:[#allocation2 + $0x9c0] sm:$0x1] %vm3108_vm2, %v13385_v35 }
  0x7d   : > { %3214 = vst.msk [vmem:[#allocation2 + $0x9d8] sm:$0x1] %vm3108_vm2, %v13385_v35 }
  0x7e   : > { %3215 = vst.msk [vmem:[#allocation2 + $0x9f0] sm:$0x1] %vm3108_vm2, %v13385_v35 }
  0x7f   : > { %3218 = vst.msk [vmem:[#allocation2 + $0xa38] sm:$0x1] %vm3108_vm2, %v13385_v35 }
  0x80   : > { %3219 = vst.msk [vmem:[#allocation2 + $0xa50] sm:$0x1] %vm3108_vm2, %v13385_v35 }
  0x81   : > { %3220 = vst.msk [vmem:[#allocation2 + $0xa68] sm:$0x1] %vm3108_vm2, %v13385_v35 }
  0x82   : > { %3221 = vst.msk [vmem:[#allocation2 + $0xa80] sm:$0x1] %vm3108_vm2, %v13385_v35 }
  0x83   : > { %3222 = vst.msk [vmem:[#allocation2 + $0xa98] sm:$0x1] %vm3108_vm2, %v13385_v35 }
  0x84   : > { %3223 = vst.msk [vmem:[#allocation2 + $0xab0] sm:$0x1] %vm3108_vm2, %v13385_v35 }
  0x85   : > { %11551 = vmatmul.msk.bf16.gmra.mxu0 %vm1255_vm0, %v11830_v31  ;;  %11606 = vmatmul.msk.bf16.gmra.mxu1 %vm1255_vm0, %v11885_v32  ;;  %3224 = vst.msk [vmem:[#allocation2 + $0xac8] sm:$0x1] %vm3108_vm2, %v13385_v35 }
  0x86   : > { %11626 = vmatmul.msk.bf16.gmra.mxu2 %vm1255_vm0, %v11905_v33  ;;  %11648 = vmatmul.msk.bf16.gmra.mxu3 %vm1255_vm0, %v11927_v34  ;;  %3225 = vst.msk [vmem:[#allocation2 + $0xae0] sm:$0x1] %vm3108_vm2, %v13385_v35 }
  0x87   : > { %3226 = vst.msk [vmem:[#allocation2 + $0xaf8] sm:$0x1] %vm3108_vm2, %v13385_v35 }
  0x88   : > { %3227 = vst.msk [vmem:[#allocation2 + $0xb10] sm:$0x1] %vm3108_vm2, %v13385_v35 }
  0x89   : > { %3228 = vst.msk [vmem:[#allocation2 + $0xb28] sm:$0x1] %vm3108_vm2, %v13385_v35 }
  0x8a   : > { %3229 = vst.msk [vmem:[#allocation2 + $0xb40] sm:$0x1] %vm3108_vm2, %v13385_v35 }
  0x8b   : > { %3230 = vst.msk [vmem:[#allocation2 + $0xb58] sm:$0x1] %vm3108_vm2, %v13385_v35 }
  0x8c   : > { %3231 = vst.msk [vmem:[#allocation2 + $0xb70] sm:$0x1] %vm3108_vm2, %v13385_v35 }
  0x8d   : > { %3232 = vst.msk [vmem:[#allocation2 + $0xb88] sm:$0x1] %vm3108_vm2, %v13385_v35 }
  0x8e   : > { %3233 = vst.msk [vmem:[#allocation2 + $0xba0] sm:$0x1] %vm3108_vm2, %v13385_v35 }
  0x8f   : > { %3236 = vst.msk [vmem:[#allocation2 + $0xbe8] sm:$0x1] %vm3108_vm2, %v13385_v35 }
  0x90   : > { %3237 = vst.msk [vmem:[#allocation2 + $0xc00] sm:$0x1] %vm3108_vm2, %v13385_v35 }
  0x91   : > { %3238 = vst.msk [vmem:[#allocation2 + $0xc18] sm:$0x1] %vm3108_vm2, %v13385_v35 }
  0x92   : > { %v1649_v39 = vpop.f32.mrf.mxu0  ;;  %v1924_v40 = vpop.f32.mrf.mxu1  ;;  %3239 = vst.msk [vmem:[#allocation2 + $0xc30] sm:$0x1] %vm3108_vm2, %v13385_v35 }
  0x93   : > { %v1650_v43 = vadd.f32 %v13561_v36, %v1649_v39  ;;  %v1925_v44 = vadd.f32 %v13561_v36, %v1924_v40  ;;  %v3878_v39 = vld [vmem:[#allocation2 + $0xa21] ss:$2 sm:$0xff]  ;;  %3240 = vst.msk [vmem:[#allocation2 + $0xc48] sm:$0x1] %vm3108_vm2, %v13385_v35 }
  0x94   : > { %3241 = vst.msk [vmem:[#allocation2 + $0xc60] sm:$0x1] %vm3108_vm2, %v13385_v35 }
  0x95   : > { %vm2289_vm3 = vcmp.ge.f32.partialorder %v1650_v43, 0.0  ;;  %v2545_v45 = vmul.f32 0.01, %v1650_v43  ;;  %vm2399_vm4 = vcmp.ge.f32.partialorder %v1925_v44, 0.0  ;;  %v2655_v46 = vmul.f32 0.01, %v1925_v44  ;;  %11552 = vmatmul.msk.bf16.gmra.mxu0 %vm1255_vm0, %v11831_v37  ;;  %11607 = vmatmul.msk.bf16.gmra.mxu1 %vm1255_vm0, %v11886_v38 }
  0x96   : > { %11627 = vmatmul.msk.bf16.gmra.mxu2 %vm1255_vm0, %v11906_v41  ;;  %11649 = vmatmul.msk.bf16.gmra.mxu3 %vm1255_vm0, %v11928_v42  ;;  %3242 = vst.msk [vmem:[#allocation2 + $0xc78] sm:$0x1] %vm3108_vm2, %v13385_v35 }
  0x97   : > { %v2801_v47 = vsel %vm2289_vm3, %v1650_v43, %v2545_v45  ;;  %v2911_v48 = vsel %vm2399_vm4, %v1925_v44, %v2655_v46  ;;  %3243 = vst.msk [vmem:[#allocation2 + $0xc90] sm:$0x1] %vm3108_vm2, %v13385_v35 }
  0x98   : > { %3398 = vst.msk [vmem:[#allocation2 + $0x19] sm:$0xff] %vm3057_vm1, %v2801_v47 }
  0x99   : > { %3508 = vst.msk [vmem:[#allocation2 + $0x5d1] sm:$0xff] %vm3057_vm1, %v2911_v48  ;;  %v2024_v49 = vpop.f32.mrf.mxu2  ;;  %v2134_v50 = vpop.f32.mrf.mxu3 }
  0x9a   : > { %v2025_v51 = vadd.f32 %v13561_v36, %v2024_v49  ;;  %v1651_v52 = vpop.f32.mrf.mxu0  ;;  %v1926_v53 = vpop.f32.mrf.mxu1  ;;  %v2135_v54 = vadd.f32 %v13561_v36, %v2134_v50  ;;  %3244 = vst.msk [vmem:[#allocation2 + $0xca8] sm:$0x1] %vm3108_vm2, %v13385_v35  ;;  %v11833_v50 = vld [vmem:[%s13466_s20 + $0x50] sm:$0xff] }
  0x9b   : > { %v1652_v55 = vadd.f32 %v13561_v36, %v1651_v52  ;;  %v1927_v56 = vadd.f32 %v13561_v36, %v1926_v53  ;;  %3245 = vst.msk [vmem:[#allocation2 + $0xcc0] sm:$0x1] %vm3108_vm2, %v13385_v35  ;;  %v11908_v52 = vld [vmem:[%s13466_s20 + $0x2a8] sm:$0xff]  ;;  %v11930_v53 = vld [vmem:[%s13466_s20 + $0x358] sm:$0xff] }
  0x9c   : > { %vm2439_vm5 = vcmp.ge.f32.partialorder %v2025_v51, 0.0  ;;  %v2695_v57 = vmul.f32 0.01, %v2025_v51  ;;  %vm2483_vm6 = vcmp.ge.f32.partialorder %v2135_v54, 0.0  ;;  %v2739_v58 = vmul.f32 0.01, %v2135_v54 }
  0x9d   : > { %vm2290_vm7 = vcmp.ge.f32.partialorder %v1652_v55, 0.0  ;;  %v2546_v59 = vmul.f32 0.01, %v1652_v55  ;;  %vm2400_vm8 = vcmp.ge.f32.partialorder %v1927_v56, 0.0  ;;  %v2656_v60 = vmul.f32 0.01, %v1927_v56 }
  0x9e   : > { %v2951_v61 = vsel %vm2439_vm5, %v2025_v51, %v2695_v57  ;;  %v2995_v0 = vsel %vm2483_vm6, %v2135_v54, %v2739_v58  ;;  %3246 = vst.msk [vmem:[#allocation2 + $0xcd8] sm:$0x1] %vm3108_vm2, %v13385_v35  ;;  %v11888_v51 = vld [vmem:[%s13466_s20 + $0x208] sm:$0xff] }
  0x9f   : > { %3548 = vst.msk [vmem:[#allocation2 + $0x7e1] sm:$0xff] %vm3057_vm1, %v2951_v61  ;;  %v2802_v62 = vsel %vm2290_vm7, %v1652_v55, %v2546_v59  ;;  %v2912_v63 = vsel %vm2400_vm8, %v1927_v56, %v2656_v60  ;;  %v3782_v58 = vld [vmem:[#allocation2 + $0x1] ss:$2 sm:$0xff] }
  0xa0   : > { %3399 = vst.msk [vmem:[#allocation2 + $0x21] sm:$0xff] %vm3057_vm1, %v2802_v62 }
  0xa1   : > { %3509 = vst.msk [vmem:[#allocation2 + $0x5d9] sm:$0xff] %vm3057_vm1, %v2912_v63  ;;  %v2026_v1 = vpop.f32.mrf.mxu2  ;;  %v2136_v2 = vpop.f32.mrf.mxu3 }
  0xa2   : > { %3592 = vst.msk [vmem:[#allocation2 + $0xa51] sm:$0xff] %vm3057_vm1, %v2995_v0  ;;  %v2027_v5 = vadd.f32 %v13561_v36, %v2026_v1  ;;  %v1654_v6 = vpop.f32.mrf.mxu0  ;;  %v1929_v7 = vpop.f32.mrf.mxu1  ;;  %v2137_v8 = vadd.f32 %v13561_v36, %v2136_v2 }
  0xa3   : > { %v1655_v11 = vadd.f32 %v13561_v36, %v1654_v6  ;;  %v1930_v12 = vadd.f32 %v13561_v36, %v1929_v7  ;;  %3247 = vst.msk [vmem:[#allocation2 + $0xcf0] sm:$0x1] %vm3108_vm2, %v13385_v35 }
  0xa4   : > { %vm2440_vm9 = vcmp.ge.f32.partialorder %v2027_v5, 0.0  ;;  %v2696_v13 = vmul.f32 0.01, %v2027_v5  ;;  %vm2484_vm10 = vcmp.ge.f32.partialorder %v2137_v8, 0.0  ;;  %v2740_v14 = vmul.f32 0.01, %v2137_v8 }
  0xa5   : > { %vm2291_vm11 = vcmp.ge.f32.partialorder %v1655_v11, 0.0  ;;  %v2547_v15 = vmul.f32 0.01, %v1655_v11  ;;  %vm2401_vm12 = vcmp.ge.f32.partialorder %v1930_v12, 0.0  ;;  %v2657_v16 = vmul.f32 0.01, %v1930_v12  ;;  %11553 = vmatmul.msk.bf16.gmra.mxu0 %vm1255_vm0, %v11832_v3  ;;  %11608 = vmatmul.msk.bf16.gmra.mxu1 %vm1255_vm0, %v11887_v4 }
  0xa6   : > { %v2952_v17 = vsel %vm2440_vm9, %v2027_v5, %v2696_v13  ;;  %11628 = vmatmul.msk.bf16.gmra.mxu2 %vm1255_vm0, %v11907_v9  ;;  %11650 = vmatmul.msk.bf16.gmra.mxu3 %vm1255_vm0, %v11929_v10  ;;  %v2996_v20 = vsel %vm2484_vm10, %v2137_v8, %v2740_v14  ;;  %3248 = vst.msk [vmem:[#allocation2 + $0xd08] sm:$0x1] %vm3108_vm2, %v13385_v35 }
  0xa7   : > { %3549 = vst.msk [vmem:[#allocation2 + $0x7e9] sm:$0xff] %vm3057_vm1, %v2952_v17  ;;  %v2803_v18 = vsel %vm2291_vm11, %v1655_v11, %v2547_v15  ;;  %v2913_v19 = vsel %vm2401_vm12, %v1930_v12, %v2657_v16 }
  0xa8   : > { %3400 = vst.msk [vmem:[#allocation2 + $0x31] sm:$0xff] %vm3057_vm1, %v2803_v18 }
  0xa9   : > { %3510 = vst.msk [vmem:[#allocation2 + $0x5e9] sm:$0xff] %vm3057_vm1, %v2913_v19  ;;  %v2029_v21 = vpop.f32.mrf.mxu2  ;;  %v2139_v22 = vpop.f32.mrf.mxu3 }
  0xaa   : > { %3593 = vst.msk [vmem:[#allocation2 + $0xa59] sm:$0xff] %vm3057_vm1, %v2996_v20  ;;  %v2030_v23 = vadd.f32 %v13561_v36, %v2029_v21  ;;  %v1656_v24 = vpop.f32.mrf.mxu0  ;;  %v1931_v25 = vpop.f32.mrf.mxu1  ;;  %v2140_v26 = vadd.f32 %v13561_v36, %v2139_v22  ;;  %v11834_v20 = vld [vmem:[%s13466_s20 + $0x58] sm:$0xff]  ;;  %v11889_v21 = vld [vmem:[%s13466_s20 + $0x210] sm:$0xff] }
  0xab   : > { %v1657_v27 = vadd.f32 %v13561_v36, %v1656_v24  ;;  %v1932_v28 = vadd.f32 %v13561_v36, %v1931_v25  ;;  %3249 = vst.msk [vmem:[#allocation2 + $0xd20] sm:$0x1] %vm3108_vm2, %v13385_v35  ;;  %v11909_v22 = vld [vmem:[%s13466_s20 + $0x2b0] sm:$0xff] }
  0xac   : > { %vm2441_vm13 = vcmp.ge.f32.partialorder %v2030_v23, 0.0  ;;  %v2697_v29 = vmul.f32 0.01, %v2030_v23  ;;  %vm2485_vm14 = vcmp.ge.f32.partialorder %v2140_v26, 0.0  ;;  %v2741_v30 = vmul.f32 0.01, %v2140_v26 }
  0xad   : > { %vm2292_vm15 = vcmp.ge.f32.partialorder %v1657_v27, 0.0  ;;  %v2548_v31 = vmul.f32 0.01, %v1657_v27  ;;  %vm2402_vm3 = vcmp.ge.f32.partialorder %v1932_v28, 0.0  ;;  %v2658_v32 = vmul.f32 0.01, %v1932_v28 }
  0xae   : > { %v2953_v33 = vsel %vm2441_vm13, %v2030_v23, %v2697_v29  ;;  %v2997_v38 = vsel %vm2485_vm14, %v2140_v26, %v2741_v30  ;;  %3250 = vst.msk [vmem:[#allocation2 + $0xd38] sm:$0x1] %vm3108_vm2, %v13385_v35  ;;  %v11931_v23 = vld [vmem:[%s13466_s20 + $0x360] sm:$0xff] }
  0xaf   : > { %3550 = vst.msk [vmem:[#allocation2 + $0x7f9] sm:$0xff] %vm3057_vm1, %v2953_v33  ;;  %v2804_v34 = vsel %vm2292_vm15, %v1657_v27, %v2548_v31  ;;  %v2914_v37 = vsel %vm2402_vm3, %v1932_v28, %v2658_v32  ;;  %v3966_v29 = vld [vmem:[#allocation2 + $0x5d2] ss:$2 sm:$0xff] }
  0xb0   : > { %3401 = vst.msk [vmem:[#allocation2 + $0x39] sm:$0xff] %vm3057_vm1, %v2804_v34 }
  0xb1   : > { %3511 = vst.msk [vmem:[#allocation2 + $0x5f1] sm:$0xff] %vm3057_vm1, %v2914_v37  ;;  %v2031_v40 = vpop.f32.mrf.mxu2  ;;  %v2141_v41 = vpop.f32.mrf.mxu3  ;;  %v3880_v42 = vld [vmem:[#allocation2 + $0xa51] ss:$2 sm:$0xff]  ;;  %v4293_v37 = vld [vmem:[#allocation2 + $0x1a] ss:$2 sm:$0xff] }
  0xb2   : > { %3594 = vst.msk [vmem:[#allocation2 + $0xa69] sm:$0xff] %vm3057_vm1, %v2997_v38  ;;  %v2032_v43 = vadd.f32 %v13561_v36, %v2031_v40  ;;  %v2142_v44 = vadd.f32 %v13561_v36, %v2141_v41  ;;  %v12002_v45 = vpack.i.bf16 %v3880_v42, %v3878_v39  ;;  %v1659_v54 = vpop.f32.mrf.mxu0  ;;  %v1934_v57 = vpop.f32.mrf.mxu1  ;;  %v3838_v39 = vld [vmem:[#allocation2 + $0x5d1] ss:$2 sm:$0xff] }
  0xb3   : > { %3251 = vst.msk [vmem:[#allocation2 + $0xd50] sm:$0x1] %vm3108_vm2, %v13385_v35  ;;  %v1660_v55 = vadd.f32 %v13561_v36, %v1659_v54  ;;  %v1935_v0 = vadd.f32 %v13561_v36, %v1934_v57 }
  0xb4   : > { %vm2442_vm4 = vcmp.ge.f32.partialorder %v2032_v43, 0.0  ;;  %v2698_v46 = vmul.f32 0.01, %v2032_v43  ;;  %vm2486_vm5 = vcmp.ge.f32.partialorder %v2142_v44, 0.0  ;;  %v2742_v47 = vmul.f32 0.01, %v2142_v44  ;;  %12003 = vrot.lane.b32.xlu0 %v12002_v45, %s13386_s23 }
  0xb5   : > { %11554 = vmatmul.msk.bf16.gmra.mxu0 %vm1255_vm0, %v11833_v50  ;;  %11609 = vmatmul.msk.bf16.gmra.mxu1 %vm1255_vm0, %v11888_v51  ;;  %7815 = vst.msk [vmem:[#allocation3] sm:$0xff] %vm1255_vm0, %v13385_v35  ;;  %v2549_v56 = vmul.f32 0.01, %v1660_v55  ;;  %vm2293_vm6 = vcmp.ge.f32.partialorder %v1660_v55, 0.0  ;;  %v2659_v6 = vmul.f32 0.01, %v1935_v0 }
  0xb6   : > { %v2954_v48 = vsel %vm2442_vm4, %v2032_v43, %v2698_v46  ;;  %v2998_v49 = vsel %vm2486_vm5, %v2142_v44, %v2742_v47  ;;  %11629 = vmatmul.msk.bf16.gmra.mxu2 %vm1255_vm0, %v11908_v52  ;;  %11651 = vmatmul.msk.bf16.gmra.mxu3 %vm1255_vm0, %v11930_v53  ;;  %7818 = vst.msk [vmem:[#allocation3 + $0xa0] sm:$0xff] %vm1255_vm0, %v13385_v35  ;;  %vm2403_vm7 = vcmp.ge.f32.partialorder %v1935_v0, 0.0  ;;  %v11835_v45 = vld [vmem:[%s13466_s20 + $0x60] sm:$0xff]  ;;  %v11890_v46 = vld [vmem:[%s13466_s20 + $0x218] sm:$0xff] }
  0xb7   : > { %3551 = vst.msk [vmem:[#allocation2 + $0x801] sm:$0xff] %vm3057_vm1, %v2954_v48  ;;  %v2805_v59 = vsel %vm2293_vm6, %v1660_v55, %v2549_v56  ;;  %v3784_v60 = vld [vmem:[#allocation2 + $0x31] ss:$2 sm:$0xff]  ;;  %v2915_v12 = vsel %vm2403_vm7, %v1935_v0, %v2659_v6  ;;  %v3912_v28 = vld [vmem:[#allocation2 + $0x32] ss:$2 sm:$0xff] }
  0xb8   : > { %3595 = vst.msk [vmem:[#allocation2 + $0xa71] sm:$0xff] %vm3057_vm1, %v2998_v49  ;;  %v12007_v61 = vpack.i.bf16 %v3784_v60, %v3782_v58  ;;  %v11910_v47 = vld [vmem:[%s13466_s20 + $0x2b8] sm:$0xff]  ;;  %v11932_v48 = vld [vmem:[%s13466_s20 + $0x368] sm:$0xff]  ;;  %v13985_v56 = vld [vmem:[%s16982_s2] ss:$0 sm:$0xff] }
  0xb9   : > { %7820 = vst.msk [vmem:[#allocation3 + $0x140] sm:$0xff] %vm1255_vm0, %v13385_v35  ;;  %v2034_v62 = vpop.f32.mrf.mxu2  ;;  %v2144_v3 = vpop.f32.mrf.mxu3  ;;  %v4037_v51 = vld [vmem:[#allocation2 + $0x18] ss:$2 sm:$0xff] }
  0xba   : > { %7822 = vst.msk [vmem:[#allocation3 + $0x1e0] sm:$0xff] %vm1255_vm0, %v13385_v35  ;;  %v1661_v63 = vpop.f32.mrf.mxu0  ;;  %v1936_v1 = vpop.f32.mrf.mxu1  ;;  %v2035_v2 = vadd.f32 %v13561_v36, %v2034_v62  ;;  %v2145_v7 = vadd.f32 %v13561_v36, %v2144_v3 }
  0xbb   : > { %7824 = vst.msk [vmem:[#allocation3 + $0x280] sm:$0xff] %vm1255_vm0, %v13385_v35  ;;  %v1662_v4 = vadd.f32 %v13561_v36, %v1661_v63  ;;  %v1937_v5 = vadd.f32 %v13561_v36, %v1936_v1  ;;  %v4165_v63 = vld [vmem:[#allocation2 + $0x19] ss:$2 sm:$0xff] }
  0xbc   : > { %7826 = vst.msk [vmem:[#allocation3 + $0x320] sm:$0xff] %vm1255_vm0, %v13385_v35  ;;  %12008 = vrot.lane.b32.xlu0 %v12007_v61, %s13386_s23  ;;  %v2699_v8 = vmul.f32 0.01, %v2035_v2  ;;  %vm2443_vm8 = vcmp.ge.f32.partialorder %v2035_v2, 0.0  ;;  %v2743_v13 = vmul.f32 0.01, %v2145_v7 }
  0xbd   : > { %7828 = vst.msk [vmem:[#allocation3 + $0x3c0] sm:$0xff] %vm1255_vm0, %v13385_v35  ;;  %v2550_v9 = vmul.f32 0.01, %v1662_v4  ;;  %vm2294_vm9 = vcmp.ge.f32.partialorder %v1662_v4, 0.0  ;;  %v2660_v10 = vmul.f32 0.01, %v1937_v5 }
  0xbe   : > { %7830 = vst.msk [vmem:[#allocation3 + $0x460] sm:$0xff] %vm1255_vm0, %v13385_v35  ;;  %vm2404_vm10 = vcmp.ge.f32.partialorder %v1937_v5, 0.0  ;;  %v2955_v36 = vsel %vm2443_vm8, %v2035_v2, %v2699_v8  ;;  %vm2487_vm11 = vcmp.ge.f32.partialorder %v2145_v7, 0.0 }
  0xbf   : > { %3402 = vst.msk [vmem:[#allocation2 + $0x49] sm:$0xff] %vm3057_vm1, %v2805_v59  ;;  %v2806_v14 = vsel %vm2294_vm9, %v1662_v4, %v2550_v9  ;;  %v2916_v16 = vsel %vm2404_vm10, %v1937_v5, %v2660_v10  ;;  %v2999_v19 = vsel %vm2487_vm11, %v2145_v7, %v2743_v13  ;;  %v11836_v9 = vld [vmem:[%s13466_s20 + $0x68] sm:$0xff] }
  0xc0   : > { %3109 = vst.msk [vmem:[#allocation2] sm:$0x1] %vm3108_vm2, %v13385_v35 }
  0xc1   : > { %3127 = vst.msk [vmem:[#allocation2 + $0x1b0] sm:$0x1] %vm3108_vm2, %v13385_v35  ;;  %v13920_v11 = vpop.f32.mrf.mxu2  ;;  %v13929_v18 = vpop.f32.mrf.mxu3 }
  0xc2   : > { %3145 = vst.msk [vmem:[#allocation2 + $0x360] sm:$0x1] %vm3108_vm2, %v13385_v35  ;;  %v13924_v15 = vpop.f32.mrf.mxu0  ;;  %v13927_v17 = vpop.f32.mrf.mxu1  ;;  %v2037_v57 = vadd.f32 %v13985_v56, %v13920_v11  ;;  %v2147_v62 = vadd.f32 %v13985_v56, %v13929_v18 }
  0xc3   : > { %3163 = vst.msk [vmem:[#allocation2 + $0x510] sm:$0x1] %vm3108_vm2, %v13385_v35  ;;  %v1665_v58 = vadd.f32 %v13985_v56, %v13924_v15  ;;  %v1940_v60 = vadd.f32 %v13985_v56, %v13927_v17 }
  0xc4   : > { %3181 = vst.msk [vmem:[#allocation2 + $0x6c0] sm:$0x1] %vm3108_vm2, %v13385_v35  ;;  %v2700_v0 = vmul.f32 0.01, %v2037_v57  ;;  %vm2444_vm12 = vcmp.ge.f32.partialorder %v2037_v57, 0.0  ;;  %vm2488_vm15 = vcmp.ge.f32.partialorder %v2147_v62, 0.0 }
  0xc5   : > { %3199 = vst.msk [vmem:[#allocation2 + $0x870] sm:$0x1] %vm3108_vm2, %v13385_v35  ;;  %11555 = vmatmul.msk.bf16.gmra.mxu0 %vm1255_vm0, %v11834_v20  ;;  %11610 = vmatmul.msk.bf16.gmra.mxu1 %vm1255_vm0, %v11889_v21  ;;  %v2551_v1 = vmul.f32 0.01, %v1665_v58  ;;  %vm2295_vm13 = vcmp.ge.f32.partialorder %v1665_v58, 0.0  ;;  %vm2405_vm14 = vcmp.ge.f32.partialorder %v1940_v60, 0.0 }
  0xc6   : > { %3235 = vst.msk [vmem:[#allocation2 + $0xbd0] sm:$0x1] %vm3108_vm2, %v13385_v35  ;;  %vm3060_vm2 = vcmask 123904   ;;  %11630 = vmatmul.msk.bf16.gmra.mxu2 %vm1255_vm0, %v11909_v22  ;;  %11652 = vmatmul.msk.bf16.gmra.mxu3 %vm1255_vm0, %v11931_v23  ;;  %v2661_v4 = vmul.f32 0.01, %v1940_v60  ;;  %v2956_v15 = vsel %vm2444_vm12, %v2037_v57, %v2700_v0  ;;  %v11933_v20 = vld [vmem:[%s13466_s20 + $0x370] sm:$0xff] }
  0xc7   : > { %3512 = vst.msk [vmem:[#allocation2 + $0x601] sm:$0xff] %vm3057_vm1, %v2915_v12  ;;  %v2744_v7 = vmul.f32 0.01, %v2147_v62 }
  0xc8   : > { %3552 = vst.msk [vmem:[#allocation2 + $0x811] sm:$0xff] %vm3057_vm1, %v2955_v36  ;;  %v11891_v36 = vld [vmem:[%s13466_s20 + $0x220] sm:$0xff]  ;;  %v2917_v21 = vsel %vm2405_vm14, %v1940_v60, %v2661_v4 }
  0xc9   : > { %3403 = vst.msk [vmem:[#allocation2 + $0x51] sm:$0xff] %vm3057_vm1, %v2806_v14  ;;  %v2039_v24 = vpop.f32.mrf.mxu2  ;;  %v13947_v26 = vpop.f32.mrf.mxu3  ;;  %v11911_v14 = vld [vmem:[%s13466_s20 + $0x2c0] sm:$0xff] }
  0xca   : > { %3513 = vst.msk [vmem:[#allocation2 + $0x609] sm:$0xff] %vm3057_vm1, %v2916_v16  ;;  %v13945_v25 = vpop.f32.mrf.mxu1  ;;  %v13949_v27 = vpop.f32.mrf.mxu0  ;;  %v2040_v2 = vadd.f32 %v13985_v56, %v2039_v24  ;;  %v2150_v8 = vadd.f32 %v13985_v56, %v13947_v26  ;;  %v2807_v16 = vsel %vm2295_vm13, %v1665_v58, %v2551_v1  ;;  %v3000_v24 = vsel %vm2488_vm15, %v2147_v62, %v2744_v7  ;;  %v3986_v58 = vld [vmem:[#allocation2 + $0x7e2] ss:$2 sm:$0xff] }
  0xcb   : > { %3596 = vst.msk [vmem:[#allocation2 + $0xa81] sm:$0xff] %vm3057_vm1, %v2999_v19  ;;  %v1942_v5 = vadd.f32 %v13985_v56, %v13945_v25  ;;  %v1667_v10 = vadd.f32 %v13985_v56, %v13949_v27 }
  0xcc   : > { %3061 = vst.msk [vmem:[#allocation2 + $0x10] sm:$0x3] %vm3060_vm2, %v13385_v35  ;;  %v2701_v17 = vmul.f32 0.01, %v2040_v2  ;;  %vm2445_vm3 = vcmp.ge.f32.partialorder %v2040_v2, 0.0  ;;  %vm2489_vm5 = vcmp.ge.f32.partialorder %v2150_v8, 0.0 }
  0xcd   : > { %3064 = vst.msk [vmem:[#allocation2 + $0x1c0] sm:$0x3] %vm3060_vm2, %v13385_v35  ;;  %v2662_v22 = vmul.f32 0.01, %v1942_v5  ;;  %vm2406_vm4 = vcmp.ge.f32.partialorder %v1942_v5, 0.0  ;;  %vm2296_vm6 = vcmp.ge.f32.partialorder %v1667_v10, 0.0 }
  0xce   : > { %3067 = vst.msk [vmem:[#allocation2 + $0x370] sm:$0x3] %vm3060_vm2, %v13385_v35  ;;  %v2745_v25 = vmul.f32 0.01, %v2150_v8  ;;  %v2552_v26 = vmul.f32 0.01, %v1667_v10 }
  0xcf   : > { %3070 = vst.msk [vmem:[#allocation2 + $0x520] sm:$0x3] %vm3060_vm2, %v13385_v35 }
  0xd0   : > { %v4295_v38 = vld [vmem:[#allocation2 + $0x4a] ss:$2 sm:$0xff]  ;;  %3073 = vst.msk [vmem:[#allocation2 + $0x6d0] sm:$0x3] %vm3060_vm2, %v13385_v35  ;;  %v4167_v61 = vld [vmem:[#allocation2 + $0x49] ss:$2 sm:$0xff] }
  0xd1   : > { %v3968_v32 = vld [vmem:[#allocation2 + $0x602] ss:$2 sm:$0xff]  ;;  %v13951_v34 = vpop.f32.mrf.mxu2  ;;  %v3840_v40 = vld [vmem:[#allocation2 + $0x601] ss:$2 sm:$0xff]  ;;  %v12037_v41 = vpack.i.bf16 %v4295_v38, %v4293_v37  ;;  %v13957_v43 = vpop.f32.mrf.mxu3  ;;  %3076 = vst.msk [vmem:[#allocation2 + $0x880] sm:$0x3] %vm3060_vm2, %v13385_v35  ;;  %v12032_v3 = vpack.i.bf16 %v4167_v61, %v4165_v63  ;;  %v3001_v38 = vsel %vm2489_vm5, %v2150_v8, %v2745_v25 }
  0xd2   : > { %v12022_v33 = vpack.i.bf16 %v3968_v32, %v3966_v29  ;;  %v13955_v42 = vpop.f32.mrf.mxu1  ;;  %v13959_v44 = vpop.f32.mrf.mxu0  ;;  %v12017_v49 = vpack.i.bf16 %v3840_v40, %v3838_v39  ;;  %v4039_v50 = vld [vmem:[#allocation2 + $0x48] ss:$2 sm:$0xff]  ;;  %3079 = vst.msk [vmem:[#allocation2 + $0xa30] sm:$0x3] %vm3060_vm2, %v13385_v35  ;;  %v2042_v11 = vadd.f32 %v13985_v56, %v13951_v34  ;;  %v2918_v32 = vsel %vm2406_vm4, %v1942_v5, %v2662_v22 }
  0xd3   : > { %v3910_v30 = vld [vmem:[#allocation2 + $0x2] ss:$2 sm:$0xff]  ;;  %12038 = vrot.lane.b32.xlu0 %v12037_v41, %s13388_s25  ;;  %v12027_v52 = vpack.i.bf16 %v4039_v50, %v4037_v51  ;;  %3082 = vst.msk [vmem:[#allocation2 + $0xbe0] sm:$0x3] %vm3060_vm2, %v13385_v35  ;;  %v1945_v18 = vadd.f32 %v13985_v56, %v13955_v42  ;;  %v1670_v23 = vadd.f32 %v13985_v56, %v13959_v44 }
  0xd4   : > { %v12012_v31 = vpack.i.bf16 %v3912_v28, %v3910_v30  ;;  %12023 = vrot.lane.b32.xlu1 %v12022_v33, %s13387_s24  ;;  %v2702_v27 = vmul.f32 0.01, %v2042_v11  ;;  %v2152_v28 = vadd.f32 %v13985_v56, %v13957_v43  ;;  %3553 = vst.msk [vmem:[#allocation2 + $0x819] sm:$0xff] %vm3057_vm1, %v2956_v15  ;;  %v2957_v30 = vsel %vm2445_vm3, %v2040_v2, %v2701_v17  ;;  %v11837_v8 = vld [vmem:[%s13466_s20 + $0x70] sm:$0xff]  ;;  %v11892_v15 = vld [vmem:[%s13466_s20 + $0x228] sm:$0xff]  ;;  %v11934_v22 = vld [vmem:[%s13466_s20 + $0x378] sm:$0xff] }
  0xd5   : > { %11556 = vmatmul.msk.bf16.gmra.mxu0 %vm1255_vm0, %v11835_v45  ;;  %11611 = vmatmul.msk.bf16.gmra.mxu1 %vm1255_vm0, %v11890_v46  ;;  %vm2446_vm7 = vcmp.ge.f32.partialorder %v2042_v11, 0.0  ;;  %3404 = vst.msk [vmem:[#allocation2 + $0x61] sm:$0xff] %vm3057_vm1, %v2807_v16  ;;  %v2553_v33 = vmul.f32 0.01, %v1670_v23  ;;  %vm2407_vm8 = vcmp.ge.f32.partialorder %v1945_v18, 0.0  ;;  %vm2297_vm9 = vcmp.ge.f32.partialorder %v1670_v23, 0.0 }
  0xd6   : > { %12013 = vrot.lane.b32.xlu2 %v12012_v31, %s13387_s24  ;;  %11631 = vmatmul.msk.bf16.gmra.mxu2 %vm1255_vm0, %v11910_v47  ;;  %v2663_v31 = vmul.f32 0.01, %v1945_v18  ;;  %3514 = vst.msk [vmem:[#allocation2 + $0x619] sm:$0xff] %vm3057_vm1, %v2917_v21  ;;  %v2808_v41 = vsel %vm2296_vm6, %v1667_v10, %v2552_v26  ;;  %v2958_v42 = vsel %vm2446_vm7, %v2042_v11, %v2702_v27  ;;  %v2746_v43 = vmul.f32 0.01, %v2152_v28  ;;  %v11912_v16 = vld [vmem:[%s13466_s20 + $0x2c8] sm:$0xff] }
  0xd7   : > { %11653 = vmatmul.msk.bf16.gmra.mxu3 %vm1255_vm0, %v11932_v48  ;;  %3597 = vst.msk [vmem:[#allocation2 + $0xa89] sm:$0xff] %vm3057_vm1, %v3000_v24  ;;  %vm2490_vm10 = vcmp.ge.f32.partialorder %v2152_v28, 0.0  ;;  %v2809_v50 = vsel %vm2297_vm9, %v1670_v23, %v2553_v33  ;;  %v4421_v33 = vld [vmem:[#allocation2 + $0x30] ss:$2 sm:$0xff] }
  0xd8   : > { %3554 = vst.msk [vmem:[#allocation2 + $0x829] sm:$0xff] %vm3057_vm1, %v2957_v30  ;;  %v2919_v47 = vsel %vm2407_vm8, %v1945_v18, %v2663_v31  ;;  %v4549_v18 = vld [vmem:[#allocation2 + $0x31] ss:$2 sm:$0xff] }
  0xd9   : > { %v2044_v53 = vpop.f32.mrf.mxu2  ;;  %v13978_v55 = vpop.f32.mrf.mxu3  ;;  %3515 = vst.msk [vmem:[#allocation2 + $0x621] sm:$0xff] %vm3057_vm1, %v2918_v32 }
  0xda   : > { %v13976_v54 = vpop.f32.mrf.mxu1  ;;  %v13991_v59 = vpop.f32.mrf.mxu0  ;;  %v2045_v29 = vadd.f32 %v13985_v56, %v2044_v53  ;;  %v14049_v40 = vadd.f32 %v13985_v56, %v13978_v55  ;;  %3598 = vst.msk [vmem:[#allocation2 + $0xa99] sm:$0xff] %vm3057_vm1, %v3001_v38 }
  0xdb   : > { %v1947_v34 = vadd.f32 %v13985_v56, %v13976_v54  ;;  %v1672_v39 = vadd.f32 %v13985_v56, %v13991_v59  ;;  %3405 = vst.msk [vmem:[#allocation2 + $0x69] sm:$0xff] %vm3057_vm1, %v2808_v41  ;;  %v3002_v59 = vsel %vm2490_vm10, %v2152_v28, %v2746_v43  ;;  %v3860_v62 = vld [vmem:[#allocation2 + $0x811] ss:$2 sm:$0xff]  ;;  %v3988_v2 = vld [vmem:[#allocation2 + $0x812] ss:$2 sm:$0xff] }
  0xdc   : > { %12028 = vrot.lane.b32.xlu1 %v12027_v52, %s13389_s26  ;;  %v2703_v44 = vmul.f32 0.01, %v2045_v29  ;;  %vm2447_vm11 = vcmp.ge.f32.partialorder %v2045_v29, 0.0  ;;  %v3858_v52 = vld [vmem:[#allocation2 + $0x7e1] ss:$2 sm:$0xff]  ;;  %vm2491_vm12 = vcmp.ge.f32.partialorder %v14049_v40, 0.0  ;;  %v12047_v7 = vpack.i.bf16 %v3988_v2, %v3986_v58 }
  0xdd   : > { %vm2408_vm2 = vcmp.ge.f32.partialorder %v1947_v34, 0.0  ;;  %v2664_v51 = vmul.f32 0.01, %v1947_v34  ;;  %v2554_v54 = vmul.f32 0.01, %v1672_v39  ;;  %vm2298_vm13 = vcmp.ge.f32.partialorder %v1672_v39, 0.0 }
  0xde   : > { %12018 = vrot.lane.b32.xlu2 %v12017_v49, %s13386_s23  ;;  %v2959_v60 = vsel %vm2447_vm11, %v2045_v29, %v2703_v44  ;;  %v2747_v61 = vmul.f32 0.01, %v14049_v40  ;;  %3555 = vst.msk [vmem:[#allocation2 + $0x831] sm:$0xff] %vm3057_vm1, %v2958_v42  ;;  %v12042_v63 = vpack.i.bf16 %v3860_v62, %v3858_v52  ;;  %12048 = vrot.lane.b32.xlu0 %v12047_v7, %s13387_s24  ;;  %v11838_v7 = vld [vmem:[%s13466_s20 + $0x78] sm:$0xff] }
  0xdf   : > { %3406 = vst.msk [vmem:[#allocation2 + $0x79] sm:$0xff] %vm3057_vm1, %v2809_v50 }
  0xe0   : > { %3516 = vst.msk [vmem:[#allocation2 + $0x631] sm:$0xff] %vm3057_vm1, %v2919_v47  ;;  %v3003_v17 = vsel %vm2491_vm12, %v14049_v40, %v2747_v61 }
  0xe1   : > { %v14008_v6 = vpop.f32.mrf.mxu2  ;;  %v14018_v13 = vpop.f32.mrf.mxu3  ;;  %3599 = vst.msk [vmem:[#allocation2 + $0xaa1] sm:$0xff] %vm3057_vm1, %v3002_v59 }
  0xe2   : > { %v1949_v12 = vpop.f32.mrf.mxu1  ;;  %v1674_v19 = vpop.f32.mrf.mxu0  ;;  %v2047_v48 = vadd.f32 %v13985_v56, %v14008_v6  ;;  %v2157_v57 = vadd.f32 %v13985_v56, %v14018_v13  ;;  %3556 = vst.msk [vmem:[#allocation2 + $0x841] sm:$0xff] %vm3057_vm1, %v2959_v60  ;;  %v4551_v27 = vld [vmem:[#allocation2 + $0x61] ss:$2 sm:$0xff]  ;;  %v4423_v30 = vld [vmem:[#allocation2 + $0x60] ss:$2 sm:$0xff] }
  0xe3   : > { %v1950_v53 = vadd.f32 %v13985_v56, %v1949_v12  ;;  %v1675_v55 = vadd.f32 %v13985_v56, %v1674_v19  ;;  %v2920_v12 = vsel %vm2408_vm2, %v1947_v34, %v2664_v51  ;;  %3600 = vst.msk [vmem:[#allocation2 + $0xab1] sm:$0xff] %vm3057_vm1, %v3003_v17  ;;  %v12057_v32 = vpack.i.bf16 %v4551_v27, %v4549_v18 }
  0xe4   : > { %vm2448_vm14 = vcmp.ge.f32.partialorder %v2047_v48, 0.0  ;;  %v2704_v0 = vmul.f32 0.01, %v2047_v48  ;;  %12043 = vrot.lane.b32.xlu1 %v12042_v63, %s13386_s23  ;;  %v2748_v11 = vmul.f32 0.01, %v2157_v57  ;;  %vm2492_vm4 = vcmp.ge.f32.partialorder %v2157_v57, 0.0 }
  0xe5   : > { %11557 = vmatmul.msk.bf16.gmra.mxu0 %vm1255_vm0, %v11836_v9  ;;  %11612 = vmatmul.msk.bf16.gmra.mxu1 %vm1255_vm0, %v11891_v36  ;;  %v2810_v9 = vsel %vm2298_vm13, %v1672_v39, %v2554_v54  ;;  %v2555_v10 = vmul.f32 0.01, %v1675_v55  ;;  %vm2409_vm15 = vcmp.ge.f32.partialorder %v1950_v53, 0.0  ;;  %vm2299_vm3 = vcmp.ge.f32.partialorder %v1675_v55, 0.0  ;;  %3517 = vst.msk [vmem:[#allocation2 + $0x639] sm:$0xff] %vm3057_vm1, %v2920_v12 }
  0xe6   : > { %12033 = vrot.lane.b32.xlu2 %v12032_v3, %s13390_s29  ;;  %11632 = vmatmul.msk.bf16.gmra.mxu2 %vm1255_vm0, %v11911_v14  ;;  %v2665_v3 = vmul.f32 0.01, %v1950_v53  ;;  %v2960_v19 = vsel %vm2448_vm14, %v2047_v48, %v2704_v0  ;;  %3407 = vst.msk [vmem:[#allocation2 + $0x81] sm:$0xff] %vm3057_vm1, %v2810_v9  ;;  %v3004_v29 = vsel %vm2492_vm4, %v2157_v57, %v2748_v11  ;;  %v3786_v11 = vld [vmem:[#allocation2 + $0x61] ss:$2 sm:$0xff] }
  0xe7   : > { %11654 = vmatmul.msk.bf16.gmra.mxu3 %vm1255_vm0, %v11933_v20  ;;  %v2811_v28 = vsel %vm2299_vm3, %v1675_v55, %v2555_v10  ;;  %3557 = vst.msk [vmem:[#allocation2 + $0x849] sm:$0xff] %vm3057_vm1, %v2960_v19  ;;  %v12052_v38 = vpack.i.bf16 %v4423_v30, %v4421_v33  ;;  %v3914_v33 = vld [vmem:[#allocation2 + $0x62] ss:$2 sm:$0xff] }
  0xe8   : > { %v2921_v23 = vsel %vm2409_vm15, %v1950_v53, %v2665_v3  ;;  %3408 = vst.msk [vmem:[#allocation2 + $0x91] sm:$0xff] %vm3057_vm1, %v2811_v28 }
  0xe9   : > { %v2049_v37 = vpop.f32.mrf.mxu2  ;;  %v2159_v46 = vpop.f32.mrf.mxu3  ;;  %3518 = vst.msk [vmem:[#allocation2 + $0x649] sm:$0xff] %vm3057_vm1, %v2921_v23 }
  0xea   : > { %v1951_v45 = vpop.f32.mrf.mxu1  ;;  %v1676_v49 = vpop.f32.mrf.mxu0  ;;  %v14072_v1 = vadd.f32 %v13985_v56, %v2049_v37  ;;  %v2160_v13 = vadd.f32 %v13985_v56, %v2159_v46  ;;  %3601 = vst.msk [vmem:[#allocation2 + $0xab9] sm:$0xff] %vm3057_vm1, %v3004_v29 }
  0xeb   : > { %v14076_v4 = vadd.f32 %v13985_v56, %v1676_v49  ;;  %v14079_v5 = vadd.f32 %v13985_v56, %v1951_v45 }
  0xec   : > { %v2705_v20 = vmul.f32 0.01, %v14072_v1  ;;  %vm2449_vm5 = vcmp.ge.f32.partialorder %v14072_v1, 0.0  ;;  %v2749_v34 = vmul.f32 0.01, %v2160_v13  ;;  %vm2493_vm8 = vcmp.ge.f32.partialorder %v2160_v13, 0.0  ;;  %12053 = vrot.lane.b32.xlu1 %v12052_v38, %s13392_s10 }
  0xed   : > { %v2556_v24 = vmul.f32 0.01, %v14076_v4  ;;  %v2666_v25 = vmul.f32 0.01, %v14079_v5  ;;  %vm2300_vm6 = vcmp.ge.f32.partialorder %v14076_v4, 0.0  ;;  %vm2410_vm7 = vcmp.ge.f32.partialorder %v14079_v5, 0.0 }
  0xee   : > { %12058 = vrot.lane.b32.xlu2 %v12057_v32, %s13391_s30  ;;  %v2961_v40 = vsel %vm2449_vm5, %v14072_v1, %v2705_v20  ;;  %v3005_v47 = vsel %vm2493_vm8, %v2160_v13, %v2749_v34  ;;  %v3882_v1 = vld [vmem:[#allocation2 + $0xa81] ss:$2 sm:$0xff] }
  0xef   : > { %v2812_v43 = vsel %vm2300_vm6, %v14076_v4, %v2556_v24  ;;  %v2922_v46 = vsel %vm2410_vm7, %v14079_v5, %v2666_v25  ;;  %3558 = vst.msk [vmem:[#allocation2 + $0x889] sm:$0xff] %vm3057_vm1, %v2961_v40  ;;  %v4169_v38 = vld [vmem:[#allocation2 + $0x79] ss:$2 sm:$0xff] }
  0xf0   : > { %3409 = vst.msk [vmem:[#allocation2 + $0x99] sm:$0xff] %vm3057_vm1, %v2812_v43 }
  0xf1   : > { %v2051_v6 = vpop.f32.mrf.mxu2  ;;  %v2161_v14 = vpop.f32.mrf.mxu3  ;;  %3519 = vst.msk [vmem:[#allocation2 + $0x651] sm:$0xff] %vm3057_vm1, %v2922_v46  ;;  %v3970_v46 = vld [vmem:[#allocation2 + $0x632] ss:$2 sm:$0xff] }
  0xf2   : > { %v1954_v36 = vpop.f32.mrf.mxu1  ;;  %v1679_v21 = vpop.f32.mrf.mxu0  ;;  %v2052_v26 = vadd.f32 %v13985_v56, %v2051_v6  ;;  %v2162_v39 = vadd.f32 %v13985_v56, %v2161_v14  ;;  %3602 = vst.msk [vmem:[#allocation2 + $0xac9] sm:$0xff] %vm3057_vm1, %v3005_v47  ;;  %v3884_v6 = vld [vmem:[#allocation2 + $0xab1] ss:$2 sm:$0xff]  ;;  %v11913_v14 = vld [vmem:[%s13466_s20 + $0x2d0] sm:$0xff] }
  0xf3   : > { %v1680_v31 = vadd.f32 %v13985_v56, %v1679_v21  ;;  %v1955_v37 = vadd.f32 %v13985_v56, %v1954_v36  ;;  %v12062_v36 = vpack.i.bf16 %v3884_v6, %v3882_v1 }
  0xf4   : > { %v2706_v41 = vmul.f32 0.01, %v2052_v26  ;;  %vm2450_vm9 = vcmp.ge.f32.partialorder %v2052_v26, 0.0  ;;  %v2750_v51 = vmul.f32 0.01, %v2162_v39  ;;  %vm2494_vm2 = vcmp.ge.f32.partialorder %v2162_v39, 0.0 }
  0xf5   : > { %11558 = vmatmul.msk.bf16.gmra.mxu0 %vm1255_vm0, %v11837_v8  ;;  %11613 = vmatmul.msk.bf16.gmra.mxu1 %vm1255_vm0, %v11892_v15  ;;  %v2557_v44 = vmul.f32 0.01, %v1680_v31  ;;  %vm2301_vm10 = vcmp.ge.f32.partialorder %v1680_v31, 0.0  ;;  %v2667_v48 = vmul.f32 0.01, %v1955_v37  ;;  %vm2411_vm11 = vcmp.ge.f32.partialorder %v1955_v37, 0.0 }
  0xf6   : > { %11633 = vmatmul.msk.bf16.gmra.mxu2 %vm1255_vm0, %v11912_v16  ;;  %v2962_v55 = vsel %vm2450_vm9, %v2052_v26, %v2706_v41  ;;  %v3006_v0 = vsel %vm2494_vm2, %v2162_v39, %v2750_v51  ;;  %v11893_v8 = vld [vmem:[%s13466_s20 + $0x230] sm:$0xff]  ;;  %v11935_v15 = vld [vmem:[%s13466_s20 + $0x380] sm:$0xff]  ;;  %12063 = vrot.lane.b32.xlu1 %v12062_v36, %s13386_s23 }
  0xf7   : > { %11655 = vmatmul.msk.bf16.gmra.mxu3 %vm1255_vm0, %v11934_v22  ;;  %v2813_v59 = vsel %vm2301_vm10, %v1680_v31, %v2557_v44  ;;  %v2923_v61 = vsel %vm2411_vm11, %v1955_v37, %v2667_v48  ;;  %3559 = vst.msk [vmem:[#allocation2 + $0x891] sm:$0xff] %vm3057_vm1, %v2962_v55  ;;  %v3788_v16 = vld [vmem:[#allocation2 + $0x91] ss:$2 sm:$0xff]  ;;  %v3916_v31 = vld [vmem:[#allocation2 + $0x92] ss:$2 sm:$0xff] }
  0xf8   : > { %3410 = vst.msk [vmem:[#allocation2 + $0xa9] sm:$0xff] %vm3057_vm1, %v2813_v59  ;;  %v12067_v21 = vpack.i.bf16 %v3788_v16, %v3786_v11  ;;  %v12072_v44 = vpack.i.bf16 %v3916_v31, %v3914_v33 }
  0xf9   : > { %v2054_v42 = vpop.f32.mrf.mxu2  ;;  %v2164_v50 = vpop.f32.mrf.mxu3  ;;  %3520 = vst.msk [vmem:[#allocation2 + $0x661] sm:$0xff] %vm3057_vm1, %v2923_v61 }
  0xfa   : > { %v2055_v45 = vadd.f32 %v13985_v56, %v2054_v42  ;;  %v1956_v49 = vpop.f32.mrf.mxu1  ;;  %v1681_v52 = vpop.f32.mrf.mxu0  ;;  %v2165_v54 = vadd.f32 %v13985_v56, %v2164_v50  ;;  %3603 = vst.msk [vmem:[#allocation2 + $0xad1] sm:$0xff] %vm3057_vm1, %v3006_v0  ;;  %12068 = vrot.lane.b32.xlu0 %v12067_v21, %s13386_s23 }
  0xfb   : > { %v1957_v53 = vadd.f32 %v13985_v56, %v1956_v49  ;;  %v1682_v58 = vadd.f32 %v13985_v56, %v1681_v52 }
  0xfc   : > { %v2707_v57 = vmul.f32 0.01, %v2055_v45  ;;  %vm2451_vm12 = vcmp.ge.f32.partialorder %v2055_v45, 0.0  ;;  %v2751_v63 = vmul.f32 0.01, %v2165_v54  ;;  %vm2495_vm15 = vcmp.ge.f32.partialorder %v2165_v54, 0.0 }
  0xfd   : > { %v2668_v60 = vmul.f32 0.01, %v1957_v53  ;;  %vm2302_vm13 = vcmp.ge.f32.partialorder %v1682_v58, 0.0  ;;  %v2558_v62 = vmul.f32 0.01, %v1682_v58  ;;  %vm2412_vm14 = vcmp.ge.f32.partialorder %v1957_v53, 0.0 }
  0xfe   : > { %v2963_v2 = vsel %vm2451_vm12, %v2055_v45, %v2707_v57  ;;  %v3007_v10 = vsel %vm2495_vm15, %v2165_v54, %v2751_v63  ;;  %v3842_v54 = vld [vmem:[#allocation2 + $0x631] ss:$2 sm:$0xff] }
  0xff   : > { %v2814_v4 = vsel %vm2302_vm13, %v1682_v58, %v2558_v62  ;;  %v2924_v9 = vsel %vm2412_vm14, %v1957_v53, %v2668_v60  ;;  %3560 = vst.msk [vmem:[#allocation2 + $0x8a1] sm:$0xff] %vm3057_vm1, %v2963_v2  ;;  %v11839_v62 = vld [vmem:[%s13466_s20 + $0x80] sm:$0xff]  ;;  %v11894_v2 = vld [vmem:[%s13466_s20 + $0x238] sm:$0xff] }
 0x100   : > { %3411 = vst.msk [vmem:[#allocation2 + $0xb1] sm:$0xff] %vm3057_vm1, %v2814_v4 }
 0x101   : > { %v2056_v3 = vpop.f32.mrf.mxu2  ;;  %v2166_v13 = vpop.f32.mrf.mxu3  ;;  %3521 = vst.msk [vmem:[#allocation2 + $0x669] sm:$0xff] %vm3057_vm1, %v2924_v9 }
 0x102   : > { %v2057_v5 = vadd.f32 %v13985_v56, %v2056_v3  ;;  %v1959_v12 = vpop.f32.mrf.mxu1  ;;  %v1684_v18 = vpop.f32.mrf.mxu0  ;;  %v2167_v20 = vadd.f32 %v13985_v56, %v2166_v13  ;;  %3604 = vst.msk [vmem:[#allocation2 + $0xae1] sm:$0xff] %vm3057_vm1, %v3007_v10  ;;  %12073 = vrot.lane.b32.xlu0 %v12072_v44, %s13387_s24  ;;  %v4297_v13 = vld [vmem:[#allocation2 + $0x7a] ss:$2 sm:$0xff] }
 0x103   : > { %v1960_v19 = vadd.f32 %v13985_v56, %v1959_v12  ;;  %v1685_v22 = vadd.f32 %v13985_v56, %v1684_v18 }
 0x104   : > { %vm2452_vm3 = vcmp.ge.f32.partialorder %v2057_v5, 0.0  ;;  %v2708_v17 = vmul.f32 0.01, %v2057_v5  ;;  %vm2496_vm5 = vcmp.ge.f32.partialorder %v2167_v20, 0.0  ;;  %v2752_v26 = vmul.f32 0.01, %v2167_v20 }
 0x105   : > { %vm2413_vm4 = vcmp.ge.f32.partialorder %v1960_v19, 0.0  ;;  %v2669_v24 = vmul.f32 0.01, %v1960_v19  ;;  %11559 = vmatmul.msk.bf16.gmra.mxu0 %vm1255_vm0, %v11838_v7  ;;  %vm2303_vm6 = vcmp.ge.f32.partialorder %v1685_v22, 0.0  ;;  %v2559_v25 = vmul.f32 0.01, %v1685_v22  ;;  %11614 = vmatmul.msk.bf16.gmra.mxu1 %vm1255_vm0, %v11893_v8 }
 0x106   : > { %v2964_v23 = vsel %vm2452_vm3, %v2057_v5, %v2708_v17  ;;  %11634 = vmatmul.msk.bf16.gmra.mxu2 %vm1255_vm0, %v11913_v14  ;;  %v3008_v29 = vsel %vm2496_vm5, %v2167_v20, %v2752_v26  ;;  %v11914_v7 = vld [vmem:[%s13466_s20 + $0x2d8] sm:$0xff]  ;;  %v11936_v8 = vld [vmem:[%s13466_s20 + $0x388] sm:$0xff] }
 0x107   : > { %3561 = vst.msk [vmem:[#allocation2 + $0x8a9] sm:$0xff] %vm3057_vm1, %v2964_v23  ;;  %v2925_v27 = vsel %vm2413_vm4, %v1960_v19, %v2669_v24  ;;  %11656 = vmatmul.msk.bf16.gmra.mxu3 %vm1255_vm0, %v11935_v15  ;;  %v2815_v28 = vsel %vm2303_vm6, %v1685_v22, %v2559_v25  ;;  %v4171_v43 = vld [vmem:[#allocation2 + $0xa9] ss:$2 sm:$0xff]  ;;  %v4299_v10 = vld [vmem:[#allocation2 + $0xaa] ss:$2 sm:$0xff] }
 0x108   : > { %3522 = vst.msk [vmem:[#allocation2 + $0x679] sm:$0xff] %vm3057_vm1, %v2925_v27  ;;  %v3972_v47 = vld [vmem:[#allocation2 + $0x662] ss:$2 sm:$0xff]  ;;  %v12092_v48 = vpack.i.bf16 %v4171_v43, %v4169_v38  ;;  %v3844_v55 = vld [vmem:[#allocation2 + $0x661] ss:$2 sm:$0xff]  ;;  %v12097_v16 = vpack.i.bf16 %v4299_v10, %v4297_v13 }
 0x109   : > { %v2059_v30 = vpop.f32.mrf.mxu2  ;;  %3412 = vst.msk [vmem:[#allocation2 + $0xc1] sm:$0xff] %vm3057_vm1, %v2815_v28  ;;  %v2169_v37 = vpop.f32.mrf.mxu3  ;;  %v12082_v57 = vpack.i.bf16 %v3972_v47, %v3970_v46  ;;  %v12077_v63 = vpack.i.bf16 %v3844_v55, %v3842_v54  ;;  %v4553_v20 = vld [vmem:[#allocation2 + $0x91] ss:$2 sm:$0xff]  ;;  %v4043_v22 = vld [vmem:[#allocation2 + $0xa8] ss:$2 sm:$0xff]  ;;  %v11840_v47 = vld [vmem:[%s13466_s20 + $0x88] sm:$0xff] }
 0x10a   : > { %v2060_v32 = vadd.f32 %v13985_v56, %v2059_v30  ;;  %3605 = vst.msk [vmem:[#allocation2 + $0xae9] sm:$0xff] %vm3057_vm1, %v3008_v29  ;;  %v1961_v34 = vpop.f32.mrf.mxu1  ;;  %v1686_v40 = vpop.f32.mrf.mxu0  ;;  %v2170_v42 = vadd.f32 %v13985_v56, %v2169_v37  ;;  %12093 = vrot.lane.b32.xlu1 %v12092_v48, %s13390_s29  ;;  %v4041_v27 = vld [vmem:[#allocation2 + $0x78] ss:$2 sm:$0xff] }
 0x10b   : > { %v1962_v41 = vadd.f32 %v13985_v56, %v1961_v34  ;;  %v1687_v45 = vadd.f32 %v13985_v56, %v1686_v40  ;;  %12083 = vrot.lane.b32.xlu2 %v12082_v57, %s13387_s24  ;;  %12078 = vrot.lane.b32.xlu0 %v12077_v63, %s13386_s23  ;;  %v11915_v57 = vld [vmem:[%s13466_s20 + $0x2e0] sm:$0xff] }
 0x10c   : > { %vm2453_vm7 = vcmp.ge.f32.partialorder %v2060_v32, 0.0  ;;  %v2709_v39 = vmul.f32 0.01, %v2060_v32  ;;  %vm2497_vm9 = vcmp.ge.f32.partialorder %v2170_v42, 0.0  ;;  %v2753_v52 = vmul.f32 0.01, %v2170_v42 }
 0x10d   : > { %vm2414_vm8 = vcmp.ge.f32.partialorder %v1962_v41, 0.0  ;;  %v2670_v50 = vmul.f32 0.01, %v1962_v41  ;;  %vm2304_vm10 = vcmp.ge.f32.partialorder %v1687_v45, 0.0  ;;  %v2560_v51 = vmul.f32 0.01, %v1687_v45 }
 0x10e   : > { %v2965_v49 = vsel %vm2453_vm7, %v2060_v32, %v2709_v39  ;;  %v3009_v59 = vsel %vm2497_vm9, %v2170_v42, %v2753_v52  ;;  %v12087_v32 = vpack.i.bf16 %v4043_v22, %v4041_v27  ;;  %v11896_v27 = vld [vmem:[%s13466_s20 + $0x248] sm:$0xff] }
 0x10f   : > { %3562 = vst.msk [vmem:[#allocation2 + $0x8b9] sm:$0xff] %vm3057_vm1, %v2965_v49  ;;  %v2926_v53 = vsel %vm2414_vm8, %v1962_v41, %v2670_v50  ;;  %v2816_v58 = vsel %vm2304_vm10, %v1687_v45, %v2560_v51  ;;  %v4425_v45 = vld [vmem:[#allocation2 + $0x90] ss:$2 sm:$0xff] }
 0x110   : > { %3523 = vst.msk [vmem:[#allocation2 + $0x681] sm:$0xff] %vm3057_vm1, %v2926_v53  ;;  %v11895_v51 = vld [vmem:[%s13466_s20 + $0x240] sm:$0xff] }
 0x111   : > { %v2061_v60 = vpop.f32.mrf.mxu2  ;;  %3413 = vst.msk [vmem:[#allocation2 + $0xc9] sm:$0xff] %vm3057_vm1, %v2816_v58  ;;  %v2171_v1 = vpop.f32.mrf.mxu3  ;;  %v11937_v58 = vld [vmem:[%s13466_s20 + $0x390] sm:$0xff] }
 0x112   : > { %v2062_v61 = vadd.f32 %v13985_v56, %v2061_v60  ;;  %3606 = vst.msk [vmem:[#allocation2 + $0xaf9] sm:$0xff] %vm3057_vm1, %v3009_v59  ;;  %v1964_v0 = vpop.f32.mrf.mxu1  ;;  %v1689_v4 = vpop.f32.mrf.mxu0  ;;  %v2172_v6 = vadd.f32 %v13985_v56, %v2171_v1 }
 0x113   : > { %v1965_v5 = vadd.f32 %v13985_v56, %v1964_v0  ;;  %v1690_v9 = vadd.f32 %v13985_v56, %v1689_v4  ;;  %12098 = vrot.lane.b32.xlu2 %v12097_v16, %s13388_s25  ;;  %12088 = vrot.lane.b32.xlu0 %v12087_v32, %s13389_s26  ;;  %v3864_v32 = vld [vmem:[#allocation2 + $0x8a1] ss:$2 sm:$0xff] }
 0x114   : > { %vm2454_vm11 = vcmp.ge.f32.partialorder %v2062_v61, 0.0  ;;  %v2710_v3 = vmul.f32 0.01, %v2062_v61  ;;  %vm2498_vm12 = vcmp.ge.f32.partialorder %v2172_v6, 0.0  ;;  %v2754_v14 = vmul.f32 0.01, %v2172_v6 }
 0x115   : > { %vm2415_vm2 = vcmp.ge.f32.partialorder %v1965_v5, 0.0  ;;  %v2671_v12 = vmul.f32 0.01, %v1965_v5  ;;  %11560 = vmatmul.msk.bf16.gmra.mxu0 %vm1255_vm0, %v11839_v62  ;;  %vm2305_vm13 = vcmp.ge.f32.partialorder %v1690_v9, 0.0  ;;  %v2561_v36 = vmul.f32 0.01, %v1690_v9  ;;  %11615 = vmatmul.msk.bf16.gmra.mxu1 %vm1255_vm0, %v11894_v2 }
 0x116   : > { %v2966_v11 = vsel %vm2454_vm11, %v2062_v61, %v2710_v3  ;;  %11635 = vmatmul.msk.bf16.gmra.mxu2 %vm1255_vm0, %v11914_v7  ;;  %v3010_v18 = vsel %vm2498_vm12, %v2172_v6, %v2754_v14 }
 0x117   : > { %3563 = vst.msk [vmem:[#allocation2 + $0x8c1] sm:$0xff] %vm3057_vm1, %v2966_v11  ;;  %v2927_v15 = vsel %vm2415_vm2, %v1965_v5, %v2671_v12  ;;  %11657 = vmatmul.msk.bf16.gmra.mxu3 %vm1255_vm0, %v11936_v8  ;;  %v2817_v17 = vsel %vm2305_vm13, %v1690_v9, %v2561_v36 }
 0x118   : > { %3524 = vst.msk [vmem:[#allocation2 + $0x691] sm:$0xff] %vm3057_vm1, %v2927_v15  ;;  %v4555_v21 = vld [vmem:[#allocation2 + $0xc1] ss:$2 sm:$0xff]  ;;  %v4427_v41 = vld [vmem:[#allocation2 + $0xc0] ss:$2 sm:$0xff] }
 0x119   : > { %v2064_v19 = vpop.f32.mrf.mxu2  ;;  %3414 = vst.msk [vmem:[#allocation2 + $0xd9] sm:$0xff] %vm3057_vm1, %v2817_v17  ;;  %v12112_v24 = vpack.i.bf16 %v4555_v21, %v4553_v20  ;;  %v2174_v26 = vpop.f32.mrf.mxu3  ;;  %v12107_v48 = vpack.i.bf16 %v4427_v41, %v4425_v45 }
 0x11a   : > { %v2065_v23 = vadd.f32 %v13985_v56, %v2064_v19  ;;  %3607 = vst.msk [vmem:[#allocation2 + $0xb01] sm:$0xff] %vm3057_vm1, %v3010_v18  ;;  %v1966_v25 = vpop.f32.mrf.mxu1  ;;  %v1691_v29 = vpop.f32.mrf.mxu0  ;;  %v2175_v31 = vadd.f32 %v13985_v56, %v2174_v26  ;;  %v11841_v26 = vld [vmem:[%s13466_s20 + $0x90] sm:$0xff] }
 0x11b   : > { %v1967_v30 = vadd.f32 %v13985_v56, %v1966_v25  ;;  %12113 = vrot.lane.b32.xlu1 %v12112_v24, %s13391_s30  ;;  %v1692_v33 = vadd.f32 %v13985_v56, %v1691_v29  ;;  %12108 = vrot.lane.b32.xlu0 %v12107_v48, %s13392_s10 }
 0x11c   : > { %vm2455_vm14 = vcmp.ge.f32.partialorder %v2065_v23, 0.0  ;;  %v2711_v28 = vmul.f32 0.01, %v2065_v23  ;;  %vm2499_vm3 = vcmp.ge.f32.partialorder %v2175_v31, 0.0  ;;  %v2755_v39 = vmul.f32 0.01, %v2175_v31 }
 0x11d   : > { %vm2416_vm15 = vcmp.ge.f32.partialorder %v1967_v30, 0.0  ;;  %v2672_v37 = vmul.f32 0.01, %v1967_v30  ;;  %vm2306_vm4 = vcmp.ge.f32.partialorder %v1692_v33, 0.0  ;;  %v2562_v38 = vmul.f32 0.01, %v1692_v33 }
 0x11e   : > { %v2967_v34 = vsel %vm2455_vm14, %v2065_v23, %v2711_v28  ;;  %v3011_v43 = vsel %vm2499_vm3, %v2175_v31, %v2755_v39  ;;  %v11916_v28 = vld [vmem:[%s13466_s20 + $0x2e8] sm:$0xff]  ;;  %v3862_v31 = vld [vmem:[#allocation2 + $0x871] ss:$2 sm:$0xff] }
 0x11f   : > { %3564 = vst.msk [vmem:[#allocation2 + $0x8d1] sm:$0xff] %vm3057_vm1, %v2967_v34  ;;  %v2928_v40 = vsel %vm2416_vm15, %v1967_v30, %v2672_v37  ;;  %v2818_v42 = vsel %vm2306_vm4, %v1692_v33, %v2562_v38  ;;  %v11938_v30 = vld [vmem:[%s13466_s20 + $0x398] sm:$0xff]  ;;  %v12102_v41 = vpack.i.bf16 %v3864_v32, %v3862_v31 }
 0x120   : > { %3525 = vst.msk [vmem:[#allocation2 + $0x699] sm:$0xff] %vm3057_vm1, %v2928_v40  ;;  %v11960_v37 = vld [vmem:[%s16983_s3 + $0x38] sm:$0xff] }
 0x121   : > { %v2066_v44 = vpop.f32.mrf.mxu2  ;;  %3415 = vst.msk [vmem:[#allocation2 + $0xe1] sm:$0xff] %vm3057_vm1, %v2818_v42  ;;  %v2176_v50 = vpop.f32.mrf.mxu3  ;;  %7285 = vmatpush.bf16.msrb.mxu1 %v11960_v37  ;;  %12103 = vrot.lane.b32.xlu2 %v12102_v41, %s13386_s23 }
 0x122   : > { %v2067_v46 = vadd.f32 %v13985_v56, %v2066_v44  ;;  %3608 = vst.msk [vmem:[#allocation2 + $0xb11] sm:$0xff] %vm3057_vm1, %v3011_v43  ;;  %v1969_v49 = vpop.f32.mrf.mxu1  ;;  %v1694_v53 = vpop.f32.mrf.mxu0  ;;  %v2177_v55 = vadd.f32 %v13985_v56, %v2176_v50  ;;  %v3790_v44 = vld [vmem:[#allocation2 + $0xc1] ss:$2 sm:$0xff] }
 0x123   : > { %v1970_v54 = vadd.f32 %v13985_v56, %v1969_v49  ;;  %v1695_v59 = vadd.f32 %v13985_v56, %v1694_v53  ;;  %v3886_v50 = vld [vmem:[#allocation2 + $0xae1] ss:$2 sm:$0xff] }
 0x124   : > { %vm2456_vm5 = vcmp.ge.f32.partialorder %v2067_v46, 0.0  ;;  %v2712_v52 = vmul.f32 0.01, %v2067_v46  ;;  %vm2500_vm7 = vcmp.ge.f32.partialorder %v2177_v55, 0.0  ;;  %v2756_v63 = vmul.f32 0.01, %v2177_v55 }
 0x125   : > { %vm2417_vm6 = vcmp.ge.f32.partialorder %v1970_v54, 0.0  ;;  %v2673_v61 = vmul.f32 0.01, %v1970_v54  ;;  %11561 = vmatmul.msk.bf16.gmra.mxu0 %vm1255_vm0, %v11840_v47  ;;  %vm2307_vm8 = vcmp.ge.f32.partialorder %v1695_v59, 0.0  ;;  %v2563_v62 = vmul.f32 0.01, %v1695_v59  ;;  %11616 = vmatmul.msk.bf16.gmra.mxu1 %vm1255_vm0, %v11895_v51 }
 0x126   : > { %v2968_v60 = vsel %vm2456_vm5, %v2067_v46, %v2712_v52  ;;  %11636 = vmatmul.msk.bf16.gmra.mxu2 %vm1255_vm0, %v11915_v57  ;;  %v3012_v2 = vsel %vm2500_vm7, %v2177_v55, %v2756_v63  ;;  %v11959_v46 = vld [vmem:[%s16983_s3 + $0x30] sm:$0xff] }
 0x127   : > { %3565 = vst.msk [vmem:[#allocation2 + $0x8d9] sm:$0xff] %vm3057_vm1, %v2968_v60  ;;  %v2929_v0 = vsel %vm2417_vm6, %v1970_v54, %v2673_v61  ;;  %11658 = vmatmul.msk.bf16.gmra.mxu3 %vm1255_vm0, %v11937_v58  ;;  %v2819_v1 = vsel %vm2307_vm8, %v1695_v59, %v2563_v62  ;;  %7286 = vmatpush.bf16.msrb.mxu1 %v11959_v46  ;;  %v11958_v61 = vld [vmem:[%s16983_s3 + $0x28] sm:$0xff] }
 0x128   : > { %3526 = vst.msk [vmem:[#allocation2 + $0x6d9] sm:$0xff] %vm3057_vm1, %v2929_v0 }
 0x129   : > { %v2069_v3 = vpop.f32.mrf.mxu2  ;;  %3416 = vst.msk [vmem:[#allocation2 + $0xf1] sm:$0xff] %vm3057_vm1, %v2819_v1  ;;  %v2179_v6 = vpop.f32.mrf.mxu3 }
 0x12a   : > { %v2070_v4 = vadd.f32 %v13985_v56, %v2069_v3  ;;  %3609 = vst.msk [vmem:[#allocation2 + $0xb19] sm:$0xff] %vm3057_vm1, %v3012_v2  ;;  %v1971_v5 = vpop.f32.mrf.mxu1  ;;  %v1696_v8 = vpop.f32.mrf.mxu0  ;;  %v2180_v10 = vadd.f32 %v13985_v56, %v2179_v6 }
 0x12b   : > { %v1972_v9 = vadd.f32 %v13985_v56, %v1971_v5  ;;  %v1697_v11 = vadd.f32 %v13985_v56, %v1696_v8  ;;  %7287 = vmatpush.bf16.msrb.mxu1 %v11958_v61  ;;  %v11957_v8 = vld [vmem:[%s16983_s3 + $0x20] sm:$0xff] }
 0x12c   : > { %vm2457_vm9 = vcmp.ge.f32.partialorder %v2070_v4, 0.0  ;;  %v2713_v7 = vmul.f32 0.01, %v2070_v4  ;;  %vm2501_vm11 = vcmp.ge.f32.partialorder %v2180_v10, 0.0  ;;  %v2757_v14 = vmul.f32 0.01, %v2180_v10 }
 0x12d   : > { %vm2418_vm10 = vcmp.ge.f32.partialorder %v1972_v9, 0.0  ;;  %v2674_v13 = vmul.f32 0.01, %v1972_v9  ;;  %vm2308_vm2 = vcmp.ge.f32.partialorder %v1697_v11, 0.0  ;;  %v2564_v36 = vmul.f32 0.01, %v1697_v11 }
 0x12e   : > { %v2969_v12 = vsel %vm2457_vm9, %v2070_v4, %v2713_v7  ;;  %v3013_v17 = vsel %vm2501_vm11, %v2180_v10, %v2757_v14  ;;  %v3918_v7 = vld [vmem:[#allocation2 + $0xc2] ss:$2 sm:$0xff] }
 0x12f   : > { %3566 = vst.msk [vmem:[#allocation2 + $0x8e9] sm:$0xff] %vm3057_vm1, %v2969_v12  ;;  %v2930_v15 = vsel %vm2418_vm10, %v1972_v9, %v2674_v13  ;;  %v2820_v16 = vsel %vm2308_vm2, %v1697_v11, %v2564_v36  ;;  %v11842_v11 = vld [vmem:[%s13466_s20 + $0x98] sm:$0xff]  ;;  %v11897_v36 = vld [vmem:[%s13466_s20 + $0x250] sm:$0xff]  ;;  %7288 = vmatpush.bf16.msrb.mxu1 %v11957_v8 }
 0x130   : > { %3527 = vst.msk [vmem:[#allocation2 + $0x6e1] sm:$0xff] %vm3057_vm1, %v2930_v15 }
 0x131   : > { %v2071_v18 = vpop.f32.mrf.mxu2  ;;  %3417 = vst.msk [vmem:[#allocation2 + $0xf9] sm:$0xff] %vm3057_vm1, %v2820_v16  ;;  %v2181_v21 = vpop.f32.mrf.mxu3  ;;  %v3888_v51 = vld [vmem:[#allocation2 + $0xb11] ss:$2 sm:$0xff]  ;;  %v14278_v16 = vld [vmem:[%s16982_s2] ss:$0 sm:$0xff] }
 0x132   : > { %v2072_v19 = vadd.f32 %v13985_v56, %v2071_v18  ;;  %3610 = vst.msk [vmem:[#allocation2 + $0xb29] sm:$0xff] %vm3057_vm1, %v3013_v17  ;;  %v1974_v20 = vpop.f32.mrf.mxu1  ;;  %v1699_v23 = vpop.f32.mrf.mxu0  ;;  %v2182_v25 = vadd.f32 %v13985_v56, %v2181_v21  ;;  %v12117_v60 = vpack.i.bf16 %v3888_v51, %v3886_v50  ;;  %v11939_v18 = vld [vmem:[%s13466_s20 + $0x3a0] sm:$0xff]  ;;  %v11956_v21 = vld [vmem:[%s16983_s3 + $0x18] sm:$0xff]  ;;  %v11954_v50 = vld [vmem:[%s16983_s3 + $0x8] sm:$0xff] }
 0x133   : > { %v1975_v24 = vadd.f32 %v13985_v56, %v1974_v20  ;;  %v1700_v29 = vadd.f32 %v13985_v56, %v1699_v23  ;;  %v3974_v23 = vld [vmem:[#allocation2 + $0x6c2] ss:$2 sm:$0xff]  ;;  %7289 = vmatpush.bf16.msrb.mxu1 %v11956_v21  ;;  %v14310_v51 = vpop.permute.xlu2 %12013 }
 0x134   : > { %vm2458_vm12 = vcmp.ge.f32.partialorder %v2072_v19, 0.0  ;;  %v2714_v22 = vmul.f32 0.01, %v2072_v19  ;;  %vm2502_vm15 = vcmp.ge.f32.partialorder %v2182_v25, 0.0  ;;  %v2758_v40 = vmul.f32 0.01, %v2182_v25  ;;  %12118 = vrot.lane.b32.xlu2 %v12117_v60, %s13386_s23 }
 0x135   : > { %vm2419_vm13 = vcmp.ge.f32.partialorder %v1975_v24, 0.0  ;;  %v2675_v34 = vmul.f32 0.01, %v1975_v24  ;;  %11562 = vmatmul.msk.bf16.gmra.mxu0 %vm1255_vm0, %v11841_v26  ;;  %vm2309_vm14 = vcmp.ge.f32.partialorder %v1700_v29, 0.0  ;;  %v2565_v38 = vmul.f32 0.01, %v1700_v29  ;;  %11617 = vmatmul.msk.bf16.gmra.mxu1 %vm1255_vm0, %v11896_v27 }
 0x136   : > { %v2970_v33 = vsel %vm2458_vm12, %v2072_v19, %v2714_v22  ;;  %11637 = vmatmul.msk.bf16.gmra.mxu2 %vm1255_vm0, %v11916_v28  ;;  %v3014_v47 = vsel %vm2502_vm15, %v2182_v25, %v2758_v40  ;;  %v4045_v28 = vld [vmem:[#allocation2 + $0xd8] ss:$2 sm:$0xff] }
 0x137   : > { %3567 = vst.msk [vmem:[#allocation2 + $0x8f1] sm:$0xff] %vm3057_vm1, %v2970_v33  ;;  %v2931_v39 = vsel %vm2419_vm13, %v1975_v24, %v2675_v34  ;;  %11659 = vmatmul.msk.bf16.gmra.mxu3 %vm1255_vm0, %v11938_v30  ;;  %v2821_v42 = vsel %vm2309_vm14, %v1700_v29, %v2565_v38  ;;  %v3846_v24 = vld [vmem:[#allocation2 + $0x6c1] ss:$2 sm:$0xff] }
 0x138   : > { %3528 = vst.msk [vmem:[#allocation2 + $0x6f1] sm:$0xff] %vm3057_vm1, %v2931_v39  ;;  %v3792_v45 = vld [vmem:[#allocation2 + $0xf1] ss:$2 sm:$0xff]  ;;  %v3920_v0 = vld [vmem:[#allocation2 + $0xf2] ss:$2 sm:$0xff]  ;;  %v11955_v34 = vld [vmem:[%s16983_s3 + $0x10] sm:$0xff] }
 0x139   : > { %v2074_v43 = vpop.f32.mrf.mxu2  ;;  %3418 = vst.msk [vmem:[#allocation2 + $0x109] sm:$0xff] %vm3057_vm1, %v2821_v42  ;;  %v12122_v49 = vpack.i.bf16 %v3792_v45, %v3790_v44  ;;  %v2184_v53 = vpop.f32.mrf.mxu3  ;;  %v12127_v10 = vpack.i.bf16 %v3920_v0, %v3918_v7  ;;  %7290 = vmatpush.bf16.msrb.mxu1 %v11955_v34  ;;  %v11953_v0 = vld [vmem:[%s16983_s3] sm:$0xff] }
 0x13a   : > { %v2075_v48 = vadd.f32 %v13985_v56, %v2074_v43  ;;  %3611 = vst.msk [vmem:[#allocation2 + $0xb31] sm:$0xff] %vm3057_vm1, %v3014_v47  ;;  %v1976_v52 = vpop.f32.mrf.mxu1  ;;  %v1701_v55 = vpop.f32.mrf.mxu0  ;;  %v2185_v58 = vadd.f32 %v13985_v56, %v2184_v53 }
 0x13b   : > { %v1977_v57 = vadd.f32 %v13985_v56, %v1976_v52  ;;  %12123 = vrot.lane.b32.xlu1 %v12122_v49, %s13386_s23  ;;  %v1702_v59 = vadd.f32 %v13985_v56, %v1701_v55  ;;  %v14312_v53 = vpop.permute.xlu0 %12003 }
 0x13c   : > { %vm2459_vm3 = vcmp.ge.f32.partialorder %v2075_v48, 0.0  ;;  %v2715_v54 = vmul.f32 0.01, %v2075_v48  ;;  %vm2503_vm5 = vcmp.ge.f32.partialorder %v2185_v58, 0.0  ;;  %v2759_v2 = vmul.f32 0.01, %v2185_v58 }
 0x13d   : > { %vm2420_vm4 = vcmp.ge.f32.partialorder %v1977_v57, 0.0  ;;  %v2676_v63 = vmul.f32 0.01, %v1977_v57  ;;  %vm2310_vm6 = vcmp.ge.f32.partialorder %v1702_v59, 0.0  ;;  %v2566_v1 = vmul.f32 0.01, %v1702_v59  ;;  %7291 = vmatpush.bf16.msrb.mxu1 %v11954_v50 }
 0x13e   : > { %v2971_v62 = vsel %vm2459_vm3, %v2075_v48, %v2715_v54  ;;  %v3015_v5 = vsel %vm2503_vm5, %v2185_v58, %v2759_v2 }
 0x13f   : > { %3568 = vst.msk [vmem:[#allocation2 + $0x901] sm:$0xff] %vm3057_vm1, %v2971_v62  ;;  %v2932_v3 = vsel %vm2420_vm4, %v1977_v57, %v2676_v63  ;;  %v2822_v4 = vsel %vm2310_vm6, %v1702_v59, %v2566_v1  ;;  %v4173_v63 = vld [vmem:[#allocation2 + $0xd9] ss:$2 sm:$0xff] }
 0x140   : > { %3529 = vst.msk [vmem:[#allocation2 + $0x6f9] sm:$0xff] %vm3057_vm1, %v2932_v3 }
 0x141   : > { %v2076_v6 = vpop.f32.mrf.mxu2  ;;  %3419 = vst.msk [vmem:[#allocation2 + $0x111] sm:$0xff] %vm3057_vm1, %v2822_v4  ;;  %v2186_v13 = vpop.f32.mrf.mxu3  ;;  %v4301_v4 = vld [vmem:[#allocation2 + $0xda] ss:$2 sm:$0xff]  ;;  %7292 = vmatpush.bf16.msrb.mxu1 %v11953_v0 }
 0x142   : > { %v2077_v9 = vadd.f32 %v13985_v56, %v2076_v6  ;;  %3612 = vst.msk [vmem:[#allocation2 + $0xb41] sm:$0xff] %vm3057_vm1, %v3015_v5  ;;  %v1979_v12 = vpop.f32.mrf.mxu1  ;;  %v1704_v15 = vpop.f32.mrf.mxu0  ;;  %v11917_v56 = vld [vmem:[%s13466_s20 + $0x2f0] sm:$0xff]  ;;  %v2187_v20 = vadd.f32 %v14278_v16, %v2186_v13  ;;  %v11843_v5 = vld [vmem:[%s13466_s20 + $0xa0] sm:$0xff]  ;;  %v11940_v13 = vld [vmem:[%s13466_s20 + $0x3a8] sm:$0xff] }
 0x143   : > { %v1980_v17 = vadd.f32 %v14278_v16, %v1979_v12  ;;  %12128 = vrot.lane.b32.xlu1 %v12127_v10, %s13387_s24  ;;  %v1705_v19 = vadd.f32 %v14278_v16, %v1704_v15  ;;  %v11918_v12 = vld [vmem:[%s13466_s20 + $0x2f8] sm:$0xff] }
 0x144   : > { %vm2460_vm7 = vcmp.ge.f32.partialorder %v2077_v9, 0.0  ;;  %v2716_v14 = vmul.f32 0.01, %v2077_v9  ;;  %vm2504_vm10 = vcmp.ge.f32.partialorder %v2187_v20, 0.0  ;;  %v2760_v32 = vmul.f32 0.01, %v2187_v20 }
 0x145   : > { %vm2421_vm8 = vcmp.ge.f32.partialorder %v1980_v17, 0.0  ;;  %11563 = vmatmul.msk.bf16.gmra.mxu0 %vm1255_vm0, %v11842_v11  ;;  %vm2311_vm9 = vcmp.ge.f32.partialorder %v1705_v19, 0.0  ;;  %v2567_v25 = vmul.f32 0.01, %v1705_v19  ;;  %v2677_v26 = vmul.f32 0.01, %v1980_v17  ;;  %11618 = vmatmul.msk.bf16.gmra.mxu1 %vm1255_vm0, %v11897_v36 }
 0x146   : > { %v2972_v22 = vsel %vm2460_vm7, %v2077_v9, %v2716_v14  ;;  %11638 = vmatmul.msk.bf16.gmra.mxu2 %vm1255_vm0, %v11917_v56  ;;  %v3016_v41 = vsel %vm2504_vm10, %v2187_v20, %v2760_v32  ;;  %v14314_v58 = vpop.permute.xlu1 %12023  ;;  %v3866_v36 = vld [vmem:[#allocation2 + $0x8d1] ss:$2 sm:$0xff]  ;;  %vm6789_vm10 = vcmask 523264  }
 0x147   : > { %3569 = vst.msk [vmem:[#allocation2 + $0x909] sm:$0xff] %vm3057_vm1, %v2972_v22  ;;  %11660 = vmatmul.msk.bf16.gmra.mxu3 %vm1255_vm0, %v11939_v18  ;;  %v3976_v27 = vld [vmem:[#allocation2 + $0x6f2] ss:$2 sm:$0xff]  ;;  %v3848_v29 = vld [vmem:[#allocation2 + $0x6f1] ss:$2 sm:$0xff]  ;;  %v2823_v30 = vsel %vm2311_vm9, %v1705_v19, %v2567_v25  ;;  %v2933_v31 = vsel %vm2421_vm8, %v1980_v17, %v2677_v26  ;;  %v14332_v18 = vpop.permute.xlu2 %12018  ;;  %v12009_v25 = vpop.permute.xlu0 %12008  ;;  %vm6724_vm9 = vcmask 392192  }
 0x148   : > { %v4047_v33 = vld [vmem:[#allocation2 + $0x108] ss:$2 sm:$0xff]  ;;  %3420 = vst.msk [vmem:[#allocation2 + $0x121] sm:$0xff] %vm3057_vm1, %v2823_v30  ;;  %v12137_v38 = vpack.i.bf16 %v3976_v27, %v3974_v23  ;;  %v12132_v40 = vpack.i.bf16 %v3848_v29, %v3846_v24  ;;  %v4175_v57 = vld [vmem:[#allocation2 + $0x109] ss:$2 sm:$0xff] }
 0x149   : > { %v2079_v37 = vpop.f32.mrf.mxu2  ;;  %v12142_v39 = vpack.i.bf16 %v4047_v33, %v4045_v28  ;;  %3530 = vst.msk [vmem:[#allocation2 + $0x709] sm:$0xff] %vm3057_vm1, %v2933_v31  ;;  %v2189_v44 = vpop.f32.mrf.mxu3  ;;  %v4303_v61 = vld [vmem:[#allocation2 + $0x10a] ss:$2 sm:$0xff]  ;;  %v12147_v3 = vpack.i.bf16 %v4175_v57, %v4173_v63 }
 0x14a   : > { %v2080_v42 = vadd.f32 %v14278_v16, %v2079_v37  ;;  %v1981_v43 = vpop.f32.mrf.mxu1  ;;  %3613 = vst.msk [vmem:[#allocation2 + $0xb49] sm:$0xff] %vm3057_vm1, %v3016_v41  ;;  %v1706_v45 = vpop.f32.mrf.mxu0  ;;  %v2190_v47 = vadd.f32 %v14278_v16, %v2189_v44  ;;  %12138 = vrot.lane.b32.xlu0 %v12137_v38, %s13387_s24  ;;  %v12152_v8 = vpack.i.bf16 %v4303_v61, %v4301_v4  ;;  %v4429_v27 = vld [vmem:[#allocation2 + $0xf0] ss:$2 sm:$0xff]  ;;  %v12011_v37 = vunpack.i.h.bf16 %v12009_v25 }
 0x14b   : > { %v1982_v46 = vadd.f32 %v14278_v16, %v1981_v43  ;;  %12143 = vrot.lane.b32.xlu2 %v12142_v39, %s13389_s26  ;;  %v1707_v49 = vadd.f32 %v14278_v16, %v1706_v45  ;;  %12133 = vrot.lane.b32.xlu1 %v12132_v40, %s13386_s23  ;;  %v12010_v38 = vunpack.i.l.bf16 %v12009_v25  ;;  %v3654_v43 = vld [vmem:[#allocation2] ss:$2 sm:$0xff]  ;;  %v12016_v61 = vunpack.i.h.bf16 %v14310_v51 }
 0x14c   : > { %vm2461_vm11 = vcmp.ge.f32.partialorder %v2080_v42, 0.0  ;;  %v2717_v48 = vmul.f32 0.01, %v2080_v42  ;;  %vm2505_vm13 = vcmp.ge.f32.partialorder %v2190_v47, 0.0  ;;  %v2761_v60 = vmul.f32 0.01, %v2190_v47 }
 0x14d   : > { %vm2422_vm2 = vcmp.ge.f32.partialorder %v1982_v46, 0.0  ;;  %v2678_v52 = vmul.f32 0.01, %v1982_v46  ;;  %vm2312_vm12 = vcmp.ge.f32.partialorder %v1707_v49, 0.0  ;;  %v2568_v55 = vmul.f32 0.01, %v1707_v49 }
 0x14e   : > { %v2973_v54 = vsel %vm2461_vm11, %v2080_v42, %v2717_v48  ;;  %v3017_v1 = vsel %vm2505_vm13, %v2190_v47, %v2761_v60  ;;  %v3868_v56 = vld [vmem:[#allocation2 + $0x901] ss:$2 sm:$0xff]  ;;  %v14339_v29 = vpop.permute.xlu1 %12028  ;;  %v11961_v42 = vld [vmem:[%s16983_s3 + $0x40] sm:$0xff] }
 0x14f   : > { %3570 = vst.msk [vmem:[#allocation2 + $0x919] sm:$0xff] %vm3057_vm1, %v2973_v54  ;;  %v2934_v59 = vsel %vm2422_vm2, %v1982_v46, %v2678_v52  ;;  %v2824_v62 = vsel %vm2312_vm12, %v1707_v49, %v2568_v55  ;;  %v12157_v24 = vpack.i.bf16 %v3868_v56, %v3866_v36  ;;  %v3656_v47 = vld [vmem:[#allocation2 + $0x30] ss:$2 sm:$0xff]  ;;  %7461 = vmatpush.bf16.msrb.mxu2 %v11961_v42  ;;  %v12034_v57 = vpop.permute.xlu2 %12033  ;;  %v12030_v63 = vunpack.i.l.bf16 %v14339_v29  ;;  %v11941_v36 = vld [vmem:[%s13466_s20 + $0x3b0] sm:$0xff] }
 0x150   : > { %3531 = vst.msk [vmem:[#allocation2 + $0x711] sm:$0xff] %vm3057_vm1, %v2934_v59  ;;  %v6596_v54 = vsel %vm3057_vm1, %v3654_v43, %v12010_v38  ;;  %v6597_v55 = vsel %vm3057_vm1, %v3656_v47, %v12011_v37 }
 0x151   : > { %3421 = vst.msk [vmem:[#allocation2 + $0x129] sm:$0xff] %vm3057_vm1, %v2824_v62  ;;  %v2081_v2 = vpop.f32.mrf.mxu2  ;;  %v2191_v7 = vpop.f32.mrf.mxu3  ;;  %v12031_v62 = vunpack.i.h.bf16 %v14339_v29 }
 0x152   : > { %3614 = vst.msk [vmem:[#allocation2 + $0xb59] sm:$0xff] %vm3057_vm1, %v3017_v1  ;;  %v2082_v6 = vadd.f32 %v14278_v16, %v2081_v2  ;;  %v1709_v9 = vpop.f32.mrf.mxu0  ;;  %v1984_v10 = vpop.f32.mrf.mxu1  ;;  %v2192_v11 = vadd.f32 %v14278_v16, %v2191_v7  ;;  %12148 = vrot.lane.b32.xlu0 %v12147_v3, %s13390_s29  ;;  %v4557_v1 = vld [vmem:[#allocation2 + $0xf1] ss:$2 sm:$0xff]  ;;  %v12015_v2 = vunpack.i.l.bf16 %v14310_v51 }
 0x153   : > { %v1710_v15 = vadd.f32 %v14278_v16, %v1709_v9  ;;  %v1985_v17 = vadd.f32 %v14278_v16, %v1984_v10  ;;  %12153 = vrot.lane.b32.xlu1 %v12152_v8, %s13388_s25  ;;  %v6661_v10 = vsel %vm1255_vm0, %v6597_v55, %v12016_v61 }
 0x154   : > { %vm2462_vm14 = vcmp.ge.f32.partialorder %v2082_v6, 0.0  ;;  %v2718_v14 = vmul.f32 0.01, %v2082_v6  ;;  %vm2506_vm15 = vcmp.ge.f32.partialorder %v2192_v11, 0.0  ;;  %v2762_v19 = vmul.f32 0.01, %v2192_v11 }
 0x155   : > { %11564 = vmatmul.msk.bf16.gmra.mxu0 %vm1255_vm0, %v11843_v5  ;;  %vm2313_vm3 = vcmp.ge.f32.partialorder %v1710_v15, 0.0  ;;  %v2569_v21 = vmul.f32 0.01, %v1710_v15  ;;  %vm2423_vm4 = vcmp.ge.f32.partialorder %v1985_v17, 0.0  ;;  %v2679_v22 = vmul.f32 0.01, %v1985_v17 }
 0x156   : > { %v2974_v20 = vsel %vm2462_vm14, %v2082_v6, %v2718_v14  ;;  %v3018_v23 = vsel %vm2506_vm15, %v2192_v11, %v2762_v19  ;;  %11639 = vmatmul.msk.bf16.gmra.mxu2 %vm1255_vm0, %v11918_v12  ;;  %v11844_v6 = vld [vmem:[%s13466_s20 + $0xa8] sm:$0xff]  ;;  %v6660_v9 = vsel %vm1255_vm0, %v6596_v54, %v12015_v2  ;;  %v14367_v51 = vpop.permute.xlu1 %12043  ;;  %v6726_v14 = vsel %vm6724_vm9, %v6661_v10, %v12031_v62 }
 0x157   : > { %3571 = vst.msk [vmem:[#allocation2 + $0x921] sm:$0xff] %vm3057_vm1, %v2974_v20  ;;  %11661 = vmatmul.msk.bf16.gmra.mxu3 %vm1255_vm0, %v11940_v13  ;;  %v2825_v26 = vsel %vm2313_vm3, %v1710_v15, %v2569_v21  ;;  %v2935_v30 = vsel %vm2423_vm4, %v1985_v17, %v2679_v22  ;;  %v11919_v13 = vld [vmem:[%s13466_s20 + $0x300] sm:$0xff]  ;;  %v6725_v15 = vsel %vm6724_vm9, %v6660_v9, %v12030_v63  ;;  %v12036_v22 = vunpack.i.h.bf16 %v12034_v57  ;;  %v3890_v62 = vld [vmem:[#allocation2 + $0xb41] ss:$2 sm:$0xff]  ;;  %v4679_v9 = vld [vmem:[#allocation2 + $0x62] ss:$2 sm:$0xff] }
 0x158   : > { %3615 = vst.msk [vmem:[#allocation2 + $0xb61] sm:$0xff] %vm3057_vm1, %v3018_v23  ;;  %v4431_v28 = vld [vmem:[#allocation2 + $0x120] ss:$2 sm:$0xff]  ;;  %v4559_v52 = vld [vmem:[#allocation2 + $0x121] ss:$2 sm:$0xff]  ;;  %v12035_v23 = vunpack.i.l.bf16 %v12034_v57  ;;  %vm6854_vm14 = vcmask 654336  }
 0x159   : > { %3422 = vst.msk [vmem:[#allocation2 + $0x139] sm:$0xff] %vm3057_vm1, %v2825_v26  ;;  %v2084_v31 = vpop.f32.mrf.mxu2  ;;  %v12162_v32 = vpack.i.bf16 %v4431_v28, %v4429_v27  ;;  %v12167_v5 = vpack.i.bf16 %v4559_v52, %v4557_v1  ;;  %v6791_v28 = vsel %vm6789_vm10, %v6726_v14, %v12036_v22  ;;  %vm6919_vm15 = vcmask 785408  }
 0x15a   : > { %3532 = vst.msk [vmem:[#allocation2 + $0x721] sm:$0xff] %vm3057_vm1, %v2935_v30  ;;  %v2085_v33 = vadd.f32 %v14278_v16, %v2084_v31  ;;  %v2194_v34 = vpop.f32.mrf.mxu3  ;;  %v1711_v39 = vpop.f32.mrf.mxu0  ;;  %12158 = vrot.lane.b32.xlu0 %v12157_v24, %s13386_s23  ;;  %v6790_v29 = vsel %vm6789_vm10, %v6725_v15, %v12035_v23  ;;  %vm6984_vm3 = vcmask 916480   ;;  %v4677_v15 = vld [vmem:[#allocation2 + $0x32] ss:$2 sm:$0xff] }
 0x15b   : > { %v1986_v40 = vpop.f32.mrf.mxu1  ;;  %v2195_v41 = vadd.f32 %v14278_v16, %v2194_v34  ;;  %12163 = vrot.lane.b32.xlu2 %v12162_v32, %s13392_s10  ;;  %v1712_v45 = vadd.f32 %v14278_v16, %v1711_v39  ;;  %v12039_v24 = vpop.permute.xlu0 %12038 }
 0x15c   : > { %vm2463_vm5 = vcmp.ge.f32.partialorder %v2085_v33, 0.0  ;;  %v2719_v44 = vmul.f32 0.01, %v2085_v33  ;;  %v1987_v46 = vadd.f32 %v14278_v16, %v1986_v40  ;;  %v12059_v31 = vpop.permute.xlu2 %12058  ;;  %v12041_v32 = vunpack.i.h.bf16 %v12039_v24 }
 0x15d   : > { %vm2507_vm6 = vcmp.ge.f32.partialorder %v2195_v41, 0.0  ;;  %v2763_v48 = vmul.f32 0.01, %v2195_v41  ;;  %vm2314_vm7 = vcmp.ge.f32.partialorder %v1712_v45, 0.0  ;;  %v2570_v50 = vmul.f32 0.01, %v1712_v45 }
 0x15e   : > { %v2975_v49 = vsel %vm2463_vm5, %v2085_v33, %v2719_v44  ;;  %vm2424_vm8 = vcmp.ge.f32.partialorder %v1987_v46, 0.0  ;;  %v2680_v59 = vmul.f32 0.01, %v1987_v46  ;;  %v12040_v33 = vunpack.i.l.bf16 %v12039_v24 }
 0x15f   : > { %3572 = vst.msk [vmem:[#allocation2 + $0x931] sm:$0xff] %vm3057_vm1, %v2975_v49  ;;  %v3019_v60 = vsel %vm2507_vm6, %v2195_v41, %v2763_v48  ;;  %v2826_v0 = vsel %vm2314_vm7, %v1712_v45, %v2570_v50  ;;  %v12054_v41 = vpop.permute.xlu1 %12053  ;;  %v6856_v43 = vsel %vm6854_vm14, %v6791_v28, %v12041_v32  ;;  %v12061_v45 = vunpack.i.h.bf16 %v12059_v31  ;;  %v3922_v32 = vld [vmem:[#allocation2 + $0x122] ss:$2 sm:$0xff] }
 0x160   : > { %3616 = vst.msk [vmem:[#allocation2 + $0xb71] sm:$0xff] %vm3057_vm1, %v3019_v60  ;;  %v2936_v3 = vsel %vm2424_vm8, %v1987_v46, %v2680_v59  ;;  %v6855_v42 = vsel %vm6854_vm14, %v6790_v29, %v12040_v33  ;;  %v12060_v46 = vunpack.i.l.bf16 %v12059_v31  ;;  %v12056_v47 = vunpack.i.h.bf16 %v12054_v41 }
 0x161   : > { %3423 = vst.msk [vmem:[#allocation2 + $0x141] sm:$0xff] %vm3057_vm1, %v2826_v0  ;;  %v2086_v4 = vpop.f32.mrf.mxu2  ;;  %v12055_v48 = vunpack.i.l.bf16 %v12054_v41 }
 0x162   : > { %3533 = vst.msk [vmem:[#allocation2 + $0x729] sm:$0xff] %vm3057_vm1, %v2936_v3  ;;  %v2087_v7 = vadd.f32 %v14278_v16, %v2086_v4  ;;  %v2196_v8 = vpop.f32.mrf.mxu3  ;;  %v1714_v11 = vpop.f32.mrf.mxu0  ;;  %12168 = vrot.lane.b32.xlu0 %v12167_v5, %s13391_s30  ;;  %v6921_v59 = vsel %vm6919_vm15, %v6856_v43, %v12056_v47 }
 0x163   : > { %v2197_v12 = vadd.f32 %v14278_v16, %v2196_v8  ;;  %v1989_v56 = vpop.f32.mrf.mxu1  ;;  %v1715_v19 = vadd.f32 %v14278_v16, %v1714_v11  ;;  %v6920_v57 = vsel %vm6919_vm15, %v6855_v42, %v12055_v48  ;;  %v14395_v60 = vpop.permute.xlu0 %12048  ;;  %v6986_v0 = vsel %vm6984_vm3, %v6921_v59, %v12061_v45  ;;  %v11845_v8 = vld [vmem:[%s13466_s20 + $0xb0] sm:$0xff] }
 0x164   : > { %vm2464_vm11 = vcmp.ge.f32.partialorder %v2087_v7, 0.0  ;;  %v2720_v17 = vmul.f32 0.01, %v2087_v7  ;;  %v1990_v20 = vadd.f32 %v14278_v16, %v1989_v56  ;;  %v6985_v63 = vsel %vm6984_vm3, %v6920_v57, %v12060_v46  ;;  %v3794_v42 = vld [vmem:[#allocation2 + $0x121] ss:$2 sm:$0xff] }
 0x165   : > { %vm2508_vm2 = vcmp.ge.f32.partialorder %v2197_v12, 0.0  ;;  %v2764_v21 = vmul.f32 0.01, %v2197_v12  ;;  %11565 = vmatmul.msk.bf16.gmra.mxu0 %vm1255_vm0, %v11844_v6  ;;  %vm2315_vm12 = vcmp.ge.f32.partialorder %v1715_v19, 0.0  ;;  %v2571_v26 = vmul.f32 0.01, %v1715_v19 }
 0x166   : > { %v2976_v25 = vsel %vm2464_vm11, %v2087_v7, %v2720_v17  ;;  %vm2425_vm13 = vcmp.ge.f32.partialorder %v1990_v20, 0.0  ;;  %11640 = vmatmul.msk.bf16.gmra.mxu2 %vm1255_vm0, %v11919_v13  ;;  %v2681_v30 = vmul.f32 0.01, %v1990_v20  ;;  %v7049_v3 = vpack.c.bf16 %v6986_v0, %v6985_v63  ;;  %v11942_v17 = vld [vmem:[%s13466_s20 + $0x3b8] sm:$0xff] }
 0x167   : > { %3573 = vst.msk [vmem:[#allocation2 + $0x939] sm:$0xff] %vm3057_vm1, %v2976_v25  ;;  %v3020_v27 = vsel %vm2508_vm2, %v2197_v12, %v2764_v21  ;;  %11662 = vmatmul.msk.bf16.gmra.mxu3 %vm1255_vm0, %v11941_v36  ;;  %v2827_v34 = vsel %vm2315_vm12, %v1715_v19, %v2571_v26  ;;  %v7050_v21 = vpack.c.bf16 %v4679_v9, %v4677_v15  ;;  %v4683_v63 = vld [vmem:[#allocation2 + $0xc2] ss:$2 sm:$0xff] }
 0x168   : > { %3617 = vst.msk [vmem:[#allocation2 + $0xb79] sm:$0xff] %vm3057_vm1, %v3020_v27  ;;  %v2937_v38 = vsel %vm2425_vm13, %v1990_v20, %v2681_v30  ;;  %7293 = vmatmul.bf16.vlgmr.msrb.gmra.mxu1 %v7049_v3  ;;  %v14432_v3 = vpop.permute.xlu2 %12083  ;;  %v14442_v15 = vld [vmem:[#allocation2 + $0x122] ss:$2 sm:$0xff] }
 0x169   : > { %v2089_v37 = vpop.f32.mrf.mxu2  ;;  %3424 = vst.msk [vmem:[#allocation2 + $0x151] sm:$0xff] %vm3057_vm1, %v2827_v34 }
 0x16a   : > { %v2090_v39 = vadd.f32 %v14278_v16, %v2089_v37  ;;  %v2199_v40 = vpop.f32.mrf.mxu3  ;;  %3534 = vst.msk [vmem:[#allocation2 + $0x739] sm:$0xff] %vm3057_vm1, %v2937_v38  ;;  %v1716_v49 = vpop.f32.mrf.mxu0 }
 0x16b   : > { %v2200_v44 = vadd.f32 %v14278_v16, %v2199_v40  ;;  %v1991_v50 = vpop.f32.mrf.mxu1  ;;  %v1717_v54 = vadd.f32 %v14278_v16, %v1716_v49 }
 0x16c   : > { %vm2465_vm4 = vcmp.ge.f32.partialorder %v2090_v39, 0.0  ;;  %v2721_v52 = vmul.f32 0.01, %v2090_v39  ;;  %v1992_v55 = vadd.f32 %v14278_v16, %v1991_v50  ;;  %v14414_v28 = vpop.permute.xlu0 %12068 }
 0x16d   : > { %vm2509_vm5 = vcmp.ge.f32.partialorder %v2200_v44, 0.0  ;;  %v2765_v61 = vmul.f32 0.01, %v2200_v44  ;;  %vm2316_vm6 = vcmp.ge.f32.partialorder %v1717_v54, 0.0  ;;  %v2572_v4 = vmul.f32 0.01, %v1717_v54 }
 0x16e   : > { %v2977_v1 = vsel %vm2465_vm4, %v2090_v39, %v2721_v52  ;;  %vm2426_vm7 = vcmp.ge.f32.partialorder %v1992_v55, 0.0  ;;  %v2682_v5 = vmul.f32 0.01, %v1992_v55 }
 0x16f   : > { %v3892_v2 = vld [vmem:[#allocation2 + $0xb71] ss:$2 sm:$0xff]  ;;  %3574 = vst.msk [vmem:[#allocation2 + $0x949] sm:$0xff] %vm3057_vm1, %v2977_v1  ;;  %v3021_v6 = vsel %vm2509_vm5, %v2200_v44, %v2765_v61  ;;  %v2828_v11 = vsel %vm2316_vm6, %v1717_v54, %v2572_v4  ;;  %v14434_v4 = vpop.permute.xlu1 %12063 }
 0x170   : > { %v12172_v10 = vpack.i.bf16 %v3892_v2, %v3890_v62  ;;  %v2938_v12 = vsel %vm2426_vm7, %v1992_v55, %v2682_v5  ;;  %3618 = vst.msk [vmem:[#allocation2 + $0xb89] sm:$0xff] %vm3057_vm1, %v3021_v6  ;;  %v11846_v62 = vld [vmem:[%s13466_s20 + $0xb8] sm:$0xff] }
 0x171   : > { %v2091_v7 = vpop.f32.mrf.mxu2  ;;  %3425 = vst.msk [vmem:[#allocation2 + $0x159] sm:$0xff] %vm3057_vm1, %v2828_v11  ;;  %v4681_v6 = vld [vmem:[#allocation2 + $0x92] ss:$2 sm:$0xff] }
 0x172   : > { %v2092_v13 = vadd.f32 %v14278_v16, %v2091_v7  ;;  %v2201_v36 = vpop.f32.mrf.mxu3  ;;  %12173 = vrot.lane.b32.xlu0 %v12172_v10, %s13386_s23  ;;  %3535 = vst.msk [vmem:[#allocation2 + $0x741] sm:$0xff] %vm3057_vm1, %v2938_v12  ;;  %v1719_v19 = vpop.f32.mrf.mxu0  ;;  %v11943_v7 = vld [vmem:[%s13466_s20 + $0x3c0] sm:$0xff]  ;;  %v7052_v11 = vpack.c.bf16 %v4683_v63, %v4681_v6 }
 0x173   : > { %v2202_v14 = vadd.f32 %v14278_v16, %v2201_v36  ;;  %v1994_v20 = vpop.f32.mrf.mxu1  ;;  %v1720_v22 = vadd.f32 %v14278_v16, %v1719_v19 }
 0x174   : > { %vm2466_vm8 = vcmp.ge.f32.partialorder %v2092_v13, 0.0  ;;  %v2722_v56 = vmul.f32 0.01, %v2092_v13  ;;  %v1995_v23 = vadd.f32 %v14278_v16, %v1994_v20  ;;  %v14426_v55 = vpop.permute.xlu0 %12073 }
 0x175   : > { %vm2510_vm11 = vcmp.ge.f32.partialorder %v2202_v14, 0.0  ;;  %v2766_v24 = vmul.f32 0.01, %v2202_v14  ;;  %11566 = vmatmul.msk.bf16.gmra.mxu0 %vm1255_vm0, %v11845_v8  ;;  %vm2317_vm2 = vcmp.ge.f32.partialorder %v1720_v22, 0.0  ;;  %v2573_v26 = vmul.f32 0.01, %v1720_v22 }
 0x176   : > { %v2978_v25 = vsel %vm2466_vm8, %v2092_v13, %v2722_v56  ;;  %vm2427_vm12 = vcmp.ge.f32.partialorder %v1995_v23, 0.0  ;;  %11708 = vmatmul.msk.bf16.vlgmr.msrb.gmra.mxu2 %vm3057_vm1, %v7050_v21  ;;  %v2683_v29 = vmul.f32 0.01, %v1995_v23  ;;  %v4305_v21 = vld [vmem:[#allocation2 + $0x13a] ss:$2 sm:$0xff] }
 0x177   : > { %3575 = vst.msk [vmem:[#allocation2 + $0x951] sm:$0xff] %vm3057_vm1, %v2978_v25  ;;  %v3022_v27 = vsel %vm2510_vm11, %v2202_v14, %v2766_v24  ;;  %11663 = vmatmul.msk.bf16.gmra.mxu3 %vm1255_vm0, %v11942_v17  ;;  %v2829_v30 = vsel %vm2317_vm2, %v1720_v22, %v2573_v26  ;;  %v14450_v22 = vld [vmem:[#allocation2 + $0xf2] ss:$2 sm:$0xff]  ;;  %v3850_v25 = vld [vmem:[#allocation2 + $0x721] ss:$2 sm:$0xff] }
 0x178   : > { %3619 = vst.msk [vmem:[#allocation2 + $0xb91] sm:$0xff] %vm3057_vm1, %v3022_v27  ;;  %v2939_v33 = vsel %vm2427_vm12, %v1995_v23, %v2683_v29  ;;  %v3924_v38 = vld [vmem:[#allocation2 + $0x152] ss:$2 sm:$0xff]  ;;  %v3796_v39 = vld [vmem:[#allocation2 + $0x151] ss:$2 sm:$0xff] }
 0x179   : > { %v2094_v31 = vpop.f32.mrf.mxu2  ;;  %3426 = vst.msk [vmem:[#allocation2 + $0x169] sm:$0xff] %vm3057_vm1, %v2829_v30  ;;  %v12182_v41 = vpack.i.bf16 %v3924_v38, %v3922_v32  ;;  %v12177_v46 = vpack.i.bf16 %v3796_v39, %v3794_v42  ;;  %v3978_v26 = vld [vmem:[#allocation2 + $0x722] ss:$2 sm:$0xff]  ;;  %v7054_v38 = vpack.c.bf16 %v14442_v15, %v14450_v22  ;;  %v12071_v39 = vunpack.i.h.bf16 %v14414_v28 }
 0x17a   : > { %v2095_v34 = vadd.f32 %v14278_v16, %v2094_v31  ;;  %v2204_v37 = vpop.f32.mrf.mxu3  ;;  %3536 = vst.msk [vmem:[#allocation2 + $0x751] sm:$0xff] %vm3057_vm1, %v2939_v33  ;;  %v1721_v44 = vpop.f32.mrf.mxu0 }
 0x17b   : > { %v2205_v40 = vadd.f32 %v14278_v16, %v2204_v37  ;;  %v1996_v45 = vpop.f32.mrf.mxu1  ;;  %v1722_v47 = vadd.f32 %v14278_v16, %v1721_v44  ;;  %12183 = vrot.lane.b32.xlu2 %v12182_v41, %s13387_s24  ;;  %12178 = vrot.lane.b32.xlu1 %v12177_v46, %s13386_s23 }
 0x17c   : > { %vm2467_vm13 = vcmp.ge.f32.partialorder %v2095_v34, 0.0  ;;  %v2723_v43 = vmul.f32 0.01, %v2095_v34  ;;  %v1997_v48 = vadd.f32 %v14278_v16, %v1996_v45  ;;  %v14461_v45 = vpop.permute.xlu2 %12098  ;;  %v12094_v46 = vpop.permute.xlu1 %12093 }
 0x17d   : > { %vm2511_vm4 = vcmp.ge.f32.partialorder %v2205_v40, 0.0  ;;  %v2767_v49 = vmul.f32 0.01, %v2205_v40  ;;  %vm2318_vm5 = vcmp.ge.f32.partialorder %v1722_v47, 0.0  ;;  %v2574_v52 = vmul.f32 0.01, %v1722_v47  ;;  %v14447_v19 = vpop.permute.xlu0 %12078 }
 0x17e   : > { %v2979_v50 = vsel %vm2467_vm13, %v2095_v34, %v2723_v43  ;;  %vm2428_vm6 = vcmp.ge.f32.partialorder %v1997_v48, 0.0  ;;  %v2684_v57 = vmul.f32 0.01, %v1997_v48  ;;  %v12101_v63 = vunpack.i.h.bf16 %v14461_v45 }
 0x17f   : > { %3576 = vst.msk [vmem:[#allocation2 + $0x961] sm:$0xff] %vm3057_vm1, %v2979_v50  ;;  %v3023_v54 = vsel %vm2511_vm4, %v2205_v40, %v2767_v49  ;;  %v2830_v59 = vsel %vm2318_vm5, %v1722_v47, %v2574_v52  ;;  %v12070_v40 = vunpack.i.l.bf16 %v14414_v28  ;;  %v12076_v50 = vunpack.i.h.bf16 %v14426_v55 }
 0x180   : > { %3620 = vst.msk [vmem:[#allocation2 + $0xba1] sm:$0xff] %vm3057_vm1, %v3023_v54  ;;  %v2940_v0 = vsel %vm2428_vm6, %v1997_v48, %v2684_v57  ;;  %v12075_v52 = vunpack.i.l.bf16 %v14426_v55  ;;  %v3660_v54 = vld [vmem:[#allocation2 + $0x90] ss:$2 sm:$0xff] }
 0x181   : > { %v2096_v61 = vpop.f32.mrf.mxu2  ;;  %3427 = vst.msk [vmem:[#allocation2 + $0x171] sm:$0xff] %vm3057_vm1, %v2830_v59 }
 0x182   : > { %v2097_v1 = vadd.f32 %v14278_v16, %v2096_v61  ;;  %v2206_v2 = vpop.f32.mrf.mxu3  ;;  %3537 = vst.msk [vmem:[#allocation2 + $0x759] sm:$0xff] %vm3057_vm1, %v2940_v0  ;;  %v1724_v9 = vpop.f32.mrf.mxu0  ;;  %v3658_v61 = vld [vmem:[#allocation2 + $0x60] ss:$2 sm:$0xff] }
 0x183   : > { %v2207_v5 = vadd.f32 %v14278_v16, %v2206_v2  ;;  %v1999_v10 = vpop.f32.mrf.mxu1  ;;  %v1725_v12 = vadd.f32 %v14278_v16, %v1724_v9  ;;  %v6598_v2 = vsel %vm3057_vm1, %v3658_v61, %v12070_v40 }
 0x184   : > { %vm2468_vm7 = vcmp.ge.f32.partialorder %v2097_v1, 0.0  ;;  %v2724_v8 = vmul.f32 0.01, %v2097_v1  ;;  %v2000_v13 = vadd.f32 %v14278_v16, %v1999_v10  ;;  %v11847_v10 = vld [vmem:[%s13466_s20 + $0xc0] sm:$0xff] }
 0x185   : > { %vm2512_vm8 = vcmp.ge.f32.partialorder %v2207_v5, 0.0  ;;  %v2768_v36 = vmul.f32 0.01, %v2207_v5  ;;  %11567 = vmatmul.msk.bf16.gmra.mxu0 %vm1255_vm0, %v11846_v62  ;;  %vm2319_vm11 = vcmp.ge.f32.partialorder %v1725_v12, 0.0  ;;  %v2575_v17 = vmul.f32 0.01, %v1725_v12  ;;  %v12089_v0 = vpop.permute.xlu0 %12088 }
 0x186   : > { %v2980_v14 = vsel %vm2468_vm7, %v2097_v1, %v2724_v8  ;;  %vm2429_vm2 = vcmp.ge.f32.partialorder %v2000_v13, 0.0  ;;  %11709 = vmatmul.msk.bf16.gmra.mxu2 %vm3057_vm1, %v7052_v11  ;;  %v2685_v20 = vmul.f32 0.01, %v2000_v13  ;;  %v6599_v62 = vsel %vm3057_vm1, %v3660_v54, %v12071_v39 }
 0x187   : > { %3577 = vst.msk [vmem:[#allocation2 + $0x969] sm:$0xff] %vm3057_vm1, %v2980_v14  ;;  %v3024_v56 = vsel %vm2512_vm8, %v2207_v5, %v2768_v36  ;;  %11664 = vmatmul.msk.bf16.gmra.mxu3 %vm1255_vm0, %v11943_v7  ;;  %v2831_v23 = vsel %vm2319_vm11, %v1725_v12, %v2575_v17  ;;  %v12091_v5 = vunpack.i.h.bf16 %v12089_v0  ;;  %v12090_v6 = vunpack.i.l.bf16 %v12089_v0 }
 0x188   : > { %3621 = vst.msk [vmem:[#allocation2 + $0xba9] sm:$0xff] %vm3057_vm1, %v3024_v56  ;;  %v4307_v24 = vld [vmem:[#allocation2 + $0x16a] ss:$2 sm:$0xff]  ;;  %v2941_v27 = vsel %vm2429_vm2, %v2000_v13, %v2685_v20  ;;  %v4179_v8 = vld [vmem:[#allocation2 + $0x169] ss:$2 sm:$0xff]  ;;  %v12100_v11 = vunpack.i.l.bf16 %v14461_v45  ;;  %v6662_v12 = vsel %vm1255_vm0, %v6598_v2, %v12075_v52  ;;  %v6663_v13 = vsel %vm1255_vm0, %v6599_v62, %v12076_v50 }
 0x189   : > { %3428 = vst.msk [vmem:[#allocation2 + $0x181] sm:$0xff] %vm3057_vm1, %v2831_v23  ;;  %v2099_v29 = vpop.f32.mrf.mxu2  ;;  %v12207_v31 = vpack.i.bf16 %v4307_v24, %v4305_v21  ;;  %v3852_v32 = vld [vmem:[#allocation2 + $0x751] ss:$2 sm:$0xff]  ;;  %v3980_v33 = vld [vmem:[#allocation2 + $0x752] ss:$2 sm:$0xff]  ;;  %v6727_v56 = vsel %vm6724_vm9, %v6662_v12, %v12090_v6  ;;  %v6728_v20 = vsel %vm6724_vm9, %v6663_v13, %v12091_v5 }
 0x18a   : > { %v2209_v30 = vpop.f32.mrf.mxu3  ;;  %3538 = vst.msk [vmem:[#allocation2 + $0x769] sm:$0xff] %vm3057_vm1, %v2941_v27  ;;  %v2100_v34 = vadd.f32 %v14278_v16, %v2099_v29  ;;  %v1726_v41 = vpop.f32.mrf.mxu0  ;;  %v12187_v43 = vpack.i.bf16 %v3852_v32, %v3850_v25  ;;  %v12192_v44 = vpack.i.bf16 %v3980_v33, %v3978_v26  ;;  %v4051_v9 = vld [vmem:[#allocation2 + $0x168] ss:$2 sm:$0xff]  ;;  %v4177_v24 = vld [vmem:[#allocation2 + $0x139] ss:$2 sm:$0xff]  ;;  %v12096_v27 = vunpack.i.h.bf16 %v12094_v46 }
 0x18b   : > { %v2210_v37 = vadd.f32 %v14278_v16, %v2209_v30  ;;  %v2001_v42 = vpop.f32.mrf.mxu1  ;;  %12208 = vrot.lane.b32.xlu0 %v12207_v31, %s13388_s25  ;;  %v1727_v48 = vadd.f32 %v14278_v16, %v1726_v41  ;;  %v4049_v25 = vld [vmem:[#allocation2 + $0x138] ss:$2 sm:$0xff]  ;;  %v12095_v29 = vunpack.i.l.bf16 %v12094_v46  ;;  %v12202_v32 = vpack.i.bf16 %v4179_v8, %v4177_v24  ;;  %v3870_v41 = vld [vmem:[#allocation2 + $0x931] ss:$2 sm:$0xff] }
 0x18c   : > { %vm2469_vm12 = vcmp.ge.f32.partialorder %v2100_v34, 0.0  ;;  %v2725_v47 = vmul.f32 0.01, %v2100_v34  ;;  %v2002_v49 = vadd.f32 %v14278_v16, %v2001_v42  ;;  %12188 = vrot.lane.b32.xlu2 %v12187_v43, %s13386_s23  ;;  %12193 = vrot.lane.b32.xlu1 %v12192_v44, %s13387_s24  ;;  %v11944_v26 = vld [vmem:[%s13466_s20 + $0x3c8] sm:$0xff]  ;;  %v12197_v33 = vpack.i.bf16 %v4051_v9, %v4049_v25  ;;  %v4561_v62 = vld [vmem:[#allocation2 + $0x151] ss:$2 sm:$0xff] }
 0x18d   : > { %vm2513_vm13 = vcmp.ge.f32.partialorder %v2210_v37, 0.0  ;;  %v2769_v28 = vmul.f32 0.01, %v2210_v37  ;;  %vm2320_vm4 = vcmp.ge.f32.partialorder %v1727_v48, 0.0  ;;  %v2576_v59 = vmul.f32 0.01, %v1727_v48 }
 0x18e   : > { %v2981_v57 = vsel %vm2469_vm12, %v2100_v34, %v2725_v47  ;;  %vm2430_vm5 = vcmp.ge.f32.partialorder %v2002_v49, 0.0  ;;  %v2686_v55 = vmul.f32 0.01, %v2002_v49  ;;  %v12114_v34 = vpop.permute.xlu1 %12113  ;;  %v6792_v42 = vsel %vm6789_vm10, %v6727_v56, %v12095_v29  ;;  %v3872_v46 = vld [vmem:[#allocation2 + $0x961] ss:$2 sm:$0xff] }
 0x18f   : > { %3578 = vst.msk [vmem:[#allocation2 + $0x979] sm:$0xff] %vm3057_vm1, %v2981_v57  ;;  %v3025_v1 = vsel %vm2513_vm13, %v2210_v37, %v2769_v28  ;;  %v2832_v7 = vsel %vm2320_vm4, %v1727_v48, %v2576_v59  ;;  %v6793_v43 = vsel %vm6789_vm10, %v6728_v20, %v12096_v27  ;;  %v12116_v50 = vunpack.i.h.bf16 %v12114_v34 }
 0x190   : > { %3622 = vst.msk [vmem:[#allocation2 + $0xbe9] sm:$0xff] %vm3057_vm1, %v3025_v1  ;;  %v2942_v36 = vsel %vm2430_vm5, %v2002_v49, %v2686_v55  ;;  %v12109_v49 = vpop.permute.xlu0 %12108  ;;  %v12115_v52 = vunpack.i.l.bf16 %v12114_v34  ;;  %v12212_v15 = vpack.i.bf16 %v3872_v46, %v3870_v41  ;;  %v6858_v55 = vsel %vm6854_vm14, %v6793_v43, %v12101_v63  ;;  %v4433_v34 = vld [vmem:[#allocation2 + $0x150] ss:$2 sm:$0xff] }
 0x191   : > { %3429 = vst.msk [vmem:[#allocation2 + $0x189] sm:$0xff] %vm3057_vm1, %v2832_v7  ;;  %v2101_v14 = vpop.f32.mrf.mxu2  ;;  %v12111_v57 = vunpack.i.h.bf16 %v12109_v49  ;;  %v12110_v59 = vunpack.i.l.bf16 %v12109_v49  ;;  %v14529_v46 = vld [vmem:[%s16982_s2] ss:$0 sm:$0xff] }
 0x192   : > { %v2211_v17 = vpop.f32.mrf.mxu3  ;;  %3539 = vst.msk [vmem:[#allocation2 + $0x771] sm:$0xff] %vm3057_vm1, %v2942_v36  ;;  %v2102_v21 = vadd.f32 %v14278_v16, %v2101_v14  ;;  %v1729_v30 = vpop.f32.mrf.mxu0 }
 0x193   : > { %v2212_v23 = vadd.f32 %v14278_v16, %v2211_v17  ;;  %v2004_v31 = vpop.f32.mrf.mxu1  ;;  %v1730_v39 = vadd.f32 %v14278_v16, %v1729_v30  ;;  %v6923_v7 = vsel %vm6919_vm15, %v6858_v55, %v12111_v57 }
 0x194   : > { %vm2470_vm6 = vcmp.ge.f32.partialorder %v2102_v21, 0.0  ;;  %v2726_v37 = vmul.f32 0.01, %v2102_v21  ;;  %v2005_v40 = vadd.f32 %v14278_v16, %v2004_v31  ;;  %12203 = vrot.lane.b32.xlu2 %v12202_v32, %s13390_s29  ;;  %12198 = vrot.lane.b32.xlu1 %v12197_v33, %s13389_s26 }
 0x195   : > { %11568 = vmatmul.msk.bf16.gmra.mxu0 %vm1255_vm0, %v11847_v10  ;;  %vm2514_vm7 = vcmp.ge.f32.partialorder %v2212_v23, 0.0  ;;  %v2770_v44 = vmul.f32 0.01, %v2212_v23  ;;  %vm2321_vm8 = vcmp.ge.f32.partialorder %v1730_v39, 0.0  ;;  %v2577_v48 = vmul.f32 0.01, %v1730_v39 }
 0x196   : > { %v2982_v47 = vsel %vm2470_vm6, %v2102_v21, %v2726_v37  ;;  %vm2431_vm11 = vcmp.ge.f32.partialorder %v2005_v40, 0.0  ;;  %11710 = vmatmul.msk.bf16.gmra.mxu2 %vm3057_vm1, %v7054_v38  ;;  %v2687_v28 = vmul.f32 0.01, %v2005_v40  ;;  %v6857_v38 = vsel %vm6854_vm14, %v6792_v42, %v12100_v11  ;;  %v4689_v37 = vld [vmem:[#allocation2 + $0x152] ss:$2 sm:$0xff] }
 0x197   : > { %11665 = vmatmul.msk.bf16.gmra.mxu3 %vm1255_vm0, %v11944_v26  ;;  %3579 = vst.msk [vmem:[#allocation2 + $0x981] sm:$0xff] %vm3057_vm1, %v2982_v47  ;;  %v3026_v54 = vsel %vm2514_vm7, %v2212_v23, %v2770_v44  ;;  %v2833_v61 = vsel %vm2321_vm8, %v1730_v39, %v2577_v48  ;;  %v6922_v6 = vsel %vm6919_vm15, %v6857_v38, %v12110_v59  ;;  %v11848_v26 = vld [vmem:[%s13466_s20 + $0xc8] sm:$0xff]  ;;  %v11945_v39 = vld [vmem:[%s13466_s20 + $0x3d0] sm:$0xff] }
 0x198   : > { %3623 = vst.msk [vmem:[#allocation2 + $0xbf1] sm:$0xff] %vm3057_vm1, %v3026_v54  ;;  %v4563_v0 = vld [vmem:[#allocation2 + $0x181] ss:$2 sm:$0xff]  ;;  %v2943_v22 = vsel %vm2431_vm11, %v2005_v40, %v2687_v28  ;;  %v6987_v10 = vsel %vm6984_vm3, %v6922_v6, %v12115_v52  ;;  %v6988_v11 = vsel %vm6984_vm3, %v6923_v7, %v12116_v50  ;;  %v4435_v25 = vld [vmem:[#allocation2 + $0x180] ss:$2 sm:$0xff] }
 0x199   : > { %3430 = vst.msk [vmem:[#allocation2 + $0x1c9] sm:$0xff] %vm3057_vm1, %v2833_v61  ;;  %v2104_v1 = vpop.f32.mrf.mxu2  ;;  %v12222_v5 = vpack.i.bf16 %v4563_v0, %v4561_v62  ;;  %v7051_v63 = vpack.c.bf16 %v6988_v11, %v6987_v10  ;;  %v4691_v27 = vld [vmem:[#allocation2 + $0x182] ss:$2 sm:$0xff]  ;;  %v12217_v42 = vpack.i.bf16 %v4435_v25, %v4433_v34  ;;  %v3894_v6 = vld [vmem:[#allocation2 + $0xbd1] ss:$2 sm:$0xff] }
 0x19a   : > { %v2214_v2 = vpop.f32.mrf.mxu3  ;;  %3540 = vst.msk [vmem:[#allocation2 + $0x781] sm:$0xff] %vm3057_vm1, %v2943_v22  ;;  %v2105_v8 = vadd.f32 %v14278_v16, %v2104_v1  ;;  %v1731_v45 = vpop.f32.mrf.mxu0  ;;  %v7056_v43 = vpack.c.bf16 %v4691_v27, %v4689_v37 }
 0x19b   : > { %v2215_v9 = vadd.f32 %v14278_v16, %v2214_v2  ;;  %v2006_v12 = vpop.f32.mrf.mxu1  ;;  %v1732_v36 = vadd.f32 %v14278_v16, %v1731_v45  ;;  %7298 = vmatmul.bf16.gmra.mxu1 %v7051_v63  ;;  %v14548_v45 = vpop.permute.xlu2 %12103  ;;  %v11849_v63 = vld [vmem:[%s13466_s20 + $0xd0] sm:$0xff] }
 0x19c   : > { %vm2471_vm2 = vcmp.ge.f32.partialorder %v2105_v8, 0.0  ;;  %v2727_v13 = vmul.f32 0.01, %v2105_v8  ;;  %v2007_v14 = vadd.f32 %v14278_v16, %v2006_v12  ;;  %12223 = vrot.lane.b32.xlu2 %v12222_v5, %s13391_s30  ;;  %12213 = vrot.lane.b32.xlu1 %v12212_v15, %s13386_s23 }
 0x19d   : > { %vm2515_vm12 = vcmp.ge.f32.partialorder %v2215_v9, 0.0  ;;  %v2771_v17 = vmul.f32 0.01, %v2215_v9  ;;  %vm2322_vm13 = vcmp.ge.f32.partialorder %v1732_v36, 0.0  ;;  %v2578_v20 = vmul.f32 0.01, %v1732_v36 }
 0x19e   : > { %v2983_v56 = vsel %vm2471_vm2, %v2105_v8, %v2727_v13  ;;  %vm2432_vm4 = vcmp.ge.f32.partialorder %v2007_v14, 0.0  ;;  %v2688_v21 = vmul.f32 0.01, %v2007_v14 }
 0x19f   : > { %3580 = vst.msk [vmem:[#allocation2 + $0x991] sm:$0xff] %vm3057_vm1, %v2983_v56  ;;  %v3027_v23 = vsel %vm2515_vm12, %v2215_v9, %v2771_v17  ;;  %v2834_v24 = vsel %vm2322_vm13, %v1732_v36, %v2578_v20 }
 0x1a0   : > { %3624 = vst.msk [vmem:[#allocation2 + $0xc01] sm:$0xff] %vm3057_vm1, %v3027_v23  ;;  %v2944_v29 = vsel %vm2432_vm4, %v2007_v14, %v2688_v21  ;;  %v11946_v21 = vld [vmem:[%s13466_s20 + $0x3d8] sm:$0xff] }
 0x1a1   : > { %3431 = vst.msk [vmem:[#allocation2 + $0x1d1] sm:$0xff] %vm3057_vm1, %v2834_v24  ;;  %v2106_v30 = vpop.f32.mrf.mxu2 }
 0x1a2   : > { %v2216_v31 = vpop.f32.mrf.mxu3  ;;  %3541 = vst.msk [vmem:[#allocation2 + $0x789] sm:$0xff] %vm3057_vm1, %v2944_v29  ;;  %v2107_v32 = vadd.f32 %v14278_v16, %v2106_v30  ;;  %v1734_v40 = vpop.f32.mrf.mxu0 }
 0x1a3   : > { %v2217_v33 = vadd.f32 %v14278_v16, %v2216_v31  ;;  %v2009_v41 = vpop.f32.mrf.mxu1  ;;  %v1735_v47 = vadd.f32 %v14529_v46, %v1734_v40 }
 0x1a4   : > { %vm2472_vm5 = vcmp.ge.f32.partialorder %v2107_v32, 0.0  ;;  %v2728_v44 = vmul.f32 0.01, %v2107_v32  ;;  %v2010_v48 = vadd.f32 %v14529_v46, %v2009_v41  ;;  %12218 = vrot.lane.b32.xlu1 %v12217_v42, %s13392_s10 }
 0x1a5   : > { %11569 = vmatmul.msk.bf16.gmra.mxu0 %vm1255_vm0, %v11848_v26  ;;  %vm2516_vm6 = vcmp.ge.f32.partialorder %v2217_v33, 0.0  ;;  %v2772_v16 = vmul.f32 0.01, %v2217_v33  ;;  %vm2323_vm7 = vcmp.ge.f32.partialorder %v1735_v47, 0.0  ;;  %v2579_v50 = vmul.f32 0.01, %v1735_v47 }
 0x1a6   : > { %v2984_v49 = vsel %vm2472_vm5, %v2107_v32, %v2728_v44  ;;  %vm2433_vm8 = vcmp.ge.f32.partialorder %v2010_v48, 0.0  ;;  %11711 = vmatmul.msk.bf16.gmra.mxu2 %vm3057_vm1, %v7056_v43  ;;  %v2689_v52 = vmul.f32 0.01, %v2010_v48 }
 0x1a7   : > { %11666 = vmatmul.msk.bf16.gmra.mxu3 %vm1255_vm0, %v11945_v39  ;;  %3581 = vst.msk [vmem:[#allocation2 + $0x999] sm:$0xff] %vm3057_vm1, %v2984_v49  ;;  %v3028_v28 = vsel %vm2516_vm6, %v2217_v33, %v2772_v16  ;;  %v2835_v54 = vsel %vm2323_vm7, %v1735_v47, %v2579_v50  ;;  %v3926_v33 = vld [vmem:[#allocation2 + $0x1b2] ss:$2 sm:$0xff]  ;;  %v3798_v39 = vld [vmem:[#allocation2 + $0x1b1] ss:$2 sm:$0xff]  ;;  %v14567_v16 = vpop.permute.xlu2 %12118 }
 0x1a8   : > { %3625 = vst.msk [vmem:[#allocation2 + $0xc09] sm:$0xff] %vm3057_vm1, %v3028_v28  ;;  %v2945_v57 = vsel %vm2433_vm8, %v2010_v48, %v2689_v52 }
 0x1a9   : > { %3432 = vst.msk [vmem:[#allocation2 + $0x1e1] sm:$0xff] %vm3057_vm1, %v2835_v54  ;;  %v2109_v59 = vpop.f32.mrf.mxu2 }
 0x1aa   : > { %v2219_v61 = vpop.f32.mrf.mxu3  ;;  %3542 = vst.msk [vmem:[#allocation2 + $0x799] sm:$0xff] %vm3057_vm1, %v2945_v57  ;;  %v2110_v62 = vadd.f32 %v14529_v46, %v2109_v59  ;;  %v1736_v15 = vpop.f32.mrf.mxu0 }
 0x1ab   : > { %v2220_v0 = vadd.f32 %v14529_v46, %v2219_v61  ;;  %v2011_v22 = vpop.f32.mrf.mxu1  ;;  %v1737_v55 = vadd.f32 %v14529_v46, %v1736_v15 }
 0x1ac   : > { %vm2473_vm11 = vcmp.ge.f32.partialorder %v2110_v62, 0.0  ;;  %v2729_v38 = vmul.f32 0.01, %v2110_v62  ;;  %v2012_v1 = vadd.f32 %v14529_v46, %v2011_v22 }
 0x1ad   : > { %v14545_v2 = vpop.permute.xlu1 %12123  ;;  %vm2517_vm2 = vcmp.ge.f32.partialorder %v2220_v0, 0.0  ;;  %v2773_v5 = vmul.f32 0.01, %v2220_v0  ;;  %vm2324_vm12 = vcmp.ge.f32.partialorder %v1737_v55, 0.0  ;;  %v2580_v8 = vmul.f32 0.01, %v1737_v55 }
 0x1ae   : > { %v2985_v7 = vsel %vm2473_vm11, %v2110_v62, %v2729_v38  ;;  %vm2434_vm13 = vcmp.ge.f32.partialorder %v2012_v1, 0.0  ;;  %v2690_v9 = vmul.f32 0.01, %v2012_v1 }
 0x1af   : > { %3582 = vst.msk [vmem:[#allocation2 + $0x9a9] sm:$0xff] %vm3057_vm1, %v2985_v7  ;;  %v3029_v10 = vsel %vm2517_vm2, %v2220_v0, %v2773_v5  ;;  %v3896_v11 = vld [vmem:[#allocation2 + $0xc01] ss:$2 sm:$0xff]  ;;  %v2836_v12 = vsel %vm2324_vm12, %v1737_v55, %v2580_v8 }
 0x1b0   : > { %3626 = vst.msk [vmem:[#allocation2 + $0xc19] sm:$0xff] %vm3057_vm1, %v3029_v10  ;;  %v12227_v13 = vpack.i.bf16 %v3896_v11, %v3894_v6  ;;  %v2946_v36 = vsel %vm2434_vm13, %v2012_v1, %v2690_v9  ;;  %v11850_v6 = vld [vmem:[%s13466_s20 + $0xd8] sm:$0xff] }
 0x1b1   : > { %3433 = vst.msk [vmem:[#allocation2 + $0x1e9] sm:$0xff] %vm3057_vm1, %v2836_v12  ;;  %v2111_v14 = vpop.f32.mrf.mxu2  ;;  %v11947_v12 = vld [vmem:[%s13466_s20 + $0x3e0] sm:$0xff] }
 0x1b2   : > { %v2221_v17 = vpop.f32.mrf.mxu3  ;;  %3543 = vst.msk [vmem:[#allocation2 + $0x7a1] sm:$0xff] %vm3057_vm1, %v2946_v36  ;;  %v2112_v56 = vadd.f32 %v14529_v46, %v2111_v14  ;;  %12228 = vrot.lane.b32.xlu1 %v12227_v13, %s13386_s23  ;;  %v1739_v23 = vpop.f32.mrf.mxu0 }
 0x1b3   : > { %v2222_v20 = vadd.f32 %v14529_v46, %v2221_v17  ;;  %v2014_v24 = vpop.f32.mrf.mxu1  ;;  %v1740_v26 = vadd.f32 %v14529_v46, %v1739_v23  ;;  %v14589_v14 = vpop.permute.xlu2 %12143  ;;  %v12126_v23 = vunpack.i.h.bf16 %v14545_v2 }
 0x1b4   : > { %vm2474_vm4 = vcmp.ge.f32.partialorder %v2112_v56, 0.0  ;;  %v2730_v25 = vmul.f32 0.01, %v2112_v56  ;;  %v2015_v27 = vadd.f32 %v14529_v46, %v2014_v24 }
 0x1b5   : > { %11570 = vmatmul.msk.bf16.gmra.mxu0 %vm1255_vm0, %v11849_v63  ;;  %vm2518_vm5 = vcmp.ge.f32.partialorder %v2222_v20, 0.0  ;;  %v2774_v29 = vmul.f32 0.01, %v2222_v20  ;;  %vm2325_vm6 = vcmp.ge.f32.partialorder %v1740_v26, 0.0  ;;  %v2581_v31 = vmul.f32 0.01, %v1740_v26  ;;  %v14561_v32 = vpop.permute.xlu1 %12128 }
 0x1b6   : > { %v2986_v30 = vsel %vm2474_vm4, %v2112_v56, %v2730_v25  ;;  %vm2435_vm7 = vcmp.ge.f32.partialorder %v2015_v27, 0.0  ;;  %v2691_v34 = vmul.f32 0.01, %v2015_v27  ;;  %v12125_v63 = vunpack.i.l.bf16 %v14545_v2 }
 0x1b7   : > { %11667 = vmatmul.msk.bf16.gmra.mxu3 %vm1255_vm0, %v11946_v21  ;;  %3583 = vst.msk [vmem:[#allocation2 + $0x9b1] sm:$0xff] %vm3057_vm1, %v2986_v30  ;;  %v3030_v37 = vsel %vm2518_vm5, %v2222_v20, %v2774_v29  ;;  %v2837_v40 = vsel %vm2325_vm6, %v1740_v26, %v2581_v31  ;;  %v3662_v21 = vld [vmem:[#allocation2 + $0xc0] ss:$2 sm:$0xff]  ;;  %v12130_v24 = vunpack.i.l.bf16 %v14561_v32  ;;  %v4181_v31 = vld [vmem:[#allocation2 + $0x1c9] ss:$2 sm:$0xff] }
 0x1b8   : > { %3627 = vst.msk [vmem:[#allocation2 + $0xc21] sm:$0xff] %vm3057_vm1, %v3030_v37  ;;  %v3928_v41 = vld [vmem:[#allocation2 + $0x1e2] ss:$2 sm:$0xff]  ;;  %v3800_v42 = vld [vmem:[#allocation2 + $0x1e1] ss:$2 sm:$0xff]  ;;  %v2947_v43 = vsel %vm2435_vm7, %v2015_v27, %v2691_v34  ;;  %v12131_v34 = vunpack.i.h.bf16 %v14561_v32 }
 0x1b9   : > { %3434 = vst.msk [vmem:[#allocation2 + $0x1f9] sm:$0xff] %vm3057_vm1, %v2837_v40  ;;  %v2114_v44 = vpop.f32.mrf.mxu2  ;;  %v12237_v48 = vpack.i.bf16 %v3928_v41, %v3926_v33  ;;  %v12232_v52 = vpack.i.bf16 %v3800_v42, %v3798_v39  ;;  %v3664_v27 = vld [vmem:[#allocation2 + $0xf0] ss:$2 sm:$0xff]  ;;  %v12146_v33 = vunpack.i.h.bf16 %v14589_v14  ;;  %v3854_v37 = vld [vmem:[#allocation2 + $0x781] ss:$2 sm:$0xff]  ;;  %v6600_v40 = vsel %vm3057_vm1, %v3662_v21, %v12125_v63 }
 0x1ba   : > { %v2224_v47 = vpop.f32.mrf.mxu3  ;;  %3544 = vst.msk [vmem:[#allocation2 + $0x7b1] sm:$0xff] %vm3057_vm1, %v2947_v43  ;;  %v2115_v49 = vadd.f32 %v14529_v46, %v2114_v44  ;;  %v1741_v28 = vpop.f32.mrf.mxu0  ;;  %v3982_v39 = vld [vmem:[#allocation2 + $0x782] ss:$2 sm:$0xff]  ;;  %v12145_v44 = vunpack.i.l.bf16 %v14589_v14  ;;  %v6664_v32 = vsel %vm1255_vm0, %v6600_v40, %v12130_v24 }
 0x1bb   : > { %v2225_v50 = vadd.f32 %v14529_v46, %v2224_v47  ;;  %v2016_v54 = vpop.f32.mrf.mxu1  ;;  %12238 = vrot.lane.b32.xlu0 %v12237_v48, %s13387_s24  ;;  %v1742_v59 = vadd.f32 %v14529_v46, %v1741_v28  ;;  %12233 = vrot.lane.b32.xlu2 %v12232_v52, %s13386_s23  ;;  %v6601_v47 = vsel %vm3057_vm1, %v3664_v27, %v12126_v23  ;;  %v12164_v21 = vpop.permute.xlu2 %12163  ;;  %v4309_v40 = vld [vmem:[#allocation2 + $0x1ca] ss:$2 sm:$0xff] }
 0x1bc   : > { %vm2475_vm8 = vcmp.ge.f32.partialorder %v2115_v49, 0.0  ;;  %v2731_v57 = vmul.f32 0.01, %v2115_v49  ;;  %v2017_v61 = vadd.f32 %v14529_v46, %v2016_v54  ;;  %v14576_v62 = vpop.permute.xlu0 %12138 }
 0x1bd   : > { %vm2519_vm11 = vcmp.ge.f32.partialorder %v2225_v50, 0.0  ;;  %v2775_v0 = vmul.f32 0.01, %v2225_v50  ;;  %vm2326_vm2 = vcmp.ge.f32.partialorder %v1742_v59, 0.0  ;;  %v2582_v22 = vmul.f32 0.01, %v1742_v59  ;;  %v14580_v5 = vpop.permute.xlu1 %12133 }
 0x1be   : > { %v2987_v15 = vsel %vm2475_vm8, %v2115_v49, %v2731_v57  ;;  %vm2436_vm12 = vcmp.ge.f32.partialorder %v2017_v61, 0.0  ;;  %v2692_v38 = vmul.f32 0.01, %v2017_v61 }
 0x1bf   : > { %3584 = vst.msk [vmem:[#allocation2 + $0x9c1] sm:$0xff] %vm3057_vm1, %v2987_v15  ;;  %v3031_v55 = vsel %vm2519_vm11, %v2225_v50, %v2775_v0  ;;  %v2838_v1 = vsel %vm2326_vm2, %v1742_v59, %v2582_v22  ;;  %v6665_v0 = vsel %vm1255_vm0, %v6601_v47, %v12131_v34 }
 0x1c0   : > { %3628 = vst.msk [vmem:[#allocation2 + $0xc31] sm:$0xff] %vm3057_vm1, %v3031_v55  ;;  %v2948_v7 = vsel %vm2436_vm12, %v2017_v61, %v2692_v38  ;;  %v6730_v63 = vsel %vm6724_vm9, %v6665_v0, %v12146_v33  ;;  %v4053_v33 = vld [vmem:[#allocation2 + $0x1c8] ss:$2 sm:$0xff] }
 0x1c1   : > { %3435 = vst.msk [vmem:[#allocation2 + $0x201] sm:$0xff] %vm3057_vm1, %v2838_v1  ;;  %v2116_v8 = vpop.f32.mrf.mxu2  ;;  %v4693_v0 = vld [vmem:[#allocation2 + $0x1e2] ss:$2 sm:$0xff] }
 0x1c2   : > { %v2226_v9 = vpop.f32.mrf.mxu3  ;;  %3545 = vst.msk [vmem:[#allocation2 + $0x7b9] sm:$0xff] %vm3057_vm1, %v2948_v7  ;;  %v2117_v10 = vadd.f32 %v14529_v46, %v2116_v8  ;;  %v1744_v13 = vpop.f32.mrf.mxu0 }
 0x1c3   : > { %v2227_v11 = vadd.f32 %v14529_v46, %v2226_v9  ;;  %v2019_v36 = vpop.f32.mrf.mxu1  ;;  %v1745_v56 = vadd.f32 %v14529_v46, %v1744_v13 }
 0x1c4   : > { %vm2476_vm13 = vcmp.ge.f32.partialorder %v2117_v10, 0.0  ;;  %v2732_v17 = vmul.f32 0.01, %v2117_v10  ;;  %v14592_v20 = vpop.permute.xlu0 %12148  ;;  %v2020_v26 = vadd.f32 %v14529_v46, %v2019_v36 }
 0x1c5   : > { %vm2520_vm4 = vcmp.ge.f32.partialorder %v2227_v11, 0.0  ;;  %11571 = vmatmul.msk.bf16.gmra.mxu0 %vm1255_vm0, %v11850_v6  ;;  %v2776_v25 = vmul.f32 0.01, %v2227_v11  ;;  %vm2327_vm5 = vcmp.ge.f32.partialorder %v1745_v56, 0.0  ;;  %v2583_v30 = vmul.f32 0.01, %v1745_v56  ;;  %v12154_v38 = vpop.permute.xlu1 %12153 }
 0x1c6   : > { %v2988_v29 = vsel %vm2476_vm13, %v2117_v10, %v2732_v17  ;;  %vm2437_vm6 = vcmp.ge.f32.partialorder %v2020_v26, 0.0  ;;  %v2693_v42 = vmul.f32 0.01, %v2020_v26  ;;  %v12151_v15 = vunpack.i.h.bf16 %v14592_v20 }
 0x1c7   : > { %11668 = vmatmul.msk.bf16.gmra.mxu3 %vm1255_vm0, %v11947_v12  ;;  %3585 = vst.msk [vmem:[#allocation2 + $0x9c9] sm:$0xff] %vm3057_vm1, %v2988_v29  ;;  %v3032_v2 = vsel %vm2520_vm4, %v2227_v11, %v2776_v25  ;;  %v2839_v41 = vsel %vm2327_vm5, %v1745_v56, %v2583_v30  ;;  %v12150_v22 = vunpack.i.l.bf16 %v14592_v20  ;;  %v6729_v10 = vsel %vm6724_vm9, %v6664_v32, %v12145_v44  ;;  %v11851_v29 = vld [vmem:[%s13466_s20 + $0xe0] sm:$0xff] }
 0x1c8   : > { %3629 = vst.msk [vmem:[#allocation2 + $0xc39] sm:$0xff] %vm3057_vm1, %v3032_v2  ;;  %v4183_v43 = vld [vmem:[#allocation2 + $0x1f9] ss:$2 sm:$0xff]  ;;  %v2949_v54 = vsel %vm2437_vm6, %v2020_v26, %v2693_v42  ;;  %v12156_v14 = vunpack.i.h.bf16 %v12154_v38  ;;  %v12155_v17 = vunpack.i.l.bf16 %v12154_v38  ;;  %v4055_v20 = vld [vmem:[#allocation2 + $0x1f8] ss:$2 sm:$0xff]  ;;  %v6795_v24 = vsel %vm6789_vm10, %v6730_v63, %v12151_v15 }
 0x1c9   : > { %3436 = vst.msk [vmem:[#allocation2 + $0x211] sm:$0xff] %vm3057_vm1, %v2839_v41  ;;  %v2119_v48 = vpop.f32.mrf.mxu2  ;;  %v3856_v50 = vld [vmem:[#allocation2 + $0x7b1] ss:$2 sm:$0xff]  ;;  %v3984_v52 = vld [vmem:[#allocation2 + $0x7b2] ss:$2 sm:$0xff]  ;;  %v12257_v28 = vpack.i.bf16 %v4183_v43, %v4181_v31  ;;  %v6794_v23 = vsel %vm6789_vm10, %v6729_v10, %v12150_v22  ;;  %v12165_v42 = vunpack.i.l.bf16 %v12164_v21 }
 0x1ca   : > { %v2229_v49 = vpop.f32.mrf.mxu3  ;;  %v2120_v57 = vadd.f32 %v14529_v46, %v2119_v48  ;;  %v12242_v61 = vpack.i.bf16 %v3856_v50, %v3854_v37  ;;  %3546 = vst.msk [vmem:[#allocation2 + $0x7c9] sm:$0xff] %vm3057_vm1, %v2949_v54  ;;  %v1746_v55 = vpop.f32.mrf.mxu0  ;;  %v12247_v1 = vpack.i.bf16 %v3984_v52, %v3982_v39  ;;  %v4311_v27 = vld [vmem:[#allocation2 + $0x1fa] ss:$2 sm:$0xff]  ;;  %v12252_v39 = vpack.i.bf16 %v4055_v20, %v4053_v33 }
 0x1cb   : > { %v2230_v59 = vadd.f32 %v14529_v46, %v2229_v49  ;;  %12258 = vrot.lane.b32.xlu1 %v12257_v28, %s13390_s29  ;;  %v1747_v7 = vadd.f32 %v14529_v46, %v1746_v55  ;;  %v2021_v9 = vpop.f32.mrf.mxu1  ;;  %v11948_v41 = vld [vmem:[%s13466_s20 + $0x3e8] sm:$0xff]  ;;  %v6859_v43 = vsel %vm6854_vm14, %v6794_v23, %v12155_v17  ;;  %v6860_v44 = vsel %vm6854_vm14, %v6795_v24, %v12156_v14 }
 0x1cc   : > { %vm2477_vm7 = vcmp.ge.f32.partialorder %v2120_v57, 0.0  ;;  %v2733_v6 = vmul.f32 0.01, %v2120_v57  ;;  %12243 = vrot.lane.b32.xlu0 %v12242_v61, %s13386_s23  ;;  %v14618_v8 = vpop.permute.xlu0 %12158  ;;  %12248 = vrot.lane.b32.xlu2 %v12247_v1, %s13387_s24  ;;  %v2022_v12 = vadd.f32 %v14529_v46, %v2021_v9  ;;  %v12262_v32 = vpack.i.bf16 %v4311_v27, %v4309_v40  ;;  %v4437_v38 = vld [vmem:[#allocation2 + $0x1e0] ss:$2 sm:$0xff] }
 0x1cd   : > { %vm2521_vm8 = vcmp.ge.f32.partialorder %v2230_v59, 0.0  ;;  %v2777_v11 = vmul.f32 0.01, %v2230_v59  ;;  %vm2328_vm11 = vcmp.ge.f32.partialorder %v1747_v7, 0.0  ;;  %v2584_v36 = vmul.f32 0.01, %v1747_v7 }
 0x1ce   : > { %v2989_v13 = vsel %vm2477_vm7, %v2120_v57, %v2733_v6  ;;  %vm2438_vm2 = vcmp.ge.f32.partialorder %v2022_v12, 0.0  ;;  %v2694_v26 = vmul.f32 0.01, %v2022_v12  ;;  %v12166_v52 = vunpack.i.h.bf16 %v12164_v21  ;;  %v4565_v55 = vld [vmem:[#allocation2 + $0x1e1] ss:$2 sm:$0xff] }
 0x1cf   : > { %3586 = vst.msk [vmem:[#allocation2 + $0x9d9] sm:$0xff] %vm3057_vm1, %v2989_v13  ;;  %v3033_v56 = vsel %vm2521_vm8, %v2230_v59, %v2777_v11  ;;  %v2840_v25 = vsel %vm2328_vm11, %v1747_v7, %v2584_v36  ;;  %v6924_v15 = vsel %vm6919_vm15, %v6859_v43, %v12165_v42  ;;  %v3876_v24 = vld [vmem:[#allocation2 + $0x9c1] ss:$2 sm:$0xff]  ;;  %vm7816_vm8 = vcmask 254976  }
 0x1d0   : > { %3630 = vst.msk [vmem:[#allocation2 + $0xc49] sm:$0xff] %vm3057_vm1, %v3033_v56  ;;  %v2950_v34 = vsel %vm2438_vm2, %v2022_v12, %v2694_v26  ;;  %v6925_v1 = vsel %vm6919_vm15, %v6860_v44, %v12166_v52  ;;  %v3874_v56 = vld [vmem:[#allocation2 + $0x991] ss:$2 sm:$0xff] }
 0x1d1   : > { %3437 = vst.msk [vmem:[#allocation2 + $0x219] sm:$0xff] %vm3057_vm1, %v2840_v25  ;;  %v2121_v30 = vpop.f32.mrf.mxu2  ;;  %v12267_v26 = vpack.i.bf16 %v3876_v24, %v3874_v56 }
 0x1d2   : > { %v2231_v31 = vpop.f32.mrf.mxu3  ;;  %v2122_v2 = vadd.f32 %v14529_v46, %v2121_v30  ;;  %3547 = vst.msk [vmem:[#allocation2 + $0x7d1] sm:$0xff] %vm3057_vm1, %v2950_v34  ;;  %v1749_v47 = vpop.f32.mrf.mxu0 }
 0x1d3   : > { %v2232_v37 = vadd.f32 %v14529_v46, %v2231_v31  ;;  %v1750_v49 = vadd.f32 %v14529_v46, %v1749_v47  ;;  %7817 = vst.msk [vmem:[#allocation3 + $0x8] sm:$0x3] %vm7816_vm8, %v13385_v35 }
 0x1d4   : > { %vm2478_vm12 = vcmp.ge.f32.partialorder %v2122_v2, 0.0  ;;  %v2734_v48 = vmul.f32 0.01, %v2122_v2  ;;  %12253 = vrot.lane.b32.xlu0 %v12252_v39, %s13389_s26  ;;  %v12169_v50 = vpop.permute.xlu0 %12168  ;;  %12263 = vrot.lane.b32.xlu2 %v12262_v32, %s13388_s25  ;;  %7821 = vst.msk [vmem:[#allocation3 + $0x148] sm:$0x3] %vm7816_vm8, %v13385_v35 }
 0x1d5   : > { %vm2522_vm13 = vcmp.ge.f32.partialorder %v2232_v37, 0.0  ;;  %11572 = vmatmul.msk.bf16.gmra.mxu0 %vm1255_vm0, %v11851_v29  ;;  %v2778_v28 = vmul.f32 0.01, %v2232_v37  ;;  %v12171_v54 = vunpack.i.h.bf16 %v12169_v50  ;;  %v12170_v57 = vunpack.i.l.bf16 %v12169_v50  ;;  %7825 = vst.msk [vmem:[#allocation3 + $0x288] sm:$0x3] %vm7816_vm8, %v13385_v35 }
 0x1d6   : > { %v2990_v59 = vsel %vm2478_vm12, %v2122_v2, %v2734_v48  ;;  %vm2329_vm4 = vcmp.ge.f32.partialorder %v1750_v49, 0.0  ;;  %v2585_v61 = vmul.f32 0.01, %v1750_v49  ;;  %7829 = vst.msk [vmem:[#allocation3 + $0x3c8] sm:$0x3] %vm7816_vm8, %v13385_v35 }
 0x1d7   : > { %11669 = vmatmul.msk.bf16.gmra.mxu3 %vm1255_vm0, %v11948_v41  ;;  %3587 = vst.msk [vmem:[#allocation2 + $0x9e1] sm:$0xff] %vm3057_vm1, %v2990_v59  ;;  %v3034_v22 = vsel %vm2522_vm13, %v2232_v37, %v2778_v28  ;;  %v6989_v6 = vsel %vm6984_vm3, %v6924_v15, %v12170_v57  ;;  %v6990_v11 = vsel %vm6984_vm3, %v6925_v1, %v12171_v54  ;;  %v11852_v37 = vld [vmem:[%s13466_s20 + $0xe8] sm:$0xff] }
 0x1d8   : > { %v2841_v7 = vsel %vm2329_vm4, %v1750_v49, %v2585_v61  ;;  %3631 = vst.msk [vmem:[#allocation2 + $0xc51] sm:$0xff] %vm3057_vm1, %v3034_v22  ;;  %v4695_v9 = vld [vmem:[#allocation2 + $0x212] ss:$2 sm:$0xff]  ;;  %v4567_v14 = vld [vmem:[#allocation2 + $0x211] ss:$2 sm:$0xff]  ;;  %v7053_v17 = vpack.c.bf16 %v6990_v11, %v6989_v6 }
 0x1d9   : > { %v4439_v10 = vld [vmem:[#allocation2 + $0x210] ss:$2 sm:$0xff]  ;;  %3438 = vst.msk [vmem:[#allocation2 + $0x229] sm:$0xff] %vm3057_vm1, %v2841_v7  ;;  %v2124_v12 = vpop.f32.mrf.mxu2  ;;  %v7058_v13 = vpack.c.bf16 %v4695_v9, %v4693_v0  ;;  %v12277_v23 = vpack.i.bf16 %v4567_v14, %v4565_v55 }
 0x1da   : > { %v2234_v63 = vpop.f32.mrf.mxu3  ;;  %v12272_v36 = vpack.i.bf16 %v4439_v10, %v4437_v38  ;;  %v2125_v20 = vadd.f32 %v14529_v46, %v2124_v12  ;;  %v1751_v25 = vpop.f32.mrf.mxu0  ;;  %7303 = vmatmul.bf16.gmra.mxu1 %v7053_v17  ;;  %v3898_v38 = vld [vmem:[#allocation2 + $0xc31] ss:$2 sm:$0xff]  ;;  %v11853_v10 = vld [vmem:[%s13466_s20 + $0xf0] sm:$0xff]  ;;  %7819 = vst.msk [vmem:[#allocation3 + $0xa8] sm:$0x3] %vm7816_vm8, %v13385_v35 }
 0x1db   : > { %v2235_v21 = vadd.f32 %v14529_v46, %v2234_v63  ;;  %11712 = vmatmul.msk.bf16.gmra.mxu2 %vm3057_vm1, %v7058_v13  ;;  %v1752_v29 = vadd.f32 %v14529_v46, %v1751_v25  ;;  %12278 = vrot.lane.b32.xlu1 %v12277_v23, %s13391_s30  ;;  %7823 = vst.msk [vmem:[#allocation3 + $0x1e8] sm:$0x3] %vm7816_vm8, %v13385_v35 }
 0x1dc   : > { %vm2479_vm5 = vcmp.ge.f32.partialorder %v2125_v20, 0.0  ;;  %v2735_v27 = vmul.f32 0.01, %v2125_v20  ;;  %12273 = vrot.lane.b32.xlu0 %v12272_v36, %s13392_s10  ;;  %12268 = vrot.lane.b32.xlu2 %v12267_v26, %s13386_s23  ;;  %7827 = vst.msk [vmem:[#allocation3 + $0x328] sm:$0x3] %vm7816_vm8, %v13385_v35 }
 0x1dd   : > { %vm2523_vm6 = vcmp.ge.f32.partialorder %v2235_v21, 0.0  ;;  %v2779_v30 = vmul.f32 0.01, %v2235_v21  ;;  %vm2330_vm7 = vcmp.ge.f32.partialorder %v1752_v29, 0.0  ;;  %v2586_v33 = vmul.f32 0.01, %v1752_v29 }
 0x1de   : > { %v2991_v31 = vsel %vm2479_vm5, %v2125_v20, %v2735_v27  ;;  %7831 = vst.msk [vmem:[#allocation3 + $0x468] sm:$0x3] %vm7816_vm8, %v13385_v35 }
 0x1df   : > { %3588 = vst.msk [vmem:[#allocation2 + $0x9f1] sm:$0xff] %vm3057_vm1, %v2991_v31  ;;  %v3035_v34 = vsel %vm2523_vm6, %v2235_v21, %v2779_v30  ;;  %v2842_v2 = vsel %vm2330_vm7, %v1752_v29, %v2586_v33  ;;  %vm7849_vm6 = vcmask 253952  }
 0x1e0   : > { %3632 = vst.msk [vmem:[#allocation2 + $0xc61] sm:$0xff] %vm3057_vm1, %v3035_v34 }
 0x1e1   : > { %3439 = vst.msk [vmem:[#allocation2 + $0x231] sm:$0xff] %vm3057_vm1, %v2842_v2  ;;  %v2126_v39 = vpop.f32.mrf.mxu2 }
 0x1e2   : > { %v2236_v40 = vpop.f32.mrf.mxu3  ;;  %v2127_v41 = vadd.f32 %v14529_v46, %v2126_v39  ;;  %v1754_v43 = vpop.f32.mrf.mxu0  ;;  %7850 = vst.msk [vmem:[#allocation3] sm:$0x1] %vm7849_vm6, %v13385_v35  ;;  %v3930_v39 = vld [vmem:[#allocation2 + $0x212] ss:$2 sm:$0xff] }
 0x1e3   : > { %v2237_v42 = vadd.f32 %v14529_v46, %v2236_v40  ;;  %v1755_v47 = vadd.f32 %v14529_v46, %v1754_v43  ;;  %7851 = vst.msk [vmem:[#allocation3 + $0x10] sm:$0x1] %vm7849_vm6, %v13385_v35 }
 0x1e4   : > { %vm2480_vm11 = vcmp.ge.f32.partialorder %v2127_v41, 0.0  ;;  %v2736_v44 = vmul.f32 0.01, %v2127_v41  ;;  %7870 = vst.msk [vmem:[#allocation3 + $0x140] sm:$0x1] %vm7849_vm6, %v13385_v35 }
 0x1e5   : > { %vm2524_vm2 = vcmp.ge.f32.partialorder %v2237_v42, 0.0  ;;  %11573 = vmatmul.msk.bf16.gmra.mxu0 %vm1255_vm0, %v11852_v37  ;;  %v2780_v32 = vmul.f32 0.01, %v2237_v42  ;;  %vm2331_vm12 = vcmp.ge.f32.partialorder %v1755_v47, 0.0  ;;  %v2587_v49 = vmul.f32 0.01, %v1755_v47  ;;  %v7294_v25 = vpop.f32.mrf.mxu1 }
 0x1e6   : > { %v2992_v48 = vsel %vm2480_vm11, %v2127_v41, %v2736_v44  ;;  %7890 = vst.msk [vmem:[#allocation3 + $0x280] sm:$0x1] %vm7849_vm6, %v13385_v35  ;;  %v3802_v37 = vld [vmem:[#allocation2 + $0x211] ss:$2 sm:$0xff] }
 0x1e7   : > { %3589 = vst.msk [vmem:[#allocation2 + $0x9f9] sm:$0xff] %vm3057_vm1, %v2992_v48  ;;  %v3036_v50 = vsel %vm2524_vm2, %v2237_v42, %v2780_v32  ;;  %v2843_v52 = vsel %vm2331_vm12, %v1755_v47, %v2587_v49  ;;  %v12184_v32 = vpop.permute.xlu2 %12183 }
 0x1e8   : > { %3633 = vst.msk [vmem:[#allocation2 + $0xc69] sm:$0xff] %vm3057_vm1, %v3036_v50 }
 0x1e9   : > { %3440 = vst.msk [vmem:[#allocation2 + $0x241] sm:$0xff] %vm3057_vm1, %v2843_v52  ;;  %v2129_v28 = vpop.f32.mrf.mxu2  ;;  %v8075_v34 = vld [vmem:[#allocation3] ss:$2 sm:$0xf]  ;;  %v11854_v52 = vld [vmem:[%s13466_s20 + $0xf8] sm:$0xff] }
 0x1ea   : > { %v2239_v54 = vpop.f32.mrf.mxu3  ;;  %v2130_v57 = vadd.f32 %v14529_v46, %v2129_v28  ;;  %v1756_v61 = vpop.f32.mrf.mxu0  ;;  %7910 = vst.msk [vmem:[#allocation3 + $0x3c0] sm:$0x1] %vm7849_vm6, %v13385_v35 }
 0x1eb   : > { %v2240_v59 = vadd.f32 %v14529_v46, %v2239_v54  ;;  %v1757_v15 = vadd.f32 %v14529_v46, %v1756_v61  ;;  %8681 = vst [vmem:[#allocation1] ss:$2 sm:$0xff] %v8075_v34  ;;  %v14857_v61 = vpop.permute.xlu0 %12173 }
 0x1ec   : > { %vm2481_vm13 = vcmp.ge.f32.partialorder %v2130_v57, 0.0  ;;  %v2737_v0 = vmul.f32 0.01, %v2130_v57  ;;  %7852 = vst.msk [vmem:[#allocation3 + $0x20] sm:$0x1] %vm7849_vm6, %v13385_v35 }
 0x1ed   : > { %vm2525_vm4 = vcmp.ge.f32.partialorder %v2240_v59, 0.0  ;;  %v2781_v22 = vmul.f32 0.01, %v2240_v59  ;;  %vm2332_vm5 = vcmp.ge.f32.partialorder %v1757_v15, 0.0  ;;  %v2588_v1 = vmul.f32 0.01, %v1757_v15  ;;  %v12179_v2 = vpop.permute.xlu1 %12178 }
 0x1ee   : > { %v2993_v55 = vsel %vm2481_vm13, %v2130_v57, %v2737_v0  ;;  %7853 = vst.msk [vmem:[#allocation3 + $0x30] sm:$0x1] %vm7849_vm6, %v13385_v35  ;;  %v7296_v0 = vpop.f32.mrf.mxu1 }
 0x1ef   : > { %3590 = vst.msk [vmem:[#allocation2 + $0xa39] sm:$0xff] %vm3057_vm1, %v2993_v55  ;;  %v3037_v6 = vsel %vm2525_vm4, %v2240_v59, %v2781_v22  ;;  %v3900_v7 = vld [vmem:[#allocation2 + $0xc61] ss:$2 sm:$0xff]  ;;  %v2844_v9 = vsel %vm2332_vm5, %v1757_v15, %v2588_v1  ;;  %v14853_v49 = vpop.permute.xlu2 %12188  ;;  %v12181_v15 = vunpack.i.h.bf16 %v12179_v2  ;;  %v3668_v55 = vld [vmem:[#allocation2 + $0x150] ss:$2 sm:$0xff] }
 0x1f0   : > { %3634 = vst.msk [vmem:[#allocation2 + $0xc79] sm:$0xff] %vm3057_vm1, %v3037_v6  ;;  %v12282_v63 = vpack.i.bf16 %v3900_v7, %v3898_v38  ;;  %v12180_v38 = vunpack.i.l.bf16 %v12179_v2  ;;  %v3666_v1 = vld [vmem:[#allocation2 + $0x120] ss:$2 sm:$0xff]  ;;  %v14865_v7 = vld [vmem:[%s16982_s2] ss:$0 sm:$0xff] }
 0x1f1   : > { %3441 = vst.msk [vmem:[#allocation2 + $0x249] sm:$0xff] %vm3057_vm1, %v2844_v9  ;;  %v2131_v11 = vpop.f32.mrf.mxu2  ;;  %v6603_v6 = vsel %vm3057_vm1, %v3668_v55, %v12181_v15 }
 0x1f2   : > { %v2241_v12 = vpop.f32.mrf.mxu3  ;;  %v2132_v13 = vadd.f32 %v14529_v46, %v2131_v11  ;;  %v1759_v14 = vpop.f32.mrf.mxu0  ;;  %12283 = vrot.lane.b32.xlu2 %v12282_v63, %s13386_s23  ;;  %7854 = vst.msk [vmem:[#allocation3 + $0x40] sm:$0x1] %vm7849_vm6, %v13385_v35  ;;  %v6602_v63 = vsel %vm3057_vm1, %v3666_v1, %v12180_v38 }
 0x1f3   : > { %v2242_v36 = vadd.f32 %v14529_v46, %v2241_v12  ;;  %v1760_v56 = vadd.f32 %v14529_v46, %v1759_v14  ;;  %v14696_v46 = vld [vmem:[%s16984_s4] ss:$0 sm:$0xff]  ;;  %7855 = vst.msk [vmem:[#allocation3 + $0x50] sm:$0x1] %vm7849_vm6, %v13385_v35  ;;  %v12186_v12 = vunpack.i.h.bf16 %v12184_v32 }
 0x1f4   : > { %vm2482_vm7 = vcmp.ge.f32.partialorder %v2132_v13, 0.0  ;;  %v2738_v17 = vmul.f32 0.01, %v2132_v13  ;;  %v7295_v29 = vadd.f32 %v14696_v46, %v7294_v25  ;;  %7856 = vst.msk [vmem:[#allocation3 + $0x60] sm:$0x1] %vm7849_vm6, %v13385_v35 }
 0x1f5   : > { %vm2526_vm11 = vcmp.ge.f32.partialorder %v2242_v36, 0.0  ;;  %11574 = vmatmul.msk.bf16.gmra.mxu0 %vm1255_vm0, %v11853_v10  ;;  %v2782_v20 = vmul.f32 0.01, %v2242_v36  ;;  %vm2333_vm2 = vcmp.ge.f32.partialorder %v1760_v56, 0.0  ;;  %v2589_v23 = vmul.f32 0.01, %v1760_v56 }
 0x1f6   : > { %v2994_v21 = vsel %vm2482_vm7, %v2132_v13, %v2738_v17  ;;  %7857 = vst.msk [vmem:[#allocation3 + $0x70] sm:$0x1] %vm7849_vm6, %v13385_v35  ;;  %v12185_v17 = vunpack.i.l.bf16 %v12184_v32 }
 0x1f7   : > { %3591 = vst.msk [vmem:[#allocation2 + $0xa41] sm:$0xff] %vm3057_vm1, %v2994_v21  ;;  %v3038_v24 = vsel %vm2526_vm11, %v2242_v36, %v2782_v20  ;;  %v2845_v26 = vsel %vm2333_vm2, %v1760_v56, %v2589_v23  ;;  %v12204_v59 = vpop.permute.xlu2 %12203  ;;  %v11855_v56 = vld [vmem:[%s13466_s20 + $0x100] sm:$0xff]  ;;  %v7297_v20 = vadd.f32 %v14696_v46, %v7296_v0  ;;  %v6667_v21 = vsel %vm1255_vm0, %v6603_v6, %v12186_v12 }
 0x1f8   : > { %3635 = vst.msk [vmem:[#allocation2 + $0xc81] sm:$0xff] %vm3057_vm1, %v3038_v24  ;;  %v3804_v40 = vld [vmem:[#allocation2 + $0x241] ss:$2 sm:$0xff]  ;;  %v3932_v41 = vld [vmem:[#allocation2 + $0x242] ss:$2 sm:$0xff]  ;;  %v6666_v25 = vsel %vm1255_vm0, %v6602_v63, %v12185_v17  ;;  %v12205_v34 = vunpack.i.l.bf16 %v12204_v59 }
 0x1f9   : > { %3442 = vst.msk [vmem:[#allocation2 + $0x259] sm:$0xff] %vm3057_vm1, %v2845_v26  ;;  %v7463_v27 = vpop.f32.mrf.mxu2  ;;  %v12287_v42 = vpack.i.bf16 %v3804_v40, %v3802_v37  ;;  %v12292_v43 = vpack.i.bf16 %v3932_v41, %v3930_v39 }
 0x1fa   : > { %v7464_v30 = vadd.f32 %v7463_v27, %v7295_v29  ;;  %7858 = vst.msk [vmem:[#allocation3 + $0x80] sm:$0x1] %vm7849_vm6, %v13385_v35  ;;  %v1761_v44 = vpop.f32.mrf.mxu0  ;;  %v2244_v47 = vpop.f32.mrf.mxu3  ;;  %v12206_v29 = vunpack.i.h.bf16 %v12204_v59 }
 0x1fb   : > { %7860 = vst.msk [vmem:[#allocation3 + $0xa0] sm:$0x1] %vm7849_vm6, %v13385_v35  ;;  %12288 = vrot.lane.b32.xlu2 %v12287_v42, %s13386_s23  ;;  %12293 = vrot.lane.b32.xlu1 %v12292_v43, %s13387_s24  ;;  %v1762_v9 = vadd.f32 %v14865_v7, %v1761_v44  ;;  %v2245_v39 = vadd.f32 %v14865_v7, %v2244_v47 }
 0x1fc   : > { %v7687_v31 = vmul.f32 0.01, %v7464_v30  ;;  %vm7623_vm12 = vcmp.ge.f32.partialorder %v7464_v30, 0.0  ;;  %7861 = vst.msk [vmem:[#allocation3 + $0xb0] sm:$0x1] %vm7849_vm6, %v13385_v35 }
 0x1fd   : > { %7862 = vst.msk [vmem:[#allocation3 + $0xc0] sm:$0x1] %vm7849_vm6, %v13385_v35  ;;  %v2590_v24 = vmul.f32 0.01, %v1762_v9  ;;  %vm2334_vm8 = vcmp.ge.f32.partialorder %v1762_v9, 0.0  ;;  %vm2527_vm4 = vcmp.ge.f32.partialorder %v2245_v39, 0.0 }
 0x1fe   : > { %v7751_v33 = vsel %vm7623_vm12, %v7464_v30, %v7687_v31  ;;  %7863 = vst.msk [vmem:[#allocation3 + $0xd0] sm:$0x1] %vm7849_vm6, %v13385_v35  ;;  %v14851_v48 = vpop.permute.xlu1 %12193  ;;  %v12209_v30 = vpop.permute.xlu0 %12208 }
 0x1ff   : > { %8011 = vst.msk [vmem:[#allocation3 + $0x11] sm:$0xff] %vm1255_vm0, %v7751_v33  ;;  %v12224_v23 = vpop.permute.xlu2 %12223  ;;  %v2846_v43 = vsel %vm2334_vm8, %v1762_v9, %v2590_v24  ;;  %v12211_v44 = vunpack.i.h.bf16 %v12209_v30  ;;  %v2783_v9 = vmul.f32 0.01, %v2245_v39 }
 0x200   : > { %7864 = vst.msk [vmem:[#allocation3 + $0xe0] sm:$0x1] %vm7849_vm6, %v13385_v35  ;;  %v12226_v37 = vunpack.i.h.bf16 %v12224_v23  ;;  %v12225_v42 = vunpack.i.l.bf16 %v12224_v23 }
 0x201   : > { %7865 = vst.msk [vmem:[#allocation3 + $0xf0] sm:$0x1] %vm7849_vm6, %v13385_v35  ;;  %v7465_v10 = vpop.f32.mrf.mxu2 }
 0x202   : > { %7866 = vst.msk [vmem:[#allocation3 + $0x100] sm:$0x1] %vm7849_vm6, %v13385_v35  ;;  %v2246_v50 = vpop.f32.mrf.mxu3  ;;  %v7466_v31 = vadd.f32 %v7465_v10, %v7297_v20 }
 0x203   : > { %7867 = vst.msk [vmem:[#allocation3 + $0x110] sm:$0x1] %vm7849_vm6, %v13385_v35  ;;  %v2247_v38 = vadd.f32 %v14865_v7, %v2246_v50 }
 0x204   : > { %7868 = vst.msk [vmem:[#allocation3 + $0x120] sm:$0x1] %vm7849_vm6, %v13385_v35  ;;  %vm7624_vm13 = vcmp.ge.f32.partialorder %v7466_v31, 0.0 }
 0x205   : > { %7871 = vst.msk [vmem:[#allocation3 + $0x150] sm:$0x1] %vm7849_vm6, %v13385_v35  ;;  %11575 = vmatmul.msk.bf16.gmra.mxu0 %vm1255_vm0, %v11854_v52  ;;  %v12210_v52 = vunpack.i.l.bf16 %v12209_v30  ;;  %v2784_v20 = vmul.f32 0.01, %v2247_v38 }
 0x206   : > { %7872 = vst.msk [vmem:[#allocation3 + $0x160] sm:$0x1] %vm7849_vm6, %v13385_v35  ;;  %v12199_v28 = vpop.permute.xlu1 %12198 }
 0x207   : > { %7873 = vst.msk [vmem:[#allocation3 + $0x170] sm:$0x1] %vm7849_vm6, %v13385_v35  ;;  %v12201_v11 = vunpack.i.h.bf16 %v12199_v28  ;;  %v12200_v13 = vunpack.i.l.bf16 %v12199_v28 }
 0x208   : > { %7874 = vst.msk [vmem:[#allocation3 + $0x180] sm:$0x1] %vm7849_vm6, %v13385_v35 }
 0x209   : > { %7875 = vst.msk [vmem:[#allocation3 + $0x190] sm:$0x1] %vm7849_vm6, %v13385_v35  ;;  %v6732_v26 = vsel %vm6724_vm9, %v6667_v21, %v12201_v11  ;;  %v6731_v33 = vsel %vm6724_vm9, %v6666_v25, %v12200_v13  ;;  %v7468_v47 = vpop.f32.mrf.mxu2 }
 0x20a   : > { %7876 = vst.msk [vmem:[#allocation3 + $0x1a0] sm:$0x1] %vm7849_vm6, %v13385_v35  ;;  %v2249_v57 = vpop.f32.mrf.mxu3  ;;  %v6797_v40 = vsel %vm6789_vm10, %v6732_v26, %v12206_v29  ;;  %v6796_v32 = vsel %vm6789_vm10, %v6731_v33, %v12205_v34  ;;  %v3039_v26 = vsel %vm2527_vm4, %v2245_v39, %v2783_v9  ;;  %v11856_v33 = vld [vmem:[%s13466_s20 + $0x108] sm:$0xff] }
 0x20b   : > { %7877 = vst.msk [vmem:[#allocation3 + $0x1b0] sm:$0x1] %vm7849_vm6, %v13385_v35  ;;  %v6862_v6 = vsel %vm6854_vm14, %v6797_v40, %v12211_v44  ;;  %v6861_v11 = vsel %vm6854_vm14, %v6796_v32, %v12210_v52  ;;  %v2250_v63 = vadd.f32 %v14865_v7, %v2249_v57 }
 0x20c   : > { %7878 = vst.msk [vmem:[#allocation3 + $0x1c0] sm:$0x1] %vm7849_vm6, %v13385_v35 }
 0x20d   : > { %7880 = vst.msk [vmem:[#allocation3 + $0x1e0] sm:$0x1] %vm7849_vm6, %v13385_v35  ;;  %v2785_v30 = vmul.f32 0.01, %v2250_v63  ;;  %vm2529_vm11 = vcmp.ge.f32.partialorder %v2250_v63, 0.0 }
 0x20e   : > { %7881 = vst.msk [vmem:[#allocation3 + $0x1f0] sm:$0x1] %vm7849_vm6, %v13385_v35  ;;  %v14859_v22 = vpop.permute.xlu1 %12213 }
 0x20f   : > { %7882 = vst.msk [vmem:[#allocation3 + $0x200] sm:$0x1] %vm7849_vm6, %v13385_v35  ;;  %v3041_v32 = vsel %vm2529_vm11, %v2250_v63, %v2785_v30 }
 0x210   : > { %7883 = vst.msk [vmem:[#allocation3 + $0x210] sm:$0x1] %vm7849_vm6, %v13385_v35 }
 0x211   : > { %7884 = vst.msk [vmem:[#allocation3 + $0x220] sm:$0x1] %vm7849_vm6, %v13385_v35 }
 0x212   : > { %7885 = vst.msk [vmem:[#allocation3 + $0x230] sm:$0x1] %vm7849_vm6, %v13385_v35  ;;  %v14869_v14 = vpop.f32.mrf.mxu3 }
 0x213   : > { %7886 = vst.msk [vmem:[#allocation3 + $0x240] sm:$0x1] %vm7849_vm6, %v13385_v35  ;;  %v2252_v44 = vadd.f32 %v14865_v7, %v14869_v14 }
 0x214   : > { %7887 = vst.msk [vmem:[#allocation3 + $0x250] sm:$0x1] %vm7849_vm6, %v13385_v35 }
 0x215   : > { %7888 = vst.msk [vmem:[#allocation3 + $0x260] sm:$0x1] %vm7849_vm6, %v13385_v35  ;;  %11576 = vmatmul.msk.bf16.gmra.mxu0 %vm1255_vm0, %v11855_v56  ;;  %v2786_v63 = vmul.f32 0.01, %v2252_v44  ;;  %vm2530_vm8 = vcmp.ge.f32.partialorder %v2252_v44, 0.0 }
 0x216   : > { %7891 = vst.msk [vmem:[#allocation3 + $0x290] sm:$0x1] %vm7849_vm6, %v13385_v35  ;;  %v12219_v2 = vpop.permute.xlu1 %12218 }
 0x217   : > { %7892 = vst.msk [vmem:[#allocation3 + $0x2a0] sm:$0x1] %vm7849_vm6, %v13385_v35  ;;  %v12221_v0 = vunpack.i.h.bf16 %v12219_v2  ;;  %v12220_v1 = vunpack.i.l.bf16 %v12219_v2 }
 0x218   : > { %7893 = vst.msk [vmem:[#allocation3 + $0x2b0] sm:$0x1] %vm7849_vm6, %v13385_v35  ;;  %v7299_v27 = vpop.f32.mrf.mxu1 }
 0x219   : > { %7894 = vst.msk [vmem:[#allocation3 + $0x2c0] sm:$0x1] %vm7849_vm6, %v13385_v35  ;;  %v7300_v41 = vadd.f32 %v14696_v46, %v7299_v27  ;;  %v6927_v12 = vsel %vm6919_vm15, %v6862_v6, %v12221_v0  ;;  %v6926_v13 = vsel %vm6919_vm15, %v6861_v11, %v12220_v1  ;;  %v4313_v6 = vld [vmem:[#allocation2 + $0x22a] ss:$2 sm:$0xff] }
 0x21a   : > { %7895 = vst.msk [vmem:[#allocation3 + $0x2d0] sm:$0x1] %vm7849_vm6, %v13385_v35  ;;  %v14883_v59 = vpop.f32.mrf.mxu3  ;;  %v6991_v17 = vsel %vm6984_vm3, %v6926_v13, %v12225_v42  ;;  %v6992_v56 = vsel %vm6984_vm3, %v6927_v12, %v12226_v37  ;;  %v4185_v42 = vld [vmem:[#allocation2 + $0x229] ss:$2 sm:$0xff] }
 0x21b   : > { %7896 = vst.msk [vmem:[#allocation3 + $0x2e0] sm:$0x1] %vm7849_vm6, %v13385_v35  ;;  %v7469_v10 = vadd.f32 %v7468_v47, %v7300_v41  ;;  %v7055_v25 = vpack.c.bf16 %v6992_v56, %v6991_v17  ;;  %v7470_v47 = vpop.f32.mrf.mxu2  ;;  %v2255_v14 = vadd.f32 %v14865_v7, %v14883_v59  ;;  %v3672_v59 = vld [vmem:[#allocation2 + $0x1e0] ss:$2 sm:$0xff] }
 0x21c   : > { %7897 = vst.msk [vmem:[#allocation3 + $0x2f0] sm:$0x1] %vm7849_vm6, %v13385_v35 }
 0x21d   : > { %7898 = vst.msk [vmem:[#allocation3 + $0x300] sm:$0x1] %vm7849_vm6, %v13385_v35  ;;  %v7689_v27 = vmul.f32 0.01, %v7469_v10  ;;  %7308 = vmatmul.bf16.gmra.mxu1 %v7055_v25  ;;  %vm7625_vm2 = vcmp.ge.f32.partialorder %v7469_v10, 0.0 }
 0x21e   : > { %7900 = vst.msk [vmem:[#allocation3 + $0x320] sm:$0x1] %vm7849_vm6, %v13385_v35 }
 0x21f   : > { %7901 = vst.msk [vmem:[#allocation3 + $0x330] sm:$0x1] %vm7849_vm6, %v13385_v35  ;;  %v7753_v0 = vsel %vm7625_vm2, %v7469_v10, %v7689_v27  ;;  %v3670_v27 = vld [vmem:[#allocation2 + $0x1b0] ss:$2 sm:$0xff] }
 0x220   : > { %7902 = vst.msk [vmem:[#allocation3 + $0x340] sm:$0x1] %vm7849_vm6, %v13385_v35  ;;  %v7301_v24 = vpop.f32.mrf.mxu1 }
 0x221   : > { %7903 = vst.msk [vmem:[#allocation3 + $0x350] sm:$0x1] %vm7849_vm6, %v13385_v35 }
 0x222   : > { %7904 = vst.msk [vmem:[#allocation3 + $0x360] sm:$0x1] %vm7849_vm6, %v13385_v35  ;;  %v2256_v40 = vpop.f32.mrf.mxu3 }
 0x223   : > { %7905 = vst.msk [vmem:[#allocation3 + $0x370] sm:$0x1] %vm7849_vm6, %v13385_v35  ;;  %v2257_v56 = vadd.f32 %v14865_v7, %v2256_v40 }
 0x224   : > { %7906 = vst.msk [vmem:[#allocation3 + $0x380] sm:$0x1] %vm7849_vm6, %v13385_v35  ;;  %v14903_v34 = vpop.permute.xlu1 %12228 }
 0x225   : > { %7907 = vst.msk [vmem:[#allocation3 + $0x390] sm:$0x1] %vm7849_vm6, %v13385_v35  ;;  %11577 = vmatmul.msk.bf16.gmra.mxu0 %vm1255_vm0, %v11856_v33  ;;  %v4697_v33 = vld [vmem:[#allocation2 + $0x242] ss:$2 sm:$0xff] }
 0x226   : > { %7908 = vst.msk [vmem:[#allocation3 + $0x3a0] sm:$0x1] %vm7849_vm6, %v13385_v35 }
 0x227   : > { %7911 = vst.msk [vmem:[#allocation3 + $0x3d0] sm:$0x1] %vm7849_vm6, %v13385_v35 }
 0x228   : > { %7912 = vst.msk [vmem:[#allocation3 + $0x3e0] sm:$0x1] %vm7849_vm6, %v13385_v35 }
 0x229   : > { %7913 = vst.msk [vmem:[#allocation3 + $0x3f0] sm:$0x1] %vm7849_vm6, %v13385_v35 }
 0x22a   : > { %7914 = vst.msk [vmem:[#allocation3 + $0x400] sm:$0x1] %vm7849_vm6, %v13385_v35 }
 0x22b   : > { %7915 = vst.msk [vmem:[#allocation3 + $0x410] sm:$0x1] %vm7849_vm6, %v13385_v35 }
 0x22c   : > { %7916 = vst.msk [vmem:[#allocation3 + $0x420] sm:$0x1] %vm7849_vm6, %v13385_v35 }
 0x22d   : > { %7917 = vst.msk [vmem:[#allocation3 + $0x430] sm:$0x1] %vm7849_vm6, %v13385_v35  ;;  %v14898_v57 = vpop.permute.xlu0 %12238 }
 0x22e   : > { %7918 = vst.msk [vmem:[#allocation3 + $0x440] sm:$0x1] %vm7849_vm6, %v13385_v35 }
 0x22f   : > { %7920 = vst.msk [vmem:[#allocation3 + $0x460] sm:$0x1] %vm7849_vm6, %v13385_v35 }
 0x230   : > { %7921 = vst.msk [vmem:[#allocation3 + $0x470] sm:$0x1] %vm7849_vm6, %v13385_v35 }
 0x231   : > { %7922 = vst.msk [vmem:[#allocation3 + $0x480] sm:$0x1] %vm7849_vm6, %v13385_v35 }
 0x232   : > { %7923 = vst.msk [vmem:[#allocation3 + $0x490] sm:$0x1] %vm7849_vm6, %v13385_v35 }
 0x233   : > { %7924 = vst.msk [vmem:[#allocation3 + $0x4a0] sm:$0x1] %vm7849_vm6, %v13385_v35 }
 0x234   : > { %7925 = vst.msk [vmem:[#allocation3 + $0x4b0] sm:$0x1] %vm7849_vm6, %v13385_v35 }
 0x235   : > { %7926 = vst.msk [vmem:[#allocation3 + $0x4c0] sm:$0x1] %vm7849_vm6, %v13385_v35 }
 0x236   : > { %7927 = vst.msk [vmem:[#allocation3 + $0x4d0] sm:$0x1] %vm7849_vm6, %v13385_v35 }
 0x237   : > { %7928 = vst.msk [vmem:[#allocation3 + $0x4e0] sm:$0x1] %vm7849_vm6, %v13385_v35  ;;  %v1764_v35 = vpop.f32.mrf.mxu0  ;;  %vm2528_vm6 = vcmp.ge.f32.partialorder %v2247_v38, 0.0 }
 0x238   : > { %v1765_v28 = vadd.f32 %v14865_v7, %v1764_v35  ;;  %v7688_v35 = vmul.f32 0.01, %v7466_v31  ;;  %3443 = vst.msk [vmem:[#allocation2 + $0x261] sm:$0xff] %vm3057_vm1, %v2846_v43  ;;  %v3040_v39 = vsel %vm2528_vm6, %v2247_v38, %v2784_v20  ;;  %v4057_v43 = vld [vmem:[#allocation2 + $0x228] ss:$2 sm:$0xff] }
 0x239   : > { %3636 = vst.msk [vmem:[#allocation2 + $0xc91] sm:$0xff] %vm3057_vm1, %v3039_v26  ;;  %v3042_v26 = vsel %vm2530_vm8, %v2252_v44, %v2786_v63 }
 0x23a   : > { %vm2335_vm5 = vcmp.ge.f32.partialorder %v1765_v28, 0.0  ;;  %v2591_v50 = vmul.f32 0.01, %v1765_v28  ;;  %v7752_v29 = vsel %vm7624_vm13, %v7466_v31, %v7688_v35  ;;  %3637 = vst.msk [vmem:[#allocation2 + $0xc99] sm:$0xff] %vm3057_vm1, %v3040_v39 }
 0x23b   : > { %8012 = vst.msk [vmem:[#allocation3 + $0x21] sm:$0xff] %vm1255_vm0, %v7752_v29 }
 0x23c   : > { %v2847_v2 = vsel %vm2335_vm5, %v1765_v28, %v2591_v50  ;;  %3638 = vst.msk [vmem:[#allocation2 + $0xca9] sm:$0xff] %vm3057_vm1, %v3041_v32  ;;  %vm2531_vm5 = vcmp.ge.f32.partialorder %v2255_v14, 0.0  ;;  %v12241_v32 = vunpack.i.h.bf16 %v14898_v57 }
 0x23d   : > { %3444 = vst.msk [vmem:[#allocation2 + $0x271] sm:$0xff] %vm3057_vm1, %v2847_v2  ;;  %v4569_v2 = vld [vmem:[#allocation2 + $0x241] ss:$2 sm:$0xff] }
 0x23e   : > { %8013 = vst.msk [vmem:[#allocation3 + $0x31] sm:$0xff] %vm1255_vm0, %v7753_v0  ;;  %v4441_v0 = vld [vmem:[#allocation2 + $0x240] ss:$2 sm:$0xff] }
 0x23f   : > { %v1766_v54 = vpop.f32.mrf.mxu0  ;;  %v4187_v52 = vld [vmem:[#allocation2 + $0x259] ss:$2 sm:$0xff]  ;;  %v4059_v28 = vld [vmem:[#allocation2 + $0x258] ss:$2 sm:$0xff]  ;;  %3639 = vst.msk [vmem:[#allocation2 + $0xcb1] sm:$0xff] %vm3057_vm1, %v3042_v26 }
 0x240   : > { %v1767_v55 = vadd.f32 %v14865_v7, %v1766_v54  ;;  %v14893_v54 = vpop.permute.xlu2 %12233  ;;  %v12297_v1 = vpack.i.bf16 %v4059_v28, %v4057_v43  ;;  %v4315_v9 = vld [vmem:[#allocation2 + $0x25a] ss:$2 sm:$0xff] }
 0x241   : > { %v12307_v12 = vpack.i.bf16 %v4315_v9, %v4313_v6  ;;  %v12236_v13 = vunpack.i.h.bf16 %v14893_v54  ;;  %v12235_v30 = vunpack.i.l.bf16 %v14893_v54 }
 0x242   : > { %v2592_v21 = vmul.f32 0.01, %v1767_v55  ;;  %vm2336_vm7 = vcmp.ge.f32.partialorder %v1767_v55, 0.0  ;;  %12298 = vrot.lane.b32.xlu2 %v12297_v1, %s13389_s26  ;;  %v8077_v25 = vld [vmem:[#allocation3 + $0x20] ss:$2 sm:$0xf] }
 0x243   : > { %12308 = vrot.lane.b32.xlu1 %v12307_v12, %s13388_s25  ;;  %v6605_v29 = vsel %vm3057_vm1, %v3672_v59, %v12236_v13  ;;  %8683 = vst [vmem:[#allocation1 + $0x1] ss:$2 sm:$0xff] %v8077_v25 }
 0x244   : > { %v2848_v31 = vsel %vm2336_vm7, %v1767_v55, %v2592_v21  ;;  %v12302_v55 = vpack.i.bf16 %v4187_v52, %v4185_v42  ;;  %v2787_v21 = vmul.f32 0.01, %v2255_v14  ;;  %v12240_v52 = vunpack.i.l.bf16 %v14898_v57 }
 0x245   : > { %3445 = vst.msk [vmem:[#allocation2 + $0x279] sm:$0xff] %vm3057_vm1, %v2848_v31  ;;  %vm2532_vm7 = vcmp.ge.f32.partialorder %v2257_v56, 0.0  ;;  %v6669_v59 = vsel %vm1255_vm0, %v6605_v29, %v12241_v32 }
 0x246   : > { %12303 = vrot.lane.b32.xlu0 %v12302_v55, %s13390_s29  ;;  %v3043_v42 = vsel %vm2531_vm5, %v2255_v14, %v2787_v21  ;;  %v6604_v14 = vsel %vm3057_vm1, %v3670_v27, %v12235_v30  ;;  %v8091_v21 = vld [vmem:[#allocation3 + $0x140] ss:$2 sm:$0xf] }
 0x247   : > { %v1769_v36 = vpop.f32.mrf.mxu0  ;;  %v6668_v13 = vsel %vm1255_vm0, %v6604_v14, %v12240_v52  ;;  %3640 = vst.msk [vmem:[#allocation2 + $0xcc1] sm:$0xff] %vm3057_vm1, %v3043_v42 }
 0x248   : > { %v1770_v23 = vadd.f32 %v14865_v7, %v1769_v36  ;;  %v7302_v36 = vadd.f32 %v14696_v46, %v7301_v24  ;;  %v14920_v35 = vpop.permute.xlu2 %12248  ;;  %v2259_v24 = vpop.f32.mrf.mxu3 }
 0x24a   : > { %v2593_v41 = vmul.f32 0.01, %v1770_v23  ;;  %vm2337_vm12 = vcmp.ge.f32.partialorder %v1770_v23, 0.0  ;;  %v7471_v11 = vadd.f32 %v7470_v47, %v7302_v36 }
 0x24c   : > { %v2849_v10 = vsel %vm2337_vm12, %v1770_v23, %v2593_v41  ;;  %v7690_v20 = vmul.f32 0.01, %v7471_v11  ;;  %vm7626_vm4 = vcmp.ge.f32.partialorder %v7471_v11, 0.0  ;;  %v2788_v41 = vmul.f32 0.01, %v2257_v56 }
 0x24d   : > { %3446 = vst.msk [vmem:[#allocation2 + $0x289] sm:$0xff] %vm3057_vm1, %v2849_v10  ;;  %v4699_v43 = vld [vmem:[#allocation2 + $0x272] ss:$2 sm:$0xff]  ;;  %v4571_v44 = vld [vmem:[#allocation2 + $0x271] ss:$2 sm:$0xff]  ;;  %v11857_v10 = vld [vmem:[%s13466_s20 + $0x110] sm:$0xff] }
 0x24e   : > { %v7754_v31 = vsel %vm7626_vm4, %v7471_v11, %v7690_v20  ;;  %v7060_v54 = vpack.c.bf16 %v4699_v43, %v4697_v33  ;;  %v12317_v28 = vpack.i.bf16 %v4571_v44, %v4569_v2  ;;  %v4443_v47 = vld [vmem:[#allocation2 + $0x270] ss:$2 sm:$0xff]  ;;  %v3044_v63 = vsel %vm2532_vm7, %v2257_v56, %v2788_v41  ;;  %11578 = vmatmul.msk.bf16.gmra.mxu0 %vm1255_vm0, %v11857_v10 }
 0x24f   : > { %v1771_v15 = vpop.f32.mrf.mxu0  ;;  %v12312_v1 = vpack.i.bf16 %v4443_v47, %v4441_v0  ;;  %8014 = vst.msk [vmem:[#allocation3 + $0x41] sm:$0xff] %vm1255_vm0, %v7754_v31  ;;  %v14962_v33 = vld.sshfl [vmem:[#allocation1] sm:$0xff pattern:$0x75316420] }
 0x250   : > { %v1772_v38 = vadd.f32 %v14865_v7, %v1771_v15  ;;  %v14922_v15 = vpop.permute.xlu0 %12243  ;;  %11713 = vmatmul.msk.bf16.gmra.mxu2 %vm3057_vm1, %v7060_v54  ;;  %12318 = vrot.lane.b32.xlu0 %v12317_v28, %s13391_s30  ;;  %v12264_v12 = vpop.permute.xlu2 %12263  ;;  %3641 = vst.msk [vmem:[#allocation2 + $0xcc9] sm:$0xff] %vm3057_vm1, %v3044_v63 }
 0x251   : > { %12313 = vrot.lane.b32.xlu2 %v12312_v1, %s13392_s10  ;;  %v2261_v20 = vpop.f32.mrf.mxu3  ;;  %v12266_v2 = vunpack.i.h.bf16 %v12264_v12  ;;  %8700 = vst [vmem:[#allocation1] ss:$2 sm:$0xff] %v8091_v21  ;;  %v7473_v54 = vpop.f32.mrf.mxu2 }
 0x252   : > { %v2594_v50 = vmul.f32 0.01, %v1772_v38  ;;  %vm2338_vm13 = vcmp.ge.f32.partialorder %v1772_v38, 0.0 }
 0x254   : > { %v2850_v40 = vsel %vm2338_vm13, %v1772_v38, %v2594_v50  ;;  %v2260_v38 = vadd.f32 %v14865_v7, %v2259_v24 }
 0x255   : > { %3447 = vst.msk [vmem:[#allocation2 + $0x291] sm:$0xff] %vm3057_vm1, %v2850_v40 }
 0x256   : > { %v2789_v26 = vmul.f32 0.01, %v2260_v38  ;;  %vm2533_vm2 = vcmp.ge.f32.partialorder %v2260_v38, 0.0  ;;  %v8079_v44 = vld [vmem:[#allocation3 + $0x40] ss:$2 sm:$0xf] }
 0x257   : > { %v1774_v37 = vpop.f32.mrf.mxu0  ;;  %v7304_v1 = vpop.f32.mrf.mxu1  ;;  %8685 = vst [vmem:[#allocation1 + $0x10] ss:$2 sm:$0xff] %v8079_v44 }
 0x258   : > { %v1775_v17 = vadd.f32 %v14865_v7, %v1774_v37  ;;  %v14936_v37 = vpop.permute.xlu1 %12258  ;;  %v12254_v55 = vpop.permute.xlu0 %12253  ;;  %v3045_v28 = vsel %vm2533_vm2, %v2260_v38, %v2789_v26  ;;  %v7305_v10 = vadd.f32 %v14696_v46, %v7304_v1 }
 0x259   : > { %v12256_v9 = vunpack.i.h.bf16 %v12254_v55  ;;  %v12255_v11 = vunpack.i.l.bf16 %v12254_v55  ;;  %v12261_v27 = vunpack.i.h.bf16 %v14936_v37  ;;  %v12260_v29 = vunpack.i.l.bf16 %v14936_v37  ;;  %v2264_v14 = vpop.f32.mrf.mxu3  ;;  %3642 = vst.msk [vmem:[#allocation2 + $0xcd9] sm:$0xff] %vm3057_vm1, %v3045_v28 }
 0x25a   : > { %vm2339_vm6 = vcmp.ge.f32.partialorder %v1775_v17, 0.0  ;;  %v2595_v39 = vmul.f32 0.01, %v1775_v17  ;;  %v12265_v37 = vunpack.i.l.bf16 %v12264_v12  ;;  %v2265_v63 = vadd.f32 %v14865_v7, %v2264_v14 }
 0x25b   : > { %v6733_v24 = vsel %vm6724_vm9, %v6668_v13, %v12255_v11  ;;  %v6734_v25 = vsel %vm6724_vm9, %v6669_v59, %v12256_v9  ;;  %v3902_v9 = vld [vmem:[#allocation2 + $0xc91] ss:$2 sm:$0xff]  ;;  %v7474_v21 = vadd.f32 %v7473_v54, %v7305_v10 }
 0x25c   : > { %v2851_v57 = vsel %vm2339_vm6, %v1775_v17, %v2595_v39  ;;  %v6799_v41 = vsel %vm6789_vm10, %v6734_v25, %v12261_v27  ;;  %vm2535_vm4 = vcmp.ge.f32.partialorder %v2265_v63, 0.0 }
 0x25d   : > { %3448 = vst.msk [vmem:[#allocation2 + $0x2a1] sm:$0xff] %vm3057_vm1, %v2851_v57  ;;  %v6864_v55 = vsel %vm6854_vm14, %v6799_v41, %v12266_v2  ;;  %vm7627_vm5 = vcmp.ge.f32.partialorder %v7474_v21, 0.0  ;;  %v7691_v27 = vmul.f32 0.01, %v7474_v21  ;;  %v3806_v41 = vld [vmem:[#allocation2 + $0x271] ss:$2 sm:$0xff] }
 0x25f   : > { %v1776_v23 = vpop.f32.mrf.mxu0 }
 0x260   : > { %v1777_v36 = vadd.f32 %v14865_v7, %v1776_v23  ;;  %v2262_v23 = vadd.f32 %v14865_v7, %v2261_v20  ;;  %v12279_v30 = vpop.permute.xlu1 %12278  ;;  %v12274_v31 = vpop.permute.xlu0 %12273 }
 0x261   : > { %v12281_v42 = vunpack.i.h.bf16 %v12279_v30  ;;  %v12280_v43 = vunpack.i.l.bf16 %v12279_v30  ;;  %v12276_v32 = vunpack.i.h.bf16 %v12274_v31  ;;  %v12275_v52 = vunpack.i.l.bf16 %v12274_v31  ;;  %v2266_v31 = vpop.f32.mrf.mxu3 }
 0x262   : > { %v2596_v6 = vmul.f32 0.01, %v1777_v36  ;;  %vm2340_vm11 = vcmp.ge.f32.partialorder %v1777_v36, 0.0  ;;  %v2790_v39 = vmul.f32 0.01, %v2262_v23  ;;  %vm2534_vm8 = vcmp.ge.f32.partialorder %v2262_v23, 0.0 }
 0x263   : > { %v6929_v12 = vsel %vm6919_vm15, %v6864_v55, %v12276_v32 }
 0x264   : > { %v2852_v56 = vsel %vm2340_vm11, %v1777_v36, %v2596_v6  ;;  %v6798_v36 = vsel %vm6789_vm10, %v6733_v24, %v12260_v29  ;;  %v3046_v6 = vsel %vm2534_vm8, %v2262_v23, %v2790_v39  ;;  %v6994_v59 = vsel %vm6984_vm3, %v6929_v12, %v12281_v42 }
 0x265   : > { %3449 = vst.msk [vmem:[#allocation2 + $0x2a9] sm:$0xff] %vm3057_vm1, %v2852_v56  ;;  %v6863_v47 = vsel %vm6854_vm14, %v6798_v36, %v12265_v37  ;;  %v2791_v24 = vmul.f32 0.01, %v2265_v63  ;;  %v3934_v56 = vld [vmem:[#allocation2 + $0x272] ss:$2 sm:$0xff]  ;;  %v7755_v39 = vsel %vm7627_vm5, %v7474_v21, %v7691_v27  ;;  %v7306_v36 = vpop.f32.mrf.mxu1 }
 0x266   : > { %v6928_v57 = vsel %vm6919_vm15, %v6863_v47, %v12275_v52  ;;  %3643 = vst.msk [vmem:[#allocation2 + $0xce1] sm:$0xff] %vm3057_vm1, %v3046_v6  ;;  %v7307_v42 = vadd.f32 %v14696_v46, %v7306_v36  ;;  %v2267_v52 = vadd.f32 %v14865_v7, %v2266_v31  ;;  %v4189_v47 = vld [vmem:[#allocation2 + $0x289] ss:$2 sm:$0xff] }
 0x267   : > { %v1779_v50 = vpop.f32.mrf.mxu0  ;;  %v6993_v13 = vsel %vm6984_vm3, %v6928_v57, %v12280_v43  ;;  %v3047_v29 = vsel %vm2535_vm4, %v2265_v63, %v2791_v24  ;;  %8015 = vst.msk [vmem:[#allocation3 + $0x51] sm:$0xff] %vm1255_vm0, %v7755_v39  ;;  %v7475_v43 = vpop.f32.mrf.mxu2 }
 0x268   : > { %v1780_v17 = vadd.f32 %v14865_v7, %v1779_v50  ;;  %v3904_v50 = vld [vmem:[#allocation2 + $0xcc1] ss:$2 sm:$0xff]  ;;  %v7057_v20 = vpack.c.bf16 %v6994_v59, %v6993_v13  ;;  %3644 = vst.msk [vmem:[#allocation2 + $0xcf1] sm:$0xff] %vm3057_vm1, %v3047_v29  ;;  %v7476_v54 = vadd.f32 %v7475_v43, %v7307_v42  ;;  %vm2536_vm7 = vcmp.ge.f32.partialorder %v2267_v52, 0.0  ;;  %v4317_v13 = vld [vmem:[#allocation2 + $0x28a] ss:$2 sm:$0xff] }
 0x269   : > { %v2269_v63 = vpop.f32.mrf.mxu3 }
 0x26a   : > { %vm2341_vm12 = vcmp.ge.f32.partialorder %v1780_v17, 0.0  ;;  %v2597_v40 = vmul.f32 0.01, %v1780_v17  ;;  %7313 = vmatmul.bf16.gmra.mxu1 %v7057_v20  ;;  %vm7628_vm11 = vcmp.ge.f32.partialorder %v7476_v54, 0.0  ;;  %v7692_v55 = vmul.f32 0.01, %v7476_v54 }
 0x26c   : > { %v2853_v0 = vsel %vm2341_vm12, %v1780_v17, %v2597_v40  ;;  %v12322_v17 = vpack.i.bf16 %v3904_v50, %v3902_v9  ;;  %v3936_v26 = vld [vmem:[#allocation2 + $0x2a2] ss:$2 sm:$0xff]  ;;  %v3808_v30 = vld [vmem:[#allocation2 + $0x2a1] ss:$2 sm:$0xff]  ;;  %v7756_v10 = vsel %vm7628_vm11, %v7476_v54, %v7692_v55  ;;  %v2270_v50 = vadd.f32 %v14865_v7, %v2269_v63 }
 0x26d   : > { %3450 = vst.msk [vmem:[#allocation2 + $0x2b9] sm:$0xff] %vm3057_vm1, %v2853_v0  ;;  %v12332_v2 = vpack.i.bf16 %v3936_v26, %v3934_v56  ;;  %v11858_v40 = vld [vmem:[%s13466_s20 + $0x118] sm:$0xff]  ;;  %v12327_v44 = vpack.i.bf16 %v3808_v30, %v3806_v41  ;;  %v2792_v0 = vmul.f32 0.01, %v2267_v52  ;;  %v4573_v36 = vld [vmem:[#allocation2 + $0x2a1] ss:$2 sm:$0xff] }
 0x26e   : > { %12323 = vrot.lane.b32.xlu0 %v12322_v17, %s13386_s23  ;;  %11579 = vmatmul.msk.bf16.gmra.mxu0 %vm1255_vm0, %v11858_v40  ;;  %v4061_v9 = vld [vmem:[#allocation2 + $0x288] ss:$2 sm:$0xff]  ;;  %8016 = vst.msk [vmem:[#allocation3 + $0x61] sm:$0xff] %vm1255_vm0, %v7756_v10  ;;  %vm2537_vm12 = vcmp.ge.f32.partialorder %v2270_v50, 0.0  ;;  %v2793_v17 = vmul.f32 0.01, %v2270_v50 }
 0x26f   : > { %v1781_v11 = vpop.f32.mrf.mxu0  ;;  %12333 = vrot.lane.b32.xlu2 %v12332_v2, %s13387_s24  ;;  %v3048_v46 = vsel %vm2536_vm7, %v2267_v52, %v2792_v0  ;;  %v4701_v39 = vld [vmem:[#allocation2 + $0x2a2] ss:$2 sm:$0xff] }
 0x270   : > { %v1782_v38 = vadd.f32 %v14865_v7, %v1781_v11  ;;  %3645 = vst.msk [vmem:[#allocation2 + $0xcf9] sm:$0xff] %vm3057_vm1, %v3048_v46  ;;  %v3049_v24 = vsel %vm2537_vm12, %v2270_v50, %v2793_v17  ;;  %v4445_v41 = vld [vmem:[#allocation2 + $0x2a0] ss:$2 sm:$0xff] }
 0x271   : > { %3646 = vst.msk [vmem:[#allocation2 + $0xd09] sm:$0xff] %vm3057_vm1, %v3049_v24  ;;  %v2271_v26 = vpop.f32.mrf.mxu3  ;;  %v11860_v10 = vld [vmem:[%s13466_s20 + $0x128] sm:$0xff] }
 0x272   : > { %vm2342_vm13 = vcmp.ge.f32.partialorder %v1782_v38, 0.0  ;;  %v2598_v23 = vmul.f32 0.01, %v1782_v38  ;;  %v2272_v29 = vadd.f32 %v14865_v7, %v2271_v26 }
 0x274   : > { %v2854_v25 = vsel %vm2342_vm13, %v1782_v38, %v2598_v23  ;;  %vm2538_vm13 = vcmp.ge.f32.partialorder %v2272_v29, 0.0  ;;  %v2794_v40 = vmul.f32 0.01, %v2272_v29 }
 0x275   : > { %3451 = vst.msk [vmem:[#allocation2 + $0x2c1] sm:$0xff] %vm3057_vm1, %v2854_v25  ;;  %v11859_v25 = vld [vmem:[%s13466_s20 + $0x120] sm:$0xff]  ;;  %v8081_v30 = vld [vmem:[#allocation3 + $0x60] ss:$2 sm:$0xf] }
 0x276   : > { %12328 = vrot.lane.b32.xlu0 %v12327_v44, %s13386_s23  ;;  %8687 = vst [vmem:[#allocation1 + $0x11] ss:$2 sm:$0xff] %v8081_v30  ;;  %v3050_v31 = vsel %vm2538_vm13, %v2272_v29, %v2794_v40 }
 0x277   : > { %v1784_v37 = vpop.f32.mrf.mxu0  ;;  %3647 = vst.msk [vmem:[#allocation2 + $0xd11] sm:$0xff] %vm3057_vm1, %v3050_v31  ;;  %v3906_v17 = vld [vmem:[#allocation2 + $0xcf1] ss:$2 sm:$0xff] }
 0x278   : > { %v1785_v32 = vadd.f32 %v14865_v7, %v1784_v37 }
 0x279   : > { %v2274_v0 = vpop.f32.mrf.mxu3 }
 0x27a   : > { %vm2343_vm6 = vcmp.ge.f32.partialorder %v1785_v32, 0.0  ;;  %v2599_v28 = vmul.f32 0.01, %v1785_v32  ;;  %v2275_v55 = vadd.f32 %v14865_v7, %v2274_v0 }
 0x27c   : > { %v2855_v1 = vsel %vm2343_vm6, %v1785_v32, %v2599_v28  ;;  %v4191_v6 = vld [vmem:[#allocation2 + $0x2b9] ss:$2 sm:$0xff]  ;;  %v4063_v11 = vld [vmem:[#allocation2 + $0x2b8] ss:$2 sm:$0xff]  ;;  %vm2539_vm5 = vcmp.ge.f32.partialorder %v2275_v55, 0.0 }
 0x27d   : > { %3452 = vst.msk [vmem:[#allocation2 + $0x2d1] sm:$0xff] %vm3057_vm1, %v2855_v1  ;;  %v4319_v14 = vld [vmem:[#allocation2 + $0x2ba] ss:$2 sm:$0xff]  ;;  %v12342_v57 = vpack.i.bf16 %v4191_v6, %v4189_v47  ;;  %v12337_v12 = vpack.i.bf16 %v4063_v11, %v4061_v9  ;;  %v2795_v46 = vmul.f32 0.01, %v2275_v55 }
 0x27e   : > { %v12347_v20 = vpack.i.bf16 %v4319_v14, %v4317_v13  ;;  %11580 = vmatmul.msk.bf16.gmra.mxu0 %vm1255_vm0, %v11859_v25 }
 0x27f   : > { %v1786_v38 = vpop.f32.mrf.mxu0  ;;  %12343 = vrot.lane.b32.xlu2 %v12342_v57, %s13390_s29  ;;  %12338 = vrot.lane.b32.xlu1 %v12337_v12, %s13389_s26  ;;  %v3051_v9 = vsel %vm2539_vm5, %v2275_v55, %v2795_v46 }
 0x280   : > { %v1787_v59 = vadd.f32 %v14865_v7, %v1786_v38  ;;  %12348 = vrot.lane.b32.xlu0 %v12347_v20, %s13388_s25  ;;  %3648 = vst.msk [vmem:[#allocation2 + $0xd21] sm:$0xff] %vm3057_vm1, %v3051_v9 }
 0x281   : > { %v2276_v14 = vpop.f32.mrf.mxu3 }
 0x282   : > { %vm2344_vm2 = vcmp.ge.f32.partialorder %v1787_v59, 0.0  ;;  %v2600_v21 = vmul.f32 0.01, %v1787_v59  ;;  %v2277_v12 = vadd.f32 %v14865_v7, %v2276_v14 }
 0x284   : > { %v2856_v23 = vsel %vm2344_vm2, %v1787_v59, %v2600_v21  ;;  %vm2540_vm7 = vcmp.ge.f32.partialorder %v2277_v12, 0.0  ;;  %v2796_v63 = vmul.f32 0.01, %v2277_v12 }
 0x285   : > { %3453 = vst.msk [vmem:[#allocation2 + $0x2d9] sm:$0xff] %vm3057_vm1, %v2856_v23 }
 0x286   : > { %v3052_v59 = vsel %vm2540_vm7, %v2277_v12, %v2796_v63 }
 0x287   : > { %v1789_v56 = vpop.f32.mrf.mxu0  ;;  %3649 = vst.msk [vmem:[#allocation2 + $0xd29] sm:$0xff] %vm3057_vm1, %v3052_v59 }
 0x288   : > { %v1790_v27 = vadd.f32 %v14865_v7, %v1789_v56  ;;  %v11861_v56 = vld [vmem:[%s13466_s20 + $0x130] sm:$0xff] }
 0x28a   : > { %vm2345_vm8 = vcmp.ge.f32.partialorder %v1790_v27, 0.0  ;;  %v2601_v2 = vmul.f32 0.01, %v1790_v27 }
 0x28c   : > { %v2857_v37 = vsel %vm2345_vm8, %v1790_v27, %v2601_v2  ;;  %v4703_v42 = vld [vmem:[#allocation2 + $0x2d2] ss:$2 sm:$0xff]  ;;  %v4575_v43 = vld [vmem:[#allocation2 + $0x2d1] ss:$2 sm:$0xff] }
 0x28d   : > { %v4447_v44 = vld [vmem:[#allocation2 + $0x2d0] ss:$2 sm:$0xff]  ;;  %3454 = vst.msk [vmem:[#allocation2 + $0x2e9] sm:$0xff] %vm3057_vm1, %v2857_v37  ;;  %v7062_v32 = vpack.c.bf16 %v4703_v42, %v4701_v39  ;;  %v12357_v52 = vpack.i.bf16 %v4575_v43, %v4573_v36  ;;  %v3810_v39 = vld [vmem:[#allocation2 + $0x2d1] ss:$2 sm:$0xff]  ;;  %v15031_v42 = vpop.permute.xlu2 %12268 }
 0x28e   : > { %v12352_v54 = vpack.i.bf16 %v4447_v44, %v4445_v41  ;;  %11581 = vmatmul.msk.bf16.gmra.mxu0 %vm1255_vm0, %v11860_v10  ;;  %v3908_v24 = vld [vmem:[#allocation2 + $0xd21] ss:$2 sm:$0xff]  ;;  %v3938_v30 = vld [vmem:[#allocation2 + $0x2d2] ss:$2 sm:$0xff] }
 0x28f   : > { %v1791_v28 = vpop.f32.mrf.mxu0  ;;  %11714 = vmatmul.msk.bf16.gmra.mxu2 %vm3057_vm1, %v7062_v32  ;;  %12358 = vrot.lane.b32.xlu2 %v12357_v52, %s13391_s30  ;;  %v12362_v25 = vpack.i.bf16 %v3908_v24, %v3906_v17  ;;  %v11862_v52 = vld [vmem:[%s13466_s20 + $0x138] sm:$0xff]  ;;  %v12294_v17 = vpop.permute.xlu1 %12293 }
 0x290   : > { %v1792_v47 = vadd.f32 %v14865_v7, %v1791_v28  ;;  %12353 = vrot.lane.b32.xlu1 %v12352_v54, %s13392_s10 }
 0x292   : > { %vm2346_vm4 = vcmp.ge.f32.partialorder %v1792_v47, 0.0  ;;  %v2602_v1 = vmul.f32 0.01, %v1792_v47 }
 0x294   : > { %v2858_v6 = vsel %vm2346_vm4, %v1792_v47, %v2602_v1 }
 0x295   : > { %3455 = vst.msk [vmem:[#allocation2 + $0x2f1] sm:$0xff] %vm3057_vm1, %v2858_v6  ;;  %v15038_v0 = vpop.permute.xlu2 %12283 }
 0x297   : > { %v1794_v11 = vpop.f32.mrf.mxu0 }
 0x298   : > { %v1795_v57 = vadd.f32 %v14865_v7, %v1794_v11  ;;  %12363 = vrot.lane.b32.xlu1 %v12362_v25, %s13386_s23 }
 0x29a   : > { %vm2347_vm6 = vcmp.ge.f32.partialorder %v1795_v57, 0.0  ;;  %v2603_v38 = vmul.f32 0.01, %v1795_v57 }
 0x29c   : > { %v2859_v13 = vsel %vm2347_vm6, %v1795_v57, %v2603_v38  ;;  %v4065_v55 = vld [vmem:[#allocation2 + $0x2e8] ss:$2 sm:$0xff]  ;;  %v4193_v46 = vld [vmem:[#allocation2 + $0x2e9] ss:$2 sm:$0xff] }
 0x29d   : > { %3456 = vst.msk [vmem:[#allocation2 + $0x301] sm:$0xff] %vm3057_vm1, %v2859_v13  ;;  %v4321_v1 = vld [vmem:[#allocation2 + $0x2ea] ss:$2 sm:$0xff]  ;;  %v12289_v59 = vpop.permute.xlu2 %12288 }
 0x29e   : > { %11582 = vmatmul.msk.bf16.gmra.mxu0 %vm1255_vm0, %v11861_v56  ;;  %v12291_v24 = vunpack.i.h.bf16 %v12289_v59  ;;  %v12290_v25 = vunpack.i.l.bf16 %v12289_v59 }
 0x29f   : > { %v1796_v50 = vpop.f32.mrf.mxu0 }
 0x2a0   : > { %v1797_v20 = vadd.f32 %v14865_v7, %v1796_v50 }
 0x2a2   : > { %vm2348_vm11 = vcmp.ge.f32.partialorder %v1797_v20, 0.0  ;;  %v2604_v21 = vmul.f32 0.01, %v1797_v20 }
 0x2a4   : > { %v2860_v23 = vsel %vm2348_vm11, %v1797_v20, %v2604_v21  ;;  %v11863_v20 = vld [vmem:[%s13466_s20 + $0x140] sm:$0xff] }
 0x2a5   : > { %3457 = vst.msk [vmem:[#allocation2 + $0x309] sm:$0xff] %vm3057_vm1, %v2860_v23 }
 0x2a7   : > { %v1799_v26 = vpop.f32.mrf.mxu0 }
 0x2a8   : > { %v1800_v27 = vadd.f32 %v14865_v7, %v1799_v26  ;;  %v12296_v26 = vunpack.i.h.bf16 %v12294_v17 }
 0x2aa   : > { %vm2349_vm2 = vcmp.ge.f32.partialorder %v1800_v27, 0.0  ;;  %v2605_v29 = vmul.f32 0.01, %v1800_v27 }
 0x2ac   : > { %v2861_v2 = vsel %vm2349_vm2, %v1800_v27, %v2605_v29  ;;  %v3940_v40 = vld [vmem:[#allocation2 + $0x302] ss:$2 sm:$0xff]  ;;  %v3812_v36 = vld [vmem:[#allocation2 + $0x301] ss:$2 sm:$0xff]  ;;  %v12295_v27 = vunpack.i.l.bf16 %v12294_v17 }
 0x2ad   : > { %3458 = vst.msk [vmem:[#allocation2 + $0x319] sm:$0xff] %vm3057_vm1, %v2861_v2  ;;  %v12372_v41 = vpack.i.bf16 %v3940_v40, %v3938_v30  ;;  %v12367_v37 = vpack.i.bf16 %v3812_v36, %v3810_v39  ;;  %v4705_v29 = vld [vmem:[#allocation2 + $0x302] ss:$2 sm:$0xff]  ;;  %v4577_v2 = vld [vmem:[#allocation2 + $0x301] ss:$2 sm:$0xff]  ;;  %v12299_v40 = vpop.permute.xlu2 %12298 }
 0x2ae   : > { %11583 = vmatmul.msk.bf16.gmra.mxu0 %vm1255_vm0, %v11862_v52  ;;  %v4449_v30 = vld [vmem:[#allocation2 + $0x300] ss:$2 sm:$0xff] }
 0x2af   : > { %v1801_v31 = vpop.f32.mrf.mxu0  ;;  %12373 = vrot.lane.b32.xlu0 %v12372_v41, %s13387_s24  ;;  %12368 = vrot.lane.b32.xlu1 %v12367_v37, %s13386_s23 }
 0x2b0   : > { %v1802_v43 = vadd.f32 %v14865_v7, %v1801_v31  ;;  %v3674_v31 = vld [vmem:[#allocation2 + $0x210] ss:$2 sm:$0xff] }
 0x2b2   : > { %vm2350_vm12 = vcmp.ge.f32.partialorder %v1802_v43, 0.0  ;;  %v2606_v44 = vmul.f32 0.01, %v1802_v43 }
 0x2b4   : > { %v2862_v32 = vsel %vm2350_vm12, %v1802_v43, %v2606_v44  ;;  %v3676_v43 = vld [vmem:[#allocation2 + $0x240] ss:$2 sm:$0xff] }
 0x2b5   : > { %3459 = vst.msk [vmem:[#allocation2 + $0x321] sm:$0xff] %vm3057_vm1, %v2862_v32  ;;  %v12314_v17 = vpop.permute.xlu2 %12313 }
 0x2b7   : > { %v1804_v54 = vpop.f32.mrf.mxu0 }
 0x2b8   : > { %v1805_v28 = vadd.f32 %v14865_v7, %v1804_v54  ;;  %v6607_v54 = vsel %vm3057_vm1, %v3676_v43, %v12291_v24  ;;  %v15066_v24 = vld [vmem:[%s16984_s4] ss:$0 sm:$0xff] }
 0x2ba   : > { %vm2351_vm8 = vcmp.ge.f32.partialorder %v1805_v28, 0.0  ;;  %v2607_v47 = vmul.f32 0.01, %v1805_v28 }
 0x2bc   : > { %v2863_v6 = vsel %vm2351_vm8, %v1805_v28, %v2607_v47  ;;  %v4067_v9 = vld [vmem:[#allocation2 + $0x318] ss:$2 sm:$0xff]  ;;  %v4195_v14 = vld [vmem:[#allocation2 + $0x319] ss:$2 sm:$0xff]  ;;  %v6606_v28 = vsel %vm3057_vm1, %v3674_v31, %v12290_v25  ;;  %v12301_v47 = vunpack.i.h.bf16 %v12299_v40 }
 0x2bd   : > { %v4323_v11 = vld [vmem:[#allocation2 + $0x31a] ss:$2 sm:$0xff]  ;;  %3460 = vst.msk [vmem:[#allocation2 + $0x331] sm:$0xff] %vm3057_vm1, %v2863_v6  ;;  %v12377_v57 = vpack.i.bf16 %v4067_v9, %v4065_v55  ;;  %v12382_v10 = vpack.i.bf16 %v4195_v14, %v4193_v46  ;;  %v6671_v55 = vsel %vm1255_vm0, %v6607_v54, %v12296_v26  ;;  %v12304_v46 = vpop.permute.xlu0 %12303  ;;  %v12300_v9 = vunpack.i.l.bf16 %v12299_v40 }
 0x2be   : > { %v12387_v12 = vpack.i.bf16 %v4323_v11, %v4321_v1  ;;  %11584 = vmatmul.msk.bf16.gmra.mxu0 %vm1255_vm0, %v11863_v20  ;;  %v6670_v1 = vsel %vm1255_vm0, %v6606_v28, %v12295_v27  ;;  %v12306_v11 = vunpack.i.h.bf16 %v12304_v46  ;;  %v12305_v14 = vunpack.i.l.bf16 %v12304_v46  ;;  %v7309_v20 = vpop.f32.mrf.mxu1 }
 0x2bf   : > { %v1806_v38 = vpop.f32.mrf.mxu0  ;;  %12378 = vrot.lane.b32.xlu0 %v12377_v57, %s13389_s26  ;;  %12383 = vrot.lane.b32.xlu1 %v12382_v10, %s13390_s29  ;;  %v12309_v57 = vpop.permute.xlu1 %12308  ;;  %v6735_v10 = vsel %vm6724_vm9, %v6670_v1, %v12300_v9  ;;  %v7310_v25 = vadd.f32 %v15066_v24, %v7309_v20 }
 0x2c0   : > { %12388 = vrot.lane.b32.xlu2 %v12387_v12, %s13388_s25  ;;  %v1807_v63 = vadd.f32 %v14865_v7, %v1806_v38  ;;  %v6736_v38 = vsel %vm6724_vm9, %v6671_v55, %v12301_v47  ;;  %v6800_v59 = vsel %vm6789_vm10, %v6735_v10, %v12305_v14 }
 0x2c2   : > { %vm2352_vm13 = vcmp.ge.f32.partialorder %v1807_v63, 0.0  ;;  %v2608_v13 = vmul.f32 0.01, %v1807_v63 }
 0x2c4   : > { %v2864_v50 = vsel %vm2352_vm13, %v1807_v63, %v2608_v13  ;;  %v12310_v63 = vunpack.i.l.bf16 %v12309_v57  ;;  %v7478_v13 = vpop.f32.mrf.mxu2 }
 0x2c5   : > { %3461 = vst.msk [vmem:[#allocation2 + $0x339] sm:$0xff] %vm3057_vm1, %v2864_v50  ;;  %v12311_v50 = vunpack.i.h.bf16 %v12309_v57  ;;  %v7479_v27 = vadd.f32 %v7478_v13, %v7310_v25  ;;  %v15085_v57 = vld [vmem:[%s16982_s2] ss:$0 sm:$0xff]  ;;  %v11865_v13 = vld [vmem:[%s13466_s20 + $0x150] sm:$0xff] }
 0x2c6   : > { %v6865_v26 = vsel %vm6854_vm14, %v6800_v59, %v12310_v63  ;;  %v7311_v55 = vpop.f32.mrf.mxu1  ;;  %v3942_v25 = vld [vmem:[#allocation2 + $0x362] ss:$2 sm:$0xff] }
 0x2c7   : > { %v1809_v21 = vpop.f32.mrf.mxu0  ;;  %vm7629_vm6 = vcmp.ge.f32.partialorder %v7479_v27, 0.0 }
 0x2c8   : > { %v1810_v23 = vadd.f32 %v14865_v7, %v1809_v21 }
 0x2ca   : > { %vm2353_vm4 = vcmp.ge.f32.partialorder %v1810_v23, 0.0  ;;  %v2609_v56 = vmul.f32 0.01, %v1810_v23 }
 0x2cc   : > { %v2865_v39 = vsel %vm2353_vm4, %v1810_v23, %v2609_v56  ;;  %v4707_v36 = vld [vmem:[#allocation2 + $0x332] ss:$2 sm:$0xff]  ;;  %v4579_v37 = vld [vmem:[#allocation2 + $0x331] ss:$2 sm:$0xff]  ;;  %v6801_v23 = vsel %vm6789_vm10, %v6736_v38, %v12306_v11 }
 0x2cd   : > { %v4451_v41 = vld [vmem:[#allocation2 + $0x330] ss:$2 sm:$0xff]  ;;  %3462 = vst.msk [vmem:[#allocation2 + $0x379] sm:$0xff] %vm3057_vm1, %v2865_v39  ;;  %v7064_v44 = vpack.c.bf16 %v4707_v36, %v4705_v29  ;;  %v12397_v52 = vpack.i.bf16 %v4579_v37, %v4577_v2  ;;  %v11864_v29 = vld [vmem:[%s13466_s20 + $0x148] sm:$0xff]  ;;  %v6866_v2 = vsel %vm6854_vm14, %v6801_v23, %v12311_v50  ;;  %v12316_v39 = vunpack.i.h.bf16 %v12314_v17  ;;  %v12319_v36 = vpop.permute.xlu0 %12318 }
 0x2ce   : > { %v12392_v32 = vpack.i.bf16 %v4451_v41, %v4449_v30  ;;  %v12315_v30 = vunpack.i.l.bf16 %v12314_v17  ;;  %v7693_v41 = vmul.f32 0.01, %v7479_v27  ;;  %v12321_v31 = vunpack.i.h.bf16 %v12319_v36  ;;  %11585 = vmatmul.msk.bf16.gmra.mxu0 %vm1255_vm0, %v11864_v29  ;;  %v3814_v23 = vld [vmem:[#allocation2 + $0x361] ss:$2 sm:$0xff] }
 0x2cf   : > { %v1811_v6 = vpop.f32.mrf.mxu0  ;;  %11715 = vmatmul.msk.bf16.gmra.mxu2 %vm3057_vm1, %v7064_v44  ;;  %12398 = vrot.lane.b32.xlu1 %v12397_v52, %s13391_s30  ;;  %v12320_v43 = vunpack.i.l.bf16 %v12319_v36  ;;  %v11949_v29 = vld [vmem:[%s13466_s20 + $0x3f0] sm:$0xff]  ;;  %v12334_v36 = vpop.permute.xlu2 %12333 }
 0x2d0   : > { %12393 = vrot.lane.b32.xlu0 %v12392_v32, %s13392_s10  ;;  %v1812_v12 = vadd.f32 %v14865_v7, %v1811_v6  ;;  %v6930_v44 = vsel %vm6919_vm15, %v6865_v26, %v12315_v30  ;;  %v6931_v32 = vsel %vm6919_vm15, %v6866_v2, %v12316_v39  ;;  %v7757_v52 = vsel %vm7629_vm6, %v7479_v27, %v7693_v41  ;;  %v7480_v6 = vpop.f32.mrf.mxu2 }
 0x2d1   : > { %v6995_v28 = vsel %vm6984_vm3, %v6930_v44, %v12320_v43  ;;  %v6996_v47 = vsel %vm6984_vm3, %v6931_v32, %v12321_v31  ;;  %8017 = vst.msk [vmem:[#allocation3 + $0x71] sm:$0xff] %vm1255_vm0, %v7757_v52  ;;  %11670 = vmatmul.msk.bf16.gmra.mxu3 %vm1255_vm0, %v11949_v29 }
 0x2d2   : > { %vm2354_vm5 = vcmp.ge.f32.partialorder %v1812_v12, 0.0  ;;  %v2610_v21 = vmul.f32 0.01, %v1812_v12  ;;  %v7059_v1 = vpack.c.bf16 %v6996_v47, %v6995_v28 }
 0x2d4   : > { %v2866_v56 = vsel %vm2354_vm5, %v1812_v12, %v2610_v21  ;;  %7318 = vmatmul.bf16.gmra.mxu1 %v7059_v1  ;;  %v8083_v21 = vld [vmem:[#allocation3 + $0xa0] ss:$2 sm:$0xf] }
 0x2d5   : > { %3463 = vst.msk [vmem:[#allocation2 + $0x381] sm:$0xff] %vm3057_vm1, %v2866_v56 }
 0x2d6   : > { %8689 = vst [vmem:[#allocation1 + $0x20] ss:$2 sm:$0xff] %v8083_v21 }
 0x2d7   : > { %v1814_v40 = vpop.f32.mrf.mxu0 }
 0x2d8   : > { %v1815_v37 = vadd.f32 %v14865_v7, %v1814_v40  ;;  %v7312_v7 = vadd.f32 %v15066_v24, %v7311_v55  ;;  %v7483_v30 = vpop.f32.mrf.mxu2  ;;  %v11866_v55 = vld [vmem:[%s13466_s20 + $0x158] sm:$0xff] }
 0x2da   : > { %vm2355_vm7 = vcmp.ge.f32.partialorder %v1815_v37, 0.0  ;;  %v2611_v54 = vmul.f32 0.01, %v1815_v37  ;;  %v7481_v9 = vadd.f32 %v7480_v6, %v7312_v7  ;;  %v12336_v6 = vunpack.i.h.bf16 %v12334_v36 }
 0x2dc   : > { %v2867_v46 = vsel %vm2355_vm7, %v1815_v37, %v2611_v54  ;;  %vm7630_vm11 = vcmp.ge.f32.partialorder %v7481_v9, 0.0  ;;  %v7694_v14 = vmul.f32 0.01, %v7481_v9 }
 0x2dd   : > { %3464 = vst.msk [vmem:[#allocation2 + $0x391] sm:$0xff] %vm3057_vm1, %v2867_v46 }
 0x2de   : > { %v7758_v10 = vsel %vm7630_vm11, %v7481_v9, %v7694_v14  ;;  %11586 = vmatmul.msk.bf16.gmra.mxu0 %vm1255_vm0, %v11865_v13  ;;  %v12344_v9 = vpop.permute.xlu2 %12343  ;;  %v3680_v14 = vld [vmem:[#allocation2 + $0x2a0] ss:$2 sm:$0xff] }
 0x2df   : > { %v1816_v11 = vpop.f32.mrf.mxu0  ;;  %8018 = vst.msk [vmem:[#allocation3 + $0x81] sm:$0xff] %vm1255_vm0, %v7758_v10 }
 0x2e0   : > { %v1817_v12 = vadd.f32 %v15085_v57, %v1816_v11  ;;  %v15091_v50 = vpop.permute.xlu0 %12323  ;;  %v3678_v11 = vld [vmem:[#allocation2 + $0x270] ss:$2 sm:$0xff] }
 0x2e2   : > { %vm2356_vm2 = vcmp.ge.f32.partialorder %v1817_v12, 0.0  ;;  %v2612_v38 = vmul.f32 0.01, %v1817_v12 }
 0x2e4   : > { %v2868_v63 = vsel %vm2356_vm2, %v1817_v12, %v2612_v38  ;;  %v12335_v38 = vunpack.i.l.bf16 %v12334_v36 }
 0x2e5   : > { %3465 = vst.msk [vmem:[#allocation2 + $0x399] sm:$0xff] %vm3057_vm1, %v2868_v63 }
 0x2e7   : > { %v1819_v59 = vpop.f32.mrf.mxu0  ;;  %v7314_v37 = vpop.f32.mrf.mxu1 }
 0x2e8   : > { %v1820_v20 = vadd.f32 %v15085_v57, %v1819_v59  ;;  %v7315_v31 = vadd.f32 %v15066_v24, %v7314_v37  ;;  %v12329_v43 = vpop.permute.xlu0 %12328 }
 0x2e9   : > { %v12331_v54 = vunpack.i.h.bf16 %v12329_v43  ;;  %v12330_v28 = vunpack.i.l.bf16 %v12329_v43 }
 0x2ea   : > { %vm2357_vm12 = vcmp.ge.f32.partialorder %v1820_v20, 0.0  ;;  %v2613_v17 = vmul.f32 0.01, %v1820_v20  ;;  %v7484_v32 = vadd.f32 %v7483_v30, %v7315_v31 }
 0x2eb   : > { %v6609_v63 = vsel %vm3057_vm1, %v3680_v14, %v12331_v54  ;;  %v6608_v13 = vsel %vm3057_vm1, %v3678_v11, %v12330_v28  ;;  %v12346_v54 = vunpack.i.h.bf16 %v12344_v9  ;;  %v12345_v28 = vunpack.i.l.bf16 %v12344_v9 }
 0x2ec   : > { %v2869_v56 = vsel %vm2357_vm12, %v1820_v20, %v2613_v17  ;;  %v3816_v26 = vld [vmem:[#allocation2 + $0x391] ss:$2 sm:$0xff]  ;;  %v3944_v27 = vld [vmem:[#allocation2 + $0x392] ss:$2 sm:$0xff]  ;;  %vm7631_vm13 = vcmp.ge.f32.partialorder %v7484_v32, 0.0  ;;  %v7485_v20 = vpop.f32.mrf.mxu2  ;;  %v6672_v29 = vsel %vm1255_vm0, %v6608_v13, %v12335_v38  ;;  %v6673_v30 = vsel %vm1255_vm0, %v6609_v63, %v12336_v6 }
 0x2ed   : > { %3466 = vst.msk [vmem:[#allocation2 + $0x3a9] sm:$0xff] %vm3057_vm1, %v2869_v56  ;;  %v12402_v40 = vpack.i.bf16 %v3816_v26, %v3814_v23  ;;  %v12407_v39 = vpack.i.bf16 %v3944_v27, %v3942_v25  ;;  %v7695_v47 = vmul.f32 0.01, %v7484_v32  ;;  %v4197_v25 = vld [vmem:[#allocation2 + $0x379] ss:$2 sm:$0xff] }
 0x2ee   : > { %11587 = vmatmul.msk.bf16.gmra.mxu0 %vm1255_vm0, %v11866_v55  ;;  %v4069_v56 = vld [vmem:[#allocation2 + $0x378] ss:$2 sm:$0xff] }
 0x2ef   : > { %v1821_v2 = vpop.f32.mrf.mxu0  ;;  %12403 = vrot.lane.b32.xlu2 %v12402_v40, %s13386_s23  ;;  %12408 = vrot.lane.b32.xlu1 %v12407_v39, %s13387_s24  ;;  %v7759_v46 = vsel %vm7631_vm13, %v7484_v32, %v7695_v47  ;;  %v7316_v10 = vpop.f32.mrf.mxu1  ;;  %v4325_v26 = vld [vmem:[#allocation2 + $0x37a] ss:$2 sm:$0xff] }
 0x2f0   : > { %v1822_v41 = vadd.f32 %v15085_v57, %v1821_v2  ;;  %8019 = vst.msk [vmem:[#allocation3 + $0xb1] sm:$0xff] %vm1255_vm0, %v7759_v46  ;;  %v7317_v59 = vadd.f32 %v15066_v24, %v7316_v10 }
 0x2f1   : > { %v12339_v1 = vpop.permute.xlu1 %12338 }
 0x2f2   : > { %vm2358_vm8 = vcmp.ge.f32.partialorder %v1822_v41, 0.0  ;;  %v2614_v44 = vmul.f32 0.01, %v1822_v41  ;;  %v12341_v21 = vunpack.i.h.bf16 %v12339_v1  ;;  %v12340_v17 = vunpack.i.l.bf16 %v12339_v1  ;;  %v12349_v47 = vpop.permute.xlu0 %12348  ;;  %v12359_v1 = vpop.permute.xlu2 %12358 }
 0x2f3   : > { %v7486_v27 = vadd.f32 %v7485_v20, %v7317_v59  ;;  %v12351_v9 = vunpack.i.h.bf16 %v12349_v47  ;;  %v12350_v14 = vunpack.i.l.bf16 %v12349_v47  ;;  %v12361_v38 = vunpack.i.h.bf16 %v12359_v1 }
 0x2f4   : > { %v2870_v52 = vsel %vm2358_vm8, %v1822_v41, %v2614_v44  ;;  %v6738_v43 = vsel %vm6724_vm9, %v6673_v30, %v12341_v21  ;;  %v6737_v44 = vsel %vm6724_vm9, %v6672_v29, %v12340_v17  ;;  %v12360_v59 = vunpack.i.l.bf16 %v12359_v1 }
 0x2f5   : > { %3467 = vst.msk [vmem:[#allocation2 + $0x3b1] sm:$0xff] %vm3057_vm1, %v2870_v52  ;;  %vm7632_vm5 = vcmp.ge.f32.partialorder %v7486_v27, 0.0  ;;  %v7696_v32 = vmul.f32 0.01, %v7486_v27  ;;  %v11950_v52 = vld [vmem:[%s13466_s20 + $0x3f8] sm:$0xff]  ;;  %v6803_v6 = vsel %vm6789_vm10, %v6738_v43, %v12346_v54  ;;  %v6802_v11 = vsel %vm6789_vm10, %v6737_v44, %v12345_v28 }
 0x2f6   : > { %11671 = vmatmul.msk.bf16.gmra.mxu3 %vm1255_vm0, %v11950_v52  ;;  %v6867_v21 = vsel %vm6854_vm14, %v6802_v11, %v12350_v14  ;;  %v6868_v17 = vsel %vm6854_vm14, %v6803_v6, %v12351_v9  ;;  %v11868_v11 = vld [vmem:[%s13466_s20 + $0x168] sm:$0xff] }
 0x2f7   : > { %v1824_v7 = vpop.f32.mrf.mxu0  ;;  %v7760_v46 = vsel %vm7632_vm5, %v7486_v27, %v7696_v32  ;;  %v11867_v27 = vld [vmem:[%s13466_s20 + $0x160] sm:$0xff] }
 0x2f8   : > { %v1825_v12 = vadd.f32 %v15085_v57, %v1824_v7  ;;  %8020 = vst.msk [vmem:[#allocation3 + $0xc1] sm:$0xff] %vm1255_vm0, %v7760_v46 }
 0x2fa   : > { %vm2359_vm4 = vcmp.ge.f32.partialorder %v1825_v12, 0.0  ;;  %v2615_v23 = vmul.f32 0.01, %v1825_v12 }
 0x2fc   : > { %v2871_v2 = vsel %vm2359_vm4, %v1825_v12, %v2615_v23  ;;  %v4199_v40 = vld [vmem:[#allocation2 + $0x3a9] ss:$2 sm:$0xff]  ;;  %v4071_v39 = vld [vmem:[#allocation2 + $0x3a8] ss:$2 sm:$0xff] }
 0x2fd   : > { %v4327_v36 = vld [vmem:[#allocation2 + $0x3aa] ss:$2 sm:$0xff]  ;;  %3468 = vst.msk [vmem:[#allocation2 + $0x3c1] sm:$0xff] %vm3057_vm1, %v2871_v2  ;;  %v12417_v41 = vpack.i.bf16 %v4199_v40, %v4197_v25  ;;  %v12412_v37 = vpack.i.bf16 %v4071_v39, %v4069_v56 }
 0x2fe   : > { %v12422_v31 = vpack.i.bf16 %v4327_v36, %v4325_v26  ;;  %11588 = vmatmul.msk.bf16.gmra.mxu0 %vm1255_vm0, %v11867_v27  ;;  %v4709_v36 = vld [vmem:[#allocation2 + $0x392] ss:$2 sm:$0xff] }
 0x2ff   : > { %v1826_v55 = vpop.f32.mrf.mxu0  ;;  %12418 = vrot.lane.b32.xlu0 %v12417_v41, %s13390_s29  ;;  %12413 = vrot.lane.b32.xlu2 %v12412_v37, %s13389_s26  ;;  %v8085_v40 = vld [vmem:[#allocation3 + $0xc0] ss:$2 sm:$0xf]  ;;  %v4581_v41 = vld [vmem:[#allocation2 + $0x391] ss:$2 sm:$0xff] }
 0x300   : > { %v1827_v7 = vadd.f32 %v15085_v57, %v1826_v55  ;;  %12423 = vrot.lane.b32.xlu1 %v12422_v31, %s13388_s25  ;;  %8691 = vst [vmem:[#allocation1 + $0x21] ss:$2 sm:$0xff] %v8085_v40  ;;  %v4453_v37 = vld [vmem:[#allocation2 + $0x390] ss:$2 sm:$0xff] }
 0x301   : > { %v8099_v55 = vld [vmem:[#allocation3 + $0x1e0] ss:$2 sm:$0xf] }
 0x302   : > { %vm2360_vm6 = vcmp.ge.f32.partialorder %v1827_v7, 0.0  ;;  %v2616_v12 = vmul.f32 0.01, %v1827_v7  ;;  %v12354_v10 = vpop.permute.xlu1 %12353 }
 0x303   : > { %v12356_v63 = vunpack.i.h.bf16 %v12354_v10  ;;  %v12355_v13 = vunpack.i.l.bf16 %v12354_v10 }
 0x304   : > { %v2872_v20 = vsel %vm2360_vm6, %v1827_v7, %v2616_v12 }
 0x305   : > { %3469 = vst.msk [vmem:[#allocation2 + $0x3c9] sm:$0xff] %vm3057_vm1, %v2872_v20  ;;  %v6932_v23 = vsel %vm6919_vm15, %v6867_v21, %v12355_v13  ;;  %v6933_v25 = vsel %vm6919_vm15, %v6868_v17, %v12356_v63  ;;  %v11869_v20 = vld [vmem:[%s13466_s20 + $0x170] sm:$0xff] }
 0x306   : > { %v6997_v56 = vsel %vm6984_vm3, %v6932_v23, %v12360_v59  ;;  %v6998_v26 = vsel %vm6984_vm3, %v6933_v25, %v12361_v38 }
 0x307   : > { %v1829_v29 = vpop.f32.mrf.mxu0  ;;  %v7061_v30 = vpack.c.bf16 %v6998_v26, %v6997_v56  ;;  %v15139_v7 = vld.sshfl [vmem:[#allocation1 + $0x20] sm:$0xff pattern:$0x75316420] }
 0x308   : > { %v1830_v2 = vadd.f32 %v15085_v57, %v1829_v29  ;;  %8704 = vst [vmem:[#allocation1 + $0x20] ss:$2 sm:$0xff] %v8099_v55  ;;  %v3682_v55 = vld [vmem:[#allocation2 + $0x2d0] ss:$2 sm:$0xff] }
 0x309   : > { %7323 = vmatmul.bf16.gmra.mxu1 %v7061_v30 }
 0x30a   : > { %vm2361_vm7 = vcmp.ge.f32.partialorder %v1830_v2, 0.0  ;;  %v2617_v39 = vmul.f32 0.01, %v1830_v2  ;;  %v15149_v21 = vpop.permute.xlu1 %12363 }
 0x30c   : > { %v2873_v31 = vsel %vm2361_vm7, %v1830_v2, %v2617_v39  ;;  %v4711_v43 = vld [vmem:[#allocation2 + $0x3c2] ss:$2 sm:$0xff]  ;;  %v4583_v44 = vld [vmem:[#allocation2 + $0x3c1] ss:$2 sm:$0xff] }
 0x30d   : > { %v4455_v32 = vld [vmem:[#allocation2 + $0x3c0] ss:$2 sm:$0xff]  ;;  %3470 = vst.msk [vmem:[#allocation2 + $0x3d9] sm:$0xff] %vm3057_vm1, %v2873_v31  ;;  %v7066_v52 = vpack.c.bf16 %v4711_v43, %v4709_v36  ;;  %v12432_v54 = vpack.i.bf16 %v4583_v44, %v4581_v41  ;;  %v3818_v56 = vld [vmem:[#allocation2 + $0x3c1] ss:$2 sm:$0xff] }
 0x30e   : > { %v12427_v28 = vpack.i.bf16 %v4455_v32, %v4453_v37  ;;  %11589 = vmatmul.msk.bf16.gmra.mxu0 %vm1255_vm0, %v11868_v11  ;;  %v3946_v29 = vld [vmem:[#allocation2 + $0x3c2] ss:$2 sm:$0xff] }
 0x30f   : > { %v1831_v47 = vpop.f32.mrf.mxu0  ;;  %11716 = vmatmul.msk.bf16.gmra.mxu2 %vm3057_vm1, %v7066_v52  ;;  %12433 = vrot.lane.b32.xlu0 %v12432_v54, %s13391_s30  ;;  %v11870_v54 = vld [vmem:[%s13466_s20 + $0x178] sm:$0xff] }
 0x310   : > { %v1832_v1 = vadd.f32 %v15085_v57, %v1831_v47  ;;  %12428 = vrot.lane.b32.xlu2 %v12427_v28, %s13392_s10 }
 0x312   : > { %vm2362_vm11 = vcmp.ge.f32.partialorder %v1832_v1, 0.0  ;;  %v2618_v46 = vmul.f32 0.01, %v1832_v1 }
 0x314   : > { %v2874_v6 = vsel %vm2362_vm11, %v1832_v1, %v2618_v46  ;;  %v3684_v1 = vld [vmem:[#allocation2 + $0x300] ss:$2 sm:$0xff] }
 0x315   : > { %3471 = vst.msk [vmem:[#allocation2 + $0x3e1] sm:$0xff] %vm3057_vm1, %v2874_v6 }
 0x317   : > { %v1834_v9 = vpop.f32.mrf.mxu0 }
 0x318   : > { %v1835_v14 = vadd.f32 %v15085_v57, %v1834_v9 }
 0x31a   : > { %vm2363_vm2 = vcmp.ge.f32.partialorder %v1835_v14, 0.0  ;;  %v2619_v12 = vmul.f32 0.01, %v1835_v14 }
 0x31c   : > { %v2875_v10 = vsel %vm2363_vm2, %v1835_v14, %v2619_v12 }
 0x31d   : > { %3472 = vst.msk [vmem:[#allocation2 + $0x3f1] sm:$0xff] %vm3057_vm1, %v2875_v10 }
 0x31e   : > { %11590 = vmatmul.msk.bf16.gmra.mxu0 %vm1255_vm0, %v11869_v20  ;;  %v4201_v20 = vld [vmem:[#allocation2 + $0x3d9] ss:$2 sm:$0xff] }
 0x31f   : > { %v1836_v38 = vpop.f32.mrf.mxu0 }
 0x320   : > { %v1837_v63 = vadd.f32 %v15085_v57, %v1836_v38 }
 0x321   : > { %v12374_v2 = vpop.permute.xlu0 %12373  ;;  %v12369_v37 = vpop.permute.xlu1 %12368 }
 0x322   : > { %vm2364_vm12 = vcmp.ge.f32.partialorder %v1837_v63, 0.0  ;;  %v2620_v13 = vmul.f32 0.01, %v1837_v63  ;;  %v12371_v43 = vunpack.i.h.bf16 %v12369_v37  ;;  %v12370_v44 = vunpack.i.l.bf16 %v12369_v37 }
 0x323   : > { %v12376_v28 = vunpack.i.h.bf16 %v12374_v2  ;;  %v12375_v47 = vunpack.i.l.bf16 %v12374_v2 }
 0x324   : > { %v2876_v59 = vsel %vm2364_vm12, %v1837_v63, %v2620_v13  ;;  %v6611_v6 = vsel %vm3057_vm1, %v3684_v1, %v12371_v43  ;;  %v6610_v11 = vsel %vm3057_vm1, %v3682_v55, %v12370_v44 }
 0x325   : > { %3473 = vst.msk [vmem:[#allocation2 + $0x3f9] sm:$0xff] %vm3057_vm1, %v2876_v59  ;;  %v6674_v63 = vsel %vm1255_vm0, %v6610_v11, %v12375_v47  ;;  %v6675_v13 = vsel %vm1255_vm0, %v6611_v6, %v12376_v28  ;;  %v4329_v59 = vld [vmem:[#allocation2 + $0x3da] ss:$2 sm:$0xff] }
 0x327   : > { %v1839_v17 = vpop.f32.mrf.mxu0 }
 0x328   : > { %v1840_v23 = vadd.f32 %v15085_v57, %v1839_v17  ;;  %v4073_v17 = vld [vmem:[#allocation2 + $0x3d8] ss:$2 sm:$0xff] }
 0x32a   : > { %vm2365_vm8 = vcmp.ge.f32.partialorder %v1840_v23, 0.0  ;;  %v2621_v25 = vmul.f32 0.01, %v1840_v23 }
 0x32c   : > { %v2877_v26 = vsel %vm2365_vm8, %v1840_v23, %v2621_v25  ;;  %v3820_v27 = vld [vmem:[#allocation2 + $0x3f1] ss:$2 sm:$0xff]  ;;  %v3948_v30 = vld [vmem:[#allocation2 + $0x3f2] ss:$2 sm:$0xff] }
 0x32d   : > { %3474 = vst.msk [vmem:[#allocation2 + $0x409] sm:$0xff] %vm3057_vm1, %v2877_v26  ;;  %v12437_v40 = vpack.i.bf16 %v3820_v27, %v3818_v56  ;;  %v12442_v39 = vpack.i.bf16 %v3948_v30, %v3946_v29 }
 0x32e   : > { %11591 = vmatmul.msk.bf16.gmra.mxu0 %vm1255_vm0, %v11870_v54 }
 0x32f   : > { %v1841_v36 = vpop.f32.mrf.mxu0  ;;  %12438 = vrot.lane.b32.xlu0 %v12437_v40, %s13386_s23  ;;  %12443 = vrot.lane.b32.xlu2 %v12442_v39, %s13387_s24 }
 0x330   : > { %v1842_v41 = vadd.f32 %v15085_v57, %v1841_v36 }
 0x331   : > { %v12379_v52 = vpop.permute.xlu0 %12378  ;;  %v12384_v10 = vpop.permute.xlu1 %12383 }
 0x332   : > { %vm2366_vm13 = vcmp.ge.f32.partialorder %v1842_v41, 0.0  ;;  %v2622_v31 = vmul.f32 0.01, %v1842_v41  ;;  %v12380_v9 = vunpack.i.l.bf16 %v12379_v52  ;;  %v12381_v12 = vunpack.i.h.bf16 %v12379_v52 }
 0x333   : > { %v12386_v25 = vunpack.i.h.bf16 %v12384_v10  ;;  %v12385_v56 = vunpack.i.l.bf16 %v12384_v10 }
 0x334   : > { %v2878_v32 = vsel %vm2366_vm13, %v1842_v41, %v2622_v31  ;;  %v6739_v23 = vsel %vm6724_vm9, %v6674_v63, %v12380_v9  ;;  %v6740_v2 = vsel %vm6724_vm9, %v6675_v13, %v12381_v12  ;;  %v12389_v41 = vpop.permute.xlu2 %12388 }
 0x335   : > { %3475 = vst.msk [vmem:[#allocation2 + $0x411] sm:$0xff] %vm3057_vm1, %v2878_v32  ;;  %v6804_v31 = vsel %vm6789_vm10, %v6739_v23, %v12385_v56  ;;  %v6805_v43 = vsel %vm6789_vm10, %v6740_v2, %v12386_v25  ;;  %v12391_v32 = vunpack.i.h.bf16 %v12389_v41  ;;  %v12390_v52 = vunpack.i.l.bf16 %v12389_v41  ;;  %v4713_v25 = vld [vmem:[#allocation2 + $0x3f2] ss:$2 sm:$0xff]  ;;  %v4585_v56 = vld [vmem:[#allocation2 + $0x3f1] ss:$2 sm:$0xff] }
 0x337   : > { %v1844_v46 = vpop.f32.mrf.mxu0  ;;  %v6869_v11 = vsel %vm6854_vm14, %v6804_v31, %v12390_v52  ;;  %v6870_v9 = vsel %vm6854_vm14, %v6805_v43, %v12391_v32 }
 0x338   : > { %v1845_v14 = vadd.f32 %v15085_v57, %v1844_v46 }
 0x33a   : > { %vm2367_vm4 = vcmp.ge.f32.partialorder %v1845_v14, 0.0  ;;  %v2623_v38 = vmul.f32 0.01, %v1845_v14 }
 0x33c   : > { %v2879_v26 = vsel %vm2367_vm4, %v1845_v14, %v2623_v38  ;;  %v4331_v27 = vld [vmem:[#allocation2 + $0x40a] ss:$2 sm:$0xff]  ;;  %v4203_v29 = vld [vmem:[#allocation2 + $0x409] ss:$2 sm:$0xff] }
 0x33d   : > { %v4075_v30 = vld [vmem:[#allocation2 + $0x408] ss:$2 sm:$0xff]  ;;  %3476 = vst.msk [vmem:[#allocation2 + $0x421] sm:$0xff] %vm3057_vm1, %v2879_v26  ;;  %v12457_v40 = vpack.i.bf16 %v4331_v27, %v4329_v59  ;;  %v12452_v39 = vpack.i.bf16 %v4203_v29, %v4201_v20 }
 0x33e   : > { %v12447_v36 = vpack.i.bf16 %v4075_v30, %v4073_v17  ;;  %v11871_v17 = vld [vmem:[%s13466_s20 + $0x180] sm:$0xff] }
 0x33f   : > { %v1846_v37 = vpop.f32.mrf.mxu0  ;;  %12458 = vrot.lane.b32.xlu0 %v12457_v40, %s13388_s25  ;;  %12453 = vrot.lane.b32.xlu2 %v12452_v39, %s13390_s29  ;;  %v4457_v26 = vld [vmem:[#allocation2 + $0x3f0] ss:$2 sm:$0xff] }
 0x340   : > { %v1847_v44 = vadd.f32 %v15085_v57, %v1846_v37  ;;  %12448 = vrot.lane.b32.xlu1 %v12447_v36, %s13389_s26  ;;  %11592 = vmatmul.msk.bf16.gmra.mxu0 %vm1255_vm0, %v11871_v17 }
 0x341   : > { %v12399_v1 = vpop.permute.xlu1 %12398 }
 0x342   : > { %v12394_v54 = vpop.permute.xlu0 %12393  ;;  %vm2368_vm5 = vcmp.ge.f32.partialorder %v1847_v44, 0.0  ;;  %v2624_v28 = vmul.f32 0.01, %v1847_v44  ;;  %v12401_v46 = vunpack.i.h.bf16 %v12399_v1  ;;  %v12400_v6 = vunpack.i.l.bf16 %v12399_v1 }
 0x343   : > { %v12396_v47 = vunpack.i.h.bf16 %v12394_v54  ;;  %v12395_v55 = vunpack.i.l.bf16 %v12394_v54 }
 0x344   : > { %v2880_v14 = vsel %vm2368_vm5, %v1847_v44, %v2624_v28  ;;  %v11872_v44 = vld [vmem:[%s13466_s20 + $0x188] sm:$0xff]  ;;  %v7488_v28 = vpop.f32.mrf.mxu2 }
 0x345   : > { %v6934_v12 = vsel %vm6919_vm15, %v6869_v11, %v12395_v55  ;;  %v6935_v10 = vsel %vm6919_vm15, %v6870_v9, %v12396_v47  ;;  %3477 = vst.msk [vmem:[#allocation2 + $0x429] sm:$0xff] %vm3057_vm1, %v2880_v14 }
 0x346   : > { %v6999_v38 = vsel %vm6984_vm3, %v6934_v12, %v12400_v6  ;;  %v7000_v63 = vsel %vm6984_vm3, %v6935_v10, %v12401_v46 }
 0x347   : > { %v7063_v13 = vpack.c.bf16 %v7000_v63, %v6999_v38  ;;  %v1849_v59 = vpop.f32.mrf.mxu0 }
 0x348   : > { %v1850_v20 = vadd.f32 %v15085_v57, %v1849_v59 }
 0x349   : > { %7328 = vmatmul.bf16.gmra.mxu1 %v7063_v13 }
 0x34a   : > { %vm2369_vm6 = vcmp.ge.f32.partialorder %v1850_v20, 0.0  ;;  %v2625_v23 = vmul.f32 0.01, %v1850_v20 }
 0x34c   : > { %v2881_v27 = vsel %vm2369_vm6, %v1850_v20, %v2625_v23  ;;  %v4715_v29 = vld [vmem:[#allocation2 + $0x422] ss:$2 sm:$0xff]  ;;  %v4587_v30 = vld [vmem:[#allocation2 + $0x421] ss:$2 sm:$0xff]  ;;  %v7490_v13 = vpop.f32.mrf.mxu2 }
 0x34d   : > { %v4459_v2 = vld [vmem:[#allocation2 + $0x420] ss:$2 sm:$0xff]  ;;  %3478 = vst.msk [vmem:[#allocation2 + $0x439] sm:$0xff] %vm3057_vm1, %v2881_v27  ;;  %v7068_v40 = vpack.c.bf16 %v4715_v29, %v4713_v25  ;;  %v12467_v39 = vpack.i.bf16 %v4587_v30, %v4585_v56  ;;  %v3822_v27 = vld [vmem:[#allocation2 + $0x421] ss:$2 sm:$0xff] }
 0x34e   : > { %v12462_v36 = vpack.i.bf16 %v4459_v2, %v4457_v26  ;;  %v11873_v20 = vld [vmem:[%s13466_s20 + $0x190] sm:$0xff] }
 0x34f   : > { %v1851_v41 = vpop.f32.mrf.mxu0  ;;  %11717 = vmatmul.msk.bf16.gmra.mxu2 %vm3057_vm1, %v7068_v40  ;;  %12468 = vrot.lane.b32.xlu2 %v12467_v39, %s13391_s30  ;;  %v3950_v26 = vld [vmem:[#allocation2 + $0x422] ss:$2 sm:$0xff] }
 0x350   : > { %v1852_v37 = vadd.f32 %v15085_v57, %v1851_v41  ;;  %12463 = vrot.lane.b32.xlu1 %v12462_v36, %s13392_s10  ;;  %11593 = vmatmul.msk.bf16.gmra.mxu0 %vm1255_vm0, %v11872_v44  ;;  %v12404_v36 = vpop.permute.xlu2 %12403 }
 0x351   : > { %v7319_v47 = vpop.f32.mrf.mxu1  ;;  %v12406_v44 = vunpack.i.h.bf16 %v12404_v36 }
 0x352   : > { %vm2370_vm7 = vcmp.ge.f32.partialorder %v1852_v37, 0.0  ;;  %v2626_v31 = vmul.f32 0.01, %v1852_v37  ;;  %v7320_v55 = vadd.f32 %v15066_v24, %v7319_v47  ;;  %v3688_v47 = vld [vmem:[#allocation2 + $0x390] ss:$2 sm:$0xff] }
 0x354   : > { %v2882_v43 = vsel %vm2370_vm7, %v1852_v37, %v2626_v31  ;;  %v7489_v46 = vadd.f32 %v7488_v28, %v7320_v55  ;;  %v3686_v28 = vld [vmem:[#allocation2 + $0x360] ss:$2 sm:$0xff] }
 0x355   : > { %3479 = vst.msk [vmem:[#allocation2 + $0x441] sm:$0xff] %vm3057_vm1, %v2882_v43 }
 0x356   : > { %vm7633_vm2 = vcmp.ge.f32.partialorder %v7489_v46, 0.0  ;;  %v7697_v11 = vmul.f32 0.01, %v7489_v46 }
 0x357   : > { %v1854_v32 = vpop.f32.mrf.mxu0 }
 0x358   : > { %v1855_v52 = vadd.f32 %v15085_v57, %v1854_v32  ;;  %v7761_v14 = vsel %vm7633_vm2, %v7489_v46, %v7697_v11 }
 0x359   : > { %8021 = vst.msk [vmem:[#allocation3 + $0xd1] sm:$0xff] %vm1255_vm0, %v7761_v14  ;;  %v7321_v10 = vpop.f32.mrf.mxu1  ;;  %v12414_v11 = vpop.permute.xlu2 %12413 }
 0x35a   : > { %vm2371_vm11 = vcmp.ge.f32.partialorder %v1855_v52, 0.0  ;;  %v2627_v54 = vmul.f32 0.01, %v1855_v52  ;;  %v7322_v38 = vadd.f32 %v15066_v24, %v7321_v10 }
 0x35c   : > { %v2883_v1 = vsel %vm2371_vm11, %v1855_v52, %v2627_v54  ;;  %v7491_v59 = vadd.f32 %v7490_v13, %v7322_v38  ;;  %v12405_v52 = vunpack.i.l.bf16 %v12404_v36 }
 0x35d   : > { %3480 = vst.msk [vmem:[#allocation2 + $0x451] sm:$0xff] %vm3057_vm1, %v2883_v1 }
 0x35e   : > { %vm7634_vm8 = vcmp.ge.f32.partialorder %v7491_v59, 0.0  ;;  %v7698_v23 = vmul.f32 0.01, %v7491_v59  ;;  %v6612_v14 = vsel %vm3057_vm1, %v3686_v28, %v12405_v52 }
 0x35f   : > { %v1856_v6 = vpop.f32.mrf.mxu0 }
 0x360   : > { %v1857_v9 = vadd.f32 %v15085_v57, %v1856_v6  ;;  %v7762_v56 = vsel %vm7634_vm8, %v7491_v59, %v7698_v23  ;;  %11594 = vmatmul.msk.bf16.gmra.mxu0 %vm1255_vm0, %v11873_v20  ;;  %v6613_v6 = vsel %vm3057_vm1, %v3688_v47, %v12406_v44  ;;  %v12416_v23 = vunpack.i.h.bf16 %v12414_v11 }
 0x361   : > { %8022 = vst.msk [vmem:[#allocation3 + $0xe1] sm:$0xff] %vm1255_vm0, %v7762_v56  ;;  %v12409_v31 = vpop.permute.xlu1 %12408 }
 0x362   : > { %vm2372_vm12 = vcmp.ge.f32.partialorder %v1857_v9, 0.0  ;;  %v2628_v12 = vmul.f32 0.01, %v1857_v9  ;;  %v12411_v54 = vunpack.i.h.bf16 %v12409_v31  ;;  %v12410_v55 = vunpack.i.l.bf16 %v12409_v31  ;;  %v4205_v31 = vld [vmem:[#allocation2 + $0x439] ss:$2 sm:$0xff] }
 0x364   : > { %v2884_v63 = vsel %vm2372_vm12, %v1857_v9, %v2628_v12  ;;  %v11874_v9 = vld [vmem:[%s13466_s20 + $0x198] sm:$0xff]  ;;  %v6677_v12 = vsel %vm1255_vm0, %v6613_v6, %v12411_v54 }
 0x365   : > { %3481 = vst.msk [vmem:[#allocation2 + $0x459] sm:$0xff] %vm3057_vm1, %v2884_v63  ;;  %v6676_v63 = vsel %vm1255_vm0, %v6612_v14, %v12410_v55 }
 0x367   : > { %v1859_v17 = vpop.f32.mrf.mxu0 }
 0x368   : > { %v1860_v25 = vadd.f32 %v15085_v57, %v1859_v17  ;;  %v8087_v32 = vld [vmem:[#allocation3 + $0xe0] ss:$2 sm:$0xf] }
 0x369   : > { %8693 = vst [vmem:[#allocation1 + $0x30] ss:$2 sm:$0xff] %v8087_v32 }
 0x36a   : > { %vm2373_vm13 = vcmp.ge.f32.partialorder %v1860_v25, 0.0  ;;  %v2629_v29 = vmul.f32 0.01, %v1860_v25  ;;  %v12429_v36 = vpop.permute.xlu2 %12428 }
 0x36b   : > { %v12431_v6 = vunpack.i.h.bf16 %v12429_v36 }
 0x36c   : > { %v3952_v30 = vld [vmem:[#allocation2 + $0x452] ss:$2 sm:$0xff]  ;;  %v3824_v2 = vld [vmem:[#allocation2 + $0x451] ss:$2 sm:$0xff]  ;;  %v2885_v41 = vsel %vm2373_vm13, %v1860_v25, %v2629_v29  ;;  %v12415_v25 = vunpack.i.l.bf16 %v12414_v11  ;;  %v12430_v11 = vunpack.i.l.bf16 %v12429_v36 }
 0x36d   : > { %v12477_v40 = vpack.i.bf16 %v3952_v30, %v3950_v26  ;;  %v12472_v39 = vpack.i.bf16 %v3824_v2, %v3822_v27  ;;  %3482 = vst.msk [vmem:[#allocation2 + $0x469] sm:$0xff] %vm3057_vm1, %v2885_v41  ;;  %v6742_v27 = vsel %vm6724_vm9, %v6677_v12, %v12416_v23  ;;  %v4077_v41 = vld [vmem:[#allocation2 + $0x438] ss:$2 sm:$0xff]  ;;  %v7493_v23 = vpop.f32.mrf.mxu2 }
 0x36e   : > { %v6741_v26 = vsel %vm6724_vm9, %v6676_v63, %v12415_v25  ;;  %v4717_v36 = vld [vmem:[#allocation2 + $0x452] ss:$2 sm:$0xff] }
 0x36f   : > { %v1861_v37 = vpop.f32.mrf.mxu0  ;;  %12478 = vrot.lane.b32.xlu0 %v12477_v40, %s13387_s24  ;;  %12473 = vrot.lane.b32.xlu1 %v12472_v39, %s13386_s23 }
 0x370   : > { %v1862_v43 = vadd.f32 %v15085_v57, %v1861_v37  ;;  %11595 = vmatmul.msk.bf16.gmra.mxu0 %vm1255_vm0, %v11874_v9  ;;  %v4333_v37 = vld [vmem:[#allocation2 + $0x43a] ss:$2 sm:$0xff] }
 0x371   : > { %v12419_v46 = vpop.permute.xlu0 %12418 }
 0x372   : > { %vm2374_vm4 = vcmp.ge.f32.partialorder %v1862_v43, 0.0  ;;  %v2630_v1 = vmul.f32 0.01, %v1862_v43  ;;  %v12421_v13 = vunpack.i.h.bf16 %v12419_v46  ;;  %v12420_v59 = vunpack.i.l.bf16 %v12419_v46  ;;  %v12424_v20 = vpop.permute.xlu1 %12423 }
 0x373   : > { %v12426_v29 = vunpack.i.h.bf16 %v12424_v20  ;;  %v12425_v30 = vunpack.i.l.bf16 %v12424_v20 }
 0x374   : > { %v2886_v10 = vsel %vm2374_vm4, %v1862_v43, %v2630_v1  ;;  %v6806_v2 = vsel %vm6789_vm10, %v6741_v26, %v12420_v59  ;;  %v6807_v40 = vsel %vm6789_vm10, %v6742_v27, %v12421_v13 }
 0x375   : > { %3483 = vst.msk [vmem:[#allocation2 + $0x471] sm:$0xff] %vm3057_vm1, %v2886_v10  ;;  %v6871_v43 = vsel %vm6854_vm14, %v6806_v2, %v12425_v30  ;;  %v6872_v44 = vsel %vm6854_vm14, %v6807_v40, %v12426_v29  ;;  %v2279_v29 = vpop.f32.mrf.mxu3 }
 0x376   : > { %v6937_v63 = vsel %vm6919_vm15, %v6872_v44, %v12431_v6  ;;  %v2280_v2 = vadd.f32 %v15085_v57, %v2279_v29 }
 0x377   : > { %v1864_v38 = vpop.f32.mrf.mxu0 }
 0x378   : > { %v1865_v17 = vadd.f32 %v15085_v57, %v1864_v38  ;;  %v6936_v38 = vsel %vm6919_vm15, %v6871_v43, %v12430_v11  ;;  %vm2541_vm2 = vcmp.ge.f32.partialorder %v2280_v2, 0.0 }
 0x37a   : > { %vm2375_vm5 = vcmp.ge.f32.partialorder %v1865_v17, 0.0  ;;  %v2631_v56 = vmul.f32 0.01, %v1865_v17 }
 0x37c   : > { %v2887_v39 = vsel %vm2375_vm5, %v1865_v17, %v2631_v56  ;;  %v4079_v52 = vld [vmem:[#allocation2 + $0x468] ss:$2 sm:$0xff]  ;;  %v4207_v28 = vld [vmem:[#allocation2 + $0x469] ss:$2 sm:$0xff]  ;;  %v11875_v56 = vld [vmem:[%s13466_s20 + $0x1a0] sm:$0xff] }
 0x37d   : > { %3484 = vst.msk [vmem:[#allocation2 + $0x481] sm:$0xff] %vm3057_vm1, %v2887_v39  ;;  %v4335_v54 = vld [vmem:[#allocation2 + $0x46a] ss:$2 sm:$0xff]  ;;  %v12482_v55 = vpack.i.bf16 %v4079_v52, %v4077_v41  ;;  %v12487_v46 = vpack.i.bf16 %v4207_v28, %v4205_v31  ;;  %v2797_v31 = vmul.f32 0.01, %v2280_v2 }
 0x37e   : > { %v12492_v1 = vpack.i.bf16 %v4335_v54, %v4333_v37  ;;  %v4461_v41 = vld [vmem:[#allocation2 + $0x450] ss:$2 sm:$0xff] }
 0x37f   : > { %v1866_v32 = vpop.f32.mrf.mxu0  ;;  %12483 = vrot.lane.b32.xlu0 %v12482_v55, %s13389_s26  ;;  %12488 = vrot.lane.b32.xlu1 %v12487_v46, %s13390_s29  ;;  %v3053_v28 = vsel %vm2541_vm2, %v2280_v2, %v2797_v31 }
 0x380   : > { %v1867_v47 = vadd.f32 %v15085_v57, %v1866_v32  ;;  %12493 = vrot.lane.b32.xlu2 %v12492_v1, %s13388_s25  ;;  %11596 = vmatmul.msk.bf16.gmra.mxu0 %vm1255_vm0, %v11875_v56  ;;  %v4589_v1 = vld [vmem:[#allocation2 + $0x451] ss:$2 sm:$0xff]  ;;  %3650 = vst.msk [vmem:[#allocation2 + $0xd39] sm:$0xff] %vm3057_vm1, %v3053_v28  ;;  %v11877_v28 = vld [vmem:[%s13466_s20 + $0x1b0] sm:$0xff] }
 0x381   : > { %v12434_v9 = vpop.permute.xlu0 %12433 }
 0x382   : > { %vm2376_vm6 = vcmp.ge.f32.partialorder %v1867_v47, 0.0  ;;  %v2632_v14 = vmul.f32 0.01, %v1867_v47  ;;  %v12436_v12 = vunpack.i.h.bf16 %v12434_v9  ;;  %v12435_v10 = vunpack.i.l.bf16 %v12434_v9 }
 0x384   : > { %v2888_v13 = vsel %vm2376_vm6, %v1867_v47, %v2632_v14  ;;  %v7001_v59 = vsel %vm6984_vm3, %v6936_v38, %v12435_v10  ;;  %v7002_v20 = vsel %vm6984_vm3, %v6937_v63, %v12436_v12  ;;  %v2281_v14 = vpop.f32.mrf.mxu3  ;;  %v7495_v12 = vpop.f32.mrf.mxu2 }
 0x385   : > { %3485 = vst.msk [vmem:[#allocation2 + $0x489] sm:$0xff] %vm3057_vm1, %v2888_v13  ;;  %v7065_v17 = vpack.c.bf16 %v7002_v20, %v7001_v59  ;;  %v2282_v38 = vadd.f32 %v15085_v57, %v2281_v14 }
 0x386   : > { %v7324_v25 = vpop.f32.mrf.mxu1 }
 0x387   : > { %v7325_v26 = vadd.f32 %v15066_v24, %v7324_v25  ;;  %v1869_v27 = vpop.f32.mrf.mxu0  ;;  %7333 = vmatmul.bf16.gmra.mxu1 %v7065_v17  ;;  %vm2542_vm8 = vcmp.ge.f32.partialorder %v2282_v38, 0.0  ;;  %v11876_v25 = vld [vmem:[%s13466_s20 + $0x1a8] sm:$0xff] }
 0x388   : > { %v1870_v30 = vadd.f32 %v15085_v57, %v1869_v27 }
 0x389   : > { %v7494_v40 = vadd.f32 %v7493_v23, %v7325_v26 }
 0x38a   : > { %vm2377_vm7 = vcmp.ge.f32.partialorder %v1870_v30, 0.0  ;;  %v2633_v39 = vmul.f32 0.01, %v1870_v30 }
 0x38b   : > { %vm7635_vm11 = vcmp.ge.f32.partialorder %v7494_v40, 0.0  ;;  %v7699_v37 = vmul.f32 0.01, %v7494_v40 }
 0x38c   : > { %v2889_v43 = vsel %vm2377_vm7, %v1870_v30, %v2633_v39  ;;  %v4719_v44 = vld [vmem:[#allocation2 + $0x482] ss:$2 sm:$0xff]  ;;  %v4591_v52 = vld [vmem:[#allocation2 + $0x481] ss:$2 sm:$0xff]  ;;  %v2284_v26 = vpop.f32.mrf.mxu3 }
 0x38d   : > { %v4463_v32 = vld [vmem:[#allocation2 + $0x480] ss:$2 sm:$0xff]  ;;  %v7763_v54 = vsel %vm7635_vm11, %v7494_v40, %v7699_v37  ;;  %3486 = vst.msk [vmem:[#allocation2 + $0x499] sm:$0xff] %vm3057_vm1, %v2889_v43  ;;  %v7070_v47 = vpack.c.bf16 %v4719_v44, %v4717_v36  ;;  %v12502_v6 = vpack.i.bf16 %v4591_v52, %v4589_v1  ;;  %v2285_v29 = vadd.f32 %v15085_v57, %v2284_v26 }
 0x38e   : > { %v12497_v55 = vpack.i.bf16 %v4463_v32, %v4461_v41  ;;  %8023 = vst.msk [vmem:[#allocation3 + $0xf1] sm:$0xff] %vm1255_vm0, %v7763_v54  ;;  %v7326_v46 = vpop.f32.mrf.mxu1 }
 0x38f   : > { %v7327_v11 = vadd.f32 %v15066_v24, %v7326_v46  ;;  %v1871_v9 = vpop.f32.mrf.mxu0  ;;  %11718 = vmatmul.msk.bf16.gmra.mxu2 %vm3057_vm1, %v7070_v47  ;;  %12503 = vrot.lane.b32.xlu1 %v12502_v6, %s13391_s30  ;;  %v2798_v24 = vmul.f32 0.01, %v2282_v38  ;;  %v2799_v2 = vmul.f32 0.01, %v2285_v29  ;;  %vm2543_vm5 = vcmp.ge.f32.partialorder %v2285_v29, 0.0 }
 0x390   : > { %12498 = vrot.lane.b32.xlu0 %v12497_v55, %s13392_s10  ;;  %v1872_v10 = vadd.f32 %v15085_v57, %v1871_v9  ;;  %11597 = vmatmul.msk.bf16.gmra.mxu0 %vm1255_vm0, %v11876_v25  ;;  %v3826_v46 = vld [vmem:[#allocation2 + $0x481] ss:$2 sm:$0xff]  ;;  %v3954_v9 = vld [vmem:[#allocation2 + $0x482] ss:$2 sm:$0xff] }
 0x391   : > { %v7496_v63 = vadd.f32 %v7495_v12, %v7327_v11  ;;  %v3054_v23 = vsel %vm2542_vm8, %v2282_v38, %v2798_v24  ;;  %v3055_v36 = vsel %vm2543_vm5, %v2285_v29, %v2799_v2  ;;  %v3692_v29 = vld [vmem:[#allocation2 + $0x3f0] ss:$2 sm:$0xff] }
 0x392   : > { %vm2378_vm12 = vcmp.ge.f32.partialorder %v1872_v10, 0.0  ;;  %v2634_v13 = vmul.f32 0.01, %v1872_v10  ;;  %3651 = vst.msk [vmem:[#allocation2 + $0xd41] sm:$0xff] %vm3057_vm1, %v3054_v23 }
 0x393   : > { %vm7636_vm13 = vcmp.ge.f32.partialorder %v7496_v63, 0.0  ;;  %v7700_v59 = vmul.f32 0.01, %v7496_v63  ;;  %3652 = vst.msk [vmem:[#allocation2 + $0xd51] sm:$0xff] %vm3057_vm1, %v3055_v36 }
 0x394   : > { %v2890_v20 = vsel %vm2378_vm12, %v1872_v10, %v2634_v13  ;;  %v2286_v37 = vpop.f32.mrf.mxu3 }
 0x395   : > { %v7764_v17 = vsel %vm7636_vm13, %v7496_v63, %v7700_v59  ;;  %3487 = vst.msk [vmem:[#allocation2 + $0x4a1] sm:$0xff] %vm3057_vm1, %v2890_v20  ;;  %v2287_v43 = vadd.f32 %v15085_v57, %v2286_v37  ;;  %v12444_v63 = vpop.permute.xlu2 %12443 }
 0x396   : > { %8024 = vst.msk [vmem:[#allocation3 + $0x101] sm:$0xff] %vm1255_vm0, %v7764_v17  ;;  %v12445_v2 = vunpack.i.l.bf16 %v12444_v63 }
 0x397   : > { %v1874_v56 = vpop.f32.mrf.mxu0  ;;  %vm2544_vm7 = vcmp.ge.f32.partialorder %v2287_v43, 0.0  ;;  %v2800_v32 = vmul.f32 0.01, %v2287_v43 }
 0x398   : > { %v1875_v27 = vadd.f32 %v15085_v57, %v1874_v56 }
 0x399   : > { %v3056_v54 = vsel %vm2544_vm7, %v2287_v43, %v2800_v32 }
 0x39a   : > { %v2635_v30 = vmul.f32 0.01, %v1875_v27  ;;  %vm2379_vm4 = vcmp.ge.f32.partialorder %v1875_v27, 0.0  ;;  %3653 = vst.msk [vmem:[#allocation2 + $0xd59] sm:$0xff] %vm3057_vm1, %v3056_v54 }
 0x39c   : > { %v2891_v39 = vsel %vm2379_vm4, %v1875_v27, %v2635_v30  ;;  %v3690_v27 = vld [vmem:[#allocation2 + $0x3c0] ss:$2 sm:$0xff]  ;;  %v4209_v43 = vld [vmem:[#allocation2 + $0x499] ss:$2 sm:$0xff] }
 0x39d   : > { %v8089_v40 = vld [vmem:[#allocation3 + $0x100] ss:$2 sm:$0xf]  ;;  %3488 = vst.msk [vmem:[#allocation2 + $0x4b1] sm:$0xff] %vm3057_vm1, %v2891_v39  ;;  %v12454_v26 = vpop.permute.xlu2 %12453 }
 0x39e   : > { %8695 = vst [vmem:[#allocation1 + $0x31] ss:$2 sm:$0xff] %v8089_v40  ;;  %v4337_v32 = vld [vmem:[#allocation2 + $0x49a] ss:$2 sm:$0xff] }
 0x39f   : > { %v1876_v41 = vpop.f32.mrf.mxu0 }
 0x3a0   : > { %v1877_v31 = vadd.f32 %v15085_v57, %v1876_v41  ;;  %11598 = vmatmul.msk.bf16.gmra.mxu0 %vm1255_vm0, %v11877_v28 }
 0x3a1   : > { %v12439_v24 = vpop.permute.xlu0 %12438 }
 0x3a2   : > { %vm2380_vm6 = vcmp.ge.f32.partialorder %v1877_v31, 0.0  ;;  %v2636_v44 = vmul.f32 0.01, %v1877_v31  ;;  %v12441_v17 = vunpack.i.h.bf16 %v12439_v24  ;;  %v12440_v23 = vunpack.i.l.bf16 %v12439_v24 }
 0x3a4   : > { %v2892_v52 = vsel %vm2380_vm6, %v1877_v31, %v2636_v44  ;;  %v6615_v40 = vsel %vm3057_vm1, %v3692_v29, %v12441_v17  ;;  %v6614_v39 = vsel %vm3057_vm1, %v3690_v27, %v12440_v23  ;;  %v12446_v31 = vunpack.i.h.bf16 %v12444_v63  ;;  %v4081_v44 = vld [vmem:[#allocation2 + $0x498] ss:$2 sm:$0xff] }
 0x3a5   : > { %3489 = vst.msk [vmem:[#allocation2 + $0x4b9] sm:$0xff] %vm3057_vm1, %v2892_v52  ;;  %v6678_v52 = vsel %vm1255_vm0, %v6614_v39, %v12445_v2 }
 0x3a7   : > { %v1879_v47 = vpop.f32.mrf.mxu0 }
 0x3a8   : > { %v1880_v55 = vadd.f32 %v15085_v57, %v1879_v47 }
 0x3a9   : > { %v12469_v63 = vpop.permute.xlu2 %12468 }
 0x3aa   : > { %vm2381_vm11 = vcmp.ge.f32.partialorder %v1880_v55, 0.0  ;;  %v2637_v1 = vmul.f32 0.01, %v1880_v55 }
 0x3ac   : > { %v2893_v6 = vsel %vm2381_vm11, %v1880_v55, %v2637_v1  ;;  %v3828_v11 = vld [vmem:[#allocation2 + $0x4b1] ss:$2 sm:$0xff]  ;;  %v3956_v14 = vld [vmem:[#allocation2 + $0x4b2] ss:$2 sm:$0xff] }
 0x3ad   : > { %3490 = vst.msk [vmem:[#allocation2 + $0x4c9] sm:$0xff] %vm3057_vm1, %v2893_v6  ;;  %v12507_v12 = vpack.i.bf16 %v3828_v11, %v3826_v46  ;;  %v12512_v10 = vpack.i.bf16 %v3956_v14, %v3954_v9  ;;  %v12456_v14 = vunpack.i.h.bf16 %v12454_v26 }
 0x3af   : > { %v1881_v38 = vpop.f32.mrf.mxu0  ;;  %12508 = vrot.lane.b32.xlu2 %v12507_v12, %s13386_s23  ;;  %12513 = vrot.lane.b32.xlu1 %v12512_v10, %s13387_s24  ;;  %v12455_v12 = vunpack.i.l.bf16 %v12454_v26  ;;  %v12471_v26 = vunpack.i.h.bf16 %v12469_v63 }
 0x3b0   : > { %v1882_v13 = vadd.f32 %v15085_v57, %v1881_v38 }
 0x3b1   : > { %v12459_v10 = vpop.permute.xlu0 %12458 }
 0x3b2   : > { %vm2382_vm2 = vcmp.ge.f32.partialorder %v1882_v13, 0.0  ;;  %v2638_v59 = vmul.f32 0.01, %v1882_v13  ;;  %v12449_v25 = vpop.permute.xlu1 %12448  ;;  %v12461_v17 = vunpack.i.h.bf16 %v12459_v10  ;;  %v12460_v23 = vunpack.i.l.bf16 %v12459_v10 }
 0x3b3   : > { %v12451_v36 = vunpack.i.h.bf16 %v12449_v25  ;;  %v12450_v41 = vunpack.i.l.bf16 %v12449_v25 }
 0x3b4   : > { %v2894_v20 = vsel %vm2382_vm2, %v1882_v13, %v2638_v59  ;;  %v15279_v13 = vld [vmem:[%s16982_s2] ss:$0 sm:$0xff] }
 0x3b5   : > { %3491 = vst.msk [vmem:[#allocation2 + $0x4d1] sm:$0xff] %vm3057_vm1, %v2894_v20  ;;  %v6743_v9 = vsel %vm6724_vm9, %v6678_v52, %v12450_v41 }
 0x3b6   : > { %v6808_v20 = vsel %vm6789_vm10, %v6743_v9, %v12455_v12 }
 0x3b7   : > { %v1884_v56 = vpop.f32.mrf.mxu0 }
 0x3b8   : > { %v1885_v30 = vadd.f32 %v15085_v57, %v1884_v56  ;;  %v6679_v57 = vsel %vm1255_vm0, %v6615_v40, %v12446_v31  ;;  %v6873_v40 = vsel %vm6854_vm14, %v6808_v20, %v12460_v23 }
 0x3b9   : > { %v6744_v11 = vsel %vm6724_vm9, %v6679_v57, %v12451_v36  ;;  %v7498_v36 = vpop.f32.mrf.mxu2 }
 0x3ba   : > { %vm2383_vm12 = vcmp.ge.f32.partialorder %v1885_v30, 0.0  ;;  %v2639_v37 = vmul.f32 0.01, %v1885_v30  ;;  %v6809_v59 = vsel %vm6789_vm10, %v6744_v11, %v12456_v14  ;;  %v4465_v11 = vld [vmem:[#allocation2 + $0x4b0] ss:$2 sm:$0xff] }
 0x3bb   : > { %v6874_v39 = vsel %vm6854_vm14, %v6809_v59, %v12461_v17 }
 0x3bc   : > { %v2895_v54 = vsel %vm2383_vm12, %v1885_v30, %v2639_v37  ;;  %v4211_v28 = vld [vmem:[#allocation2 + $0x4c9] ss:$2 sm:$0xff]  ;;  %v4083_v47 = vld [vmem:[#allocation2 + $0x4c8] ss:$2 sm:$0xff]  ;;  %v12470_v30 = vunpack.i.l.bf16 %v12469_v63 }
 0x3bd   : > { %v4339_v55 = vld [vmem:[#allocation2 + $0x4ca] ss:$2 sm:$0xff]  ;;  %3492 = vst.msk [vmem:[#allocation2 + $0x4e1] sm:$0xff] %vm3057_vm1, %v2895_v54  ;;  %v12522_v1 = vpack.i.bf16 %v4211_v28, %v4209_v43  ;;  %v12517_v46 = vpack.i.bf16 %v4083_v47, %v4081_v44 }
 0x3be   : > { %v12527_v6 = vpack.i.bf16 %v4339_v55, %v4337_v32  ;;  %v15293_v43 = vld [vmem:[%s16984_s4] ss:$0 sm:$0xff] }
 0x3bf   : > { %v1886_v38 = vpop.f32.mrf.mxu0  ;;  %12523 = vrot.lane.b32.xlu0 %v12522_v1, %s13390_s29  ;;  %12518 = vrot.lane.b32.xlu2 %v12517_v46, %s13389_s26  ;;  %v4721_v46 = vld [vmem:[#allocation2 + $0x4b2] ss:$2 sm:$0xff] }
 0x3c0   : > { %v1887_v24 = vadd.f32 %v15279_v13, %v1886_v38  ;;  %12528 = vrot.lane.b32.xlu1 %v12527_v6, %s13388_s25  ;;  %v4593_v6 = vld [vmem:[#allocation2 + $0x4b1] ss:$2 sm:$0xff] }
 0x3c1   : > { %v7500_v23 = vpop.f32.mrf.mxu2 }
 0x3c2   : > { %vm2384_vm8 = vcmp.ge.f32.partialorder %v1887_v24, 0.0  ;;  %v2640_v25 = vmul.f32 0.01, %v1887_v24  ;;  %v12464_v56 = vpop.permute.xlu1 %12463 }
 0x3c3   : > { %v12466_v27 = vunpack.i.h.bf16 %v12464_v56  ;;  %v12465_v29 = vunpack.i.l.bf16 %v12464_v56 }
 0x3c4   : > { %v2896_v2 = vsel %vm2384_vm8, %v1887_v24, %v2640_v25 }
 0x3c5   : > { %3493 = vst.msk [vmem:[#allocation2 + $0x4e9] sm:$0xff] %vm3057_vm1, %v2896_v2  ;;  %v6938_v37 = vsel %vm6919_vm15, %v6873_v40, %v12465_v29  ;;  %v6939_v31 = vsel %vm6919_vm15, %v6874_v39, %v12466_v27 }
 0x3c6   : > { %v7329_v41 = vpop.f32.mrf.mxu1  ;;  %v7003_v32 = vsel %vm6984_vm3, %v6938_v37, %v12470_v30  ;;  %v7004_v52 = vsel %vm6984_vm3, %v6939_v31, %v12471_v26 }
 0x3c7   : > { %v7330_v44 = vadd.f32 %v15293_v43, %v7329_v41  ;;  %v1889_v54 = vpop.f32.mrf.mxu0  ;;  %v7067_v28 = vpack.c.bf16 %v7004_v52, %v7003_v32 }
 0x3c8   : > { %v1890_v55 = vadd.f32 %v15279_v13, %v1889_v54 }
 0x3c9   : > { %v7499_v47 = vadd.f32 %v7498_v36, %v7330_v44  ;;  %7338 = vmatmul.bf16.gmra.mxu1 %v7067_v28  ;;  %v3830_v28 = vld [vmem:[#allocation2 + $0x511] ss:$2 sm:$0xff] }
 0x3ca   : > { %vm2385_vm4 = vcmp.ge.f32.partialorder %v1890_v55, 0.0  ;;  %v2641_v1 = vmul.f32 0.01, %v1890_v55 }
 0x3cb   : > { %vm7637_vm13 = vcmp.ge.f32.partialorder %v7499_v47, 0.0  ;;  %v7701_v57 = vmul.f32 0.01, %v7499_v47 }
 0x3cc   : > { %v2897_v14 = vsel %vm2385_vm4, %v1890_v55, %v2641_v1  ;;  %v4723_v12 = vld [vmem:[#allocation2 + $0x4e2] ss:$2 sm:$0xff]  ;;  %v4595_v10 = vld [vmem:[#allocation2 + $0x4e1] ss:$2 sm:$0xff]  ;;  %v3958_v55 = vld [vmem:[#allocation2 + $0x512] ss:$2 sm:$0xff] }
 0x3cd   : > { %v7765_v9 = vsel %vm7637_vm13, %v7499_v47, %v7701_v57  ;;  %v4467_v38 = vld [vmem:[#allocation2 + $0x4e0] ss:$2 sm:$0xff]  ;;  %v7072_v24 = vpack.c.bf16 %v4723_v12, %v4721_v46  ;;  %v12537_v59 = vpack.i.bf16 %v4595_v10, %v4593_v6  ;;  %3494 = vst.msk [vmem:[#allocation2 + $0x529] sm:$0xff] %vm3057_vm1, %v2897_v14 }
 0x3ce   : > { %8025 = vst.msk [vmem:[#allocation3 + $0x111] sm:$0xff] %vm1255_vm0, %v7765_v9  ;;  %v7331_v63 = vpop.f32.mrf.mxu1  ;;  %v12532_v20 = vpack.i.bf16 %v4467_v38, %v4465_v11 }
 0x3cf   : > { %v7332_v17 = vadd.f32 %v15293_v43, %v7331_v63  ;;  %v1891_v25 = vpop.f32.mrf.mxu0  ;;  %11719 = vmatmul.msk.bf16.gmra.mxu2 %vm3057_vm1, %v7072_v24  ;;  %12538 = vrot.lane.b32.xlu0 %v12537_v59, %s13391_s30 }
 0x3d0   : > { %v1892_v26 = vadd.f32 %v15279_v13, %v1891_v25  ;;  %12533 = vrot.lane.b32.xlu2 %v12532_v20, %s13392_s10  ;;  %v3694_v25 = vld [vmem:[#allocation2 + $0x420] ss:$2 sm:$0xff] }
 0x3d1   : > { %v7501_v56 = vadd.f32 %v7500_v23, %v7332_v17 }
 0x3d2   : > { %vm2386_vm6 = vcmp.ge.f32.partialorder %v1892_v26, 0.0  ;;  %v2642_v29 = vmul.f32 0.01, %v1892_v26 }
 0x3d3   : > { %vm7638_vm5 = vcmp.ge.f32.partialorder %v7501_v56, 0.0  ;;  %v7702_v27 = vmul.f32 0.01, %v7501_v56 }
 0x3d4   : > { %v2898_v2 = vsel %vm2386_vm6, %v1892_v26, %v2642_v29 }
 0x3d5   : > { %v7766_v30 = vsel %vm7638_vm5, %v7501_v56, %v7702_v27  ;;  %3495 = vst.msk [vmem:[#allocation2 + $0x531] sm:$0xff] %vm3057_vm1, %v2898_v2  ;;  %v3696_v56 = vld [vmem:[#allocation2 + $0x450] ss:$2 sm:$0xff] }
 0x3d6   : > { %8026 = vst.msk [vmem:[#allocation3 + $0x121] sm:$0xff] %vm1255_vm0, %v7766_v30 }
 0x3d7   : > { %v1894_v40 = vpop.f32.mrf.mxu0 }
 0x3d8   : > { %v1895_v39 = vadd.f32 %v15279_v13, %v1894_v40 }
 0x3da   : > { %vm2387_vm7 = vcmp.ge.f32.partialorder %v1895_v39, 0.0  ;;  %v2643_v36 = vmul.f32 0.01, %v1895_v39 }
 0x3dc   : > { %v2899_v41 = vsel %vm2387_vm7, %v1895_v39, %v2643_v36 }
 0x3dd   : > { %3496 = vst.msk [vmem:[#allocation2 + $0x541] sm:$0xff] %vm3057_vm1, %v2899_v41 }
 0x3df   : > { %v1896_v37 = vpop.f32.mrf.mxu0 }
 0x3e0   : > { %v1897_v31 = vadd.f32 %v15279_v13, %v1896_v37 }
 0x3e1   : > { %v12479_v6 = vpop.permute.xlu0 %12478  ;;  %v12474_v10 = vpop.permute.xlu1 %12473 }
 0x3e2   : > { %vm2388_vm11 = vcmp.ge.f32.partialorder %v1897_v31, 0.0  ;;  %v2644_v44 = vmul.f32 0.01, %v1897_v31  ;;  %v12476_v63 = vunpack.i.h.bf16 %v12474_v10  ;;  %v12475_v24 = vunpack.i.l.bf16 %v12474_v10 }
 0x3e3   : > { %v12481_v17 = vunpack.i.h.bf16 %v12479_v6  ;;  %v12480_v23 = vunpack.i.l.bf16 %v12479_v6 }
 0x3e4   : > { %v2900_v32 = vsel %vm2388_vm11, %v1897_v31, %v2644_v44  ;;  %v6617_v27 = vsel %vm3057_vm1, %v3696_v56, %v12476_v63  ;;  %v6616_v29 = vsel %vm3057_vm1, %v3694_v25, %v12475_v24  ;;  %v4341_v31 = vld [vmem:[#allocation2 + $0x52a] ss:$2 sm:$0xff]  ;;  %v4213_v44 = vld [vmem:[#allocation2 + $0x529] ss:$2 sm:$0xff] }
 0x3e5   : > { %3497 = vst.msk [vmem:[#allocation2 + $0x549] sm:$0xff] %vm3057_vm1, %v2900_v32  ;;  %v6680_v41 = vsel %vm1255_vm0, %v6616_v29, %v12480_v23  ;;  %v6681_v37 = vsel %vm1255_vm0, %v6617_v27, %v12481_v17  ;;  %v4085_v32 = vld [vmem:[#allocation2 + $0x528] ss:$2 sm:$0xff] }
 0x3e7   : > { %v1899_v52 = vpop.f32.mrf.mxu0 }
 0x3e8   : > { %v1900_v54 = vadd.f32 %v15279_v13, %v1899_v52 }
 0x3ea   : > { %vm2389_vm2 = vcmp.ge.f32.partialorder %v1900_v54, 0.0  ;;  %v2645_v47 = vmul.f32 0.01, %v1900_v54 }
 0x3ec   : > { %v2901_v57 = vsel %vm2389_vm2, %v1900_v54, %v2645_v47  ;;  %v3832_v1 = vld [vmem:[#allocation2 + $0x541] ss:$2 sm:$0xff]  ;;  %v3960_v46 = vld [vmem:[#allocation2 + $0x542] ss:$2 sm:$0xff] }
 0x3ed   : > { %3498 = vst.msk [vmem:[#allocation2 + $0x559] sm:$0xff] %vm3057_vm1, %v2901_v57  ;;  %v12542_v11 = vpack.i.bf16 %v3832_v1, %v3830_v28  ;;  %v12547_v9 = vpack.i.bf16 %v3960_v46, %v3958_v55 }
 0x3ef   : > { %v1901_v14 = vpop.f32.mrf.mxu0  ;;  %12543 = vrot.lane.b32.xlu0 %v12542_v11, %s13386_s23  ;;  %12548 = vrot.lane.b32.xlu2 %v12547_v9, %s13387_s24 }
 0x3f0   : > { %v1902_v12 = vadd.f32 %v15279_v13, %v1901_v14  ;;  %v12494_v14 = vpop.permute.xlu2 %12493 }
 0x3f1   : > { %v12484_v20 = vpop.permute.xlu0 %12483  ;;  %v12489_v39 = vpop.permute.xlu1 %12488  ;;  %v12496_v24 = vunpack.i.h.bf16 %v12494_v14 }
 0x3f2   : > { %vm2390_vm12 = vcmp.ge.f32.partialorder %v1902_v12, 0.0  ;;  %v2646_v38 = vmul.f32 0.01, %v1902_v12  ;;  %v12485_v30 = vunpack.i.l.bf16 %v12484_v20  ;;  %v12486_v40 = vunpack.i.h.bf16 %v12484_v20 }
 0x3f3   : > { %v12491_v54 = vunpack.i.h.bf16 %v12489_v39  ;;  %v12490_v28 = vunpack.i.l.bf16 %v12489_v39 }
 0x3f4   : > { %v2902_v59 = vsel %vm2390_vm12, %v1902_v12, %v2646_v38  ;;  %v6745_v52 = vsel %vm6724_vm9, %v6680_v41, %v12485_v30  ;;  %v6746_v46 = vsel %vm6724_vm9, %v6681_v37, %v12486_v40 }
 0x3f5   : > { %3499 = vst.msk [vmem:[#allocation2 + $0x561] sm:$0xff] %vm3057_vm1, %v2902_v59  ;;  %v6810_v10 = vsel %vm6789_vm10, %v6745_v52, %v12490_v28  ;;  %v6811_v38 = vsel %vm6789_vm10, %v6746_v46, %v12491_v54  ;;  %v12495_v59 = vunpack.i.l.bf16 %v12494_v14  ;;  %v4597_v46 = vld [vmem:[#allocation2 + $0x541] ss:$2 sm:$0xff] }
 0x3f6   : > { %v6876_v30 = vsel %vm6854_vm14, %v6811_v38, %v12496_v24 }
 0x3f7   : > { %v1904_v26 = vpop.f32.mrf.mxu0  ;;  %v6875_v29 = vsel %vm6854_vm14, %v6810_v10, %v12495_v59 }
 0x3f8   : > { %v1905_v2 = vadd.f32 %v15279_v13, %v1904_v26 }
 0x3fa   : > { %vm2391_vm8 = vcmp.ge.f32.partialorder %v1905_v2, 0.0  ;;  %v2647_v36 = vmul.f32 0.01, %v1905_v2 }
 0x3fc   : > { %v2903_v47 = vsel %vm2391_vm8, %v1905_v2, %v2647_v36  ;;  %v4343_v55 = vld [vmem:[#allocation2 + $0x55a] ss:$2 sm:$0xff]  ;;  %v4215_v57 = vld [vmem:[#allocation2 + $0x559] ss:$2 sm:$0xff]  ;;  %v7503_v2 = vpop.f32.mrf.mxu2 }
 0x3fd   : > { %v4087_v1 = vld [vmem:[#allocation2 + $0x558] ss:$2 sm:$0xff]  ;;  %3500 = vst.msk [vmem:[#allocation2 + $0x571] sm:$0xff] %vm3057_vm1, %v2903_v47  ;;  %v12562_v6 = vpack.i.bf16 %v4343_v55, %v4341_v31  ;;  %v12557_v11 = vpack.i.bf16 %v4215_v57, %v4213_v44 }
 0x3fe   : > { %v12552_v9 = vpack.i.bf16 %v4087_v1, %v4085_v32  ;;  %v4725_v1 = vld [vmem:[#allocation2 + $0x542] ss:$2 sm:$0xff] }
 0x3ff   : > { %v1906_v12 = vpop.f32.mrf.mxu0  ;;  %12563 = vrot.lane.b32.xlu0 %v12562_v6, %s13388_s25  ;;  %12558 = vrot.lane.b32.xlu2 %v12557_v11, %s13390_s29 }
 0x400   : > { %v1907_v63 = vadd.f32 %v15279_v13, %v1906_v12  ;;  %12553 = vrot.lane.b32.xlu1 %v12552_v9, %s13389_s26 }
 0x401   : > { %v12504_v56 = vpop.permute.xlu1 %12503 }
 0x402   : > { %v12499_v20 = vpop.permute.xlu0 %12498  ;;  %vm2392_vm13 = vcmp.ge.f32.partialorder %v1907_v63, 0.0  ;;  %v2648_v17 = vmul.f32 0.01, %v1907_v63  ;;  %v12506_v26 = vunpack.i.h.bf16 %v12504_v56  ;;  %v12505_v27 = vunpack.i.l.bf16 %v12504_v56 }
 0x403   : > { %v12501_v23 = vunpack.i.h.bf16 %v12499_v20  ;;  %v12500_v25 = vunpack.i.l.bf16 %v12499_v20 }
 0x404   : > { %v2904_v40 = vsel %vm2392_vm13, %v1907_v63, %v2648_v17  ;;  %v7334_v39 = vpop.f32.mrf.mxu1  ;;  %v4469_v63 = vld [vmem:[#allocation2 + $0x540] ss:$2 sm:$0xff]  ;;  %v7505_v59 = vpop.f32.mrf.mxu2 }
 0x405   : > { %v6940_v36 = vsel %vm6919_vm15, %v6875_v29, %v12500_v25  ;;  %v6941_v41 = vsel %vm6919_vm15, %v6876_v30, %v12501_v23  ;;  %3501 = vst.msk [vmem:[#allocation2 + $0x579] sm:$0xff] %vm3057_vm1, %v2904_v40  ;;  %v7335_v37 = vadd.f32 %v15293_v43, %v7334_v39 }
 0x406   : > { %v7005_v31 = vsel %vm6984_vm3, %v6940_v36, %v12505_v27  ;;  %v7006_v44 = vsel %vm6984_vm3, %v6941_v41, %v12506_v26 }
 0x407   : > { %v7069_v32 = vpack.c.bf16 %v7006_v44, %v7005_v31  ;;  %v7504_v52 = vadd.f32 %v7503_v2, %v7335_v37  ;;  %v1909_v54 = vpop.f32.mrf.mxu0  ;;  %v8107_v44 = vld [vmem:[#allocation3 + $0x280] ss:$2 sm:$0xf] }
 0x408   : > { %v1910_v28 = vadd.f32 %v15279_v13, %v1909_v54 }
 0x409   : > { %7343 = vmatmul.bf16.gmra.mxu1 %v7069_v32  ;;  %vm7639_vm4 = vcmp.ge.f32.partialorder %v7504_v52, 0.0  ;;  %v7703_v47 = vmul.f32 0.01, %v7504_v52 }
 0x40a   : > { %vm2393_vm5 = vcmp.ge.f32.partialorder %v1910_v28, 0.0  ;;  %v2649_v55 = vmul.f32 0.01, %v1910_v28 }
 0x40b   : > { %v7767_v57 = vsel %vm7639_vm4, %v7504_v52, %v7703_v47 }
 0x40c   : > { %8027 = vst.msk [vmem:[#allocation3 + $0x151] sm:$0xff] %vm1255_vm0, %v7767_v57  ;;  %v2905_v6 = vsel %vm2393_vm5, %v1910_v28, %v2649_v55  ;;  %v7336_v11 = vpop.f32.mrf.mxu1  ;;  %v4727_v9 = vld [vmem:[#allocation2 + $0x572] ss:$2 sm:$0xff]  ;;  %v4599_v14 = vld [vmem:[#allocation2 + $0x571] ss:$2 sm:$0xff] }
 0x40d   : > { %3502 = vst.msk [vmem:[#allocation2 + $0x589] sm:$0xff] %vm3057_vm1, %v2905_v6  ;;  %v7337_v12 = vadd.f32 %v15293_v43, %v7336_v11  ;;  %v7074_v10 = vpack.c.bf16 %v4727_v9, %v4725_v1  ;;  %v12572_v38 = vpack.i.bf16 %v4599_v14, %v4597_v46  ;;  %v4471_v24 = vld [vmem:[#allocation2 + $0x570] ss:$2 sm:$0xff]  ;;  %v3834_v1 = vld [vmem:[#allocation2 + $0x571] ss:$2 sm:$0xff] }
 0x40e   : > { %v12567_v20 = vpack.i.bf16 %v4471_v24, %v4469_v63  ;;  %v4731_v55 = vld [vmem:[#allocation2 + $0x5d2] ss:$2 sm:$0xff] }
 0x40f   : > { %v7506_v17 = vadd.f32 %v7505_v59, %v7337_v12  ;;  %v1911_v23 = vpop.f32.mrf.mxu0  ;;  %11720 = vmatmul.msk.bf16.gmra.mxu2 %vm3057_vm1, %v7074_v10  ;;  %12573 = vrot.lane.b32.xlu2 %v12572_v38, %s13391_s30  ;;  %v3962_v57 = vld [vmem:[#allocation2 + $0x572] ss:$2 sm:$0xff]  ;;  %v12509_v38 = vpop.permute.xlu2 %12508 }
 0x410   : > { %v1912_v25 = vadd.f32 %v15279_v13, %v1911_v23  ;;  %12568 = vrot.lane.b32.xlu1 %v12567_v20, %s13392_s10  ;;  %v12511_v23 = vunpack.i.h.bf16 %v12509_v38 }
 0x411   : > { %vm7640_vm6 = vcmp.ge.f32.partialorder %v7506_v17, 0.0  ;;  %v7704_v56 = vmul.f32 0.01, %v7506_v17 }
 0x412   : > { %vm2394_vm7 = vcmp.ge.f32.partialorder %v1912_v25, 0.0  ;;  %v2650_v26 = vmul.f32 0.01, %v1912_v25 }
 0x413   : > { %v7768_v27 = vsel %vm7640_vm6, %v7506_v17, %v7704_v56  ;;  %v12510_v17 = vunpack.i.l.bf16 %v12509_v38 }
 0x414   : > { %8028 = vst.msk [vmem:[#allocation3 + $0x161] sm:$0xff] %vm1255_vm0, %v7768_v27  ;;  %v2906_v29 = vsel %vm2394_vm7, %v1912_v25, %v2650_v26 }
 0x415   : > { %3503 = vst.msk [vmem:[#allocation2 + $0x591] sm:$0xff] %vm3057_vm1, %v2906_v29  ;;  %v3698_v29 = vld [vmem:[#allocation2 + $0x480] ss:$2 sm:$0xff] }
 0x417   : > { %v1914_v30 = vpop.f32.mrf.mxu0 }
 0x418   : > { %v1915_v2 = vadd.f32 %v15279_v13, %v1914_v30 }
 0x419   : > { %v12519_v30 = vpop.permute.xlu2 %12518 }
 0x41a   : > { %vm2395_vm11 = vcmp.ge.f32.partialorder %v1915_v2, 0.0  ;;  %v2651_v40 = vmul.f32 0.01, %v1915_v2 }
 0x41b   : > { %v8093_v39 = vld [vmem:[#allocation3 + $0x160] ss:$2 sm:$0xf] }
 0x41c   : > { %v2907_v36 = vsel %vm2395_vm11, %v1915_v2, %v2651_v40  ;;  %8701 = vst [vmem:[#allocation1 + $0x1] ss:$2 sm:$0xff] %v8093_v39  ;;  %v3700_v2 = vld [vmem:[#allocation2 + $0x4b0] ss:$2 sm:$0xff]  ;;  %v6618_v40 = vsel %vm3057_vm1, %v3698_v29, %v12510_v17 }
 0x41d   : > { %3504 = vst.msk [vmem:[#allocation2 + $0x5a1] sm:$0xff] %vm3057_vm1, %v2907_v36 }
 0x41f   : > { %v1916_v41 = vpop.f32.mrf.mxu0 }
 0x420   : > { %v1917_v37 = vadd.f32 %v15279_v13, %v1916_v41  ;;  %v4733_v41 = vld [vmem:[#allocation2 + $0x602] ss:$2 sm:$0xff] }
 0x421   : > { %v12514_v59 = vpop.permute.xlu1 %12513 }
 0x422   : > { %vm2396_vm2 = vcmp.ge.f32.partialorder %v1917_v37, 0.0  ;;  %v2652_v31 = vmul.f32 0.01, %v1917_v37  ;;  %v12515_v25 = vunpack.i.l.bf16 %v12514_v59  ;;  %v12516_v26 = vunpack.i.h.bf16 %v12514_v59 }
 0x423   : > { %v15353_v52 = vld.sshfl [vmem:[#allocation1] sm:$0xff pattern:$0x75316420] }
 0x424   : > { %v2908_v32 = vsel %vm2396_vm2, %v1917_v37, %v2652_v31  ;;  %16994 = vst [vmem:[#allocation5_spill] sm:$0xff] %v15353_v52  ;;  %v6682_v39 = vsel %vm1255_vm0, %v6618_v40, %v12515_v25  ;;  %v4735_v37 = vld [vmem:[#allocation2 + $0x632] ss:$2 sm:$0xff]  ;;  %v12520_v31 = vunpack.i.l.bf16 %v12519_v30 }
 0x425   : > { %3505 = vst.msk [vmem:[#allocation2 + $0x5a9] sm:$0xff] %vm3057_vm1, %v2908_v32  ;;  %v4093_v40 = vld [vmem:[#allocation2 + $0x5e8] ss:$2 sm:$0xff] }
 0x426   : > { %8712 = vst [vmem:[#allocation1] ss:$2 sm:$0xff] %v8107_v44 }
 0x427   : > { %v1919_v54 = vpop.f32.mrf.mxu0 }
 0x428   : > { %v1920_v28 = vadd.f32 %v15279_v13, %v1919_v54 }
 0x42a   : > { %vm2397_vm12 = vcmp.ge.f32.partialorder %v1920_v28, 0.0  ;;  %v2653_v47 = vmul.f32 0.01, %v1920_v28  ;;  %v12534_v17 = vpop.permute.xlu2 %12533 }
 0x42c   : > { %v2909_v46 = vsel %vm2397_vm12, %v1920_v28, %v2653_v47  ;;  %v4729_v6 = vld [vmem:[#allocation2 + $0x5a2] ss:$2 sm:$0xff]  ;;  %v3836_v9 = vld [vmem:[#allocation2 + $0x5a1] ss:$2 sm:$0xff]  ;;  %v12521_v28 = vunpack.i.h.bf16 %v12519_v30  ;;  %v6747_v47 = vsel %vm6724_vm9, %v6682_v39, %v12520_v31 }
 0x42d   : > { %v3964_v11 = vld [vmem:[#allocation2 + $0x5a2] ss:$2 sm:$0xff]  ;;  %3506 = vst.msk [vmem:[#allocation2 + $0x5b9] sm:$0xff] %vm3057_vm1, %v2909_v46  ;;  %v7076_v14 = vpack.c.bf16 %v4731_v55, %v4729_v6  ;;  %v12577_v10 = vpack.i.bf16 %v3836_v9, %v3834_v1  ;;  %v7078_v55 = vpack.c.bf16 %v4735_v37, %v4733_v41  ;;  %v4217_v46 = vld [vmem:[#allocation2 + $0x589] ss:$2 sm:$0xff] }
 0x42e   : > { %v12582_v12 = vpack.i.bf16 %v3964_v11, %v3962_v57  ;;  %v4089_v57 = vld [vmem:[#allocation2 + $0x588] ss:$2 sm:$0xff]  ;;  %v4601_v39 = vld [vmem:[#allocation2 + $0x5a1] ss:$2 sm:$0xff] }
 0x42f   : > { %v1921_v63 = vpop.f32.mrf.mxu0  ;;  %11721 = vmatmul.msk.bf16.gmra.mxu2 %vm3057_vm1, %v7076_v14  ;;  %12578 = vrot.lane.b32.xlu1 %v12577_v10, %s13386_s23  ;;  %v4345_v1 = vld [vmem:[#allocation2 + $0x58a] ss:$2 sm:$0xff] }
 0x430   : > { %12583 = vrot.lane.b32.xlu0 %v12582_v12, %s13387_s24  ;;  %v1922_v24 = vadd.f32 %v15279_v13, %v1921_v63  ;;  %v6619_v13 = vsel %vm3057_vm1, %v3700_v2, %v12511_v23  ;;  %v4473_v2 = vld [vmem:[#allocation2 + $0x5a0] ss:$2 sm:$0xff]  ;;  %v4475_v37 = vld [vmem:[#allocation2 + $0x5d0] ss:$2 sm:$0xff] }
 0x431   : > { %v12524_v27 = vpop.permute.xlu0 %12523  ;;  %v6683_v44 = vsel %vm1255_vm0, %v6619_v13, %v12516_v26  ;;  %v12535_v26 = vunpack.i.l.bf16 %v12534_v17  ;;  %v4095_v13 = vld [vmem:[#allocation2 + $0x618] ss:$2 sm:$0xff] }
 0x432   : > { %vm2398_vm8 = vcmp.ge.f32.partialorder %v1922_v24, 0.0  ;;  %v2654_v20 = vmul.f32 0.01, %v1922_v24  ;;  %v12525_v36 = vunpack.i.l.bf16 %v12524_v27  ;;  %v12526_v32 = vunpack.i.h.bf16 %v12524_v27  ;;  %v12529_v54 = vpop.permute.xlu1 %12528 }
 0x433   : > { %v6748_v6 = vsel %vm6724_vm9, %v6683_v44, %v12521_v28  ;;  %v12531_v9 = vunpack.i.h.bf16 %v12529_v54  ;;  %v12530_v14 = vunpack.i.l.bf16 %v12529_v54  ;;  %v4603_v54 = vld [vmem:[#allocation2 + $0x5d1] ss:$2 sm:$0xff] }
 0x434   : > { %v2910_v56 = vsel %vm2398_vm8, %v1922_v24, %v2654_v20  ;;  %v6812_v11 = vsel %vm6789_vm10, %v6747_v47, %v12525_v36  ;;  %v6813_v63 = vsel %vm6789_vm10, %v6748_v6, %v12526_v32  ;;  %v12602_v32 = vpack.i.bf16 %v4475_v37, %v4473_v2  ;;  %v7508_v47 = vpop.f32.mrf.mxu2  ;;  %v4221_v6 = vld [vmem:[#allocation2 + $0x5e9] ss:$2 sm:$0xff]  ;;  %v4099_v37 = vld [vmem:[#allocation2 + $0x678] ss:$2 sm:$0xff] }
 0x435   : > { %3507 = vst.msk [vmem:[#allocation2 + $0x5c1] sm:$0xff] %vm3057_vm1, %v2910_v56  ;;  %v6877_v23 = vsel %vm6854_vm14, %v6812_v11, %v12530_v14  ;;  %v6878_v25 = vsel %vm6854_vm14, %v6813_v63, %v12531_v9  ;;  %v12536_v56 = vunpack.i.h.bf16 %v12534_v17  ;;  %v4223_v9 = vld [vmem:[#allocation2 + $0x619] ss:$2 sm:$0xff]  ;;  %v4349_v14 = vld [vmem:[#allocation2 + $0x5ea] ss:$2 sm:$0xff] }
 0x436   : > { %v6942_v36 = vsel %vm6919_vm15, %v6877_v23, %v12535_v26  ;;  %v4477_v63 = vld [vmem:[#allocation2 + $0x600] ss:$2 sm:$0xff]  ;;  %v12617_v23 = vpack.i.bf16 %v4223_v9, %v4221_v6  ;;  %v4605_v2 = vld [vmem:[#allocation2 + $0x601] ss:$2 sm:$0xff] }
 0x437   : > { %v6943_v41 = vsel %vm6919_vm15, %v6878_v25, %v12536_v56  ;;  %v4481_v6 = vld [vmem:[#allocation2 + $0x660] ss:$2 sm:$0xff] }
 0x43c   : > { %v4091_v12 = vld [vmem:[#allocation2 + $0x5b8] ss:$2 sm:$0xff]  ;;  %v4219_v38 = vld [vmem:[#allocation2 + $0x5b9] ss:$2 sm:$0xff] }
 0x43d   : > { %v4347_v10 = vld [vmem:[#allocation2 + $0x5ba] ss:$2 sm:$0xff]  ;;  %v12587_v24 = vpack.i.bf16 %v4091_v12, %v4089_v57  ;;  %v12592_v20 = vpack.i.bf16 %v4219_v38, %v4217_v46  ;;  %v12612_v57 = vpack.i.bf16 %v4095_v13, %v4093_v40  ;;  %v4607_v40 = vld [vmem:[#allocation2 + $0x631] ss:$2 sm:$0xff] }
 0x43e   : > { %v12597_v59 = vpack.i.bf16 %v4347_v10, %v4345_v1  ;;  %v12607_v1 = vpack.i.bf16 %v4603_v54, %v4601_v39  ;;  %v4351_v12 = vld [vmem:[#allocation2 + $0x61a] ss:$2 sm:$0xff]  ;;  %v4225_v13 = vld [vmem:[#allocation2 + $0x649] ss:$2 sm:$0xff]  ;;  %v4227_v39 = vld [vmem:[#allocation2 + $0x679] ss:$2 sm:$0xff] }
 0x43f   : > { %11722 = vmatmul.msk.bf16.gmra.mxu2 %vm3057_vm1, %v7078_v55  ;;  %12588 = vrot.lane.b32.xlu0 %v12587_v24, %s13389_s26  ;;  %v4737_v10 = vld [vmem:[#allocation2 + $0x662] ss:$2 sm:$0xff]  ;;  %v4739_v38 = vld [vmem:[#allocation2 + $0x692] ss:$2 sm:$0xff]  ;;  %v12622_v26 = vpack.i.bf16 %v4351_v12, %v4349_v14 }
 0x440   : > { %12598 = vrot.lane.b32.xlu2 %v12597_v59, %s13388_s25  ;;  %12593 = vrot.lane.b32.xlu1 %v12592_v20, %s13390_s29  ;;  %v4479_v59 = vld [vmem:[#allocation2 + $0x630] ss:$2 sm:$0xff]  ;;  %v7080_v17 = vpack.c.bf16 %v4739_v38, %v4737_v10 }
 0x441   : > { %v12539_v27 = vpop.permute.xlu0 %12538  ;;  %v12627_v56 = vpack.i.bf16 %v4479_v59, %v4477_v63  ;;  %v15395_v63 = vld.sshfl [vmem:[#allocation1 + $0x10] sm:$0xff pattern:$0x75316420] }
 0x442   : > { %v12541_v29 = vunpack.i.h.bf16 %v12539_v27  ;;  %v12540_v30 = vunpack.i.l.bf16 %v12539_v27  ;;  %v4103_v59 = vld [vmem:[#allocation2 + $0x708] ss:$2 sm:$0xff] }
 0x444   : > { %v7007_v31 = vsel %vm6984_vm3, %v6942_v36, %v12540_v30  ;;  %v7008_v44 = vsel %vm6984_vm3, %v6943_v41, %v12541_v29  ;;  %v7510_v29 = vpop.f32.mrf.mxu2  ;;  %v4097_v36 = vld [vmem:[#allocation2 + $0x648] ss:$2 sm:$0xff] }
 0x445   : > { %v7071_v28 = vpack.c.bf16 %v7008_v44, %v7007_v31  ;;  %v12632_v44 = vpack.i.bf16 %v4607_v40, %v4605_v2  ;;  %v12637_v54 = vpack.i.bf16 %v4099_v37, %v4097_v36  ;;  %v4745_v2 = vld [vmem:[#allocation2 + $0x752] ss:$2 sm:$0xff]  ;;  %v4747_v40 = vld [vmem:[#allocation2 + $0x782] ss:$2 sm:$0xff] }
 0x446   : > { %v7339_v55 = vpop.f32.mrf.mxu1  ;;  %v4107_v36 = vld [vmem:[#allocation2 + $0x768] ss:$2 sm:$0xff]  ;;  %v7084_v37 = vpack.c.bf16 %v4747_v40, %v4745_v2  ;;  %v4237_v2 = vld [vmem:[#allocation2 + $0x799] ss:$2 sm:$0xff] }
 0x447   : > { %v7340_v46 = vadd.f32 %v15293_v43, %v7339_v55  ;;  %12603 = vrot.lane.b32.xlu0 %v12602_v32, %s13392_s10  ;;  %7348 = vmatmul.bf16.gmra.mxu1 %v7071_v28  ;;  %v12642_v32 = vpack.i.bf16 %v4227_v39, %v4225_v13  ;;  %v4353_v28 = vld [vmem:[#allocation2 + $0x64a] ss:$2 sm:$0xff]  ;;  %v4613_v13 = vld [vmem:[#allocation2 + $0x6f1] ss:$2 sm:$0xff] }
 0x448   : > { %12613 = vrot.lane.b32.xlu2 %v12612_v57, %s13389_s26  ;;  %12608 = vrot.lane.b32.xlu1 %v12607_v1, %s13391_s30  ;;  %v4741_v55 = vld [vmem:[#allocation2 + $0x6f2] ss:$2 sm:$0xff]  ;;  %v4743_v57 = vld [vmem:[#allocation2 + $0x722] ss:$2 sm:$0xff]  ;;  %v4609_v1 = vld [vmem:[#allocation2 + $0x661] ss:$2 sm:$0xff] }
 0x449   : > { %v7509_v11 = vadd.f32 %v7508_v47, %v7340_v46  ;;  %v4355_v47 = vld [vmem:[#allocation2 + $0x67a] ss:$2 sm:$0xff]  ;;  %v4611_v46 = vld [vmem:[#allocation2 + $0x691] ss:$2 sm:$0xff]  ;;  %v7082_v14 = vpack.c.bf16 %v4743_v57, %v4741_v55 }
 0x44a   : > { %v12647_v12 = vpack.i.bf16 %v4355_v47, %v4353_v28  ;;  %v12657_v10 = vpack.i.bf16 %v4611_v46, %v4609_v1  ;;  %v4105_v39 = vld [vmem:[#allocation2 + $0x738] ss:$2 sm:$0xff]  ;;  %v4233_v28 = vld [vmem:[#allocation2 + $0x739] ss:$2 sm:$0xff]  ;;  %v4235_v47 = vld [vmem:[#allocation2 + $0x769] ss:$2 sm:$0xff] }
 0x44b   : > { %vm7641_vm13 = vcmp.ge.f32.partialorder %v7509_v11, 0.0  ;;  %v7705_v24 = vmul.f32 0.01, %v7509_v11  ;;  %v4361_v55 = vld [vmem:[#allocation2 + $0x73a] ss:$2 sm:$0xff] }
 0x44c   : > { %v4489_v1 = vld [vmem:[#allocation2 + $0x750] ss:$2 sm:$0xff]  ;;  %v4491_v46 = vld [vmem:[#allocation2 + $0x780] ss:$2 sm:$0xff] }
 0x44d   : > { %v7769_v20 = vsel %vm7641_vm13, %v7509_v11, %v7705_v24  ;;  %v4483_v11 = vld [vmem:[#allocation2 + $0x690] ss:$2 sm:$0xff] }
 0x44e   : > { %8029 = vst.msk [vmem:[#allocation3 + $0x171] sm:$0xff] %vm1255_vm0, %v7769_v20  ;;  %v7341_v25 = vpop.f32.mrf.mxu1  ;;  %v12652_v38 = vpack.i.bf16 %v4483_v11, %v4481_v6  ;;  %v4101_v24 = vld [vmem:[#allocation2 + $0x6d8] ss:$2 sm:$0xff]  ;;  %v12692_v11 = vpack.i.bf16 %v4235_v47, %v4233_v28 }
 0x44f   : > { %v7342_v27 = vadd.f32 %v15293_v43, %v7341_v25  ;;  %11723 = vmatmul.msk.bf16.gmra.mxu2 %vm3057_vm1, %v7080_v17  ;;  %12618 = vrot.lane.b32.xlu0 %v12617_v23, %s13390_s29  ;;  %v4357_v20 = vld [vmem:[#allocation2 + $0x6da] ss:$2 sm:$0xff]  ;;  %v4359_v17 = vld [vmem:[#allocation2 + $0x70a] ss:$2 sm:$0xff]  ;;  %v4229_v23 = vld [vmem:[#allocation2 + $0x6d9] ss:$2 sm:$0xff] }
 0x450   : > { %12628 = vrot.lane.b32.xlu2 %v12627_v56, %s13392_s10  ;;  %12623 = vrot.lane.b32.xlu1 %v12622_v26, %s13388_s25  ;;  %v4231_v25 = vld [vmem:[#allocation2 + $0x709] ss:$2 sm:$0xff]  ;;  %v12662_v56 = vpack.i.bf16 %v4103_v59, %v4101_v24  ;;  %v12672_v26 = vpack.i.bf16 %v4359_v17, %v4357_v20  ;;  %v4363_v6 = vld [vmem:[#allocation2 + $0x76a] ss:$2 sm:$0xff] }
 0x451   : > { %v7511_v30 = vadd.f32 %v7510_v29, %v7342_v27  ;;  %v12667_v27 = vpack.i.bf16 %v4231_v25, %v4229_v23  ;;  %v4485_v29 = vld [vmem:[#allocation2 + $0x6f0] ss:$2 sm:$0xff]  ;;  %v3704_v20 = vld [vmem:[#allocation2 + $0x540] ss:$2 sm:$0xff] }
 0x452   : > { %v4749_v17 = vld [vmem:[#allocation2 + $0x7b2] ss:$2 sm:$0xff]  ;;  %v4751_v23 = vld [vmem:[#allocation2 + $0x7e2] ss:$2 sm:$0xff] }
 0x453   : > { %vm7642_vm4 = vcmp.ge.f32.partialorder %v7511_v30, 0.0  ;;  %v7706_v41 = vmul.f32 0.01, %v7511_v30 }
 0x455   : > { %v7770_v31 = vsel %vm7642_vm4, %v7511_v30, %v7706_v41  ;;  %v4487_v30 = vld [vmem:[#allocation2 + $0x720] ss:$2 sm:$0xff]  ;;  %v4615_v41 = vld [vmem:[#allocation2 + $0x721] ss:$2 sm:$0xff] }
 0x456   : > { %8030 = vst.msk [vmem:[#allocation3 + $0x181] sm:$0xff] %vm1255_vm0, %v7770_v31  ;;  %v12677_v31 = vpack.i.bf16 %v4487_v30, %v4485_v29  ;;  %v4617_v29 = vld [vmem:[#allocation2 + $0x751] ss:$2 sm:$0xff]  ;;  %v4619_v30 = vld [vmem:[#allocation2 + $0x781] ss:$2 sm:$0xff] }
 0x457   : > { %12633 = vrot.lane.b32.xlu0 %v12632_v44, %s13391_s30  ;;  %v12687_v44 = vpack.i.bf16 %v4107_v36, %v4105_v39  ;;  %v4239_v39 = vld [vmem:[#allocation2 + $0x7c9] ss:$2 sm:$0xff]  ;;  %v4109_v36 = vld [vmem:[#allocation2 + $0x798] ss:$2 sm:$0xff] }
 0x458   : > { %12643 = vrot.lane.b32.xlu2 %v12642_v32, %s13390_s29  ;;  %12638 = vrot.lane.b32.xlu1 %v12637_v54, %s13389_s26  ;;  %v12682_v32 = vpack.i.bf16 %v4615_v41, %v4613_v13  ;;  %v12549_v54 = vpop.permute.xlu2 %12548  ;;  %v4111_v41 = vld [vmem:[#allocation2 + $0x7c8] ss:$2 sm:$0xff] }
 0x459   : > { %v12551_v40 = vunpack.i.h.bf16 %v12549_v54  ;;  %v12550_v13 = vunpack.i.l.bf16 %v12549_v54 }
 0x45d   : > { %v8095_v9 = vld [vmem:[#allocation3 + $0x180] ss:$2 sm:$0xf] }
 0x45e   : > { %8702 = vst [vmem:[#allocation1 + $0x10] ss:$2 sm:$0xff] %v8095_v9 }
 0x45f   : > { %11724 = vmatmul.msk.bf16.gmra.mxu2 %vm3057_vm1, %v7082_v14  ;;  %12648 = vrot.lane.b32.xlu0 %v12647_v12, %s13388_s25  ;;  %v12702_v12 = vpack.i.bf16 %v4491_v46, %v4489_v1 }
 0x460   : > { %12658 = vrot.lane.b32.xlu2 %v12657_v10, %s13391_s30  ;;  %12653 = vrot.lane.b32.xlu1 %v12652_v38, %s13392_s10  ;;  %v12697_v10 = vpack.i.bf16 %v4363_v6, %v4361_v55  ;;  %v3702_v38 = vld [vmem:[#allocation2 + $0x510] ss:$2 sm:$0xff]  ;;  %v12559_v59 = vpop.permute.xlu2 %12558  ;;  %v12717_v55 = vpack.i.bf16 %v4239_v39, %v4237_v2  ;;  %v7513_v2 = vpop.f32.mrf.mxu2 }
 0x461   : > { %v12544_v57 = vpop.permute.xlu0 %12543  ;;  %v12561_v1 = vunpack.i.h.bf16 %v12559_v59  ;;  %v12560_v46 = vunpack.i.l.bf16 %v12559_v59  ;;  %v4367_v59 = vld [vmem:[#allocation2 + $0x7ca] ss:$2 sm:$0xff] }
 0x462   : > { %v12546_v9 = vunpack.i.h.bf16 %v12544_v57  ;;  %v12545_v14 = vunpack.i.l.bf16 %v12544_v57  ;;  %v12712_v57 = vpack.i.bf16 %v4111_v41, %v4109_v36 }
 0x464   : > { %v6621_v25 = vsel %vm3057_vm1, %v3704_v20, %v12546_v9  ;;  %v4623_v20 = vld [vmem:[#allocation2 + $0x7e1] ss:$2 sm:$0xff] }
 0x467   : > { %12663 = vrot.lane.b32.xlu0 %v12662_v56, %s13389_s26  ;;  %v6620_v56 = vsel %vm3057_vm1, %v3702_v38, %v12545_v14  ;;  %v4621_v14 = vld [vmem:[#allocation2 + $0x7b1] ss:$2 sm:$0xff] }
 0x468   : > { %12673 = vrot.lane.b32.xlu2 %v12672_v26, %s13388_s25  ;;  %12668 = vrot.lane.b32.xlu1 %v12667_v27, %s13390_s29  ;;  %v12732_v39 = vpack.i.bf16 %v4623_v20, %v4621_v14  ;;  %v4243_v14 = vld [vmem:[#allocation2 + $0x829] ss:$2 sm:$0xff] }
 0x469   : > { %v12574_v54 = vpop.permute.xlu2 %12573 }
 0x46f   : > { %11725 = vmatmul.msk.bf16.gmra.mxu2 %vm3057_vm1, %v7084_v37  ;;  %12678 = vrot.lane.b32.xlu0 %v12677_v31, %s13392_s10  ;;  %v6684_v37 = vsel %vm1255_vm0, %v6620_v56, %v12550_v13  ;;  %v6685_v31 = vsel %vm1255_vm0, %v6621_v25, %v12551_v40  ;;  %v4493_v25 = vld [vmem:[#allocation2 + $0x7b0] ss:$2 sm:$0xff]  ;;  %v4495_v56 = vld [vmem:[#allocation2 + $0x7e0] ss:$2 sm:$0xff] }
 0x470   : > { %12688 = vrot.lane.b32.xlu2 %v12687_v44, %s13389_s26  ;;  %12683 = vrot.lane.b32.xlu1 %v12682_v32, %s13391_s30  ;;  %v7086_v44 = vpack.c.bf16 %v4751_v23, %v4749_v17  ;;  %v12707_v32 = vpack.i.bf16 %v4619_v30, %v4617_v29 }
 0x471   : > { %v12564_v6 = vpop.permute.xlu0 %12563 }
 0x472   : > { %v12554_v24 = vpop.permute.xlu1 %12553 }
 0x473   : > { %v12556_v26 = vunpack.i.h.bf16 %v12554_v24  ;;  %v12555_v27 = vunpack.i.l.bf16 %v12554_v24  ;;  %v4365_v24 = vld [vmem:[#allocation2 + $0x79a] ss:$2 sm:$0xff] }
 0x474   : > { %v12722_v13 = vpack.i.bf16 %v4367_v59, %v4365_v24 }
 0x475   : > { %v6750_v28 = vsel %vm6724_vm9, %v6685_v31, %v12556_v26  ;;  %v6749_v47 = vsel %vm6724_vm9, %v6684_v37, %v12555_v27  ;;  %v12576_v26 = vunpack.i.h.bf16 %v12574_v54  ;;  %v12575_v27 = vunpack.i.l.bf16 %v12574_v54  ;;  %v4755_v54 = vld [vmem:[#allocation2 + $0x842] ss:$2 sm:$0xff] }
 0x476   : > { %v6814_v9 = vsel %vm6789_vm10, %v6749_v47, %v12560_v46  ;;  %v12727_v31 = vpack.i.bf16 %v4495_v56, %v4493_v25  ;;  %v4369_v46 = vld [vmem:[#allocation2 + $0x7fa] ss:$2 sm:$0xff] }
 0x477   : > { %12693 = vrot.lane.b32.xlu0 %v12692_v11, %s13390_s29  ;;  %v6815_v11 = vsel %vm6789_vm10, %v6750_v28, %v12561_v1  ;;  %v4115_v1 = vld [vmem:[#allocation2 + $0x828] ss:$2 sm:$0xff] }
 0x478   : > { %12703 = vrot.lane.b32.xlu2 %v12702_v12, %s13392_s10  ;;  %12698 = vrot.lane.b32.xlu1 %v12697_v10, %s13388_s25  ;;  %v12566_v12 = vunpack.i.h.bf16 %v12564_v6  ;;  %v12565_v10 = vunpack.i.l.bf16 %v12564_v6  ;;  %v4497_v56 = vld [vmem:[#allocation2 + $0x810] ss:$2 sm:$0xff] }
 0x47a   : > { %v6879_v29 = vsel %vm6854_vm14, %v6814_v9, %v12565_v10  ;;  %v6880_v30 = vsel %vm6854_vm14, %v6815_v11, %v12566_v12  ;;  %v4371_v11 = vld [vmem:[#allocation2 + $0x82a] ss:$2 sm:$0xff]  ;;  %v4241_v9 = vld [vmem:[#allocation2 + $0x7f9] ss:$2 sm:$0xff] }
 0x47b   : > { %v12747_v20 = vpack.i.bf16 %v4371_v11, %v4369_v46 }
 0x47f   : > { %11726 = vmatmul.msk.bf16.gmra.mxu2 %vm3057_vm1, %v7086_v44  ;;  %12708 = vrot.lane.b32.xlu0 %v12707_v32, %s13391_s30 }
 0x480   : > { %12718 = vrot.lane.b32.xlu2 %v12717_v55, %s13390_s29  ;;  %12713 = vrot.lane.b32.xlu1 %v12712_v57, %s13389_s26  ;;  %v4113_v55 = vld [vmem:[#allocation2 + $0x7f8] ss:$2 sm:$0xff] }
 0x481   : > { %v4753_v57 = vld [vmem:[#allocation2 + $0x812] ss:$2 sm:$0xff]  ;;  %v12737_v24 = vpack.i.bf16 %v4115_v1, %v4113_v55  ;;  %v4245_v55 = vld [vmem:[#allocation2 + $0x889] ss:$2 sm:$0xff] }
 0x482   : > { %v12569_v38 = vpop.permute.xlu1 %12568 }
 0x483   : > { %v12571_v17 = vunpack.i.h.bf16 %v12569_v38  ;;  %v12570_v23 = vunpack.i.l.bf16 %v12569_v38  ;;  %v7088_v38 = vpack.c.bf16 %v4755_v54, %v4753_v57  ;;  %v4247_v57 = vld [vmem:[#allocation2 + $0x8b9] ss:$2 sm:$0xff] }
 0x484   : > { %v12772_v11 = vpack.i.bf16 %v4247_v57, %v4245_v55 }
 0x485   : > { %v6944_v36 = vsel %vm6919_vm15, %v6879_v29, %v12570_v23  ;;  %v6945_v41 = vsel %vm6919_vm15, %v6880_v30, %v12571_v17  ;;  %v12742_v17 = vpack.i.bf16 %v4243_v14, %v4241_v9  ;;  %v7515_v23 = vpop.f32.mrf.mxu2  ;;  %v4625_v29 = vld [vmem:[#allocation2 + $0x811] ss:$2 sm:$0xff]  ;;  %v3990_v30 = vld [vmem:[#allocation2 + $0x872] ss:$2 sm:$0xff] }
 0x486   : > { %v7344_v40 = vpop.f32.mrf.mxu1  ;;  %v7009_v44 = vsel %vm6984_vm3, %v6944_v36, %v12575_v27  ;;  %v7010_v32 = vsel %vm6984_vm3, %v6945_v41, %v12576_v26  ;;  %v4499_v26 = vld [vmem:[#allocation2 + $0x840] ss:$2 sm:$0xff] }
 0x487   : > { %v7345_v37 = vadd.f32 %v15293_v43, %v7344_v40  ;;  %12723 = vrot.lane.b32.xlu0 %v12722_v13, %s13388_s25  ;;  %v7073_v28 = vpack.c.bf16 %v7010_v32, %v7009_v44  ;;  %v12752_v13 = vpack.i.bf16 %v4499_v26, %v4497_v56  ;;  %v4117_v41 = vld [vmem:[#allocation2 + $0x888] ss:$2 sm:$0xff] }
 0x488   : > { %12733 = vrot.lane.b32.xlu2 %v12732_v39, %s13391_s30  ;;  %12728 = vrot.lane.b32.xlu1 %v12727_v31, %s13392_s10  ;;  %v4757_v44 = vld [vmem:[#allocation2 + $0x8a2] ss:$2 sm:$0xff]  ;;  %v4759_v32 = vld [vmem:[#allocation2 + $0x8d2] ss:$2 sm:$0xff] }
 0x489   : > { %v7514_v47 = vadd.f32 %v7513_v2, %v7345_v37  ;;  %7353 = vmatmul.bf16.gmra.mxu1 %v7073_v28  ;;  %v3992_v2 = vld [vmem:[#allocation2 + $0x8a2] ss:$2 sm:$0xff]  ;;  %v7090_v46 = vpack.c.bf16 %v4759_v32, %v4757_v44 }
 0x48a   : > { %v12762_v39 = vpack.i.bf16 %v3992_v2, %v3990_v30  ;;  %v4119_v37 = vld [vmem:[#allocation2 + $0x8b8] ss:$2 sm:$0xff]  ;;  %v4121_v26 = vld [vmem:[#allocation2 + $0x8e8] ss:$2 sm:$0xff] }
 0x48b   : > { %vm7643_vm5 = vcmp.ge.f32.partialorder %v7514_v47, 0.0  ;;  %v7707_v6 = vmul.f32 0.01, %v7514_v47  ;;  %v4373_v28 = vld [vmem:[#allocation2 + $0x88a] ss:$2 sm:$0xff] }
 0x48c   : > { %v4501_v14 = vld [vmem:[#allocation2 + $0x8a0] ss:$2 sm:$0xff] }
 0x48d   : > { %v7771_v12 = vsel %vm7643_vm5, %v7514_v47, %v7707_v6  ;;  %v4375_v47 = vld [vmem:[#allocation2 + $0x8ba] ss:$2 sm:$0xff]  ;;  %v12767_v6 = vpack.i.bf16 %v4119_v37, %v4117_v41 }
 0x48e   : > { %8031 = vst.msk [vmem:[#allocation3 + $0x191] sm:$0xff] %vm1255_vm0, %v7771_v12  ;;  %v7346_v10 = vpop.f32.mrf.mxu1  ;;  %v12777_v54 = vpack.i.bf16 %v4375_v47, %v4373_v28  ;;  %v4503_v12 = vld [vmem:[#allocation2 + $0x8d0] ss:$2 sm:$0xff] }
 0x48f   : > { %v7347_v59 = vadd.f32 %v15293_v43, %v7346_v10  ;;  %11727 = vmatmul.msk.bf16.gmra.mxu2 %vm3057_vm1, %v7088_v38  ;;  %12738 = vrot.lane.b32.xlu0 %v12737_v24, %s13389_s26  ;;  %v4627_v43 = vld [vmem:[#allocation2 + $0x841] ss:$2 sm:$0xff]  ;;  %v3994_v38 = vld [vmem:[#allocation2 + $0x8d2] ss:$2 sm:$0xff]  ;;  %v3996_v24 = vld [vmem:[#allocation2 + $0x902] ss:$2 sm:$0xff] }
 0x490   : > { %12748 = vrot.lane.b32.xlu2 %v12747_v20, %s13388_s25  ;;  %12743 = vrot.lane.b32.xlu1 %v12742_v17, %s13390_s29  ;;  %v12757_v36 = vpack.i.bf16 %v4627_v43, %v4625_v29  ;;  %v4629_v10 = vld [vmem:[#allocation2 + $0x8a1] ss:$2 sm:$0xff]  ;;  %v12782_v20 = vpack.i.bf16 %v4503_v12, %v4501_v14  ;;  %v12792_v17 = vpack.i.bf16 %v3996_v24, %v3994_v38  ;;  %v4761_v2 = vld [vmem:[#allocation2 + $0x902] ss:$2 sm:$0xff]  ;;  %v4763_v43 = vld [vmem:[#allocation2 + $0x932] ss:$2 sm:$0xff] }
 0x491   : > { %v7516_v25 = vadd.f32 %v7515_v23, %v7347_v59  ;;  %v4631_v59 = vld [vmem:[#allocation2 + $0x8d1] ss:$2 sm:$0xff]  ;;  %v7092_v44 = vpack.c.bf16 %v4763_v43, %v4761_v2  ;;  %v4505_v24 = vld [vmem:[#allocation2 + $0x900] ss:$2 sm:$0xff] }
 0x492   : > { %v12787_v23 = vpack.i.bf16 %v4631_v59, %v4629_v10  ;;  %v4507_v59 = vld [vmem:[#allocation2 + $0x930] ss:$2 sm:$0xff] }
 0x493   : > { %vm7644_vm6 = vcmp.ge.f32.partialorder %v7516_v25, 0.0  ;;  %v7708_v27 = vmul.f32 0.01, %v7516_v25 }
 0x495   : > { %v7772_v40 = vsel %vm7644_vm6, %v7516_v25, %v7708_v27  ;;  %v15454_v25 = vpop.f32.mrf.mxu2  ;;  %v4123_v27 = vld [vmem:[#allocation2 + $0x918] ss:$2 sm:$0xff] }
 0x496   : > { %8032 = vst.msk [vmem:[#allocation3 + $0x1a1] sm:$0xff] %vm1255_vm0, %v7772_v40  ;;  %v4377_v40 = vld [vmem:[#allocation2 + $0x8ea] ss:$2 sm:$0xff]  ;;  %v12797_v32 = vpack.i.bf16 %v4123_v27, %v4121_v26  ;;  %v4635_v26 = vld [vmem:[#allocation2 + $0x931] ss:$2 sm:$0xff] }
 0x497   : > { %12753 = vrot.lane.b32.xlu0 %v12752_v13, %s13392_s10  ;;  %v4379_v13 = vld [vmem:[#allocation2 + $0x91a] ss:$2 sm:$0xff] }
 0x498   : > { %12763 = vrot.lane.b32.xlu2 %v12762_v39, %s13387_s24  ;;  %12758 = vrot.lane.b32.xlu1 %v12757_v36, %s13391_s30  ;;  %v4249_v39 = vld [vmem:[#allocation2 + $0x8e9] ss:$2 sm:$0xff]  ;;  %v4251_v36 = vld [vmem:[#allocation2 + $0x919] ss:$2 sm:$0xff]  ;;  %v12807_v28 = vpack.i.bf16 %v4379_v13, %v4377_v40 }
 0x499   : > { %v12802_v47 = vpack.i.bf16 %v4251_v36, %v4249_v39  ;;  %v12812_v39 = vpack.i.bf16 %v4507_v59, %v4505_v24 }
 0x49a   : > { %v15443_v31 = vpop.permute.xlu2 %12598 }
 0x49d   : > { %v8097_v1 = vld [vmem:[#allocation3 + $0x1a0] ss:$2 sm:$0xf] }
 0x49e   : > { %8703 = vst [vmem:[#allocation1 + $0x11] ss:$2 sm:$0xff] %v8097_v1  ;;  %v3706_v1 = vld [vmem:[#allocation2 + $0x570] ss:$2 sm:$0xff] }
 0x49f   : > { %11728 = vmatmul.msk.bf16.gmra.mxu2 %vm3057_vm1, %v7090_v46  ;;  %12768 = vrot.lane.b32.xlu0 %v12767_v6, %s13389_s26  ;;  %v3708_v46 = vld [vmem:[#allocation2 + $0x5a0] ss:$2 sm:$0xff] }
 0x4a0   : > { %12778 = vrot.lane.b32.xlu2 %v12777_v54, %s13388_s25  ;;  %12773 = vrot.lane.b32.xlu1 %v12772_v11, %s13390_s29 }
 0x4a1   : > { %v12579_v29 = vpop.permute.xlu1 %12578 }
 0x4a2   : > { %v15449_v9 = vpop.permute.xlu2 %12613  ;;  %v12584_v56 = vpop.permute.xlu0 %12583  ;;  %v12581_v41 = vunpack.i.h.bf16 %v12579_v29  ;;  %v12580_v37 = vunpack.i.l.bf16 %v12579_v29 }
 0x4a3   : > { %v12586_v55 = vunpack.i.h.bf16 %v12584_v56  ;;  %v12585_v57 = vunpack.i.l.bf16 %v12584_v56  ;;  %v4000_v56 = vld [vmem:[#allocation2 + $0x962] ss:$2 sm:$0xff] }
 0x4a4   : > { %v6623_v6 = vsel %vm3057_vm1, %v3708_v46, %v12581_v41  ;;  %v6622_v54 = vsel %vm3057_vm1, %v3706_v1, %v12580_v37 }
 0x4a5   : > { %v6686_v27 = vsel %vm1255_vm0, %v6622_v54, %v12585_v57  ;;  %v6687_v29 = vsel %vm1255_vm0, %v6623_v6, %v12586_v55  ;;  %v4125_v55 = vld [vmem:[#allocation2 + $0x948] ss:$2 sm:$0xff]  ;;  %v4127_v57 = vld [vmem:[#allocation2 + $0x978] ss:$2 sm:$0xff] }
 0x4a7   : > { %12783 = vrot.lane.b32.xlu0 %v12782_v20, %s13392_s10  ;;  %v4633_v20 = vld [vmem:[#allocation2 + $0x901] ss:$2 sm:$0xff] }
 0x4a8   : > { %12793 = vrot.lane.b32.xlu2 %v12792_v17, %s13387_s24  ;;  %12788 = vrot.lane.b32.xlu1 %v12787_v23, %s13391_s30  ;;  %v15466_v17 = vpop.f32.mrf.mxu2  ;;  %v3998_v23 = vld [vmem:[#allocation2 + $0x932] ss:$2 sm:$0xff]  ;;  %v12817_v41 = vpack.i.bf16 %v4635_v26, %v4633_v20 }
 0x4a9   : > { %v12822_v36 = vpack.i.bf16 %v4000_v56, %v3998_v23  ;;  %v4383_v20 = vld [vmem:[#allocation2 + $0x97a] ss:$2 sm:$0xff]  ;;  %v4253_v23 = vld [vmem:[#allocation2 + $0x949] ss:$2 sm:$0xff]  ;;  %v4255_v56 = vld [vmem:[#allocation2 + $0x979] ss:$2 sm:$0xff] }
 0x4aa   : > { %v15456_v30 = vpop.permute.xlu2 %12628 }
 0x4af   : > { %11729 = vmatmul.msk.bf16.gmra.mxu2 %vm3057_vm1, %v7092_v44  ;;  %12798 = vrot.lane.b32.xlu0 %v12797_v32, %s13389_s26  ;;  %v12601_v32 = vunpack.i.h.bf16 %v15443_v31 }
 0x4b0   : > { %12808 = vrot.lane.b32.xlu2 %v12807_v28, %s13388_s25  ;;  %12803 = vrot.lane.b32.xlu1 %v12802_v47, %s13390_s29  ;;  %v12600_v28 = vunpack.i.l.bf16 %v15443_v31 }
 0x4b1   : > { %v12589_v11 = vpop.permute.xlu0 %12588 }
 0x4b2   : > { %v12591_v14 = vunpack.i.h.bf16 %v12589_v11  ;;  %v12590_v12 = vunpack.i.l.bf16 %v12589_v11  ;;  %v15464_v10 = vpop.permute.xlu2 %12643  ;;  %v12594_v38 = vpop.permute.xlu1 %12593  ;;  %v4765_v11 = vld [vmem:[#allocation2 + $0x962] ss:$2 sm:$0xff] }
 0x4b3   : > { %v12596_v2 = vunpack.i.h.bf16 %v12594_v38  ;;  %v12595_v43 = vunpack.i.l.bf16 %v12594_v38  ;;  %v15481_v38 = vpop.f32.mrf.mxu2 }
 0x4b4   : > { %v6751_v40 = vsel %vm6724_vm9, %v6686_v27, %v12590_v12  ;;  %v6752_v13 = vsel %vm6724_vm9, %v6687_v29, %v12591_v14  ;;  %v4767_v14 = vld [vmem:[#allocation2 + $0x992] ss:$2 sm:$0xff]  ;;  %v12021_v27 = vunpack.i.h.bf16 %v14332_v18  ;;  %v12020_v29 = vunpack.i.l.bf16 %v14332_v18 }
 0x4b5   : > { %v6816_v37 = vsel %vm6789_vm10, %v6751_v40, %v12595_v43  ;;  %v6817_v44 = vsel %vm6789_vm10, %v6752_v13, %v12596_v2  ;;  %v4381_v12 = vld [vmem:[#allocation2 + $0x94a] ss:$2 sm:$0xff] }
 0x4b6   : > { %v6881_v31 = vsel %vm6854_vm14, %v6816_v37, %v12600_v28  ;;  %v6882_v26 = vsel %vm6854_vm14, %v6817_v44, %v12601_v32  ;;  %v3710_v40 = vld [vmem:[#allocation2 + $0x5d0] ss:$2 sm:$0xff]  ;;  %v3712_v13 = vld [vmem:[#allocation2 + $0x600] ss:$2 sm:$0xff]  ;;  %v12832_v37 = vpack.i.bf16 %v4255_v56, %v4253_v23  ;;  %v12026_v44 = vunpack.i.h.bf16 %v14314_v58 }
 0x4b7   : > { %12813 = vrot.lane.b32.xlu0 %v12812_v39, %s13392_s10  ;;  %v7094_v39 = vpack.c.bf16 %v4767_v14, %v4765_v11  ;;  %v12025_v32 = vunpack.i.l.bf16 %v14314_v58  ;;  %v6625_v18 = vsel %vm3057_vm1, %v3712_v13, %v12021_v27 }
 0x4b8   : > { %12823 = vrot.lane.b32.xlu2 %v12822_v36, %s13387_s24  ;;  %12818 = vrot.lane.b32.xlu1 %v12817_v41, %s13391_s30  ;;  %v12827_v36 = vpack.i.bf16 %v4127_v57, %v4125_v55  ;;  %v12616_v55 = vunpack.i.h.bf16 %v15449_v9  ;;  %v12615_v57 = vunpack.i.l.bf16 %v15449_v9  ;;  %v6689_v56 = vsel %vm1255_vm0, %v6625_v18, %v12026_v44  ;;  %v4004_v9 = vld [vmem:[#allocation2 + $0x9c2] ss:$2 sm:$0xff] }
 0x4b9   : > { %v12604_v47 = vpop.permute.xlu0 %12603  ;;  %v3714_v44 = vld [vmem:[#allocation2 + $0x630] ss:$2 sm:$0xff]  ;;  %v3716_v18 = vld [vmem:[#allocation2 + $0x660] ss:$2 sm:$0xff] }
 0x4ba   : > { %v12606_v1 = vunpack.i.h.bf16 %v12604_v47  ;;  %v12605_v46 = vunpack.i.l.bf16 %v12604_v47  ;;  %v15479_v6 = vpop.permute.xlu2 %12658  ;;  %v12609_v54 = vpop.permute.xlu1 %12608  ;;  %v6754_v27 = vsel %vm6724_vm9, %v6689_v56, %v12616_v55  ;;  %v12080_v55 = vunpack.i.l.bf16 %v14447_v19 }
 0x4bb   : > { %v12611_v24 = vunpack.i.h.bf16 %v12609_v54  ;;  %v12610_v59 = vunpack.i.l.bf16 %v12609_v54  ;;  %v12837_v54 = vpack.i.bf16 %v4383_v20, %v4381_v12  ;;  %v4637_v20 = vld [vmem:[#allocation2 + $0x961] ss:$2 sm:$0xff]  ;;  %v15507_v13 = vpop.f32.mrf.mxu2 }
 0x4bc   : > { %v6946_v2 = vsel %vm6919_vm15, %v6881_v31, %v12605_v46  ;;  %v6947_v43 = vsel %vm6919_vm15, %v6882_v26, %v12606_v1  ;;  %v6624_v1 = vsel %vm3057_vm1, %v3710_v40, %v12020_v29  ;;  %v4002_v31 = vld [vmem:[#allocation2 + $0x992] ss:$2 sm:$0xff]  ;;  %v4639_v26 = vld [vmem:[#allocation2 + $0x991] ss:$2 sm:$0xff] }
 0x4bd   : > { %v7011_v41 = vsel %vm6984_vm3, %v6946_v2, %v12610_v59  ;;  %v7012_v47 = vsel %vm6984_vm3, %v6947_v43, %v12611_v24  ;;  %v4509_v24 = vld [vmem:[#allocation2 + $0x960] ss:$2 sm:$0xff]  ;;  %v4511_v59 = vld [vmem:[#allocation2 + $0x990] ss:$2 sm:$0xff]  ;;  %v6688_v23 = vsel %vm1255_vm0, %v6624_v1, %v12025_v32  ;;  %v12081_v1 = vunpack.i.h.bf16 %v14447_v19 }
 0x4be   : > { %v7075_v28 = vpack.c.bf16 %v7012_v47, %v7011_v41  ;;  %v6753_v29 = vsel %vm6724_vm9, %v6688_v23, %v12615_v57  ;;  %v15514_v41 = vld [vmem:[%s16984_s4] ss:$0 sm:$0xff]  ;;  %v12086_v19 = vunpack.i.h.bf16 %v14432_v3 }
 0x4bf   : > { %11730 = vmatmul.msk.bf16.gmra.mxu2 %vm3057_vm1, %v7094_v39  ;;  %12828 = vrot.lane.b32.xlu0 %v12827_v36, %s13389_s26 }
 0x4c0   : > { %12838 = vrot.lane.b32.xlu2 %v12837_v54, %s13388_s25  ;;  %12833 = vrot.lane.b32.xlu1 %v12832_v37, %s13390_s29  ;;  %v12842_v54 = vpack.i.bf16 %v4511_v59, %v4509_v24  ;;  %v12852_v37 = vpack.i.bf16 %v4004_v9, %v4002_v31 }
 0x4c1   : > { %7358 = vmatmul.bf16.gmra.mxu1 %v7075_v28  ;;  %v12619_v46 = vpop.permute.xlu0 %12618  ;;  %v12847_v28 = vpack.i.bf16 %v4639_v26, %v4637_v20  ;;  %v4385_v20 = vld [vmem:[#allocation2 + $0x9aa] ss:$2 sm:$0xff] }
 0x4c2   : > { %v12621_v11 = vunpack.i.h.bf16 %v12619_v46  ;;  %v12620_v58 = vunpack.i.l.bf16 %v12619_v46  ;;  %v15501_v14 = vpop.permute.xlu2 %12673  ;;  %v12624_v12 = vpop.permute.xlu1 %12623  ;;  %v4769_v26 = vld [vmem:[#allocation2 + $0x9c2] ss:$2 sm:$0xff] }
 0x4c3   : > { %v12626_v2 = vunpack.i.h.bf16 %v12624_v12  ;;  %v12625_v43 = vunpack.i.l.bf16 %v12624_v12  ;;  %v12631_v12 = vunpack.i.h.bf16 %v15456_v30  ;;  %v15538_v52 = vpop.f32.mrf.mxu2 }
 0x4c4   : > { %v7349_v40 = vpop.f32.mrf.mxu1  ;;  %v6818_v39 = vsel %vm6789_vm10, %v6753_v29, %v12620_v58  ;;  %v6819_v36 = vsel %vm6789_vm10, %v6754_v27, %v12621_v11  ;;  %v4129_v11 = vld [vmem:[#allocation2 + $0x9a8] ss:$2 sm:$0xff]  ;;  %v4131_v58 = vld [vmem:[#allocation2 + $0x9d8] ss:$2 sm:$0xff] }
 0x4c5   : > { %v7350_v47 = vadd.f32 %v15514_v41, %v7349_v40  ;;  %v6884_v57 = vsel %vm6854_vm14, %v6819_v36, %v12626_v2  ;;  %v6883_v46 = vsel %vm6854_vm14, %v6818_v39, %v12625_v43  ;;  %v4771_v27 = vld [vmem:[#allocation2 + $0x9f2] ss:$2 sm:$0xff]  ;;  %v12085_v2 = vunpack.i.l.bf16 %v14432_v3  ;;  %v4257_v40 = vld [vmem:[#allocation2 + $0x9a9] ss:$2 sm:$0xff]  ;;  %v4259_v39 = vld [vmem:[#allocation2 + $0x9d9] ss:$2 sm:$0xff] }
 0x4c6   : > { %v4387_v29 = vld [vmem:[#allocation2 + $0x9da] ss:$2 sm:$0xff]  ;;  %v6949_v36 = vsel %vm6919_vm15, %v6884_v57, %v12631_v12  ;;  %v12862_v12 = vpack.i.bf16 %v4259_v39, %v4257_v40  ;;  %v12646_v40 = vunpack.i.h.bf16 %v15464_v10 }
 0x4c7   : > { %v7519_v32 = vadd.f32 %v15454_v25, %v7350_v47  ;;  %12843 = vrot.lane.b32.xlu0 %v12842_v54, %s13392_s10  ;;  %v12630_v25 = vunpack.i.l.bf16 %v15456_v30  ;;  %v6627_v47 = vsel %vm3057_vm1, %v3716_v18, %v12081_v1  ;;  %v6626_v54 = vsel %vm3057_vm1, %v3714_v44, %v12080_v55  ;;  %v4513_v1 = vld [vmem:[#allocation2 + $0x9c0] ss:$2 sm:$0xff] }
 0x4c8   : > { %12853 = vrot.lane.b32.xlu2 %v12852_v37, %s13387_s24  ;;  %12848 = vrot.lane.b32.xlu1 %v12847_v28, %s13391_s30  ;;  %v6690_v55 = vsel %vm1255_vm0, %v6626_v54, %v12085_v2  ;;  %v12645_v2 = vunpack.i.l.bf16 %v15464_v10  ;;  %v4008_v39 = vld [vmem:[#allocation2 + $0xa52] ss:$2 sm:$0xff] }
 0x4c9   : > { %vm7645_vm7 = vcmp.ge.f32.partialorder %v7519_v32, 0.0  ;;  %v7709_v24 = vmul.f32 0.01, %v7519_v32  ;;  %v12634_v59 = vpop.permute.xlu0 %12633  ;;  %v6948_v30 = vsel %vm6919_vm15, %v6883_v46, %v12630_v25  ;;  %v12867_v46 = vpack.i.bf16 %v4387_v29, %v4385_v20 }
 0x4ca   : > { %v12636_v23 = vunpack.i.h.bf16 %v12634_v59  ;;  %v12635_v56 = vunpack.i.l.bf16 %v12634_v59  ;;  %v15528_v31 = vpop.permute.xlu2 %12688  ;;  %v12639_v9 = vpop.permute.xlu1 %12638 }
 0x4cb   : > { %v7773_v43 = vsel %vm7645_vm7, %v7519_v32, %v7709_v24  ;;  %v7096_v32 = vpack.c.bf16 %v4771_v27, %v4769_v26  ;;  %v12857_v24 = vpack.i.bf16 %v4131_v58, %v4129_v11  ;;  %v12641_v25 = vunpack.i.h.bf16 %v12639_v9  ;;  %v15559_v10 = vpop.f32.mrf.mxu2 }
 0x4cc   : > { %8033 = vst.msk [vmem:[#allocation3 + $0x1b1] sm:$0xff] %vm1255_vm0, %v7773_v43  ;;  %v7351_v37 = vpop.f32.mrf.mxu1  ;;  %v7013_v28 = vsel %vm6984_vm3, %v6948_v30, %v12635_v56  ;;  %v7014_v59 = vsel %vm6984_vm3, %v6949_v36, %v12636_v23  ;;  %v12640_v57 = vunpack.i.l.bf16 %v12639_v9  ;;  %v6691_v11 = vsel %vm1255_vm0, %v6627_v47, %v12086_v19  ;;  %v4515_v23 = vld [vmem:[#allocation2 + $0x9f0] ss:$2 sm:$0xff]  ;;  %v4641_v30 = vld [vmem:[#allocation2 + $0x9c1] ss:$2 sm:$0xff] }
 0x4cd   : > { %v7352_v3 = vadd.f32 %v15514_v41, %v7351_v37  ;;  %v7077_v18 = vpack.c.bf16 %v7014_v59, %v7013_v28  ;;  %v4006_v43 = vld [vmem:[#allocation2 + $0xa22] ss:$2 sm:$0xff]  ;;  %v4643_v36 = vld [vmem:[#allocation2 + $0x9f1] ss:$2 sm:$0xff]  ;;  %v12872_v47 = vpack.i.bf16 %v4515_v23, %v4513_v1 }
 0x4ce   : > { %v6755_v56 = vsel %vm6724_vm9, %v6690_v55, %v12640_v57  ;;  %v3720_v57 = vld [vmem:[#allocation2 + $0x6f0] ss:$2 sm:$0xff] }
 0x4cf   : > { %v7521_v44 = vadd.f32 %v15466_v17, %v7352_v3  ;;  %11731 = vmatmul.msk.bf16.gmra.mxu2 %vm3057_vm1, %v7096_v32  ;;  %12858 = vrot.lane.b32.xlu0 %v12857_v24, %s13389_s26  ;;  %v6756_v17 = vsel %vm6724_vm9, %v6691_v11, %v12641_v25  ;;  %v6820_v54 = vsel %vm6789_vm10, %v6755_v56, %v12645_v2  ;;  %v3718_v25 = vld [vmem:[#allocation2 + $0x6c0] ss:$2 sm:$0xff]  ;;  %v12661_v11 = vunpack.i.h.bf16 %v15479_v6 }
 0x4d0   : > { %12868 = vrot.lane.b32.xlu2 %v12867_v46, %s13388_s25  ;;  %12863 = vrot.lane.b32.xlu1 %v12862_v12, %s13390_s29  ;;  %v6821_v37 = vsel %vm6789_vm10, %v6756_v17, %v12646_v40  ;;  %v12882_v24 = vpack.i.bf16 %v4008_v39, %v4006_v43  ;;  %v12877_v46 = vpack.i.bf16 %v4643_v36, %v4641_v30  ;;  %v12136_v12 = vunpack.i.h.bf16 %v14580_v5  ;;  %v4773_v17 = vld [vmem:[#allocation2 + $0xa52] ss:$2 sm:$0xff]  ;;  %v4775_v56 = vld [vmem:[#allocation2 + $0xa82] ss:$2 sm:$0xff] }
 0x4d1   : > { %vm7646_vm11 = vcmp.ge.f32.partialorder %v7521_v44, 0.0  ;;  %v7710_v58 = vmul.f32 0.01, %v7521_v44  ;;  %7363 = vmatmul.bf16.gmra.mxu1 %v7077_v18  ;;  %v12649_v20 = vpop.permute.xlu0 %12648  ;;  %v12135_v18 = vunpack.i.l.bf16 %v14580_v5  ;;  %v12141_v43 = vunpack.i.h.bf16 %v14576_v62  ;;  %v4135_v40 = vld [vmem:[#allocation2 + $0xa68] ss:$2 sm:$0xff] }
 0x4d2   : > { %v12651_v9 = vunpack.i.h.bf16 %v12649_v20  ;;  %v12650_v26 = vunpack.i.l.bf16 %v12649_v20  ;;  %v15550_v27 = vpop.permute.xlu2 %12703  ;;  %v12654_v29 = vpop.permute.xlu1 %12653  ;;  %v12140_v5 = vunpack.i.l.bf16 %v14576_v62  ;;  %v6629_v39 = vsel %vm3057_vm1, %v3720_v57, %v12136_v12 }
 0x4d3   : > { %v7774_v19 = vsel %vm7646_vm11, %v7521_v44, %v7710_v58  ;;  %v12656_v28 = vunpack.i.h.bf16 %v12654_v29  ;;  %v12655_v59 = vunpack.i.l.bf16 %v12654_v29  ;;  %v12660_v58 = vunpack.i.l.bf16 %v15479_v6  ;;  %v4261_v29 = vld [vmem:[#allocation2 + $0xa39] ss:$2 sm:$0xff] }
 0x4d4   : > { %8034 = vst.msk [vmem:[#allocation3 + $0x1c1] sm:$0xff] %vm1255_vm0, %v7774_v19  ;;  %v6885_v3 = vsel %vm6854_vm14, %v6820_v54, %v12650_v26  ;;  %v6886_v32 = vsel %vm6854_vm14, %v6821_v37, %v12651_v9  ;;  %v4133_v9 = vld [vmem:[#allocation2 + $0xa38] ss:$2 sm:$0xff]  ;;  %v6628_v6 = vsel %vm3057_vm1, %v3718_v25, %v12135_v18  ;;  %v7098_v30 = vpack.c.bf16 %v4775_v56, %v4773_v17  ;;  %v4263_v54 = vld [vmem:[#allocation2 + $0xa69] ss:$2 sm:$0xff] }
 0x4d5   : > { %v6950_v1 = vsel %vm6919_vm15, %v6885_v3, %v12655_v59  ;;  %v6951_v55 = vsel %vm6919_vm15, %v6886_v32, %v12656_v28  ;;  %v4389_v26 = vld [vmem:[#allocation2 + $0xa3a] ss:$2 sm:$0xff]  ;;  %v12887_v36 = vpack.i.bf16 %v4135_v40, %v4133_v9  ;;  %v12892_v3 = vpack.i.bf16 %v4263_v54, %v4261_v29  ;;  %v15582_v32 = vpop.f32.mrf.mxu2  ;;  %v4645_v17 = vld [vmem:[#allocation2 + $0xa51] ss:$2 sm:$0xff] }
 0x4d6   : > { %v7015_v2 = vsel %vm6984_vm3, %v6950_v1, %v12660_v58  ;;  %v7016_v19 = vsel %vm6984_vm3, %v6951_v55, %v12661_v11  ;;  %v4517_v18 = vld [vmem:[#allocation2 + $0xa50] ss:$2 sm:$0xff] }
 0x4d7   : > { %12873 = vrot.lane.b32.xlu0 %v12872_v47, %s13392_s10  ;;  %v4391_v47 = vld [vmem:[#allocation2 + $0xa6a] ss:$2 sm:$0xff]  ;;  %v7079_v62 = vpack.c.bf16 %v7016_v19, %v7015_v2  ;;  %v12676_v2 = vunpack.i.h.bf16 %v15501_v14  ;;  %v12675_v19 = vunpack.i.l.bf16 %v15501_v14 }
 0x4d8   : > { %12883 = vrot.lane.b32.xlu2 %v12882_v24, %s13387_s24  ;;  %12878 = vrot.lane.b32.xlu1 %v12877_v46, %s13391_s30  ;;  %v12897_v59 = vpack.i.bf16 %v4391_v47, %v4389_v26  ;;  %v6692_v24 = vsel %vm1255_vm0, %v6628_v6, %v12140_v5  ;;  %v6693_v46 = vsel %vm1255_vm0, %v6629_v39, %v12141_v43  ;;  %v4010_v56 = vld [vmem:[#allocation2 + $0xa82] ss:$2 sm:$0xff]  ;;  %v4012_v9 = vld [vmem:[#allocation2 + $0xab2] ss:$2 sm:$0xff]  ;;  %v4647_v26 = vld [vmem:[#allocation2 + $0xa81] ss:$2 sm:$0xff] }
 0x4d9   : > { %v12664_v44 = vpop.permute.xlu0 %12663  ;;  %v12912_v39 = vpack.i.bf16 %v4012_v9, %v4010_v56  ;;  %v12907_v6 = vpack.i.bf16 %v4647_v26, %v4645_v17  ;;  %v3722_v9 = vld [vmem:[#allocation2 + $0x720] ss:$2 sm:$0xff]  ;;  %v3724_v26 = vld [vmem:[#allocation2 + $0x750] ss:$2 sm:$0xff] }
 0x4da   : > { %v15570_v20 = vpop.permute.xlu2 %12718  ;;  %v12669_v23 = vpop.permute.xlu1 %12668  ;;  %v12666_v37 = vunpack.i.h.bf16 %v12664_v44  ;;  %v12665_v28 = vunpack.i.l.bf16 %v12664_v44  ;;  %v4519_v44 = vld [vmem:[#allocation2 + $0xa80] ss:$2 sm:$0xff] }
 0x4db   : > { %v12671_v25 = vunpack.i.h.bf16 %v12669_v23  ;;  %v12670_v57 = vunpack.i.l.bf16 %v12669_v23  ;;  %v12902_v29 = vpack.i.bf16 %v4519_v44, %v4517_v18  ;;  %v4395_v18 = vld [vmem:[#allocation2 + $0xaca] ss:$2 sm:$0xff]  ;;  %v4265_v44 = vld [vmem:[#allocation2 + $0xa99] ss:$2 sm:$0xff] }
 0x4dc   : > { %v6757_v1 = vsel %vm6724_vm9, %v6692_v24, %v12665_v28  ;;  %v6758_v55 = vsel %vm6724_vm9, %v6693_v46, %v12666_v37  ;;  %v4137_v28 = vld [vmem:[#allocation2 + $0xa98] ss:$2 sm:$0xff] }
 0x4dd   : > { %v6822_v43 = vsel %vm6789_vm10, %v6757_v1, %v12670_v57  ;;  %v6823_v23 = vsel %vm6789_vm10, %v6758_v55, %v12671_v25  ;;  %v4777_v46 = vld [vmem:[#allocation2 + $0xab2] ss:$2 sm:$0xff]  ;;  %v4779_v25 = vld [vmem:[#allocation2 + $0xae2] ss:$2 sm:$0xff]  ;;  %v4267_v1 = vld [vmem:[#allocation2 + $0xac9] ss:$2 sm:$0xff]  ;;  %v12191_v55 = vunpack.i.h.bf16 %v14853_v49 }
 0x4de   : > { %v6887_v47 = vsel %vm6854_vm14, %v6822_v43, %v12675_v19  ;;  %v6888_v54 = vsel %vm6854_vm14, %v6823_v23, %v12676_v2  ;;  %v4393_v57 = vld [vmem:[#allocation2 + $0xa9a] ss:$2 sm:$0xff]  ;;  %v12195_v2 = vunpack.i.l.bf16 %v14851_v48 }
 0x4df   : > { %11732 = vmatmul.msk.bf16.gmra.mxu2 %vm3057_vm1, %v7098_v30  ;;  %12888 = vrot.lane.b32.xlu0 %v12887_v36, %s13389_s26  ;;  %v12927_v23 = vpack.i.bf16 %v4395_v18, %v4393_v57  ;;  %v4016_v57 = vld [vmem:[#allocation2 + $0xb12] ss:$2 sm:$0xff]  ;;  %v4651_v18 = vld [vmem:[#allocation2 + $0xae1] ss:$2 sm:$0xff] }
 0x4e0   : > { %12898 = vrot.lane.b32.xlu2 %v12897_v59, %s13388_s25  ;;  %12893 = vrot.lane.b32.xlu1 %v12892_v3, %s13390_s29  ;;  %v4139_v59 = vld [vmem:[#allocation2 + $0xac8] ss:$2 sm:$0xff] }
 0x4e1   : > { %7368 = vmatmul.bf16.gmra.mxu1 %v7079_v62  ;;  %v12679_v12 = vpop.permute.xlu0 %12678  ;;  %v12917_v43 = vpack.i.bf16 %v4139_v59, %v4137_v28  ;;  %v4521_v59 = vld [vmem:[#allocation2 + $0xab0] ss:$2 sm:$0xff] }
 0x4e2   : > { %v15588_v11 = vpop.permute.xlu2 %12733  ;;  %v12684_v58 = vpop.permute.xlu1 %12683  ;;  %v12681_v5 = vunpack.i.h.bf16 %v12679_v12  ;;  %v12680_v40 = vunpack.i.l.bf16 %v12679_v12 }
 0x4e3   : > { %v12686_v30 = vunpack.i.h.bf16 %v12684_v58  ;;  %v12685_v36 = vunpack.i.l.bf16 %v12684_v58  ;;  %v15603_v12 = vpop.f32.mrf.mxu2  ;;  %v12190_v58 = vunpack.i.l.bf16 %v14853_v49  ;;  %v6631_v49 = vsel %vm3057_vm1, %v3724_v26, %v12191_v55 }
 0x4e4   : > { %v6952_v3 = vsel %vm6919_vm15, %v6887_v47, %v12680_v40  ;;  %v6953_v14 = vsel %vm6919_vm15, %v6888_v54, %v12681_v5  ;;  %v12922_v5 = vpack.i.bf16 %v4267_v1, %v4265_v44  ;;  %v12196_v40 = vunpack.i.h.bf16 %v14851_v48 }
 0x4e5   : > { %v7017_v17 = vsel %vm6984_vm3, %v6952_v3, %v12685_v36  ;;  %v7018_v56 = vsel %vm6984_vm3, %v6953_v14, %v12686_v30  ;;  %v12690_v30 = vunpack.i.l.bf16 %v15528_v31  ;;  %v4523_v3 = vld [vmem:[#allocation2 + $0xae0] ss:$2 sm:$0xff]  ;;  %v4649_v14 = vld [vmem:[#allocation2 + $0xab1] ss:$2 sm:$0xff] }
 0x4e6   : > { %v7081_v19 = vpack.c.bf16 %v7018_v56, %v7017_v17 }
 0x4e7   : > { %12903 = vrot.lane.b32.xlu0 %v12902_v29, %s13392_s10  ;;  %v7100_v29 = vpack.c.bf16 %v4779_v25, %v4777_v46  ;;  %v6695_v46 = vsel %vm1255_vm0, %v6631_v49, %v12196_v40  ;;  %v12245_v49 = vunpack.i.l.bf16 %v14922_v15 }
 0x4e8   : > { %12913 = vrot.lane.b32.xlu2 %v12912_v39, %s13387_s24  ;;  %12908 = vrot.lane.b32.xlu1 %v12907_v6, %s13391_s30  ;;  %v6630_v39 = vsel %vm3057_vm1, %v3722_v9, %v12190_v58  ;;  %v12691_v6 = vunpack.i.h.bf16 %v15528_v31  ;;  %v4014_v31 = vld [vmem:[#allocation2 + $0xae2] ss:$2 sm:$0xff]  ;;  %v12932_v9 = vpack.i.bf16 %v4523_v3, %v4521_v59 }
 0x4e9   : > { %v12694_v37 = vpop.permute.xlu0 %12693  ;;  %v6694_v25 = vsel %vm1255_vm0, %v6630_v39, %v12195_v2  ;;  %v12942_v26 = vpack.i.bf16 %v4016_v57, %v4014_v31  ;;  %v12706_v39 = vunpack.i.h.bf16 %v15550_v27  ;;  %v4269_v31 = vld [vmem:[#allocation2 + $0xaf9] ss:$2 sm:$0xff]  ;;  %v4271_v57 = vld [vmem:[#allocation2 + $0xb29] ss:$2 sm:$0xff] }
 0x4ea   : > { %v15601_v62 = vpop.permute.xlu2 %12748  ;;  %v12699_v24 = vpop.permute.xlu1 %12698  ;;  %v12696_v36 = vunpack.i.h.bf16 %v12694_v37  ;;  %v12695_v47 = vunpack.i.l.bf16 %v12694_v37  ;;  %v6759_v44 = vsel %vm6724_vm9, %v6694_v25, %v12690_v30  ;;  %v6760_v37 = vsel %vm6724_vm9, %v6695_v46, %v12691_v6  ;;  %v4397_v46 = vld [vmem:[#allocation2 + $0xafa] ss:$2 sm:$0xff]  ;;  %v4399_v25 = vld [vmem:[#allocation2 + $0xb2a] ss:$2 sm:$0xff] }
 0x4eb   : > { %v12701_v1 = vunpack.i.h.bf16 %v12699_v24  ;;  %v12700_v55 = vunpack.i.l.bf16 %v12699_v24  ;;  %v15627_v58 = vpop.f32.mrf.mxu2  ;;  %v3728_v24 = vld [vmem:[#allocation2 + $0x7b0] ss:$2 sm:$0xff]  ;;  %v12705_v6 = vunpack.i.l.bf16 %v15550_v27  ;;  %v12250_v27 = vunpack.i.l.bf16 %v14920_v35 }
 0x4ec   : > { %v6824_v17 = vsel %vm6789_vm10, %v6759_v44, %v12695_v47  ;;  %v6825_v56 = vsel %vm6789_vm10, %v6760_v37, %v12696_v36  ;;  %v4781_v36 = vld [vmem:[#allocation2 + $0xb12] ss:$2 sm:$0xff]  ;;  %v4783_v47 = vld [vmem:[#allocation2 + $0xb42] ss:$2 sm:$0xff]  ;;  %v12251_v44 = vunpack.i.h.bf16 %v14920_v35 }
 0x4ef   : > { %11733 = vmatmul.msk.bf16.gmra.mxu2 %vm3057_vm1, %v7100_v29  ;;  %12918 = vrot.lane.b32.xlu0 %v12917_v43, %s13389_s26  ;;  %v12937_v29 = vpack.i.bf16 %v4651_v18, %v4649_v14  ;;  %v3726_v43 = vld [vmem:[#allocation2 + $0x780] ss:$2 sm:$0xff] }
 0x4f0   : > { %12928 = vrot.lane.b32.xlu2 %v12927_v23, %s13388_s25  ;;  %12923 = vrot.lane.b32.xlu1 %v12922_v5, %s13390_s29  ;;  %v6889_v23 = vsel %vm6854_vm14, %v6824_v17, %v12700_v55  ;;  %v6890_v5 = vsel %vm6854_vm14, %v6825_v56, %v12701_v1  ;;  %v4143_v14 = vld [vmem:[#allocation2 + $0xb28] ss:$2 sm:$0xff]  ;;  %v6632_v17 = vsel %vm3057_vm1, %v3726_v43, %v12245_v49 }
 0x4f1   : > { %7373 = vmatmul.bf16.gmra.mxu1 %v7081_v19  ;;  %v12709_v48 = vpop.permute.xlu0 %12708  ;;  %v12246_v19 = vunpack.i.h.bf16 %v14922_v15  ;;  %v6954_v18 = vsel %vm6919_vm15, %v6889_v23, %v12705_v6  ;;  %v6955_v15 = vsel %vm6919_vm15, %v6890_v5, %v12706_v39  ;;  %v7102_v56 = vpack.c.bf16 %v4783_v47, %v4781_v36 }
 0x4f2   : > { %v15619_v54 = vpop.permute.xlu2 %12763  ;;  %v15621_v28 = vpop.permute.xlu1 %12713  ;;  %v12711_v40 = vunpack.i.h.bf16 %v12709_v48  ;;  %v12710_v2 = vunpack.i.l.bf16 %v12709_v48  ;;  %v4141_v48 = vld [vmem:[#allocation2 + $0xaf8] ss:$2 sm:$0xff]  ;;  %v12957_v23 = vpack.i.bf16 %v4399_v25, %v4397_v46  ;;  %v12952_v5 = vpack.i.bf16 %v4271_v57, %v4269_v31 }
 0x4f3   : > { %v6633_v55 = vsel %vm3057_vm1, %v3728_v24, %v12246_v19  ;;  %v15654_v39 = vpop.f32.mrf.mxu2  ;;  %v6696_v43 = vsel %vm1255_vm0, %v6632_v17, %v12250_v27  ;;  %v4527_v24 = vld [vmem:[#allocation2 + $0xb40] ss:$2 sm:$0xff]  ;;  %v12721_v46 = vunpack.i.h.bf16 %v15570_v20  ;;  %v12720_v25 = vunpack.i.l.bf16 %v15570_v20 }
 0x4f4   : > { %v7019_v37 = vsel %vm6984_vm3, %v6954_v18, %v12710_v2  ;;  %v7020_v1 = vsel %vm6984_vm3, %v6955_v15, %v12711_v40  ;;  %v6697_v40 = vsel %vm1255_vm0, %v6633_v55, %v12251_v44  ;;  %v4018_v31 = vld [vmem:[#allocation2 + $0xb42] ss:$2 sm:$0xff]  ;;  %v4020_v57 = vld [vmem:[#allocation2 + $0xb72] ss:$2 sm:$0xff]  ;;  %v4655_v18 = vld [vmem:[#allocation2 + $0xb41] ss:$2 sm:$0xff]  ;;  %v12045_v20 = vunpack.i.l.bf16 %v14367_v51 }
 0x4f5   : > { %v7083_v35 = vpack.c.bf16 %v7020_v1, %v7019_v37 }
 0x4f7   : > { %12933 = vrot.lane.b32.xlu0 %v12932_v9, %s13392_s10  ;;  %v12947_v9 = vpack.i.bf16 %v4143_v14, %v4141_v48  ;;  %v4653_v14 = vld [vmem:[#allocation2 + $0xb11] ss:$2 sm:$0xff] }
 0x4f8   : > { %12943 = vrot.lane.b32.xlu2 %v12942_v26, %s13387_s24  ;;  %12938 = vrot.lane.b32.xlu1 %v12937_v29, %s13391_s30  ;;  %v12716_v26 = vunpack.i.h.bf16 %v15621_v28  ;;  %v12715_v29 = vunpack.i.l.bf16 %v15621_v28  ;;  %v4525_v28 = vld [vmem:[#allocation2 + $0xb10] ss:$2 sm:$0xff] }
 0x4f9   : > { %v12724_v30 = vpop.permute.xlu0 %12723  ;;  %v12962_v15 = vpack.i.bf16 %v4527_v24, %v4525_v28  ;;  %v4147_v24 = vld [vmem:[#allocation2 + $0xb88] ss:$2 sm:$0xff] }
 0x4fa   : > { %v15640_v59 = vpop.permute.xlu2 %12778  ;;  %v15642_v3 = vpop.permute.xlu1 %12728  ;;  %v6762_v19 = vsel %vm6724_vm9, %v6697_v40, %v12716_v26  ;;  %v6761_v49 = vsel %vm6724_vm9, %v6696_v43, %v12715_v29  ;;  %v12726_v6 = vunpack.i.h.bf16 %v12724_v30  ;;  %v12725_v36 = vunpack.i.l.bf16 %v12724_v30  ;;  %v3730_v29 = vld [vmem:[#allocation2 + $0x7e0] ss:$2 sm:$0xff] }
 0x4fb   : > { %v6826_v44 = vsel %vm6789_vm10, %v6761_v49, %v12720_v25  ;;  %v6827_v27 = vsel %vm6789_vm10, %v6762_v19, %v12721_v46  ;;  %v12731_v37 = vunpack.i.h.bf16 %v15642_v3  ;;  %v12730_v30 = vunpack.i.l.bf16 %v15642_v3  ;;  %v3732_v3 = vld [vmem:[#allocation2 + $0x810] ss:$2 sm:$0xff] }
 0x4fc   : > { %v6891_v1 = vsel %vm6854_vm14, %v6826_v44, %v12725_v36  ;;  %v6892_v55 = vsel %vm6854_vm14, %v6827_v27, %v12726_v6  ;;  %v4401_v19 = vld [vmem:[#allocation2 + $0xb5a] ss:$2 sm:$0xff]  ;;  %v4403_v49 = vld [vmem:[#allocation2 + $0xb8a] ss:$2 sm:$0xff]  ;;  %v12046_v6 = vunpack.i.h.bf16 %v14367_v51  ;;  %v12736_v36 = vunpack.i.h.bf16 %v15588_v11  ;;  %v4275_v44 = vld [vmem:[#allocation2 + $0xb89] ss:$2 sm:$0xff] }
 0x4fd   : > { %v6957_v43 = vsel %vm6919_vm15, %v6892_v55, %v12731_v37  ;;  %v4785_v25 = vld [vmem:[#allocation2 + $0xb72] ss:$2 sm:$0xff]  ;;  %v12051_v27 = vunpack.i.h.bf16 %v14395_v60  ;;  %v12050_v51 = vunpack.i.l.bf16 %v14395_v60 }
 0x4ff   : > { %11734 = vmatmul.msk.bf16.gmra.mxu2 %vm3057_vm1, %v7102_v56  ;;  %12948 = vrot.lane.b32.xlu0 %v12947_v9, %s13389_s26  ;;  %v12972_v56 = vpack.i.bf16 %v4020_v57, %v4018_v31  ;;  %v12967_v9 = vpack.i.bf16 %v4655_v18, %v4653_v14  ;;  %v12735_v14 = vunpack.i.l.bf16 %v15588_v11  ;;  %v4787_v31 = vld [vmem:[#allocation2 + $0xba2] ss:$2 sm:$0xff]  ;;  %v4273_v57 = vld [vmem:[#allocation2 + $0xb59] ss:$2 sm:$0xff]  ;;  %v6634_v18 = vsel %vm3057_vm1, %v3730_v29, %v12045_v20 }
 0x500   : > { %12958 = vrot.lane.b32.xlu2 %v12957_v23, %s13388_s25  ;;  %12953 = vrot.lane.b32.xlu1 %v12952_v5, %s13390_s29  ;;  %v4145_v23 = vld [vmem:[#allocation2 + $0xb58] ss:$2 sm:$0xff]  ;;  %v15683_v5 = vpop.f32.mrf.mxu2  ;;  %v7022_v11 = vsel %vm6984_vm3, %v6957_v43, %v12736_v36  ;;  %v7104_v55 = vpack.c.bf16 %v4787_v31, %v4785_v25  ;;  %v12982_v29 = vpack.i.bf16 %v4275_v44, %v4273_v57  ;;  %v4657_v31 = vld [vmem:[#allocation2 + $0xb71] ss:$2 sm:$0xff]  ;;  %v4659_v57 = vld [vmem:[#allocation2 + $0xba1] ss:$2 sm:$0xff] }
 0x501   : > { %7378 = vmatmul.bf16.gmra.mxu1 %v7083_v35  ;;  %v15662_v2 = vpop.permute.xlu0 %12738  ;;  %v6956_v35 = vsel %vm6919_vm15, %v6891_v1, %v12730_v30  ;;  %v4022_v25 = vld [vmem:[#allocation2 + $0xbd2] ss:$2 sm:$0xff] }
 0x502   : > { %v15666_v47 = vpop.permute.xlu2 %12793  ;;  %v15668_v48 = vpop.permute.xlu1 %12743  ;;  %v7021_v37 = vsel %vm6984_vm3, %v6956_v35, %v12735_v14  ;;  %v12740_v30 = vunpack.i.l.bf16 %v15662_v2 }
 0x503   : > { %v7085_v35 = vpack.c.bf16 %v7022_v11, %v7021_v37 }
 0x506   : > { %v7354_v17 = vpop.f32.mrf.mxu1 }
 0x507   : > { %v7355_v26 = vadd.f32 %v15514_v41, %v7354_v17  ;;  %12963 = vrot.lane.b32.xlu0 %v12962_v15, %s13392_s10  ;;  %v12977_v17 = vpack.i.bf16 %v4147_v24, %v4145_v23  ;;  %v11969_v23 = vld [vmem:[%s16985_s5 + $0x38] sm:$0xff] }
 0x508   : > { %12973 = vrot.lane.b32.xlu2 %v12972_v56, %s13387_s24  ;;  %12968 = vrot.lane.b32.xlu1 %v12967_v9, %s13391_s30  ;;  %v6635_v56 = vsel %vm3057_vm1, %v3732_v3, %v12046_v6  ;;  %v12741_v9 = vunpack.i.h.bf16 %v15662_v2  ;;  %v6698_v3 = vsel %vm1255_vm0, %v6634_v18, %v12050_v51  ;;  %v12745_v2 = vunpack.i.l.bf16 %v15668_v48  ;;  %v4531_v6 = vld [vmem:[#allocation2 + $0xba0] ss:$2 sm:$0xff]  ;;  %v15725_v18 = vpop.f32.mrf.mxu2 }
 0x509   : > { %v7524_v40 = vadd.f32 %v15481_v38, %v7355_v26  ;;  %v15688_v28 = vpop.permute.xlu0 %12753  ;;  %v12987_v26 = vpack.i.bf16 %v4403_v49, %v4401_v19  ;;  %v6699_v43 = vsel %vm1255_vm0, %v6635_v56, %v12051_v27  ;;  %v4529_v49 = vld [vmem:[#allocation2 + $0xb70] ss:$2 sm:$0xff]  ;;  %10060 = vmatpush.bf16.msrb.mxu3 %v11969_v23  ;;  %v12997_v56 = vpack.i.bf16 %v4659_v57, %v4657_v31  ;;  %v3736_v57 = vld [vmem:[#allocation2 + $0x8a0] ss:$2 sm:$0xff] }
 0x50a   : > { %v15693_v46 = vpop.permute.xlu1 %12758  ;;  %v15696_v15 = vpop.permute.xlu2 %12808  ;;  %v6764_v36 = vsel %vm6724_vm9, %v6699_v43, %v12741_v9  ;;  %v12992_v44 = vpack.i.bf16 %v4531_v6, %v4529_v49  ;;  %v12756_v51 = vunpack.i.h.bf16 %v15688_v28  ;;  %v12755_v37 = vunpack.i.l.bf16 %v15688_v28  ;;  %v4151_v23 = vld [vmem:[#allocation2 + $0xc18] ss:$2 sm:$0xff] }
 0x50b   : > { %vm7647_vm2 = vcmp.ge.f32.partialorder %v7524_v40, 0.0  ;;  %v7711_v38 = vmul.f32 0.01, %v7524_v40  ;;  %v12760_v28 = vunpack.i.l.bf16 %v15693_v46  ;;  %v4791_v43 = vld [vmem:[#allocation2 + $0xc32] ss:$2 sm:$0xff]  ;;  %v12106_v6 = vunpack.i.h.bf16 %v14548_v45 }
 0x50c   : > { %v3734_v49 = vld [vmem:[#allocation2 + $0x870] ss:$2 sm:$0xff] }
 0x50d   : > { %v7775_v1 = vsel %vm7647_vm2, %v7524_v40, %v7711_v38  ;;  %v12746_v40 = vunpack.i.h.bf16 %v15668_v48  ;;  %v4024_v48 = vld [vmem:[#allocation2 + $0xc02] ss:$2 sm:$0xff] }
 0x50e   : > { %8035 = vst.msk [vmem:[#allocation3 + $0x1f1] sm:$0xff] %vm1255_vm0, %v7775_v1  ;;  %v7356_v20 = vpop.f32.mrf.mxu1  ;;  %v12751_v1 = vunpack.i.h.bf16 %v15601_v62 }
 0x50f   : > { %v7357_v60 = vadd.f32 %v15514_v41, %v7356_v20  ;;  %11735 = vmatmul.msk.bf16.gmra.mxu2 %vm3057_vm1, %v7104_v55  ;;  %12978 = vrot.lane.b32.xlu0 %v12977_v17, %s13389_s26  ;;  %v6763_v41 = vsel %vm6724_vm9, %v6698_v3, %v12740_v30  ;;  %v6829_v27 = vsel %vm6789_vm10, %v6764_v36, %v12746_v40  ;;  %v12750_v55 = vunpack.i.l.bf16 %v15601_v62  ;;  %v4407_v40 = vld [vmem:[#allocation2 + $0xc1a] ss:$2 sm:$0xff] }
 0x510   : > { %12988 = vrot.lane.b32.xlu2 %v12987_v26, %s13388_s25  ;;  %12983 = vrot.lane.b32.xlu1 %v12982_v29, %s13390_s29  ;;  %v13002_v17 = vpack.i.bf16 %v4024_v48, %v4022_v25  ;;  %v6894_v20 = vsel %vm6854_vm14, %v6829_v27, %v12751_v1  ;;  %v12761_v26 = vunpack.i.h.bf16 %v15693_v46  ;;  %v4279_v46 = vld [vmem:[#allocation2 + $0xc19] ss:$2 sm:$0xff]  ;;  %v12105_v36 = vunpack.i.l.bf16 %v14548_v45 }
 0x511   : > { %v7526_v24 = vadd.f32 %v15507_v13, %v7357_v60  ;;  %7383 = vmatmul.bf16.gmra.mxu1 %v7085_v35  ;;  %v15720_v19 = vpop.permute.xlu0 %12768  ;;  %v6828_v13 = vsel %vm6789_vm10, %v6763_v41, %v12745_v2  ;;  %v6959_v29 = vsel %vm6919_vm15, %v6894_v20, %v12756_v51  ;;  %v4149_v35 = vld [vmem:[#allocation2 + $0xbe8] ss:$2 sm:$0xff]  ;;  %v12765_v48 = vunpack.i.l.bf16 %v15619_v54 }
 0x512   : > { %v15723_v14 = vpop.permute.xlu1 %12773  ;;  %v15731_v30 = vpop.permute.xlu2 %12823  ;;  %v6893_v9 = vsel %vm6854_vm14, %v6828_v13, %v12750_v55  ;;  %v4789_v2 = vld [vmem:[#allocation2 + $0xc02] ss:$2 sm:$0xff]  ;;  %v7024_v31 = vsel %vm6984_vm3, %v6959_v29, %v12761_v26  ;;  %v13007_v51 = vpack.i.bf16 %v4151_v23, %v4149_v35 }
 0x513   : > { %vm7648_vm12 = vcmp.ge.f32.partialorder %v7526_v24, 0.0  ;;  %v7712_v38 = vmul.f32 0.01, %v7526_v24  ;;  %v6958_v62 = vsel %vm6919_vm15, %v6893_v9, %v12755_v37  ;;  %v4405_v41 = vld [vmem:[#allocation2 + $0xbea] ss:$2 sm:$0xff]  ;;  %v15755_v13 = vpop.f32.mrf.mxu2  ;;  %v7106_v27 = vpack.c.bf16 %v4791_v43, %v4789_v2 }
 0x514   : > { %v7023_v25 = vsel %vm6984_vm3, %v6958_v62, %v12760_v28  ;;  %v12771_v37 = vunpack.i.h.bf16 %v15720_v19  ;;  %v13017_v1 = vpack.i.bf16 %v4407_v40, %v4405_v41  ;;  %v12776_v20 = vunpack.i.h.bf16 %v15723_v14  ;;  %v4533_v62 = vld [vmem:[#allocation2 + $0xc00] ss:$2 sm:$0xff]  ;;  %v4535_v29 = vld [vmem:[#allocation2 + $0xc30] ss:$2 sm:$0xff]  ;;  %v4661_v43 = vld [vmem:[#allocation2 + $0xc01] ss:$2 sm:$0xff] }
 0x515   : > { %v7776_v11 = vsel %vm7648_vm12, %v7526_v24, %v7712_v38  ;;  %v4277_v24 = vld [vmem:[#allocation2 + $0xbe9] ss:$2 sm:$0xff]  ;;  %v12766_v38 = vunpack.i.h.bf16 %v15619_v54  ;;  %v6637_v54 = vsel %vm3057_vm1, %v3736_v57, %v12106_v6  ;;  %v12775_v26 = vunpack.i.l.bf16 %v15723_v14  ;;  %v4026_v41 = vld [vmem:[#allocation2 + $0xc32] ss:$2 sm:$0xff]  ;;  %v4028_v40 = vld [vmem:[#allocation2 + $0xc62] ss:$2 sm:$0xff] }
 0x516   : > { %8036 = vst.msk [vmem:[#allocation3 + $0x201] sm:$0xff] %vm1255_vm0, %v7776_v11  ;;  %v12770_v11 = vunpack.i.l.bf16 %v15720_v19  ;;  %v13012_v45 = vpack.i.bf16 %v4279_v46, %v4277_v24  ;;  %v4663_v24 = vld [vmem:[#allocation2 + $0xc31] ss:$2 sm:$0xff]  ;;  %v13022_v46 = vpack.i.bf16 %v4535_v29, %v4533_v62  ;;  %v12780_v57 = vunpack.i.l.bf16 %v15640_v59 }
 0x517   : > { %12993 = vrot.lane.b32.xlu0 %v12992_v44, %s13392_s10  ;;  %v6701_v9 = vsel %vm1255_vm0, %v6637_v54, %v12766_v38  ;;  %v13032_v38 = vpack.i.bf16 %v4028_v40, %v4026_v41  ;;  %v4153_v54 = vld [vmem:[#allocation2 + $0xc48] ss:$2 sm:$0xff]  ;;  %v4281_v62 = vld [vmem:[#allocation2 + $0xc49] ss:$2 sm:$0xff]  ;;  %v4283_v29 = vld [vmem:[#allocation2 + $0xc79] ss:$2 sm:$0xff] }
 0x518   : > { %13003 = vrot.lane.b32.xlu2 %v13002_v17, %s13387_s24  ;;  %12998 = vrot.lane.b32.xlu1 %v12997_v56, %s13391_s30  ;;  %v7087_v17 = vpack.c.bf16 %v7024_v31, %v7023_v25  ;;  %v6636_v56 = vsel %vm3057_vm1, %v3734_v49, %v12105_v36  ;;  %v6766_v23 = vsel %vm6724_vm9, %v6701_v9, %v12771_v37  ;;  %v8115_v49 = vld [vmem:[#allocation3 + $0x320] ss:$2 sm:$0xf]  ;;  %v12781_v31 = vunpack.i.h.bf16 %v15640_v59  ;;  %v3738_v40 = vld [vmem:[#allocation2 + $0x8d0] ss:$2 sm:$0xff] }
 0x519   : > { %v15745_v60 = vpop.permute.xlu0 %12783  ;;  %v6700_v19 = vsel %vm1255_vm0, %v6636_v56, %v12765_v48  ;;  %v6831_v6 = vsel %vm6789_vm10, %v6766_v23, %v12776_v20  ;;  %v13027_v48 = vpack.i.bf16 %v4663_v24, %v4661_v43  ;;  %v4155_v56 = vld [vmem:[#allocation2 + $0xc78] ss:$2 sm:$0xff]  ;;  %v12160_v23 = vunpack.i.l.bf16 %v14618_v8 }
 0x51a   : > { %v15747_v3 = vpop.permute.xlu1 %12788  ;;  %v15759_v55 = vpop.permute.xlu2 %12838  ;;  %v6765_v35 = vsel %vm6724_vm9, %v6700_v19, %v12770_v11  ;;  %v12786_v36 = vunpack.i.h.bf16 %v15745_v60  ;;  %v12785_v25 = vunpack.i.l.bf16 %v15745_v60  ;;  %v6896_v37 = vsel %vm6854_vm14, %v6831_v6, %v12781_v31  ;;  %v4793_v9 = vld [vmem:[#allocation2 + $0xc62] ss:$2 sm:$0xff]  ;;  %v4795_v20 = vld [vmem:[#allocation2 + $0xc92] ss:$2 sm:$0xff] }
 0x51b   : > { %v6830_v14 = vsel %vm6789_vm10, %v6765_v35, %v12775_v26  ;;  %v12791_v11 = vunpack.i.h.bf16 %v15747_v3  ;;  %v12790_v60 = vunpack.i.l.bf16 %v15747_v3  ;;  %v4409_v26 = vld [vmem:[#allocation2 + $0xc4a] ss:$2 sm:$0xff]  ;;  %v4411_v3 = vld [vmem:[#allocation2 + $0xc7a] ss:$2 sm:$0xff]  ;;  %v12161_v35 = vunpack.i.h.bf16 %v14618_v8 }
 0x51c   : > { %v3740_v24 = vld [vmem:[#allocation2 + $0x900] ss:$2 sm:$0xff]  ;;  %v7108_v6 = vpack.c.bf16 %v4795_v20, %v4793_v9  ;;  %v13047_v31 = vpack.i.bf16 %v4411_v3, %v4409_v26  ;;  %v4665_v20 = vld [vmem:[#allocation2 + $0xc61] ss:$2 sm:$0xff] }
 0x51d   : > { %v8101_v44 = vld [vmem:[#allocation3 + $0x200] ss:$2 sm:$0xf] }
 0x51e   : > { %8705 = vst [vmem:[#allocation1 + $0x21] ss:$2 sm:$0xff] %v8101_v44  ;;  %v15783_v44 = vpop.f32.mrf.mxu2  ;;  %v4030_v3 = vld [vmem:[#allocation2 + $0xc92] ss:$2 sm:$0xff] }
 0x51f   : > { %11736 = vmatmul.msk.bf16.gmra.mxu2 %vm3057_vm1, %v7106_v27  ;;  %13008 = vrot.lane.b32.xlu0 %v13007_v51, %s13389_s26  ;;  %v6895_v51 = vsel %vm6854_vm14, %v6830_v14, %v12780_v57  ;;  %v13037_v14 = vpack.i.bf16 %v4155_v56, %v4153_v54  ;;  %v13042_v57 = vpack.i.bf16 %v4283_v29, %v4281_v62  ;;  %v4032_v62 = vld [vmem:[#allocation2 + $0xcc2] ss:$2 sm:$0xff]  ;;  %v4667_v29 = vld [vmem:[#allocation2 + $0xc91] ss:$2 sm:$0xff] }
 0x520   : > { %13018 = vrot.lane.b32.xlu2 %v13017_v1, %s13388_s25  ;;  %13013 = vrot.lane.b32.xlu1 %v13012_v45, %s13390_s29  ;;  %v6960_v59 = vsel %vm6919_vm15, %v6895_v51, %v12785_v25  ;;  %v6961_v1 = vsel %vm6919_vm15, %v6896_v37, %v12786_v36 }
 0x521   : > { %7388 = vmatmul.bf16.gmra.mxu1 %v7087_v17  ;;  %v15771_v28 = vpop.permute.xlu0 %12798  ;;  %v7025_v43 = vsel %vm6984_vm3, %v6960_v59, %v12790_v60  ;;  %v7026_v41 = vsel %vm6984_vm3, %v6961_v1, %v12791_v11  ;;  %v4537_v59 = vld [vmem:[#allocation2 + $0xc60] ss:$2 sm:$0xff]  ;;  %v4539_v1 = vld [vmem:[#allocation2 + $0xc90] ss:$2 sm:$0xff] }
 0x522   : > { %v15775_v2 = vpop.permute.xlu1 %12803  ;;  %v15796_v45 = vpop.permute.xlu2 %12853  ;;  %v12801_v36 = vunpack.i.h.bf16 %v15771_v28  ;;  %v12800_v25 = vunpack.i.l.bf16 %v15771_v28  ;;  %v7089_v8 = vpack.c.bf16 %v7026_v41, %v7025_v43 }
 0x523   : > { %v12806_v37 = vunpack.i.h.bf16 %v15775_v2  ;;  %v12805_v11 = vunpack.i.l.bf16 %v15775_v2 }
 0x525   : > { %v15785_v27 = vld.sshfl [vmem:[#allocation1 + $0x20] sm:$0xff pattern:$0x75316420] }
 0x526   : > { %8716 = vst [vmem:[#allocation1 + $0x20] ss:$2 sm:$0xff] %v8115_v49  ;;  %v12795_v49 = vunpack.i.l.bf16 %v15666_v47  ;;  %v15818_v28 = vpop.f32.mrf.mxu2 }
 0x527   : > { %13023 = vrot.lane.b32.xlu0 %v13022_v46, %s13392_s10  ;;  %v12796_v46 = vunpack.i.h.bf16 %v15666_v47 }
 0x528   : > { %13033 = vrot.lane.b32.xlu2 %v13032_v38, %s13387_s24  ;;  %13028 = vrot.lane.b32.xlu1 %v13027_v48, %s13391_s30  ;;  %v6639_v38 = vsel %vm3057_vm1, %v3740_v24, %v12161_v35  ;;  %v6638_v48 = vsel %vm3057_vm1, %v3738_v40, %v12160_v23  ;;  %v13052_v35 = vpack.i.bf16 %v4539_v1, %v4537_v59  ;;  %v12811_v40 = vunpack.i.h.bf16 %v15696_v15  ;;  %v4285_v59 = vld [vmem:[#allocation2 + $0xca9] ss:$2 sm:$0xff]  ;;  %v4287_v1 = vld [vmem:[#allocation2 + $0xcd9] ss:$2 sm:$0xff] }
 0x529   : > { %v15798_v17 = vpop.permute.xlu0 %12813  ;;  %v6703_v47 = vsel %vm1255_vm0, %v6639_v38, %v12796_v46  ;;  %v6702_v51 = vsel %vm1255_vm0, %v6638_v48, %v12795_v49  ;;  %v12810_v24 = vunpack.i.l.bf16 %v15696_v15  ;;  %v13062_v46 = vpack.i.bf16 %v4032_v62, %v4030_v3  ;;  %v4797_v48 = vld [vmem:[#allocation2 + $0xcc2] ss:$2 sm:$0xff] }
 0x52a   : > { %v15800_v19 = vpop.permute.xlu1 %12818  ;;  %v6767_v54 = vsel %vm6724_vm9, %v6702_v51, %v12800_v25  ;;  %v6768_v56 = vsel %vm6724_vm9, %v6703_v47, %v12801_v36  ;;  %v15828_v26 = vpop.permute.xlu2 %12868  ;;  %v12816_v43 = vunpack.i.h.bf16 %v15798_v17  ;;  %v12815_v41 = vunpack.i.l.bf16 %v15798_v17  ;;  %v4799_v47 = vld [vmem:[#allocation2 + $0xcf2] ss:$2 sm:$0xff] }
 0x52b   : > { %v6833_v2 = vsel %vm6789_vm10, %v6768_v56, %v12806_v37  ;;  %v6832_v23 = vsel %vm6789_vm10, %v6767_v54, %v12805_v11  ;;  %v13057_v49 = vpack.i.bf16 %v4667_v29, %v4665_v20  ;;  %v12821_v36 = vunpack.i.h.bf16 %v15800_v19  ;;  %v4413_v51 = vld [vmem:[#allocation2 + $0xcaa] ss:$2 sm:$0xff]  ;;  %v4415_v11 = vld [vmem:[#allocation2 + $0xcda] ss:$2 sm:$0xff] }
 0x52c   : > { %v12820_v25 = vunpack.i.l.bf16 %v15800_v19  ;;  %v12215_v37 = vunpack.i.l.bf16 %v14859_v22  ;;  %v3742_v54 = vld [vmem:[#allocation2 + $0x930] ss:$2 sm:$0xff]  ;;  %v12216_v56 = vunpack.i.h.bf16 %v14859_v22  ;;  %v12825_v20 = vunpack.i.l.bf16 %v15731_v30  ;;  %v3744_v29 = vld [vmem:[#allocation2 + $0x960] ss:$2 sm:$0xff] }
 0x52d   : > { %v13072_v22 = vpack.i.bf16 %v4287_v1, %v4285_v59  ;;  %v4034_v59 = vld [vmem:[#allocation2 + $0xcf2] ss:$2 sm:$0xff]  ;;  %v4669_v1 = vld [vmem:[#allocation2 + $0xcc1] ss:$2 sm:$0xff] }
 0x52e   : > { %v15850_v19 = vpop.f32.mrf.mxu2 }
 0x52f   : > { %11737 = vmatmul.msk.bf16.gmra.mxu2 %vm3057_vm1, %v7108_v6  ;;  %13038 = vrot.lane.b32.xlu0 %v13037_v14, %s13389_s26  ;;  %v6897_v6 = vsel %vm6854_vm14, %v6832_v23, %v12810_v24  ;;  %v6898_v14 = vsel %vm6854_vm14, %v6833_v2, %v12811_v40 }
 0x530   : > { %13048 = vrot.lane.b32.xlu2 %v13047_v31, %s13388_s25  ;;  %13043 = vrot.lane.b32.xlu1 %v13042_v57, %s13390_s29  ;;  %v6962_v17 = vsel %vm6919_vm15, %v6897_v6, %v12815_v41  ;;  %v6963_v15 = vsel %vm6919_vm15, %v6898_v14, %v12816_v43  ;;  %v4157_v57 = vld [vmem:[#allocation2 + $0xca8] ss:$2 sm:$0xff]  ;;  %v7110_v43 = vpack.c.bf16 %v4799_v47, %v4797_v48  ;;  %v15865_v6 = vld [vmem:[%s16984_s4] ss:$0 sm:$0xff] }
 0x531   : > { %7393 = vmatmul.bf16.gmra.mxu1 %v7089_v8  ;;  %v15822_v60 = vpop.permute.xlu0 %12828  ;;  %v4159_v8 = vld [vmem:[#allocation2 + $0xcd8] ss:$2 sm:$0xff]  ;;  %v7027_v3 = vsel %vm6984_vm3, %v6962_v17, %v12820_v25  ;;  %v7028_v62 = vsel %vm6984_vm3, %v6963_v15, %v12821_v36  ;;  %v6641_v36 = vsel %vm3057_vm1, %v3744_v29, %v12216_v56 }
 0x532   : > { %v15826_v9 = vpop.permute.xlu1 %12833  ;;  %v12830_v2 = vunpack.i.l.bf16 %v15822_v60  ;;  %v15858_v23 = vpop.permute.xlu2 %12883  ;;  %v13067_v41 = vpack.i.bf16 %v4159_v8, %v4157_v57  ;;  %v12831_v40 = vunpack.i.h.bf16 %v15822_v60  ;;  %v7091_v14 = vpack.c.bf16 %v7028_v62, %v7027_v3  ;;  %v4541_v47 = vld [vmem:[#allocation2 + $0xcc0] ss:$2 sm:$0xff] }
 0x533   : > { %v12835_v25 = vunpack.i.l.bf16 %v15826_v9  ;;  %v12836_v57 = vunpack.i.h.bf16 %v15826_v9 }
 0x536   : > { %v15885_v62 = vpop.f32.mrf.mxu2 }
 0x537   : > { %13053 = vrot.lane.b32.xlu0 %v13052_v35, %s13392_s10  ;;  %v12826_v35 = vunpack.i.h.bf16 %v15731_v30 }
 0x538   : > { %13063 = vrot.lane.b32.xlu2 %v13062_v46, %s13387_s24  ;;  %13058 = vrot.lane.b32.xlu1 %v13057_v49, %s13391_s30  ;;  %v13077_v46 = vpack.i.bf16 %v4415_v11, %v4413_v51  ;;  %v6640_v49 = vsel %vm3057_vm1, %v3742_v54, %v12215_v37  ;;  %v4543_v51 = vld [vmem:[#allocation2 + $0xcf0] ss:$2 sm:$0xff]  ;;  %v4671_v54 = vld [vmem:[#allocation2 + $0xcf1] ss:$2 sm:$0xff] }
 0x539   : > { %v15845_v31 = vpop.permute.xlu0 %12843  ;;  %v6704_v60 = vsel %vm1255_vm0, %v6640_v49, %v12825_v20  ;;  %v6705_v17 = vsel %vm1255_vm0, %v6641_v36, %v12826_v35  ;;  %v4036_v20 = vld [vmem:[#allocation2 + $0xd22] ss:$2 sm:$0xff]  ;;  %v13082_v9 = vpack.i.bf16 %v4543_v51, %v4541_v47 }
 0x53a   : > { %v15847_v38 = vpop.permute.xlu1 %12848  ;;  %v6769_v15 = vsel %vm6724_vm9, %v6704_v60, %v12830_v2  ;;  %v6770_v37 = vsel %vm6724_vm9, %v6705_v17, %v12831_v40  ;;  %v12846_v29 = vunpack.i.h.bf16 %v15845_v31  ;;  %v12845_v35 = vunpack.i.l.bf16 %v15845_v31  ;;  %v4419_v47 = vld [vmem:[#allocation2 + $0xd3a] ss:$2 sm:$0xff] }
 0x53b   : > { %v6834_v3 = vsel %vm6789_vm10, %v6769_v15, %v12835_v25  ;;  %v12850_v36 = vunpack.i.l.bf16 %v15847_v38 }
 0x53e   : > { %v7359_v24 = vpop.f32.mrf.mxu1 }
 0x53f   : > { %v7360_v30 = vadd.f32 %v15865_v6, %v7359_v24  ;;  %11738 = vmatmul.msk.bf16.gmra.mxu2 %vm3057_vm1, %v7110_v43  ;;  %13068 = vrot.lane.b32.xlu0 %v13067_v41, %s13389_s26  ;;  %v12841_v43 = vunpack.i.h.bf16 %v15759_v55  ;;  %v12840_v41 = vunpack.i.l.bf16 %v15759_v55  ;;  %v13092_v24 = vpack.i.bf16 %v4036_v20, %v4034_v59  ;;  %v4161_v55 = vld [vmem:[#allocation2 + $0xd08] ss:$2 sm:$0xff]  ;;  %v4289_v59 = vld [vmem:[#allocation2 + $0xd09] ss:$2 sm:$0xff] }
 0x540   : > { %13078 = vrot.lane.b32.xlu2 %v13077_v46, %s13388_s25  ;;  %13073 = vrot.lane.b32.xlu1 %v13072_v22, %s13390_s29  ;;  %v13087_v46 = vpack.i.bf16 %v4671_v54, %v4669_v1  ;;  %v15893_v22 = vpop.permute.xlu2 %12898  ;;  %v12270_v1 = vunpack.i.l.bf16 %v15031_v42  ;;  %v3746_v20 = vld [vmem:[#allocation2 + $0x990] ss:$2 sm:$0xff] }
 0x541   : > { %v7529_v8 = vadd.f32 %v15538_v52, %v7360_v30  ;;  %7398 = vmatmul.bf16.gmra.mxu1 %v7091_v14  ;;  %v15879_v48 = vpop.permute.xlu0 %12858  ;;  %v6835_v52 = vsel %vm6789_vm10, %v6770_v37, %v12836_v57  ;;  %v6899_v30 = vsel %vm6854_vm14, %v6834_v3, %v12840_v41  ;;  %v12851_v14 = vunpack.i.h.bf16 %v15847_v38  ;;  %v4163_v57 = vld [vmem:[#allocation2 + $0xd38] ss:$2 sm:$0xff] }
 0x542   : > { %v15882_v11 = vpop.permute.xlu1 %12863  ;;  %v6900_v31 = vsel %vm6854_vm14, %v6835_v52, %v12841_v43  ;;  %v6964_v60 = vsel %vm6919_vm15, %v6899_v30, %v12845_v35  ;;  %v4801_v37 = vld [vmem:[#allocation2 + $0xd22] ss:$2 sm:$0xff]  ;;  %v4803_v38 = vld [vmem:[#allocation2 + $0xd52] ss:$2 sm:$0xff]  ;;  %v12271_v3 = vunpack.i.h.bf16 %v15031_v42  ;;  %v12856_v35 = vunpack.i.h.bf16 %v15796_v45 }
 0x543   : > { %vm7649_vm8 = vcmp.ge.f32.partialorder %v7529_v8, 0.0  ;;  %v7713_v56 = vmul.f32 0.01, %v7529_v8  ;;  %v6965_v25 = vsel %vm6919_vm15, %v6900_v31, %v12846_v29  ;;  %v3748_v29 = vld [vmem:[#allocation2 + $0x9c0] ss:$2 sm:$0xff]  ;;  %v7112_v43 = vpack.c.bf16 %v4803_v38, %v4801_v37  ;;  %v15920_v31 = vpop.f32.mrf.mxu2 }
 0x544   : > { %v7030_v52 = vsel %vm6984_vm3, %v6965_v25, %v12851_v14  ;;  %v13097_v41 = vpack.i.bf16 %v4163_v57, %v4161_v55  ;;  %v6642_v30 = vsel %vm3057_vm1, %v3746_v20, %v12270_v1  ;;  %v12866_v25 = vunpack.i.h.bf16 %v15882_v11  ;;  %v4547_v37 = vld [vmem:[#allocation2 + $0xd50] ss:$2 sm:$0xff]  ;;  %v4675_v20 = vld [vmem:[#allocation2 + $0xd51] ss:$2 sm:$0xff] }
 0x545   : > { %v7777_v2 = vsel %vm7649_vm8, %v7529_v8, %v7713_v56  ;;  %v4417_v8 = vld [vmem:[#allocation2 + $0xd0a] ss:$2 sm:$0xff]  ;;  %v4291_v56 = vld [vmem:[#allocation2 + $0xd39] ss:$2 sm:$0xff] }
 0x546   : > { %8037 = vst.msk [vmem:[#allocation3 + $0x211] sm:$0xff] %vm1255_vm0, %v7777_v2  ;;  %v7361_v40 = vpop.f32.mrf.mxu1  ;;  %v13107_v42 = vpack.i.bf16 %v4419_v47, %v4417_v8  ;;  %v4545_v47 = vld [vmem:[#allocation2 + $0xd20] ss:$2 sm:$0xff] }
 0x547   : > { %v7362_v49 = vadd.f32 %v15865_v6, %v7361_v40  ;;  %13083 = vrot.lane.b32.xlu0 %v13082_v9, %s13392_s10  ;;  %v7029_v9 = vsel %vm6984_vm3, %v6964_v60, %v12850_v36  ;;  %v12861_v40 = vunpack.i.h.bf16 %v15879_v48  ;;  %v6643_v36 = vsel %vm3057_vm1, %v3748_v29, %v12271_v3 }
 0x548   : > { %13093 = vrot.lane.b32.xlu2 %v13092_v24, %s13387_s24  ;;  %13088 = vrot.lane.b32.xlu1 %v13087_v46, %s13391_s30  ;;  %v12860_v24 = vunpack.i.l.bf16 %v15879_v48  ;;  %v6707_v55 = vsel %vm1255_vm0, %v6643_v36, %v12856_v35  ;;  %v15930_v60 = vpop.permute.xlu2 %12913  ;;  %v13112_v3 = vpack.i.bf16 %v4547_v37, %v4545_v47  ;;  %v12871_v29 = vunpack.i.h.bf16 %v15828_v26 }
 0x549   : > { %v7531_v17 = vadd.f32 %v15559_v10, %v7362_v49  ;;  %v15906_v15 = vpop.permute.xlu0 %12873  ;;  %v12855_v10 = vunpack.i.l.bf16 %v15796_v45  ;;  %v13102_v49 = vpack.i.bf16 %v4291_v56, %v4289_v59  ;;  %v7093_v45 = vpack.c.bf16 %v7030_v52, %v7029_v9 }
 0x54a   : > { %v15908_v51 = vpop.permute.xlu1 %12878  ;;  %v6772_v59 = vsel %vm6724_vm9, %v6707_v55, %v12861_v40  ;;  %v12876_v9 = vunpack.i.h.bf16 %v15906_v15  ;;  %v12875_v52 = vunpack.i.l.bf16 %v15906_v15  ;;  %v12870_v35 = vunpack.i.l.bf16 %v15828_v26  ;;  %v15947_v40 = vld.sshfl [vmem:[#allocation1 + $0x30] sm:$0xff pattern:$0x75316420] }
 0x54b   : > { %vm7650_vm13 = vcmp.ge.f32.partialorder %v7531_v17, 0.0  ;;  %v7714_v54 = vmul.f32 0.01, %v7531_v17  ;;  %v6706_v48 = vsel %vm1255_vm0, %v6642_v30, %v12855_v10  ;;  %v12881_v15 = vunpack.i.h.bf16 %v15908_v51 }
 0x54c   : > { %v6771_v38 = vsel %vm6724_vm9, %v6706_v48, %v12860_v24  ;;  %v12006_v48 = vunpack.i.h.bf16 %v14312_v53 }
 0x54d   : > { %v7778_v2 = vsel %vm7650_vm13, %v7531_v17, %v7714_v54  ;;  %v12865_v17 = vunpack.i.l.bf16 %v15882_v11  ;;  %v4673_v54 = vld [vmem:[#allocation2 + $0xd21] ss:$2 sm:$0xff]  ;;  %v6837_v11 = vsel %vm6789_vm10, %v6772_v59, %v12866_v25 }
 0x54e   : > { %8038 = vst.msk [vmem:[#allocation3 + $0x221] sm:$0xff] %vm1255_vm0, %v7778_v2  ;;  %v7364_v46 = vpop.f32.mrf.mxu1 }
 0x54f   : > { %v7365_v14 = vadd.f32 %v15865_v6, %v7364_v46  ;;  %11739 = vmatmul.msk.bf16.gmra.mxu2 %vm3057_vm1, %v7112_v43  ;;  %13098 = vrot.lane.b32.xlu0 %v13097_v41, %s13389_s26  ;;  %v13117_v41 = vpack.i.bf16 %v4675_v20, %v4673_v54 }
 0x550   : > { %13108 = vrot.lane.b32.xlu2 %v13107_v42, %s13388_s25  ;;  %13103 = vrot.lane.b32.xlu1 %v13102_v49, %s13390_s29  ;;  %v6902_v42 = vsel %vm6854_vm14, %v6837_v11, %v12871_v29  ;;  %v12880_v49 = vunpack.i.l.bf16 %v15908_v51  ;;  %v15963_v55 = vpop.permute.xlu2 %12928  ;;  %v12005_v51 = vunpack.i.l.bf16 %v14312_v53  ;;  %v11968_v53 = vld [vmem:[%s16985_s5 + $0x30] sm:$0xff] }
 0x551   : > { %v7534_v57 = vadd.f32 %v15582_v32, %v7365_v14  ;;  %7403 = vmatmul.bf16.gmra.mxu1 %v7093_v45  ;;  %v15935_v8 = vpop.permute.xlu0 %12888  ;;  %v6836_v32 = vsel %vm6789_vm10, %v6771_v38, %v12865_v17  ;;  %v6967_v30 = vsel %vm6919_vm15, %v6902_v42, %v12876_v9  ;;  %v3752_v17 = vld [vmem:[#allocation2 + $0xa50] ss:$2 sm:$0xff]  ;;  %v3750_v38 = vld [vmem:[#allocation2 + $0xa20] ss:$2 sm:$0xff]  ;;  %10061 = vmatpush.bf16.msrb.mxu3 %v11968_v53  ;;  %v12915_v53 = vunpack.i.l.bf16 %v15930_v60 }
 0x552   : > { %v15939_v1 = vpop.permute.xlu1 %12893  ;;  %v6901_v46 = vsel %vm6854_vm14, %v6836_v32, %v12870_v35  ;;  %v7032_v37 = vsel %vm6984_vm3, %v6967_v30, %v12881_v15  ;;  %v12891_v54 = vunpack.i.h.bf16 %v15935_v8  ;;  %v12900_v30 = vunpack.i.l.bf16 %v15893_v22 }
 0x553   : > { %vm7651_vm4 = vcmp.ge.f32.partialorder %v7534_v57, 0.0  ;;  %v7715_v56 = vmul.f32 0.01, %v7534_v57  ;;  %v6966_v26 = vsel %vm6919_vm15, %v6901_v46, %v12875_v52  ;;  %v12895_v52 = vunpack.i.l.bf16 %v15939_v1 }
 0x554   : > { %v7031_v47 = vsel %vm6984_vm3, %v6966_v26, %v12880_v49 }
 0x555   : > { %v8103_v10 = vld [vmem:[#allocation3 + $0x220] ss:$2 sm:$0xf]  ;;  %v7779_v2 = vsel %vm7651_vm4, %v7534_v57, %v7715_v56  ;;  %v12886_v57 = vunpack.i.h.bf16 %v15858_v23  ;;  %v12890_v56 = vunpack.i.l.bf16 %v15935_v8  ;;  %v7095_v32 = vpack.c.bf16 %v7032_v37, %v7031_v47 }
 0x556   : > { %v7366_v43 = vpop.f32.mrf.mxu1  ;;  %8706 = vst [vmem:[#allocation1 + $0x30] ss:$2 sm:$0xff] %v8103_v10  ;;  %v6644_v10 = vsel %vm3057_vm1, %v3750_v38, %v12005_v51  ;;  %v12896_v8 = vunpack.i.h.bf16 %v15939_v1 }
 0x557   : > { %v7367_v24 = vadd.f32 %v15865_v6, %v7366_v43  ;;  %13113 = vrot.lane.b32.xlu0 %v13112_v3, %s13392_s10  ;;  %8039 = vst.msk [vmem:[#allocation3 + $0x231] sm:$0xff] %vm1255_vm0, %v7779_v2  ;;  %v6645_v3 = vsel %vm3057_vm1, %v3752_v17, %v12006_v48 }
 0x558   : > { %13118 = vrot.lane.b32.xlu1 %v13117_v41, %s13391_s30  ;;  %v15986_v46 = vpop.permute.xlu2 %12943 }
 0x559   : > { %v7536_v14 = vadd.f32 %v15603_v12, %v7367_v24  ;;  %v12904_v45 = vpop.permute.xlu0 %12903  ;;  %v12885_v12 = vunpack.i.l.bf16 %v15858_v23  ;;  %v6709_v23 = vsel %vm1255_vm0, %v6645_v3, %v12886_v57 }
 0x55a   : > { %v15960_v36 = vpop.permute.xlu1 %12908  ;;  %v6774_v43 = vsel %vm6724_vm9, %v6709_v23, %v12891_v54  ;;  %v12906_v26 = vunpack.i.h.bf16 %v12904_v45  ;;  %v12905_v1 = vunpack.i.l.bf16 %v12904_v45 }
 0x55b   : > { %vm7652_vm5 = vcmp.ge.f32.partialorder %v7536_v14, 0.0  ;;  %v7716_v25 = vmul.f32 0.01, %v7536_v14  ;;  %v6708_v9 = vsel %vm1255_vm0, %v6644_v10, %v12885_v12  ;;  %v6839_v42 = vsel %vm6789_vm10, %v6774_v43, %v12896_v8 }
 0x55c   : > { %v6773_v2 = vsel %vm6724_vm9, %v6708_v9, %v12890_v56  ;;  %v12911_v57 = vunpack.i.h.bf16 %v15960_v36  ;;  %v12910_v47 = vunpack.i.l.bf16 %v15960_v36  ;;  %v3754_v56 = vld [vmem:[#allocation2 + $0xa80] ss:$2 sm:$0xff] }
 0x55d   : > { %v7780_v59 = vsel %vm7652_vm5, %v7536_v14, %v7716_v25  ;;  %v6838_v15 = vsel %vm6789_vm10, %v6773_v2, %v12895_v52 }
 0x55e   : > { %8040 = vst.msk [vmem:[#allocation3 + $0x241] sm:$0xff] %vm1255_vm0, %v7780_v59  ;;  %v7369_v20 = vpop.f32.mrf.mxu1  ;;  %v6903_v51 = vsel %vm6854_vm14, %v6838_v15, %v12900_v30  ;;  %v12065_v59 = vunpack.i.l.bf16 %v14434_v4 }
 0x55f   : > { %v7370_v11 = vadd.f32 %v15865_v6, %v7369_v20  ;;  %v6968_v37 = vsel %vm6919_vm15, %v6903_v51, %v12905_v1  ;;  %v12066_v20 = vunpack.i.h.bf16 %v14434_v4 }
 0x560   : > { %v7033_v36 = vsel %vm6984_vm3, %v6968_v37, %v12910_v47  ;;  %v6646_v8 = vsel %vm3057_vm1, %v3754_v56, %v12065_v59  ;;  %v16009_v52 = vpop.permute.xlu2 %12958 }
 0x561   : > { %v7539_v29 = vadd.f32 %v15627_v58, %v7370_v11  ;;  %7408 = vmatmul.bf16.gmra.mxu1 %v7095_v32  ;;  %v12919_v35 = vpop.permute.xlu0 %12918  ;;  %v12901_v58 = vunpack.i.h.bf16 %v15893_v22  ;;  %v3756_v11 = vld [vmem:[#allocation2 + $0xab0] ss:$2 sm:$0xff]  ;;  %v12916_v32 = vunpack.i.h.bf16 %v15930_v60  ;;  %v6710_v43 = vsel %vm1255_vm0, %v6646_v8, %v12915_v53 }
 0x562   : > { %v12924_v41 = vpop.permute.xlu1 %12923  ;;  %v12920_v10 = vunpack.i.l.bf16 %v12919_v35  ;;  %v12921_v23 = vunpack.i.h.bf16 %v12919_v35  ;;  %v6647_v2 = vsel %vm3057_vm1, %v3756_v11, %v12066_v20  ;;  %v12120_v53 = vunpack.i.l.bf16 %v14567_v16 }
 0x563   : > { %vm7653_vm6 = vcmp.ge.f32.partialorder %v7539_v29, 0.0  ;;  %v7717_v24 = vmul.f32 0.01, %v7539_v29  ;;  %v6904_v17 = vsel %vm6854_vm14, %v6839_v42, %v12901_v58  ;;  %v6711_v60 = vsel %vm1255_vm0, %v6647_v2, %v12916_v32 }
 0x564   : > { %v6969_v45 = vsel %vm6919_vm15, %v6904_v17, %v12906_v26  ;;  %v6775_v42 = vsel %vm6724_vm9, %v6710_v43, %v12920_v10  ;;  %v12926_v35 = vunpack.i.h.bf16 %v12924_v41  ;;  %v6776_v26 = vsel %vm6724_vm9, %v6711_v60, %v12921_v23 }
 0x565   : > { %v8105_v49 = vld [vmem:[#allocation3 + $0x240] ss:$2 sm:$0xf]  ;;  %v7781_v14 = vsel %vm7653_vm6, %v7539_v29, %v7717_v24  ;;  %v7034_v3 = vsel %vm6984_vm3, %v6969_v45, %v12911_v57  ;;  %v12925_v24 = vunpack.i.l.bf16 %v12924_v41  ;;  %v12931_v17 = vunpack.i.h.bf16 %v15963_v55 }
 0x566   : > { %v7371_v48 = vpop.f32.mrf.mxu1  ;;  %8707 = vst [vmem:[#allocation1 + $0x31] ss:$2 sm:$0xff] %v8105_v49  ;;  %v7097_v29 = vpack.c.bf16 %v7034_v3, %v7033_v36  ;;  %v12930_v41 = vunpack.i.l.bf16 %v15963_v55  ;;  %v3758_v3 = vld [vmem:[#allocation2 + $0xae0] ss:$2 sm:$0xff]  ;;  %v12121_v11 = vunpack.i.h.bf16 %v14567_v16  ;;  %v12946_v23 = vunpack.i.h.bf16 %v15986_v46 }
 0x567   : > { %v7372_v25 = vadd.f32 %v15865_v6, %v7371_v48  ;;  %8041 = vst.msk [vmem:[#allocation3 + $0x251] sm:$0xff] %vm1255_vm0, %v7781_v14  ;;  %v6840_v30 = vsel %vm6789_vm10, %v6775_v42, %v12925_v24  ;;  %v6841_v14 = vsel %vm6789_vm10, %v6776_v26, %v12926_v35 }
 0x568   : > { %v6905_v47 = vsel %vm6854_vm14, %v6840_v30, %v12930_v41  ;;  %v6906_v37 = vsel %vm6854_vm14, %v6841_v14, %v12931_v17  ;;  %v16026_v59 = vpop.permute.xlu2 %12973  ;;  %v12961_v17 = vunpack.i.h.bf16 %v16009_v52  ;;  %v12960_v41 = vunpack.i.l.bf16 %v16009_v52 }
 0x569   : > { %v7541_v22 = vadd.f32 %v15654_v39, %v7372_v25  ;;  %v12934_v38 = vpop.permute.xlu0 %12933 }
 0x56a   : > { %v12939_v12 = vpop.permute.xlu1 %12938  ;;  %v12936_v48 = vunpack.i.h.bf16 %v12934_v38  ;;  %v12935_v25 = vunpack.i.l.bf16 %v12934_v38 }
 0x56b   : > { %vm7654_vm7 = vcmp.ge.f32.partialorder %v7541_v22, 0.0  ;;  %v7718_v54 = vmul.f32 0.01, %v7541_v22  ;;  %v12941_v45 = vunpack.i.h.bf16 %v12939_v12 }
 0x56c   : > { %v6970_v38 = vsel %vm6919_vm15, %v6905_v47, %v12935_v25 }
 0x56d   : > { %v7782_v39 = vsel %vm7654_vm7, %v7541_v22, %v7718_v54  ;;  %v12940_v22 = vunpack.i.l.bf16 %v12939_v12  ;;  %v6971_v54 = vsel %vm6919_vm15, %v6906_v37, %v12936_v48  ;;  %v12945_v12 = vunpack.i.l.bf16 %v15986_v46  ;;  %v16059_v37 = vpop.f32.mrf.mxu2 }
 0x56e   : > { %8042 = vst.msk [vmem:[#allocation3 + $0x261] sm:$0xff] %vm1255_vm0, %v7782_v39  ;;  %v7374_v9 = vpop.f32.mrf.mxu1  ;;  %v7036_v10 = vsel %vm6984_vm3, %v6971_v54, %v12941_v45  ;;  %v3760_v39 = vld [vmem:[#allocation2 + $0xb10] ss:$2 sm:$0xff] }
 0x56f   : > { %v7375_v4 = vadd.f32 %v15865_v6, %v7374_v9  ;;  %v7035_v32 = vsel %vm6984_vm3, %v6970_v38, %v12940_v22  ;;  %v6649_v43 = vsel %vm3057_vm1, %v3760_v39, %v12121_v11 }
 0x570   : > { %v7099_v16 = vpack.c.bf16 %v7036_v10, %v7035_v32  ;;  %v6713_v60 = vsel %vm1255_vm0, %v6649_v43, %v12946_v23  ;;  %v16052_v30 = vpop.permute.xlu2 %12988  ;;  %v12175_v32 = vunpack.i.l.bf16 %v14857_v61  ;;  %v3762_v23 = vld [vmem:[#allocation2 + $0xb40] ss:$2 sm:$0xff] }
 0x571   : > { %v7544_v15 = vadd.f32 %v15683_v5, %v7375_v4  ;;  %7413 = vmatmul.bf16.gmra.mxu1 %v7097_v29  ;;  %v12949_v49 = vpop.permute.xlu0 %12948  ;;  %v6648_v29 = vsel %vm3057_vm1, %v3758_v3, %v12120_v53  ;;  %v12176_v3 = vunpack.i.h.bf16 %v14857_v61 }
 0x572   : > { %v12954_v1 = vpop.permute.xlu1 %12953  ;;  %v12951_v9 = vunpack.i.h.bf16 %v12949_v49  ;;  %v12950_v8 = vunpack.i.l.bf16 %v12949_v49  ;;  %v6712_v24 = vsel %vm1255_vm0, %v6648_v29, %v12945_v12  ;;  %v3764_v12 = vld [vmem:[#allocation2 + $0xb70] ss:$2 sm:$0xff] }
 0x573   : > { %vm7655_vm11 = vcmp.ge.f32.partialorder %v7544_v15, 0.0  ;;  %v7719_v58 = vmul.f32 0.01, %v7544_v15  ;;  %v12956_v42 = vunpack.i.h.bf16 %v12954_v1  ;;  %v12955_v35 = vunpack.i.l.bf16 %v12954_v1 }
 0x574   : > { %v6777_v49 = vsel %vm6724_vm9, %v6712_v24, %v12950_v8  ;;  %v6778_v26 = vsel %vm6724_vm9, %v6713_v60, %v12951_v9  ;;  %v6650_v60 = vsel %vm3057_vm1, %v3762_v23, %v12175_v32 }
 0x575   : > { %v7783_v51 = vsel %vm7655_vm11, %v7544_v15, %v7719_v58  ;;  %v6843_v48 = vsel %vm6789_vm10, %v6778_v26, %v12956_v42  ;;  %v6842_v25 = vsel %vm6789_vm10, %v6777_v49, %v12955_v35  ;;  %v16094_v26 = vpop.f32.mrf.mxu2 }
 0x576   : > { %8043 = vst.msk [vmem:[#allocation3 + $0x291] sm:$0xff] %vm1255_vm0, %v7783_v51  ;;  %v7376_v5 = vpop.f32.mrf.mxu1  ;;  %v6907_v45 = vsel %vm6854_vm14, %v6842_v25, %v12960_v41  ;;  %v6908_v22 = vsel %vm6854_vm14, %v6843_v48, %v12961_v17  ;;  %v12991_v41 = vunpack.i.h.bf16 %v16052_v30 }
 0x577   : > { %v7377_v57 = vadd.f32 %v15865_v6, %v7376_v5 }
 0x578   : > { %v16077_v9 = vpop.permute.xlu2 %13003 }
 0x579   : > { %v7546_v56 = vadd.f32 %v15725_v18, %v7377_v57  ;;  %v12964_v55 = vpop.permute.xlu0 %12963 }
 0x57a   : > { %v16031_v20 = vpop.permute.xlu1 %12968  ;;  %v12966_v51 = vunpack.i.h.bf16 %v12964_v55 }
 0x57b   : > { %vm7656_vm2 = vcmp.ge.f32.partialorder %v7546_v56, 0.0  ;;  %v7720_v36 = vmul.f32 0.01, %v7546_v56  ;;  %v12971_v38 = vunpack.i.h.bf16 %v16031_v20  ;;  %v12970_v54 = vunpack.i.l.bf16 %v16031_v20 }
 0x57c   : > { %v12976_v20 = vunpack.i.h.bf16 %v16026_v59 }
 0x57d   : > { %v7784_v18 = vsel %vm7656_vm2, %v7546_v56, %v7720_v36  ;;  %v16124_v23 = vpop.f32.mrf.mxu2 }
 0x57e   : > { %8044 = vst.msk [vmem:[#allocation3 + $0x2a1] sm:$0xff] %vm1255_vm0, %v7784_v18  ;;  %v7379_v4 = vpop.f32.mrf.mxu1  ;;  %v8123_v18 = vld [vmem:[#allocation3 + $0x3c0] ss:$2 sm:$0xf] }
 0x57f   : > { %v7380_v2 = vadd.f32 %v15865_v6, %v7379_v4 }
 0x581   : > { %v7549_v46 = vadd.f32 %v15755_v13, %v7380_v2  ;;  %7418 = vmatmul.bf16.gmra.mxu1 %v7099_v16  ;;  %v16046_v15 = vpop.permute.xlu0 %12978  ;;  %v12965_v13 = vunpack.i.l.bf16 %v12964_v55  ;;  %v6973_v55 = vsel %vm6919_vm15, %v6908_v22, %v12966_v51  ;;  %v6651_v2 = vsel %vm3057_vm1, %v3764_v12, %v12176_v3  ;;  %v16106_v22 = vpop.permute.xlu2 %13018 }
 0x582   : > { %v16050_v58 = vpop.permute.xlu1 %12983  ;;  %v7038_v39 = vsel %vm6984_vm3, %v6973_v55, %v12971_v38  ;;  %v12981_v4 = vunpack.i.h.bf16 %v16046_v15  ;;  %v12980_v29 = vunpack.i.l.bf16 %v16046_v15 }
 0x583   : > { %vm7657_vm12 = vcmp.ge.f32.partialorder %v7549_v46, 0.0  ;;  %v7721_v14 = vmul.f32 0.01, %v7549_v46  ;;  %v6972_v56 = vsel %vm6919_vm15, %v6907_v45, %v12965_v13  ;;  %v12986_v35 = vunpack.i.h.bf16 %v16050_v58  ;;  %v16104_v45 = vld.sshfl [vmem:[#allocation1 + $0x10] sm:$0xff pattern:$0x75316420] }
 0x584   : > { %v7037_v10 = vsel %vm6984_vm3, %v6972_v56, %v12970_v54 }
 0x585   : > { %v8109_v1 = vld [vmem:[#allocation3 + $0x2a0] ss:$2 sm:$0xf]  ;;  %v7785_v5 = vsel %vm7657_vm12, %v7549_v46, %v7721_v14  ;;  %v7101_v24 = vpack.c.bf16 %v7038_v39, %v7037_v10  ;;  %v12985_v46 = vunpack.i.l.bf16 %v16050_v58  ;;  %v3766_v10 = vld [vmem:[#allocation2 + $0xbd0] ss:$2 sm:$0xff]  ;;  %v12231_v39 = vunpack.i.h.bf16 %v14903_v34 }
 0x586   : > { %v7381_v57 = vpop.f32.mrf.mxu1  ;;  %8713 = vst [vmem:[#allocation1 + $0x1] ss:$2 sm:$0xff] %v8109_v1 }
 0x587   : > { %v7382_v47 = vadd.f32 %v15865_v6, %v7381_v57  ;;  %8045 = vst.msk [vmem:[#allocation3 + $0x2b1] sm:$0xff] %vm1255_vm0, %v7785_v5  ;;  %v12990_v5 = vunpack.i.l.bf16 %v16052_v30  ;;  %v11967_v30 = vld [vmem:[%s16985_s5 + $0x28] sm:$0xff] }
 0x588   : > { %10062 = vmatpush.bf16.msrb.mxu3 %v11967_v30 }
 0x589   : > { %v7551_v52 = vadd.f32 %v15783_v44, %v7382_v47  ;;  %v12994_v53 = vpop.permute.xlu0 %12993  ;;  %v12975_v44 = vunpack.i.l.bf16 %v16026_v59  ;;  %v6715_v59 = vsel %vm1255_vm0, %v6651_v2, %v12976_v20  ;;  %v12230_v20 = vunpack.i.l.bf16 %v14903_v34 }
 0x58a   : > { %v16069_v36 = vpop.permute.xlu1 %12998  ;;  %v6780_v48 = vsel %vm6724_vm9, %v6715_v59, %v12981_v4  ;;  %v12996_v17 = vunpack.i.h.bf16 %v12994_v53  ;;  %v13006_v4 = vunpack.i.h.bf16 %v16077_v9 }
 0x58b   : > { %vm7658_vm8 = vcmp.ge.f32.partialorder %v7551_v52, 0.0  ;;  %v7722_v11 = vmul.f32 0.01, %v7551_v52  ;;  %v6714_v42 = vsel %vm1255_vm0, %v6650_v60, %v12975_v44  ;;  %v6845_v51 = vsel %vm6789_vm10, %v6780_v48, %v12986_v35 }
 0x58c   : > { %v6779_v14 = vsel %vm6724_vm9, %v6714_v42, %v12980_v29  ;;  %v6910_v56 = vsel %vm6854_vm14, %v6845_v51, %v12991_v41  ;;  %v13001_v55 = vunpack.i.h.bf16 %v16069_v36  ;;  %v6652_v34 = vsel %vm3057_vm1, %v3766_v10, %v12230_v20  ;;  %v3772_v10 = vld [vmem:[#allocation2 + $0xc60] ss:$2 sm:$0xff] }
 0x58d   : > { %v7786_v8 = vsel %vm7658_vm8, %v7551_v52, %v7722_v11  ;;  %v16083_v16 = vld.sshfl [vmem:[#allocation1] sm:$0xff pattern:$0x75316420]  ;;  %v6844_v13 = vsel %vm6789_vm10, %v6779_v14, %v12985_v46  ;;  %v13000_v52 = vunpack.i.l.bf16 %v16069_v36  ;;  %v6975_v3 = vsel %vm6919_vm15, %v6910_v56, %v12996_v17 }
 0x58e   : > { %8046 = vst.msk [vmem:[#allocation3 + $0x2c1] sm:$0xff] %vm1255_vm0, %v7786_v8  ;;  %v7384_v61 = vpop.f32.mrf.mxu1  ;;  %v6909_v54 = vsel %vm6854_vm14, %v6844_v13, %v12990_v5  ;;  %v7040_v8 = vsel %vm6984_vm3, %v6975_v3, %v13001_v55 }
 0x58f   : > { %v7385_v43 = vadd.f32 %v15865_v6, %v7384_v61  ;;  %8724 = vst [vmem:[#allocation1] ss:$2 sm:$0xff] %v8123_v18  ;;  %v13005_v18 = vunpack.i.l.bf16 %v16077_v9  ;;  %v13034_v9 = vpop.permute.xlu2 %13033 }
 0x591   : > { %v7554_v15 = vadd.f32 %v15818_v28, %v7385_v43  ;;  %7423 = vmatmul.bf16.gmra.mxu1 %v7101_v24  ;;  %v16092_v49 = vpop.permute.xlu0 %13008  ;;  %v12995_v28 = vunpack.i.l.bf16 %v12994_v53  ;;  %v6716_v42 = vsel %vm1255_vm0, %v6652_v34, %v13005_v18  ;;  %v13036_v18 = vunpack.i.h.bf16 %v13034_v9 }
 0x592   : > { %v16098_v25 = vpop.permute.xlu1 %13013  ;;  %v13011_v61 = vunpack.i.h.bf16 %v16092_v49  ;;  %v13010_v2 = vunpack.i.l.bf16 %v16092_v49 }
 0x593   : > { %vm7659_vm13 = vcmp.ge.f32.partialorder %v7554_v15, 0.0  ;;  %v7723_v1 = vmul.f32 0.01, %v7554_v15  ;;  %v6974_v53 = vsel %vm6919_vm15, %v6909_v54, %v12995_v28  ;;  %v13016_v46 = vunpack.i.h.bf16 %v16098_v25 }
 0x594   : > { %v7039_v44 = vsel %vm6984_vm3, %v6974_v53, %v13000_v52  ;;  %v6781_v48 = vsel %vm6724_vm9, %v6716_v42, %v13010_v2 }
 0x595   : > { %v8111_v58 = vld [vmem:[#allocation3 + $0x2c0] ss:$2 sm:$0xf]  ;;  %v7787_v57 = vsel %vm7659_vm13, %v7554_v15, %v7723_v1  ;;  %v7103_v60 = vpack.c.bf16 %v7040_v8, %v7039_v44  ;;  %v13015_v15 = vunpack.i.l.bf16 %v16098_v25  ;;  %v13020_v25 = vunpack.i.l.bf16 %v16106_v22  ;;  %v3770_v8 = vld [vmem:[#allocation2 + $0xc30] ss:$2 sm:$0xff] }
 0x596   : > { %v7386_v47 = vpop.f32.mrf.mxu1  ;;  %8714 = vst [vmem:[#allocation1 + $0x10] ss:$2 sm:$0xff] %v8111_v58 }
 0x597   : > { %v7387_v38 = vadd.f32 %v15865_v6, %v7386_v47  ;;  %8047 = vst.msk [vmem:[#allocation3 + $0x2d1] sm:$0xff] %vm1255_vm0, %v7787_v57  ;;  %v6846_v58 = vsel %vm6789_vm10, %v6781_v48, %v13015_v15  ;;  %v16145_v57 = vpop.f32.mrf.mxu2  ;;  %v13049_v20 = vpop.permute.xlu2 %13048 }
 0x598   : > { %v6911_v56 = vsel %vm6854_vm14, %v6846_v58, %v13020_v25 }
 0x599   : > { %v7556_v11 = vadd.f32 %v15850_v19, %v7387_v38  ;;  %v13024_v12 = vpop.permute.xlu0 %13023  ;;  %v3768_v19 = vld [vmem:[#allocation2 + $0xc00] ss:$2 sm:$0xff] }
 0x59a   : > { %v16120_v32 = vpop.permute.xlu1 %13028  ;;  %v6653_v59 = vsel %vm3057_vm1, %v3768_v19, %v12231_v39  ;;  %v13026_v41 = vunpack.i.h.bf16 %v13024_v12  ;;  %v13025_v5 = vunpack.i.l.bf16 %v13024_v12  ;;  %v12286_v12 = vunpack.i.h.bf16 %v15038_v0 }
 0x59b   : > { %vm7660_vm4 = vcmp.ge.f32.partialorder %v7556_v11, 0.0  ;;  %v7724_v36 = vmul.f32 0.01, %v7556_v11  ;;  %v6717_v35 = vsel %vm1255_vm0, %v6653_v59, %v13006_v4  ;;  %v13031_v52 = vunpack.i.h.bf16 %v16120_v32 }
 0x59c   : > { %v6782_v1 = vsel %vm6724_vm9, %v6717_v35, %v13011_v61  ;;  %v13030_v30 = vunpack.i.l.bf16 %v16120_v32  ;;  %v6976_v53 = vsel %vm6919_vm15, %v6911_v56, %v13025_v5  ;;  %v12285_v39 = vunpack.i.l.bf16 %v15038_v0 }
 0x59d   : > { %v7788_v29 = vsel %vm7660_vm4, %v7556_v11, %v7724_v36  ;;  %v6847_v17 = vsel %vm6789_vm10, %v6782_v1, %v13016_v46  ;;  %v13035_v19 = vunpack.i.l.bf16 %v13034_v9  ;;  %v13051_v5 = vunpack.i.h.bf16 %v13049_v20 }
 0x59e   : > { %8048 = vst.msk [vmem:[#allocation3 + $0x2e1] sm:$0xff] %vm1255_vm0, %v7788_v29  ;;  %v7389_v43 = vpop.f32.mrf.mxu1  ;;  %v7041_v32 = vsel %vm6984_vm3, %v6976_v53, %v13030_v30  ;;  %v6654_v0 = vsel %vm3057_vm1, %v3770_v8, %v12285_v39  ;;  %v3774_v39 = vld [vmem:[#allocation2 + $0xc90] ss:$2 sm:$0xff] }
 0x59f   : > { %v7390_v24 = vadd.f32 %v15865_v6, %v7389_v43  ;;  %v6655_v43 = vsel %vm3057_vm1, %v3772_v10, %v12286_v12  ;;  %v6718_v35 = vsel %vm1255_vm0, %v6654_v0, %v13035_v19  ;;  %v12325_v12 = vunpack.i.l.bf16 %v15091_v50 }
 0x5a0   : > { %v6719_v59 = vsel %vm1255_vm0, %v6655_v43, %v13036_v18 }
 0x5a1   : > { %v7559_v49 = vadd.f32 %v15885_v62, %v7390_v24  ;;  %7428 = vmatmul.bf16.gmra.mxu1 %v7103_v60  ;;  %v13039_v14 = vpop.permute.xlu0 %13038  ;;  %v13021_v62 = vunpack.i.h.bf16 %v16106_v22  ;;  %v16166_v60 = vpop.f32.mrf.mxu2 }
 0x5a2   : > { %v13044_v13 = vpop.permute.xlu1 %13043  ;;  %v13041_v4 = vunpack.i.h.bf16 %v13039_v14 }
 0x5a3   : > { %vm7661_vm5 = vcmp.ge.f32.partialorder %v7559_v49, 0.0  ;;  %v7725_v51 = vmul.f32 0.01, %v7559_v49  ;;  %v6912_v55 = vsel %vm6854_vm14, %v6847_v17, %v13021_v62  ;;  %v13046_v42 = vunpack.i.h.bf16 %v13044_v13 }
 0x5a4   : > { %v6977_v3 = vsel %vm6919_vm15, %v6912_v55, %v13026_v41  ;;  %v6784_v9 = vsel %vm6724_vm9, %v6719_v59, %v13041_v4  ;;  %v13045_v46 = vunpack.i.l.bf16 %v13044_v13  ;;  %v13050_v62 = vunpack.i.l.bf16 %v13049_v20 }
 0x5a5   : > { %v8113_v28 = vld [vmem:[#allocation3 + $0x2e0] ss:$2 sm:$0xf]  ;;  %v7789_v47 = vsel %vm7661_vm5, %v7559_v49, %v7725_v51  ;;  %v7042_v44 = vsel %vm6984_vm3, %v6977_v3, %v13031_v52  ;;  %v6849_v48 = vsel %vm6789_vm10, %v6784_v9, %v13046_v42  ;;  %v13064_v51 = vpop.permute.xlu2 %13063  ;;  %v12326_v3 = vunpack.i.h.bf16 %v15091_v50 }
 0x5a6   : > { %v7391_v38 = vpop.f32.mrf.mxu1  ;;  %8715 = vst [vmem:[#allocation1 + $0x11] ss:$2 sm:$0xff] %v8113_v28  ;;  %v7105_v24 = vpack.c.bf16 %v7042_v44, %v7041_v32  ;;  %v13066_v20 = vunpack.i.h.bf16 %v13064_v51  ;;  %v13065_v18 = vunpack.i.l.bf16 %v13064_v51 }
 0x5a7   : > { %v7392_v54 = vadd.f32 %v15865_v6, %v7391_v38  ;;  %8049 = vst.msk [vmem:[#allocation3 + $0x2f1] sm:$0xff] %vm1255_vm0, %v7789_v47  ;;  %v6914_v38 = vsel %vm6854_vm14, %v6849_v48, %v13051_v5 }
 0x5a9   : > { %v7561_v22 = vadd.f32 %v15920_v31, %v7392_v54  ;;  %v13054_v11 = vpop.permute.xlu0 %13053  ;;  %v13040_v31 = vunpack.i.l.bf16 %v13039_v14  ;;  %v16182_v53 = vpop.f32.mrf.mxu2 }
 0x5aa   : > { %v13059_v61 = vpop.permute.xlu1 %13058  ;;  %v13056_v17 = vunpack.i.h.bf16 %v13054_v11  ;;  %v13055_v28 = vunpack.i.l.bf16 %v13054_v11  ;;  %v3776_v11 = vld [vmem:[#allocation2 + $0xcc0] ss:$2 sm:$0xff] }
 0x5ab   : > { %vm7662_vm6 = vcmp.ge.f32.partialorder %v7561_v22, 0.0  ;;  %v7726_v36 = vmul.f32 0.01, %v7561_v22  ;;  %v6783_v49 = vsel %vm6724_vm9, %v6718_v35, %v13040_v31  ;;  %v13061_v54 = vunpack.i.h.bf16 %v13059_v61 }
 0x5ac   : > { %v6848_v58 = vsel %vm6789_vm10, %v6783_v49, %v13045_v46  ;;  %v13060_v56 = vunpack.i.l.bf16 %v13059_v61  ;;  %v6979_v52 = vsel %vm6919_vm15, %v6914_v38, %v13056_v17  ;;  %v6657_v4 = vsel %vm3057_vm1, %v3776_v11, %v12326_v3 }
 0x5ad   : > { %v7790_v29 = vsel %vm7662_vm6, %v7561_v22, %v7726_v36  ;;  %v6913_v47 = vsel %vm6854_vm14, %v6848_v58, %v13050_v62  ;;  %v7044_v10 = vsel %vm6984_vm3, %v6979_v52, %v13061_v54  ;;  %v6656_v31 = vsel %vm3057_vm1, %v3774_v39, %v12325_v12  ;;  %v3778_v52 = vld [vmem:[#allocation2 + $0xcf0] ss:$2 sm:$0xff]  ;;  %v8131_v12 = vld [vmem:[#allocation3 + $0x460] ss:$2 sm:$0xf] }
 0x5ae   : > { %8050 = vst.msk [vmem:[#allocation3 + $0x301] sm:$0xff] %vm1255_vm0, %v7790_v29  ;;  %v7394_v2 = vpop.f32.mrf.mxu1  ;;  %v6978_v55 = vsel %vm6919_vm15, %v6913_v47, %v13055_v28  ;;  %v13079_v29 = vpop.permute.xlu2 %13078  ;;  %v6720_v43 = vsel %vm1255_vm0, %v6656_v31, %v13065_v18 }
 0x5af   : > { %v7395_v34 = vadd.f32 %v15865_v6, %v7394_v2  ;;  %v7043_v36 = vsel %vm6984_vm3, %v6978_v55, %v13060_v56  ;;  %v6721_v2 = vsel %vm1255_vm0, %v6657_v4, %v13066_v20  ;;  %v13081_v51 = vunpack.i.h.bf16 %v13079_v29  ;;  %v3780_v20 = vld [vmem:[#allocation2 + $0xd20] ss:$2 sm:$0xff] }
 0x5b0   : > { %v7107_v50 = vpack.c.bf16 %v7044_v10, %v7043_v36  ;;  %v13080_v58 = vunpack.i.l.bf16 %v13079_v29  ;;  %v12365_v56 = vunpack.i.l.bf16 %v15149_v21 }
 0x5b1   : > { %v7564_v15 = vadd.f32 %v16059_v37, %v7395_v34  ;;  %7433 = vmatmul.bf16.gmra.mxu1 %v7105_v24  ;;  %v13069_v1 = vpop.permute.xlu0 %13068  ;;  %v16197_v46 = vpop.f32.mrf.mxu2 }
 0x5b2   : > { %v13074_v37 = vpop.permute.xlu1 %13073  ;;  %v13071_v44 = vunpack.i.h.bf16 %v13069_v1  ;;  %v13070_v8 = vunpack.i.l.bf16 %v13069_v1 }
 0x5b3   : > { %vm7663_vm7 = vcmp.ge.f32.partialorder %v7564_v15, 0.0  ;;  %v7727_v14 = vmul.f32 0.01, %v7564_v15  ;;  %v13076_v34 = vunpack.i.h.bf16 %v13074_v37  ;;  %v13075_v24 = vunpack.i.l.bf16 %v13074_v37 }
 0x5b4   : > { %v6785_v42 = vsel %vm6724_vm9, %v6720_v43, %v13070_v8  ;;  %v6786_v35 = vsel %vm6724_vm9, %v6721_v2, %v13071_v44  ;;  %v6658_v44 = vsel %vm3057_vm1, %v3778_v52, %v12365_v56 }
 0x5b5   : > { %v7791_v41 = vsel %vm7663_vm7, %v7564_v15, %v7727_v14  ;;  %v6851_v15 = vsel %vm6789_vm10, %v6786_v35, %v13076_v34  ;;  %v6850_v49 = vsel %vm6789_vm10, %v6785_v42, %v13075_v24 }
 0x5b6   : > { %8051 = vst.msk [vmem:[#allocation3 + $0x331] sm:$0xff] %vm1255_vm0, %v7791_v41  ;;  %v7396_v13 = vpop.f32.mrf.mxu1  ;;  %v6915_v41 = vsel %vm6854_vm14, %v6850_v49, %v13080_v58  ;;  %v6916_v5 = vsel %vm6854_vm14, %v6851_v15, %v13081_v51  ;;  %v16232_v58 = vld.sshfl [vmem:[#allocation1 + $0x30] sm:$0xff pattern:$0x75316420] }
 0x5b7   : > { %v7397_v25 = vadd.f32 %v15865_v6, %v7396_v13 }
 0x5b9   : > { %v7566_v30 = vadd.f32 %v16094_v26, %v7397_v25  ;;  %v13084_v26 = vpop.permute.xlu0 %13083  ;;  %v13094_v25 = vpop.permute.xlu2 %13093 }
 0x5ba   : > { %v13089_v0 = vpop.permute.xlu1 %13088  ;;  %v13086_v48 = vunpack.i.h.bf16 %v13084_v26  ;;  %v13085_v1 = vunpack.i.l.bf16 %v13084_v26  ;;  %v13095_v3 = vunpack.i.l.bf16 %v13094_v25  ;;  %v13096_v36 = vunpack.i.h.bf16 %v13094_v25  ;;  %v16212_v39 = vpop.f32.mrf.mxu2 }
 0x5bb   : > { %vm7664_vm11 = vcmp.ge.f32.partialorder %v7566_v30, 0.0  ;;  %v7728_v22 = vmul.f32 0.01, %v7566_v30  ;;  %v13091_v62 = vunpack.i.h.bf16 %v13089_v0  ;;  %v13090_v13 = vunpack.i.l.bf16 %v13089_v0 }
 0x5bc   : > { %v6980_v47 = vsel %vm6919_vm15, %v6915_v41, %v13085_v1  ;;  %v6981_v38 = vsel %vm6919_vm15, %v6916_v5, %v13086_v48  ;;  %v6722_v29 = vsel %vm1255_vm0, %v6658_v44, %v13095_v3 }
 0x5bd   : > { %v7792_v32 = vsel %vm7664_vm11, %v7566_v30, %v7728_v22  ;;  %v12366_v30 = vunpack.i.h.bf16 %v15149_v21  ;;  %v7045_v22 = vsel %vm6984_vm3, %v6980_v47, %v13090_v13  ;;  %v7046_v11 = vsel %vm6984_vm3, %v6981_v38, %v13091_v62  ;;  %v16221_v21 = vld [vmem:[%s16984_s4] ss:$0 sm:$0xff] }
 0x5be   : > { %8052 = vst.msk [vmem:[#allocation3 + $0x341] sm:$0xff] %vm1255_vm0, %v7792_v32  ;;  %v7399_v19 = vpop.f32.mrf.mxu1  ;;  %v11966_v13 = vld [vmem:[%s16985_s5 + $0x20] sm:$0xff] }
 0x5bf   : > { %v7400_v61 = vadd.f32 %v15865_v6, %v7399_v19  ;;  %v7109_v19 = vpack.c.bf16 %v7046_v11, %v7045_v22  ;;  %v6659_v4 = vsel %vm3057_vm1, %v3780_v20, %v12366_v30  ;;  %10063 = vmatpush.bf16.msrb.mxu3 %v11966_v13  ;;  %v8155_v13 = vld [vmem:[#allocation3 + $0x141] ss:$2 sm:$0xf] }
 0x5c1   : > { %v7569_v59 = vadd.f32 %v16124_v23, %v7400_v61  ;;  %7438 = vmatmul.bf16.gmra.mxu1 %v7107_v50  ;;  %v13099_v37 = vpop.permute.xlu0 %13098  ;;  %v6723_v61 = vsel %vm1255_vm0, %v6659_v4, %v13096_v36  ;;  %v13109_v0 = vpop.permute.xlu2 %13108 }
 0x5c2   : > { %v13100_v18 = vunpack.i.l.bf16 %v13099_v37  ;;  %v13111_v48 = vunpack.i.h.bf16 %v13109_v0  ;;  %v13110_v1 = vunpack.i.l.bf16 %v13109_v0 }
 0x5c3   : > { %vm7665_vm2 = vcmp.ge.f32.partialorder %v7569_v59, 0.0  ;;  %v7729_v9 = vmul.f32 0.01, %v7569_v59 }
 0x5c4   : > { %v6787_v43 = vsel %vm6724_vm9, %v6722_v29, %v13100_v18 }
 0x5c5   : > { %v8117_v14 = vld [vmem:[#allocation3 + $0x340] ss:$2 sm:$0xf]  ;;  %v7793_v17 = vsel %vm7665_vm2, %v7569_v59, %v7729_v9 }
 0x5c6   : > { %v7401_v23 = vpop.f32.mrf.mxu1  ;;  %8717 = vst [vmem:[#allocation1 + $0x21] ss:$2 sm:$0xff] %v8117_v14 }
 0x5c7   : > { %v7402_v28 = vadd.f32 %v15865_v6, %v7401_v23  ;;  %8053 = vst.msk [vmem:[#allocation3 + $0x351] sm:$0xff] %vm1255_vm0, %v7793_v17  ;;  %v13104_v6 = vpop.permute.xlu1 %13103  ;;  %v7583_v23 = vpop.f32.mrf.mxu2 }
 0x5c8   : > { %v13106_v50 = vunpack.i.h.bf16 %v13104_v6  ;;  %v13105_v31 = vunpack.i.l.bf16 %v13104_v6 }
 0x5c9   : > { %v7571_v54 = vadd.f32 %v16145_v57, %v7402_v28  ;;  %v13101_v57 = vunpack.i.h.bf16 %v13099_v37  ;;  %v13114_v24 = vpop.permute.xlu0 %13113 }
 0x5ca   : > { %v6852_v42 = vsel %vm6789_vm10, %v6787_v43, %v13105_v31  ;;  %v13116_v15 = vunpack.i.h.bf16 %v13114_v24  ;;  %v13115_v49 = vunpack.i.l.bf16 %v13114_v24 }
 0x5cb   : > { %vm7666_vm12 = vcmp.ge.f32.partialorder %v7571_v54, 0.0  ;;  %v7730_v55 = vmul.f32 0.01, %v7571_v54  ;;  %v6788_v34 = vsel %vm6724_vm9, %v6723_v61, %v13101_v57  ;;  %v6917_v28 = vsel %vm6854_vm14, %v6852_v42, %v13110_v1  ;;  %v8139_v1 = vld [vmem:[#allocation3 + $0x1] ss:$2 sm:$0xf] }
 0x5cc   : > { %v6853_v35 = vsel %vm6789_vm10, %v6788_v34, %v13106_v50  ;;  %v6982_v37 = vsel %vm6919_vm15, %v6917_v28, %v13115_v49 }
 0x5cd   : > { %v7794_v10 = vsel %vm7666_vm12, %v7571_v54, %v7730_v55  ;;  %v16216_v8 = vld.sshfl [vmem:[#allocation1 + $0x20] sm:$0xff pattern:$0x75316420]  ;;  %v6918_v41 = vsel %vm6854_vm14, %v6853_v35, %v13111_v48 }
 0x5ce   : > { %8054 = vst.msk [vmem:[#allocation3 + $0x361] sm:$0xff] %vm1255_vm0, %v7794_v10  ;;  %v7404_v32 = vpop.f32.mrf.mxu1  ;;  %v6983_v25 = vsel %vm6919_vm15, %v6918_v41, %v13116_v15 }
 0x5cf   : > { %v7405_v26 = vadd.f32 %v16221_v21, %v7404_v32  ;;  %8728 = vst [vmem:[#allocation1 + $0x20] ss:$2 sm:$0xff] %v8131_v12  ;;  %v13119_v14 = vpop.permute.xlu1 %13118  ;;  %v7585_v22 = vpop.f32.mrf.mxu2 }
 0x5d0   : > { %v13121_v5 = vunpack.i.h.bf16 %v13119_v14  ;;  %v13120_v62 = vunpack.i.l.bf16 %v13119_v14 }
 0x5d1   : > { %v7574_v2 = vadd.f32 %v16166_v60, %v7405_v26  ;;  %7443 = vmatmul.bf16.gmra.mxu1 %v7109_v19 }
 0x5d2   : > { %v7047_v54 = vsel %vm6984_vm3, %v6982_v37, %v13120_v62  ;;  %v7048_v56 = vsel %vm6984_vm3, %v6983_v25, %v13121_v5 }
 0x5d3   : > { %vm7667_vm8 = vcmp.ge.f32.partialorder %v7574_v2, 0.0  ;;  %v7731_v59 = vmul.f32 0.01, %v7574_v2  ;;  %v7111_v30 = vpack.c.bf16 %v7048_v56, %v7047_v54  ;;  %v8157_v54 = vld [vmem:[#allocation3 + $0x161] ss:$2 sm:$0xf] }
 0x5d5   : > { %v8119_v9 = vld [vmem:[#allocation3 + $0x360] ss:$2 sm:$0xf]  ;;  %v7795_v60 = vsel %vm7667_vm8, %v7574_v2, %v7731_v59 }
 0x5d6   : > { %v7406_v51 = vpop.f32.mrf.mxu1  ;;  %8718 = vst [vmem:[#allocation1 + $0x30] ss:$2 sm:$0xff] %v8119_v9 }
 0x5d7   : > { %v7407_v17 = vadd.f32 %v16221_v21, %v7406_v51  ;;  %8055 = vst.msk [vmem:[#allocation3 + $0x371] sm:$0xff] %vm1255_vm0, %v7795_v60  ;;  %v7588_v18 = vpop.f32.mrf.mxu2 }
 0x5d9   : > { %v7576_v47 = vadd.f32 %v16182_v53, %v7407_v17 }
 0x5db   : > { %vm7668_vm9 = vcmp.ge.f32.partialorder %v7576_v47, 0.0  ;;  %v7732_v38 = vmul.f32 0.01, %v7576_v47 }
 0x5dd   : > { %v7796_v6 = vsel %vm7668_vm9, %v7576_v47, %v7732_v38 }
 0x5de   : > { %8056 = vst.msk [vmem:[#allocation3 + $0x381] sm:$0xff] %vm1255_vm0, %v7796_v6  ;;  %v7409_v55 = vpop.f32.mrf.mxu1  ;;  %v16267_v6 = vld.sshfl [vmem:[#allocation1 + $0x10] sm:$0xff pattern:$0x75316420] }
 0x5df   : > { %v7410_v52 = vadd.f32 %v16221_v21, %v7409_v55  ;;  %v7590_v29 = vpop.f32.mrf.mxu2 }
 0x5e1   : > { %v7579_v3 = vadd.f32 %v16197_v46, %v7410_v52  ;;  %7448 = vmatmul.bf16.gmra.mxu1 %v7111_v30 }
 0x5e3   : > { %vm7669_vm14 = vcmp.ge.f32.partialorder %v7579_v3, 0.0  ;;  %v7733_v53 = vmul.f32 0.01, %v7579_v3 }
 0x5e5   : > { %v8121_v11 = vld [vmem:[#allocation3 + $0x380] ss:$2 sm:$0xf]  ;;  %v7797_v12 = vsel %vm7669_vm14, %v7579_v3, %v7733_v53 }
 0x5e6   : > { %v7411_v20 = vpop.f32.mrf.mxu1  ;;  %8719 = vst [vmem:[#allocation1 + $0x31] ss:$2 sm:$0xff] %v8121_v11 }
 0x5e7   : > { %v7412_v36 = vadd.f32 %v16221_v21, %v7411_v20  ;;  %8057 = vst.msk [vmem:[#allocation3 + $0x391] sm:$0xff] %vm1255_vm0, %v7797_v12  ;;  %v7593_v34 = vpop.f32.mrf.mxu2  ;;  %v8173_v20 = vld [vmem:[#allocation3 + $0x2a1] ss:$2 sm:$0xf] }
 0x5e9   : > { %v7581_v10 = vadd.f32 %v16212_v39, %v7412_v36 }
 0x5eb   : > { %vm7670_vm3 = vcmp.ge.f32.partialorder %v7581_v10, 0.0  ;;  %v7734_v57 = vmul.f32 0.01, %v7581_v10 }
 0x5ed   : > { %v7798_v32 = vsel %vm7670_vm3, %v7581_v10, %v7734_v57 }
 0x5ee   : > { %8058 = vst.msk [vmem:[#allocation3 + $0x3a1] sm:$0xff] %vm1255_vm0, %v7798_v32  ;;  %v7414_v46 = vpop.f32.mrf.mxu1 }
 0x5ef   : > { %v7415_v44 = vadd.f32 %v16221_v21, %v7414_v46  ;;  %v7595_v49 = vpop.f32.mrf.mxu2  ;;  %v8187_v46 = vld [vmem:[#allocation3 + $0x3c1] ss:$2 sm:$0xf] }
 0x5f1   : > { %v7584_v26 = vadd.f32 %v7583_v23, %v7415_v44  ;;  %v8141_v23 = vld [vmem:[#allocation3 + $0x21] ss:$2 sm:$0xf] }
 0x5f3   : > { %vm7671_vm13 = vcmp.ge.f32.partialorder %v7584_v26, 0.0  ;;  %v7735_v19 = vmul.f32 0.01, %v7584_v26 }
 0x5f5   : > { %v7799_v4 = vsel %vm7671_vm13, %v7584_v26, %v7735_v19 }
 0x5f6   : > { %8059 = vst.msk [vmem:[#allocation3 + $0x3d1] sm:$0xff] %vm1255_vm0, %v7799_v4  ;;  %v7416_v61 = vpop.f32.mrf.mxu1 }
 0x5f7   : > { %v7417_v50 = vadd.f32 %v16221_v21, %v7416_v61  ;;  %v7598_v5 = vpop.f32.mrf.mxu2 }
 0x5f9   : > { %v7586_v39 = vadd.f32 %v7585_v22, %v7417_v50  ;;  %v8171_v22 = vld [vmem:[#allocation3 + $0x281] ss:$2 sm:$0xf] }
 0x5fb   : > { %vm7672_vm4 = vcmp.ge.f32.partialorder %v7586_v39, 0.0  ;;  %v7736_v31 = vmul.f32 0.01, %v7586_v39 }
 0x5fd   : > { %v7800_v2 = vsel %vm7672_vm4, %v7586_v39, %v7736_v31  ;;  %v8203_v39 = vld [vmem:[#allocation3 + $0x2] ss:$2 sm:$0xf] }
 0x5fe   : > { %8060 = vst.msk [vmem:[#allocation3 + $0x3e1] sm:$0xff] %vm1255_vm0, %v7800_v2  ;;  %v7419_v43 = vpop.f32.mrf.mxu1  ;;  %v8143_v2 = vld [vmem:[#allocation3 + $0x41] ss:$2 sm:$0xf] }
 0x5ff   : > { %v7420_v24 = vadd.f32 %v16221_v21, %v7419_v43  ;;  %v7600_v30 = vpop.f32.mrf.mxu2 }
 0x601   : > { %v7589_v0 = vadd.f32 %v7588_v18, %v7420_v24  ;;  %v8145_v24 = vld [vmem:[#allocation3 + $0x61] ss:$2 sm:$0xf] }
 0x603   : > { %vm7673_vm5 = vcmp.ge.f32.partialorder %v7589_v0, 0.0  ;;  %v7737_v59 = vmul.f32 0.01, %v7589_v0 }
 0x605   : > { %v8125_v42 = vld [vmem:[#allocation3 + $0x3e0] ss:$2 sm:$0xf]  ;;  %v7801_v35 = vsel %vm7673_vm5, %v7589_v0, %v7737_v59 }
 0x606   : > { %v7421_v9 = vpop.f32.mrf.mxu1  ;;  %8725 = vst [vmem:[#allocation1 + $0x1] ss:$2 sm:$0xff] %v8125_v42  ;;  %v8205_v42 = vld [vmem:[#allocation3 + $0x22] ss:$2 sm:$0xf] }
 0x607   : > { %v7422_v15 = vadd.f32 %v16221_v21, %v7421_v9  ;;  %8061 = vst.msk [vmem:[#allocation3 + $0x3f1] sm:$0xff] %vm1255_vm0, %v7801_v35  ;;  %v7603_v44 = vpop.f32.mrf.mxu2 }
 0x609   : > { %v7591_v14 = vadd.f32 %v7590_v29, %v7422_v15  ;;  %v8189_v29 = vld [vmem:[#allocation3 + $0x3e1] ss:$2 sm:$0xf] }
 0x60b   : > { %vm7674_vm6 = vcmp.ge.f32.partialorder %v7591_v14, 0.0  ;;  %v7738_v48 = vmul.f32 0.01, %v7591_v14 }
 0x60d   : > { %v7802_v60 = vsel %vm7674_vm6, %v7591_v14, %v7738_v48  ;;  %v16260_v51 = vld.sshfl [vmem:[#allocation1] sm:$0xff pattern:$0x75316420]  ;;  %v8219_v14 = vld [vmem:[#allocation3 + $0x142] ss:$2 sm:$0xf] }
 0x60e   : > { %8062 = vst.msk [vmem:[#allocation3 + $0x401] sm:$0xff] %vm1255_vm0, %v7802_v60  ;;  %v7424_v17 = vpop.f32.mrf.mxu1 }
 0x60f   : > { %8784 = vst [vmem:[#allocation1] ss:$2 sm:$0xff] %v8139_v1  ;;  %v7425_v28 = vadd.f32 %v16221_v21, %v7424_v17  ;;  %v7605_v0 = vpop.f32.mrf.mxu2  ;;  %v8159_v1 = vld [vmem:[#allocation3 + $0x181] ss:$2 sm:$0xf] }
 0x610   : > { %8786 = vst [vmem:[#allocation1 + $0x1] ss:$2 sm:$0xff] %v8141_v23  ;;  %v8161_v17 = vld [vmem:[#allocation3 + $0x1a1] ss:$2 sm:$0xf] }
 0x611   : > { %v7594_v41 = vadd.f32 %v7593_v34, %v7425_v28 }
 0x613   : > { %v7739_v62 = vmul.f32 0.01, %v7594_v41  ;;  %vm7675_vm7 = vcmp.ge.f32.partialorder %v7594_v41, 0.0 }
 0x615   : > { %v8127_v47 = vld [vmem:[#allocation3 + $0x400] ss:$2 sm:$0xf]  ;;  %v7803_v56 = vsel %vm7675_vm7, %v7594_v41, %v7739_v62 }
 0x616   : > { %v7426_v37 = vpop.f32.mrf.mxu1  ;;  %8726 = vst [vmem:[#allocation1 + $0x10] ss:$2 sm:$0xff] %v8127_v47 }
 0x617   : > { %v16264_v25 = vld.sshfl [vmem:[#allocation1] sm:$0xff pattern:$0x75316420]  ;;  %v7427_v38 = vadd.f32 %v16221_v21, %v7426_v37  ;;  %8063 = vst.msk [vmem:[#allocation3 + $0x411] sm:$0xff] %vm1255_vm0, %v7803_v56  ;;  %v7608_v41 = vpop.f32.mrf.mxu2 }
 0x618   : > { %8803 = vst [vmem:[#allocation1] ss:$2 sm:$0xff] %v8155_v13  ;;  %v8221_v13 = vld [vmem:[#allocation3 + $0x162] ss:$2 sm:$0xf] }
 0x619   : > { %8804 = vst [vmem:[#allocation1 + $0x1] ss:$2 sm:$0xff] %v8157_v54  ;;  %v7596_v55 = vadd.f32 %v7595_v49, %v7427_v38  ;;  %v8235_v54 = vld [vmem:[#allocation3 + $0x282] ss:$2 sm:$0xf] }
 0x61a   : > { %v8175_v56 = vld [vmem:[#allocation3 + $0x2c1] ss:$2 sm:$0xf] }
 0x61b   : > { %vm7676_vm11 = vcmp.ge.f32.partialorder %v7596_v55, 0.0  ;;  %v7740_v52 = vmul.f32 0.01, %v7596_v55 }
 0x61d   : > { %v7804_v3 = vsel %vm7676_vm11, %v7596_v55, %v7740_v52  ;;  %v8177_v52 = vld [vmem:[#allocation3 + $0x2e1] ss:$2 sm:$0xf] }
 0x61e   : > { %8064 = vst.msk [vmem:[#allocation3 + $0x421] sm:$0xff] %vm1255_vm0, %v7804_v3  ;;  %v7429_v53 = vpop.f32.mrf.mxu1 }
 0x61f   : > { %v7430_v11 = vadd.f32 %v16221_v21, %v7429_v53  ;;  %v7610_v53 = vpop.f32.mrf.mxu2 }
 0x620   : > { %v16272_v12 = vld.sshfl [vmem:[#allocation1] sm:$0xff pattern:$0x75316420] }
 0x621   : > { %8815 = vst [vmem:[#allocation1] ss:$2 sm:$0xff] %v8171_v22  ;;  %v7599_v36 = vadd.f32 %v7598_v5, %v7430_v11  ;;  %v8237_v22 = vld [vmem:[#allocation3 + $0x2a2] ss:$2 sm:$0xf] }
 0x622   : > { %8816 = vst [vmem:[#allocation1 + $0x1] ss:$2 sm:$0xff] %v8173_v20 }
 0x623   : > { %vm7677_vm2 = vcmp.ge.f32.partialorder %v7599_v36, 0.0  ;;  %v7741_v10 = vmul.f32 0.01, %v7599_v36 }
 0x625   : > { %v8129_v57 = vld [vmem:[#allocation3 + $0x420] ss:$2 sm:$0xf]  ;;  %v7805_v18 = vsel %vm7677_vm2, %v7599_v36, %v7741_v10 }
 0x626   : > { %v7431_v32 = vpop.f32.mrf.mxu1  ;;  %8727 = vst [vmem:[#allocation1 + $0x11] ss:$2 sm:$0xff] %v8129_v57  ;;  %v8191_v57 = vld [vmem:[#allocation3 + $0x401] ss:$2 sm:$0xf] }
 0x627   : > { %v7432_v26 = vadd.f32 %v16221_v21, %v7431_v32  ;;  %8065 = vst.msk [vmem:[#allocation3 + $0x431] sm:$0xff] %vm1255_vm0, %v7805_v18  ;;  %v8251_v18 = vld [vmem:[#allocation3 + $0x3c2] ss:$2 sm:$0xf] }
 0x628   : > { %v8193_v32 = vld [vmem:[#allocation3 + $0x421] ss:$2 sm:$0xf] }
 0x629   : > { %v16275_v19 = vld.sshfl [vmem:[#allocation1] sm:$0xff pattern:$0x75316420]  ;;  %v7601_v4 = vadd.f32 %v7600_v30, %v7432_v26 }
 0x62a   : > { %8827 = vst [vmem:[#allocation1] ss:$2 sm:$0xff] %v8187_v46 }
 0x62b   : > { %8828 = vst [vmem:[#allocation1 + $0x1] ss:$2 sm:$0xff] %v8189_v29  ;;  %vm7678_vm12 = vcmp.ge.f32.partialorder %v7601_v4, 0.0  ;;  %v7742_v61 = vmul.f32 0.01, %v7601_v4 }
 0x62d   : > { %v7806_v50 = vsel %vm7678_vm12, %v7601_v4, %v7742_v61  ;;  %v16279_v43 = vld.sshfl [vmem:[#allocation1 + $0x10] sm:$0xff pattern:$0x75316420]  ;;  %v8147_v4 = vld [vmem:[#allocation3 + $0xa1] ss:$2 sm:$0xf] }
 0x62e   : > { %8066 = vst.msk [vmem:[#allocation3 + $0x441] sm:$0xff] %vm1255_vm0, %v7806_v50  ;;  %v7434_v31 = vpop.f32.mrf.mxu1  ;;  %v8253_v50 = vld [vmem:[#allocation3 + $0x3e2] ss:$2 sm:$0xf] }
 0x62f   : > { %v7435_v34 = vadd.f32 %v16221_v21, %v7434_v31  ;;  %8788 = vst [vmem:[#allocation1 + $0x10] ss:$2 sm:$0xff] %v8143_v2  ;;  %v7613_v31 = vpop.f32.mrf.mxu2 }
 0x630   : > { %8790 = vst [vmem:[#allocation1 + $0x11] ss:$2 sm:$0xff] %v8145_v24  ;;  %v8207_v24 = vld [vmem:[#allocation3 + $0x42] ss:$2 sm:$0xf] }
 0x631   : > { %v7604_v59 = vadd.f32 %v7603_v44, %v7435_v34  ;;  %v8149_v34 = vld [vmem:[#allocation3 + $0xc1] ss:$2 sm:$0xf] }
 0x632   : > { %v16282_v35 = vld.sshfl [vmem:[#allocation1] sm:$0xff pattern:$0x75316420] }
 0x633   : > { %8919 = vst [vmem:[#allocation1] ss:$2 sm:$0xff] %v8203_v39  ;;  %vm7679_vm8 = vcmp.ge.f32.partialorder %v7604_v59, 0.0  ;;  %v7743_v9 = vmul.f32 0.01, %v7604_v59 }
 0x634   : > { %8921 = vst [vmem:[#allocation1 + $0x1] ss:$2 sm:$0xff] %v8205_v42  ;;  %v8209_v42 = vld [vmem:[#allocation3 + $0x62] ss:$2 sm:$0xf] }
 0x635   : > { %v7807_v15 = vsel %vm7679_vm8, %v7604_v59, %v7743_v9  ;;  %v8266_v9 = vld [vmem:[#allocation3 + $0x10] ss:$2 sm:$0xf] }
 0x636   : > { %8067 = vst.msk [vmem:[#allocation3 + $0x471] sm:$0xff] %vm1255_vm0, %v7807_v15  ;;  %v7436_v49 = vpop.f32.mrf.mxu1  ;;  %v8268_v15 = vld [vmem:[#allocation3 + $0x30] ss:$2 sm:$0xf] }
 0x637   : > { %v7437_v48 = vadd.f32 %v16221_v21, %v7436_v49  ;;  %v8800_v60 = vld.sshfl [vmem:[#allocation1 + $0x10] sm:$0xff pattern:$0x75316420] }
 0x638   : > { %8805 = vst [vmem:[#allocation1 + $0x10] ss:$2 sm:$0xff] %v8159_v1  ;;  %v13122_v28 = vpack.i.bf16 %v8800_v60, %v16264_v25 }
 0x639   : > { %v7606_v23 = vadd.f32 %v7605_v0, %v7437_v48  ;;  %8806 = vst [vmem:[#allocation1 + $0x11] ss:$2 sm:$0xff] %v8161_v17  ;;  %v8163_v48 = vld [vmem:[#allocation3 + $0x1e1] ss:$2 sm:$0xf]  ;;  %v7615_v17 = vpop.f32.mrf.mxu2 }
 0x63a   : > { %13123 = vrot.lane.b32.xlu2 %v13122_v28, %s13387_s24  ;;  %v8223_v28 = vld [vmem:[#allocation3 + $0x182] ss:$2 sm:$0xf] }
 0x63b   : > { %v16287_v5 = vld.sshfl [vmem:[#allocation1] sm:$0xff pattern:$0x75316420]  ;;  %vm7680_vm9 = vcmp.ge.f32.partialorder %v7606_v23, 0.0  ;;  %v7744_v62 = vmul.f32 0.01, %v7606_v23 }
 0x63c   : > { %8938 = vst [vmem:[#allocation1] ss:$2 sm:$0xff] %v8219_v14 }
 0x63d   : > { %8939 = vst [vmem:[#allocation1 + $0x1] ss:$2 sm:$0xff] %v8221_v13  ;;  %v7808_v37 = vsel %vm7680_vm9, %v7606_v23, %v7744_v62  ;;  %v8225_v13 = vld [vmem:[#allocation3 + $0x1a2] ss:$2 sm:$0xf] }
 0x63e   : > { %v7439_v47 = vpop.f32.mrf.mxu1  ;;  %8068 = vst.msk [vmem:[#allocation3 + $0x481] sm:$0xff] %vm1255_vm0, %v7808_v37 }
 0x63f   : > { %v7440_v38 = vadd.f32 %v16221_v21, %v7439_v47 }
 0x640   : > { %v16292_v25 = vld.sshfl [vmem:[#allocation1 + $0x10] sm:$0xff pattern:$0x75316420] }
 0x641   : > { %v7609_v55 = vadd.f32 %v7608_v41, %v7440_v38  ;;  %8817 = vst [vmem:[#allocation1 + $0x10] ss:$2 sm:$0xff] %v8175_v56  ;;  %v8165_v41 = vld [vmem:[#allocation3 + $0x201] ss:$2 sm:$0xf] }
 0x642   : > { %8818 = vst [vmem:[#allocation1 + $0x11] ss:$2 sm:$0xff] %v8177_v52  ;;  %v16313_v56 = vld.sshfl [vmem:[#allocation1 + $0x30] sm:$0xff pattern:$0x75316420] }
 0x643   : > { %v7745_v30 = vmul.f32 0.01, %v7609_v55  ;;  %vm7681_vm14 = vcmp.ge.f32.partialorder %v7609_v55, 0.0 }
 0x644   : > { %v16294_v3 = vld.sshfl [vmem:[#allocation1] sm:$0xff pattern:$0x75316420] }
 0x645   : > { %8950 = vst [vmem:[#allocation1] ss:$2 sm:$0xff] %v8235_v54  ;;  %v8133_v11 = vld [vmem:[#allocation3 + $0x480] ss:$2 sm:$0xf]  ;;  %v7809_v36 = vsel %vm7681_vm14, %v7609_v55, %v7745_v30 }
 0x646   : > { %8951 = vst [vmem:[#allocation1 + $0x1] ss:$2 sm:$0xff] %v8237_v22  ;;  %v7441_v20 = vpop.f32.mrf.mxu1  ;;  %v8282_v54 = vld [vmem:[#allocation3 + $0x150] ss:$2 sm:$0xf] }
 0x647   : > { %v7442_v10 = vadd.f32 %v16221_v21, %v7441_v20  ;;  %8729 = vst [vmem:[#allocation1 + $0x21] ss:$2 sm:$0xff] %v8133_v11  ;;  %v8179_v55 = vld [vmem:[#allocation3 + $0x321] ss:$2 sm:$0xf] }
 0x648   : > { %8069 = vst.msk [vmem:[#allocation3 + $0x491] sm:$0xff] %vm1255_vm0, %v7809_v36  ;;  %v8181_v36 = vld [vmem:[#allocation3 + $0x341] ss:$2 sm:$0xf] }
 0x649   : > { %v7611_v46 = vadd.f32 %v7610_v53, %v7442_v10  ;;  %v16297_v44 = vld.sshfl [vmem:[#allocation1 + $0x10] sm:$0xff pattern:$0x75316420]  ;;  %v8284_v53 = vld [vmem:[#allocation3 + $0x170] ss:$2 sm:$0xf] }
 0x64a   : > { %8829 = vst [vmem:[#allocation1 + $0x10] ss:$2 sm:$0xff] %v8191_v57  ;;  %v8239_v10 = vld [vmem:[#allocation3 + $0x2c2] ss:$2 sm:$0xf] }
 0x64b   : > { %vm7682_vm3 = vcmp.ge.f32.partialorder %v7611_v46, 0.0  ;;  %v7746_v26 = vmul.f32 0.01, %v7611_v46  ;;  %8830 = vst [vmem:[#allocation1 + $0x11] ss:$2 sm:$0xff] %v8193_v32 }
 0x64c   : > { %v8195_v32 = vld [vmem:[#allocation3 + $0x461] ss:$2 sm:$0xf] }
 0x64d   : > { %v16300_v29 = vld.sshfl [vmem:[#allocation1] sm:$0xff pattern:$0x75316420]  ;;  %v7810_v61 = vsel %vm7682_vm3, %v7611_v46, %v7746_v26  ;;  %v8298_v46 = vld [vmem:[#allocation3 + $0x290] ss:$2 sm:$0xf] }
 0x64e   : > { %8962 = vst [vmem:[#allocation1] ss:$2 sm:$0xff] %v8251_v18  ;;  %v7444_v39 = vpop.f32.mrf.mxu1  ;;  %v16302_v2 = vld.sshfl [vmem:[#allocation1 + $0x20] sm:$0xff pattern:$0x75316420] }
 0x64f   : > { %8963 = vst [vmem:[#allocation1 + $0x1] ss:$2 sm:$0xff] %v8253_v50  ;;  %v7445_v59 = vadd.f32 %v16221_v21, %v7444_v39  ;;  %v8241_v18 = vld [vmem:[#allocation3 + $0x2e2] ss:$2 sm:$0xf] }
 0x650   : > { %8070 = vst.msk [vmem:[#allocation3 + $0x4a1] sm:$0xff] %vm1255_vm0, %v7810_v61  ;;  %v8300_v61 = vld [vmem:[#allocation3 + $0x2b0] ss:$2 sm:$0xf] }
 0x651   : > { %8792 = vst [vmem:[#allocation1 + $0x20] ss:$2 sm:$0xff] %v8147_v4  ;;  %v7614_v1 = vadd.f32 %v7613_v31, %v7445_v59  ;;  %v8197_v39 = vld [vmem:[#allocation3 + $0x481] ss:$2 sm:$0xf] }
 0x652   : > { %8794 = vst [vmem:[#allocation1 + $0x21] ss:$2 sm:$0xff] %v8149_v34  ;;  %v16305_v0 = vld.sshfl [vmem:[#allocation1 + $0x10] sm:$0xff pattern:$0x75316420] }
 0x653   : > { %8923 = vst [vmem:[#allocation1 + $0x10] ss:$2 sm:$0xff] %v8207_v24  ;;  %vm7683_vm13 = vcmp.ge.f32.partialorder %v7614_v1, 0.0  ;;  %v7747_v37 = vmul.f32 0.01, %v7614_v1 }
 0x654   : > { %8925 = vst [vmem:[#allocation1 + $0x11] ss:$2 sm:$0xff] %v8209_v42  ;;  %v8255_v31 = vld [vmem:[#allocation3 + $0x402] ss:$2 sm:$0xf] }
 0x655   : > { %v7811_v22 = vsel %vm7683_vm13, %v7614_v1, %v7747_v37  ;;  %v8257_v24 = vld [vmem:[#allocation3 + $0x422] ss:$2 sm:$0xf]  ;;  %v8314_v42 = vld [vmem:[#allocation3 + $0x3d0] ss:$2 sm:$0xf] }
 0x656   : > { %v16308_v49 = vld.sshfl [vmem:[#allocation1] sm:$0xff pattern:$0x75316420]  ;;  %v7446_v14 = vpop.f32.mrf.mxu1  ;;  %8071 = vst.msk [vmem:[#allocation3 + $0x4b1] sm:$0xff] %vm1255_vm0, %v7811_v22 }
 0x657   : > { %9054 = vst [vmem:[#allocation1] ss:$2 sm:$0xff] %v8266_v9  ;;  %v7447_v60 = vadd.f32 %v16221_v21, %v7446_v14  ;;  %v8135_v38 = vld [vmem:[#allocation3 + $0x4a0] ss:$2 sm:$0xf] }
 0x658   : > { %9056 = vst [vmem:[#allocation1 + $0x1] ss:$2 sm:$0xff] %v8268_v15  ;;  %v8211_v59 = vld [vmem:[#allocation3 + $0xa2] ss:$2 sm:$0xf] }
 0x659   : > { %v16311_v23 = vld.sshfl [vmem:[#allocation1 + $0x20] sm:$0xff pattern:$0x75316420]  ;;  %v7616_v62 = vadd.f32 %v7615_v17, %v7447_v60  ;;  %8730 = vst [vmem:[#allocation1 + $0x30] ss:$2 sm:$0xff] %v8135_v38 }
 0x65a   : > { %8807 = vst [vmem:[#allocation1 + $0x20] ss:$2 sm:$0xff] %v8163_v48  ;;  %v7618_v48 = vpop.f32.mrf.mxu2  ;;  %v8316_v1 = vld [vmem:[#allocation3 + $0x3f0] ss:$2 sm:$0xf] }
 0x65b   : > { %8808 = vst [vmem:[#allocation1 + $0x21] ss:$2 sm:$0xff] %v8165_v41  ;;  %v8935_v47 = vld.sshfl [vmem:[#allocation1 + $0x10] sm:$0xff pattern:$0x75316420]  ;;  %vm7684_vm4 = vcmp.ge.f32.partialorder %v7616_v62, 0.0 }
 0x65c   : > { %8940 = vst [vmem:[#allocation1 + $0x10] ss:$2 sm:$0xff] %v8223_v28  ;;  %v7748_v52 = vmul.f32 0.01, %v7616_v62  ;;  %v13127_v4 = vpack.i.bf16 %v8935_v47, %v16287_v5 }
 0x65d   : > { %8941 = vst [vmem:[#allocation1 + $0x11] ss:$2 sm:$0xff] %v8225_v13  ;;  %v8213_v60 = vld [vmem:[#allocation3 + $0xc2] ss:$2 sm:$0xf] }
 0x65e   : > { %v7812_v20 = vsel %vm7684_vm4, %v7616_v62, %v7748_v52  ;;  %13128 = vrot.lane.b32.xlu0 %v13127_v4, %s13390_s29  ;;  %v7449_v9 = vpop.f32.mrf.mxu1  ;;  %v8270_v62 = vld [vmem:[#allocation3 + $0x50] ss:$2 sm:$0xf]  ;;  %v8330_v47 = vld [vmem:[#allocation3 + $0x11] ss:$2 sm:$0xf] }
 0x65f   : > { %v16315_v30 = vld.sshfl [vmem:[#allocation1] sm:$0xff pattern:$0x75316420]  ;;  %8072 = vst.msk [vmem:[#allocation3 + $0x4c1] sm:$0xff] %vm1255_vm0, %v7812_v20  ;;  %v7450_v14 = vadd.f32 %v16221_v21, %v7449_v9 }
 0x660   : > { %9073 = vst [vmem:[#allocation1] ss:$2 sm:$0xff] %v8282_v54  ;;  %v8272_v38 = vld [vmem:[#allocation3 + $0x70] ss:$2 sm:$0xf] }
 0x661   : > { %9074 = vst [vmem:[#allocation1 + $0x1] ss:$2 sm:$0xff] %v8284_v53  ;;  %v7619_v17 = vadd.f32 %v7618_v48, %v7450_v14  ;;  %v8332_v54 = vld [vmem:[#allocation3 + $0x31] ss:$2 sm:$0xf] }
 0x662   : > { %v16317_v11 = vld.sshfl [vmem:[#allocation1 + $0x20] sm:$0xff pattern:$0x75316420]  ;;  %v8151_v53 = vld [vmem:[#allocation3 + $0xe1] ss:$2 sm:$0xf] }
 0x663   : > { %8819 = vst [vmem:[#allocation1 + $0x20] ss:$2 sm:$0xff] %v8179_v55  ;;  %vm7685_vm5 = vcmp.ge.f32.partialorder %v7619_v17, 0.0  ;;  %v7749_v41 = vmul.f32 0.01, %v7619_v17 }
 0x664   : > { %8820 = vst [vmem:[#allocation1 + $0x21] ss:$2 sm:$0xff] %v8181_v36  ;;  %v16320_v57 = vld.sshfl [vmem:[#allocation1 + $0x10] sm:$0xff pattern:$0x75316420] }
 0x665   : > { %8952 = vst [vmem:[#allocation1 + $0x10] ss:$2 sm:$0xff] %v8239_v10  ;;  %v7813_v37 = vsel %vm7685_vm5, %v7619_v17, %v7749_v41  ;;  %v8227_v55 = vld [vmem:[#allocation3 + $0x1e2] ss:$2 sm:$0xf] }
 0x666   : > { %8953 = vst [vmem:[#allocation1 + $0x11] ss:$2 sm:$0xff] %v8241_v18  ;;  %v8137_v15 = vld [vmem:[#allocation3 + $0x4c0] ss:$2 sm:$0xf]  ;;  %v7451_v18 = vpop.f32.mrf.mxu1 }
 0x667   : > { %8731 = vst [vmem:[#allocation1 + $0x31] ss:$2 sm:$0xff] %v8137_v15  ;;  %v8153_v20 = vld [vmem:[#allocation3 + $0x101] ss:$2 sm:$0xf]  ;;  %v7452_v4 = vadd.f32 %v16221_v21, %v7451_v18 }
 0x668   : > { %v16323_v26 = vld.sshfl [vmem:[#allocation1] sm:$0xff pattern:$0x75316420]  ;;  %8073 = vst.msk [vmem:[#allocation3 + $0x4d1] sm:$0xff] %vm1255_vm0, %v7813_v37 }
 0x669   : > { %9085 = vst [vmem:[#allocation1] ss:$2 sm:$0xff] %v8298_v46  ;;  %v8229_v10 = vld [vmem:[#allocation3 + $0x202] ss:$2 sm:$0xf] }
 0x66a   : > { %9086 = vst [vmem:[#allocation1 + $0x1] ss:$2 sm:$0xff] %v8300_v61  ;;  %v8288_v61 = vld [vmem:[#allocation3 + $0x1b0] ss:$2 sm:$0xf] }
 0x66b   : > { %v16327_v50 = vld.sshfl [vmem:[#allocation1 + $0x20] sm:$0xff pattern:$0x75316420]  ;;  %v8167_v15 = vld [vmem:[#allocation3 + $0x221] ss:$2 sm:$0xf] }
 0x66c   : > { %8831 = vst [vmem:[#allocation1 + $0x20] ss:$2 sm:$0xff] %v8195_v32  ;;  %v8286_v32 = vld [vmem:[#allocation3 + $0x190] ss:$2 sm:$0xf] }
 0x66d   : > { %8832 = vst [vmem:[#allocation1 + $0x21] ss:$2 sm:$0xff] %v8197_v39  ;;  %v16329_v34 = vld.sshfl [vmem:[#allocation1 + $0x10] sm:$0xff pattern:$0x75316420] }
 0x66e   : > { %8964 = vst [vmem:[#allocation1 + $0x10] ss:$2 sm:$0xff] %v8255_v31  ;;  %v16341_v22 = vld.sshfl [vmem:[#allocation1 + $0x30] sm:$0xff pattern:$0x75316420] }
 0x66f   : > { %8965 = vst [vmem:[#allocation1 + $0x11] ss:$2 sm:$0xff] %v8257_v24  ;;  %v8243_v39 = vld [vmem:[#allocation3 + $0x322] ss:$2 sm:$0xf]  ;;  %v7620_v24 = vpop.f32.mrf.mxu2 }
 0x670   : > { %8796 = vst [vmem:[#allocation1 + $0x30] ss:$2 sm:$0xff] %v8151_v53  ;;  %v8346_v31 = vld [vmem:[#allocation3 + $0x151] ss:$2 sm:$0xf]  ;;  %v7621_v9 = vadd.f32 %v7620_v24, %v7452_v4 }
 0x671   : > { %v16331_v5 = vld.sshfl [vmem:[#allocation1] sm:$0xff pattern:$0x75316420]  ;;  %8798 = vst [vmem:[#allocation1 + $0x31] ss:$2 sm:$0xff] %v8153_v20 }
 0x672   : > { %9097 = vst [vmem:[#allocation1] ss:$2 sm:$0xff] %v8314_v42  ;;  %v8348_v42 = vld [vmem:[#allocation3 + $0x171] ss:$2 sm:$0xf]  ;;  %vm7686_vm6 = vcmp.ge.f32.partialorder %v7621_v9, 0.0 }
 0x673   : > { %9098 = vst [vmem:[#allocation1 + $0x1] ss:$2 sm:$0xff] %v8316_v1  ;;  %v8245_v14 = vld [vmem:[#allocation3 + $0x342] ss:$2 sm:$0xf] }
 0x674   : > { %v16334_v28 = vld.sshfl [vmem:[#allocation1 + $0x20] sm:$0xff pattern:$0x75316420]  ;;  %v8302_v1 = vld [vmem:[#allocation3 + $0x2d0] ss:$2 sm:$0xf] }
 0x675   : > { %8927 = vst [vmem:[#allocation1 + $0x20] ss:$2 sm:$0xff] %v8211_v59  ;;  %v7750_v21 = vmul.f32 0.01, %v7621_v9 }
 0x676   : > { %8929 = vst [vmem:[#allocation1 + $0x21] ss:$2 sm:$0xff] %v8213_v60  ;;  %v16336_v13 = vld.sshfl [vmem:[#allocation1 + $0x10] sm:$0xff pattern:$0x75316420] }
 0x677   : > { %9058 = vst [vmem:[#allocation1 + $0x10] ss:$2 sm:$0xff] %v8270_v62  ;;  %v8169_v17 = vld [vmem:[#allocation3 + $0x241] ss:$2 sm:$0xf] }
 0x678   : > { %9060 = vst [vmem:[#allocation1 + $0x11] ss:$2 sm:$0xff] %v8272_v38  ;;  %v8802_v60 = vld.sshfl [vmem:[#allocation1 + $0x30] sm:$0xff pattern:$0x75316420] }
 0x679   : > { %8809 = vst [vmem:[#allocation1 + $0x30] ss:$2 sm:$0xff] %v8167_v15  ;;  %v8304_v62 = vld [vmem:[#allocation3 + $0x2f0] ss:$2 sm:$0xf]  ;;  %v13137_v53 = vpack.i.bf16 %v8802_v60, %v16311_v23 }
 0x67a   : > { %v16338_v52 = vld.sshfl [vmem:[#allocation1] sm:$0xff pattern:$0x75316420]  ;;  %v8259_v37 = vld [vmem:[#allocation3 + $0x462] ss:$2 sm:$0xf] }
 0x67b   : > { %9189 = vst [vmem:[#allocation1] ss:$2 sm:$0xff] %v8330_v47  ;;  %v8362_v47 = vld [vmem:[#allocation3 + $0x291] ss:$2 sm:$0xf]  ;;  %13138 = vrot.lane.b32.xlu2 %v13137_v53, %s13387_s24 }
 0x67c   : > { %9191 = vst [vmem:[#allocation1 + $0x1] ss:$2 sm:$0xff] %v8332_v54  ;;  %v7814_v54 = vsel %vm7686_vm6, %v7621_v9, %v7750_v21  ;;  %v8261_v18 = vld [vmem:[#allocation3 + $0x482] ss:$2 sm:$0xf] }
 0x67d   : > { %v16343_v36 = vld.sshfl [vmem:[#allocation1 + $0x20] sm:$0xff pattern:$0x75316420]  ;;  %8810 = vst [vmem:[#allocation1 + $0x31] ss:$2 sm:$0xff] %v8169_v17 }
 0x67e   : > { %8942 = vst [vmem:[#allocation1 + $0x20] ss:$2 sm:$0xff] %v8227_v55  ;;  %v8364_v55 = vld [vmem:[#allocation3 + $0x2b1] ss:$2 sm:$0xf] }
 0x67f   : > { %8943 = vst [vmem:[#allocation1 + $0x21] ss:$2 sm:$0xff] %v8229_v10  ;;  %v9070_v46 = vld.sshfl [vmem:[#allocation1 + $0x10] sm:$0xff pattern:$0x75316420] }
 0x680   : > { %9075 = vst [vmem:[#allocation1 + $0x10] ss:$2 sm:$0xff] %v8286_v32  ;;  %v13132_v20 = vpack.i.bf16 %v9070_v46, %v16315_v30  ;;  %v8318_v32 = vld [vmem:[#allocation3 + $0x410] ss:$2 sm:$0xf] }
 0x681   : > { %9076 = vst [vmem:[#allocation1 + $0x11] ss:$2 sm:$0xff] %v8288_v61  ;;  %v8183_v4 = vld [vmem:[#allocation3 + $0x361] ss:$2 sm:$0xf] }
 0x682   : > { %8074 = vst.msk [vmem:[#allocation3 + $0x4e1] sm:$0xff] %vm1255_vm0, %v7814_v54  ;;  %13133 = vrot.lane.b32.xlu1 %v13132_v20, %s13392_s10  ;;  %v8320_v61 = vld [vmem:[#allocation3 + $0x430] ss:$2 sm:$0xf] }
 0x683   : > { %v16346_v59 = vld.sshfl [vmem:[#allocation1] sm:$0xff pattern:$0x75316420]  ;;  %v8274_v46 = vld [vmem:[#allocation3 + $0xb0] ss:$2 sm:$0xf] }
 0x684   : > { %9208 = vst [vmem:[#allocation1] ss:$2 sm:$0xff] %v8346_v31  ;;  %v8814_v23 = vld.sshfl [vmem:[#allocation1 + $0x30] sm:$0xff pattern:$0x75316420] }
 0x685   : > { %9209 = vst [vmem:[#allocation1 + $0x1] ss:$2 sm:$0xff] %v8348_v42  ;;  %v8378_v31 = vld [vmem:[#allocation3 + $0x3d1] ss:$2 sm:$0xf]  ;;  %v13152_v42 = vpack.i.bf16 %v16292_v25, %v16272_v12  ;;  %v13167_v12 = vpack.i.bf16 %v8814_v23, %v16317_v11  ;;  %v13182_v11 = vpack.i.bf16 %v16297_v44, %v16275_v19 }
 0x686   : > { %v16348_v48 = vld.sshfl [vmem:[#allocation1 + $0x20] sm:$0xff pattern:$0x75316420]  ;;  %8821 = vst [vmem:[#allocation1 + $0x30] ss:$2 sm:$0xff] %v8183_v4 }
 0x687   : > { %8954 = vst [vmem:[#allocation1 + $0x20] ss:$2 sm:$0xff] %v8243_v39  ;;  %v8380_v24 = vld [vmem:[#allocation3 + $0x3f1] ss:$2 sm:$0xf]  ;;  %13153 = vrot.lane.b32.xlu2 %v13152_v42, %s13387_s24 }
 0x688   : > { %8955 = vst [vmem:[#allocation1 + $0x21] ss:$2 sm:$0xff] %v8245_v14  ;;  %v16350_v41 = vld.sshfl [vmem:[#allocation1 + $0x10] sm:$0xff pattern:$0x75316420] }
 0x689   : > { %9087 = vst [vmem:[#allocation1 + $0x10] ss:$2 sm:$0xff] %v8302_v1  ;;  %v8185_v9 = vld [vmem:[#allocation3 + $0x381] ss:$2 sm:$0xf] }
 0x68a   : > { %9088 = vst [vmem:[#allocation1 + $0x11] ss:$2 sm:$0xff] %v8304_v62  ;;  %v8276_v14 = vld [vmem:[#allocation3 + $0xd0] ss:$2 sm:$0xf] }
 0x68b   : > { %8822 = vst [vmem:[#allocation1 + $0x31] ss:$2 sm:$0xff] %v8185_v9  ;;  %v8334_v1 = vld [vmem:[#allocation3 + $0x51] ss:$2 sm:$0xf] }
 0x68c   : > { %v16352_v38 = vld.sshfl [vmem:[#allocation1] sm:$0xff pattern:$0x75316420]  ;;  %v8336_v21 = vld [vmem:[#allocation3 + $0x71] ss:$2 sm:$0xf] }
 0x68d   : > { %9220 = vst [vmem:[#allocation1] ss:$2 sm:$0xff] %v8362_v47  ;;  %v8394_v17 = vld [vmem:[#allocation3 + $0x12] ss:$2 sm:$0xf] }
 0x68e   : > { %9221 = vst [vmem:[#allocation1 + $0x1] ss:$2 sm:$0xff] %v8364_v55  ;;  %v8396_v62 = vld [vmem:[#allocation3 + $0x32] ss:$2 sm:$0xf] }
 0x68f   : > { %v16356_v10 = vld.sshfl [vmem:[#allocation1 + $0x20] sm:$0xff pattern:$0x75316420]  ;;  %v8290_v25 = vld [vmem:[#allocation3 + $0x1f0] ss:$2 sm:$0xf]  ;;  %13168 = vrot.lane.b32.xlu2 %v13167_v12, %s13387_s24 }
 0x690   : > { %8966 = vst [vmem:[#allocation1 + $0x20] ss:$2 sm:$0xff] %v8259_v37  ;;  %v8199_v54 = vld [vmem:[#allocation3 + $0x4a1] ss:$2 sm:$0xf] }
 0x691   : > { %8967 = vst [vmem:[#allocation1 + $0x21] ss:$2 sm:$0xff] %v8261_v18  ;;  %v16361_v39 = vld.sshfl [vmem:[#allocation1 + $0x10] sm:$0xff pattern:$0x75316420] }
 0x692   : > { %9099 = vst [vmem:[#allocation1 + $0x10] ss:$2 sm:$0xff] %v8318_v32  ;;  %v8826_v47 = vld.sshfl [vmem:[#allocation1 + $0x30] sm:$0xff pattern:$0x75316420] }
 0x693   : > { %9100 = vst [vmem:[#allocation1 + $0x11] ss:$2 sm:$0xff] %v8320_v61  ;;  %v8350_v53 = vld [vmem:[#allocation3 + $0x191] ss:$2 sm:$0xf]  ;;  %v13197_v44 = vpack.i.bf16 %v8826_v47, %v16327_v50  ;;  %v13212_v47 = vpack.i.bf16 %v16305_v0, %v16282_v35 }
 0x694   : > { %8833 = vst [vmem:[#allocation1 + $0x30] ss:$2 sm:$0xff] %v8199_v54  ;;  %v8292_v20 = vld [vmem:[#allocation3 + $0x210] ss:$2 sm:$0xf] }
 0x695   : > { %v16363_v30 = vld.sshfl [vmem:[#allocation1] sm:$0xff pattern:$0x75316420]  ;;  %v8201_v18 = vld [vmem:[#allocation3 + $0x4c1] ss:$2 sm:$0xf] }
 0x696   : > { %9232 = vst [vmem:[#allocation1] ss:$2 sm:$0xff] %v8378_v31  ;;  %v8352_v4 = vld [vmem:[#allocation3 + $0x1b1] ss:$2 sm:$0xf] }
 0x697   : > { %9233 = vst [vmem:[#allocation1 + $0x1] ss:$2 sm:$0xff] %v8380_v24  ;;  %v8410_v61 = vld [vmem:[#allocation3 + $0x152] ss:$2 sm:$0xf]  ;;  %13183 = vrot.lane.b32.xlu2 %v13182_v11, %s13387_s24 }
 0x698   : > { %v16367_v15 = vld.sshfl [vmem:[#allocation1 + $0x20] sm:$0xff pattern:$0x75316420]  ;;  %8834 = vst [vmem:[#allocation1 + $0x31] ss:$2 sm:$0xff] %v8201_v18 }
 0x699   : > { %9062 = vst [vmem:[#allocation1 + $0x20] ss:$2 sm:$0xff] %v8274_v46  ;;  %v8412_v31 = vld [vmem:[#allocation3 + $0x172] ss:$2 sm:$0xf] }
 0x69a   : > { %9064 = vst [vmem:[#allocation1 + $0x21] ss:$2 sm:$0xff] %v8276_v14  ;;  %v16370_v60 = vld.sshfl [vmem:[#allocation1 + $0x10] sm:$0xff pattern:$0x75316420] }
 0x69b   : > { %9193 = vst [vmem:[#allocation1 + $0x10] ss:$2 sm:$0xff] %v8334_v1  ;;  %v8306_v46 = vld [vmem:[#allocation3 + $0x330] ss:$2 sm:$0xf] }
 0x69c   : > { %9195 = vst [vmem:[#allocation1 + $0x11] ss:$2 sm:$0xff] %v8336_v21  ;;  %v8215_v24 = vld [vmem:[#allocation3 + $0xe2] ss:$2 sm:$0xf] }
 0x69d   : > { %v8308_v42 = vld [vmem:[#allocation3 + $0x350] ss:$2 sm:$0xf]  ;;  %v8366_v1 = vld [vmem:[#allocation3 + $0x2d1] ss:$2 sm:$0xf] }
 0x69e   : > { %v16372_v37 = vld.sshfl [vmem:[#allocation1] sm:$0xff pattern:$0x75316420]  ;;  %v8217_v21 = vld [vmem:[#allocation3 + $0x102] ss:$2 sm:$0xf] }
 0x69f   : > { %16995 = vst [vmem:[#allocation6_spill] sm:$0xff] %v16372_v37  ;;  %v8838_v14 = vld.sshfl [vmem:[#allocation1 + $0x30] sm:$0xff pattern:$0x75316420]  ;;  %13198 = vrot.lane.b32.xlu2 %v13197_v44, %s13387_s24 }
 0x6a0   : > { %9292 = vst [vmem:[#allocation1] ss:$2 sm:$0xff] %v8394_v17  ;;  %v8368_v19 = vld [vmem:[#allocation3 + $0x2f1] ss:$2 sm:$0xf]  ;;  %v13227_v0 = vpack.i.bf16 %v8838_v14, %v16334_v28 }
 0x6a1   : > { %9294 = vst [vmem:[#allocation1 + $0x1] ss:$2 sm:$0xff] %v8396_v62  ;;  %v16376_v55 = vld.sshfl [vmem:[#allocation1 + $0x20] sm:$0xff pattern:$0x75316420] }
 0x6a2   : > { %9077 = vst [vmem:[#allocation1 + $0x20] ss:$2 sm:$0xff] %v8290_v25  ;;  %v8426_v62 = vld [vmem:[#allocation3 + $0x292] ss:$2 sm:$0xf] }
 0x6a3   : > { %9078 = vst [vmem:[#allocation1 + $0x21] ss:$2 sm:$0xff] %v8292_v20  ;;  %v16378_v32 = vld.sshfl [vmem:[#allocation1 + $0x10] sm:$0xff pattern:$0x75316420] }
 0x6a4   : > { %9210 = vst [vmem:[#allocation1 + $0x10] ss:$2 sm:$0xff] %v8350_v53  ;;  %v8428_v25 = vld [vmem:[#allocation3 + $0x2b2] ss:$2 sm:$0xf] }
 0x6a5   : > { %9211 = vst [vmem:[#allocation1 + $0x11] ss:$2 sm:$0xff] %v8352_v4  ;;  %v8322_v54 = vld [vmem:[#allocation3 + $0x470] ss:$2 sm:$0xf] }
 0x6a6   : > { %8931 = vst [vmem:[#allocation1 + $0x30] ss:$2 sm:$0xff] %v8215_v24  ;;  %v8324_v20 = vld [vmem:[#allocation3 + $0x490] ss:$2 sm:$0xf] }
 0x6a7   : > { %8933 = vst [vmem:[#allocation1 + $0x31] ss:$2 sm:$0xff] %v8217_v21  ;;  %v8382_v18 = vld [vmem:[#allocation3 + $0x411] ss:$2 sm:$0xf]  ;;  %13213 = vrot.lane.b32.xlu2 %v13212_v47, %s13387_s24 }
 0x6a8   : > { %v16382_v23 = vld.sshfl [vmem:[#allocation1] sm:$0xff pattern:$0x75316420]  ;;  %v8231_v4 = vld [vmem:[#allocation3 + $0x222] ss:$2 sm:$0xf] }
 0x6a9   : > { %9311 = vst [vmem:[#allocation1] ss:$2 sm:$0xff] %v8410_v61  ;;  %v8384_v11 = vld [vmem:[#allocation3 + $0x431] ss:$2 sm:$0xf] }
 0x6aa   : > { %9312 = vst [vmem:[#allocation1 + $0x1] ss:$2 sm:$0xff] %v8412_v31  ;;  %v16385_v9 = vld.sshfl [vmem:[#allocation1 + $0x20] sm:$0xff pattern:$0x75316420] }
 0x6ab   : > { %9089 = vst [vmem:[#allocation1 + $0x20] ss:$2 sm:$0xff] %v8306_v46  ;;  %v8442_v31 = vld [vmem:[#allocation3 + $0x3d2] ss:$2 sm:$0xf] }
 0x6ac   : > { %9090 = vst [vmem:[#allocation1 + $0x21] ss:$2 sm:$0xff] %v8308_v42  ;;  %v16387_v17 = vld.sshfl [vmem:[#allocation1 + $0x10] sm:$0xff pattern:$0x75316420] }
 0x6ad   : > { %9222 = vst [vmem:[#allocation1 + $0x10] ss:$2 sm:$0xff] %v8366_v1  ;;  %v8338_v42 = vld [vmem:[#allocation3 + $0xb1] ss:$2 sm:$0xf] }
 0x6ae   : > { %9223 = vst [vmem:[#allocation1 + $0x11] ss:$2 sm:$0xff] %v8368_v19  ;;  %v8937_v61 = vld.sshfl [vmem:[#allocation1 + $0x30] sm:$0xff pattern:$0x75316420] }
 0x6af   : > { %v13142_v46 = vpack.i.bf16 %v8937_v61, %v16343_v36  ;;  %8944 = vst [vmem:[#allocation1 + $0x30] ss:$2 sm:$0xff] %v8231_v4  ;;  %v8444_v1 = vld [vmem:[#allocation3 + $0x3f2] ss:$2 sm:$0xf]  ;;  %13228 = vrot.lane.b32.xlu2 %v13227_v0, %s13387_s24 }
 0x6b0   : > { %v8233_v21 = vld [vmem:[#allocation3 + $0x242] ss:$2 sm:$0xf]  ;;  %v8340_v35 = vld [vmem:[#allocation3 + $0xd1] ss:$2 sm:$0xf] }
 0x6b1   : > { %v16390_v12 = vld.sshfl [vmem:[#allocation1] sm:$0xff pattern:$0x75316420]  ;;  %13143 = vrot.lane.b32.xlu0 %v13142_v46, %s13390_s29  ;;  %8945 = vst [vmem:[#allocation1 + $0x31] ss:$2 sm:$0xff] %v8233_v21 }
 0x6b2   : > { %9323 = vst [vmem:[#allocation1] ss:$2 sm:$0xff] %v8426_v62  ;;  %v8398_v36 = vld [vmem:[#allocation3 + $0x52] ss:$2 sm:$0xf] }
 0x6b3   : > { %9324 = vst [vmem:[#allocation1 + $0x1] ss:$2 sm:$0xff] %v8428_v25  ;;  %v16393_v53 = vld.sshfl [vmem:[#allocation1 + $0x20] sm:$0xff pattern:$0x75316420]  ;;  %v13157_v25 = vpack.i.bf16 %v16320_v57, %v16294_v3 }
 0x6b4   : > { %9101 = vst [vmem:[#allocation1 + $0x20] ss:$2 sm:$0xff] %v8322_v54  ;;  %v8400_v62 = vld [vmem:[#allocation3 + $0x72] ss:$2 sm:$0xf] }
 0x6b5   : > { %9102 = vst [vmem:[#allocation1 + $0x21] ss:$2 sm:$0xff] %v8324_v20  ;;  %v16395_v50 = vld.sshfl [vmem:[#allocation1 + $0x10] sm:$0xff pattern:$0x75316420] }
 0x6b6   : > { %9234 = vst [vmem:[#allocation1 + $0x10] ss:$2 sm:$0xff] %v8382_v18  ;;  %v8458_v54 = vld [vmem:[#allocation3 + $0x20] ss:$2 sm:$0xf] }
 0x6b7   : > { %9235 = vst [vmem:[#allocation1 + $0x11] ss:$2 sm:$0xff] %v8384_v11  ;;  %v8460_v20 = vld [vmem:[#allocation3 + $0x40] ss:$2 sm:$0xf]  ;;  %v11965_v11 = vld [vmem:[%s16985_s5 + $0x18] sm:$0xff] }
 0x6b8   : > { %v8354_v4 = vld [vmem:[#allocation3 + $0x1f1] ss:$2 sm:$0xf]  ;;  %v8949_v28 = vld.sshfl [vmem:[#allocation1 + $0x30] sm:$0xff pattern:$0x75316420]  ;;  %10064 = vmatpush.bf16.msrb.mxu3 %v11965_v11 }
 0x6b9   : > { %13158 = vrot.lane.b32.xlu0 %v13157_v25, %s13390_s29  ;;  %v8247_v14 = vld [vmem:[#allocation3 + $0x362] ss:$2 sm:$0xf]  ;;  %v8414_v3 = vld [vmem:[#allocation3 + $0x192] ss:$2 sm:$0xf]  ;;  %v13172_v46 = vpack.i.bf16 %v8949_v28, %v16348_v48 }
 0x6ba   : > { %v16401_v24 = vld.sshfl [vmem:[#allocation1] sm:$0xff pattern:$0x75316420]  ;;  %8956 = vst [vmem:[#allocation1 + $0x30] ss:$2 sm:$0xff] %v8247_v14 }
 0x6bb   : > { %9335 = vst [vmem:[#allocation1] ss:$2 sm:$0xff] %v8442_v31  ;;  %v8356_v57 = vld [vmem:[#allocation3 + $0x211] ss:$2 sm:$0xf] }
 0x6bc   : > { %9336 = vst [vmem:[#allocation1 + $0x1] ss:$2 sm:$0xff] %v8444_v1  ;;  %v16404_v19 = vld.sshfl [vmem:[#allocation1 + $0x20] sm:$0xff pattern:$0x75316420] }
 0x6bd   : > { %9197 = vst [vmem:[#allocation1 + $0x20] ss:$2 sm:$0xff] %v8338_v42  ;;  %v8249_v61 = vld [vmem:[#allocation3 + $0x382] ss:$2 sm:$0xf] }
 0x6be   : > { %9199 = vst [vmem:[#allocation1 + $0x21] ss:$2 sm:$0xff] %v8340_v35  ;;  %v16407_v44 = vld.sshfl [vmem:[#allocation1 + $0x10] sm:$0xff pattern:$0x75316420] }
 0x6bf   : > { %16996 = vst [vmem:[#allocation7_spill] sm:$0xff] %v16407_v44  ;;  %v8416_v42 = vld [vmem:[#allocation3 + $0x1b2] ss:$2 sm:$0xf] }
 0x6c0   : > { %9296 = vst [vmem:[#allocation1 + $0x10] ss:$2 sm:$0xff] %v8398_v36  ;;  %v8474_v1 = vld [vmem:[#allocation3 + $0x160] ss:$2 sm:$0xf] }
 0x6c1   : > { %9298 = vst [vmem:[#allocation1 + $0x11] ss:$2 sm:$0xff] %v8400_v62  ;;  %13173 = vrot.lane.b32.xlu0 %v13172_v46, %s13390_s29  ;;  %v8370_v21 = vld [vmem:[#allocation3 + $0x331] ss:$2 sm:$0xf] }
 0x6c2   : > { %8957 = vst [vmem:[#allocation1 + $0x31] ss:$2 sm:$0xff] %v8249_v61  ;;  %v8372_v35 = vld [vmem:[#allocation3 + $0x351] ss:$2 sm:$0xf] }
 0x6c3   : > { %v16412_v18 = vld.sshfl [vmem:[#allocation1] sm:$0xff pattern:$0x75316420]  ;;  %v8263_v48 = vld [vmem:[#allocation3 + $0x4a2] ss:$2 sm:$0xf] }
 0x6c4   : > { %9427 = vst [vmem:[#allocation1] ss:$2 sm:$0xff] %v8458_v54  ;;  %v8430_v25 = vld [vmem:[#allocation3 + $0x2d2] ss:$2 sm:$0xf] }
 0x6c5   : > { %9429 = vst [vmem:[#allocation1 + $0x1] ss:$2 sm:$0xff] %v8460_v20  ;;  %v16418_v47 = vld.sshfl [vmem:[#allocation1 + $0x20] sm:$0xff pattern:$0x75316420]  ;;  %v13187_v20 = vpack.i.bf16 %v16329_v34, %v16300_v29 }
 0x6c6   : > { %9212 = vst [vmem:[#allocation1 + $0x20] ss:$2 sm:$0xff] %v8354_v4  ;;  %v8432_v28 = vld [vmem:[#allocation3 + $0x2f2] ss:$2 sm:$0xf] }
 0x6c7   : > { %9213 = vst [vmem:[#allocation1 + $0x21] ss:$2 sm:$0xff] %v8356_v57  ;;  %v8476_v14 = vld [vmem:[#allocation3 + $0x180] ss:$2 sm:$0xf] }
 0x6c8   : > { %v9308_v31 = vld.sshfl [vmem:[#allocation1 + $0x10] sm:$0xff pattern:$0x75316420]  ;;  %v8386_v11 = vld [vmem:[#allocation3 + $0x471] ss:$2 sm:$0xf] }
 0x6c9   : > { %9313 = vst [vmem:[#allocation1 + $0x10] ss:$2 sm:$0xff] %v8414_v3  ;;  %v13242_v62 = vpack.i.bf16 %v9308_v31, %v16382_v23  ;;  %v8961_v54 = vld.sshfl [vmem:[#allocation1 + $0x30] sm:$0xff pattern:$0x75316420]  ;;  %13188 = vrot.lane.b32.xlu0 %v13187_v20, %s13390_s29 }
 0x6ca   : > { %9314 = vst [vmem:[#allocation1 + $0x11] ss:$2 sm:$0xff] %v8416_v42  ;;  %v8265_v23 = vld [vmem:[#allocation3 + $0x4c2] ss:$2 sm:$0xf]  ;;  %v13202_v29 = vpack.i.bf16 %v8961_v54, %v16356_v10  ;;  %v13217_v54 = vpack.i.bf16 %v16336_v13, %v16308_v49 }
 0x6cb   : > { %13243 = vrot.lane.b32.xlu2 %v13242_v62, %s13387_s24  ;;  %8968 = vst [vmem:[#allocation1 + $0x30] ss:$2 sm:$0xff] %v8263_v48  ;;  %v8388_v57 = vld [vmem:[#allocation3 + $0x491] ss:$2 sm:$0xf] }
 0x6cc   : > { %v16422_v0 = vld.sshfl [vmem:[#allocation1] sm:$0xff pattern:$0x75316420]  ;;  %8969 = vst [vmem:[#allocation1 + $0x31] ss:$2 sm:$0xff] %v8265_v23 }
 0x6cd   : > { %9446 = vst [vmem:[#allocation1] ss:$2 sm:$0xff] %v8474_v1  ;;  %v8446_v34 = vld [vmem:[#allocation3 + $0x412] ss:$2 sm:$0xf] }
 0x6ce   : > { %v16424_v36 = vld.sshfl [vmem:[#allocation1 + $0x20] sm:$0xff pattern:$0x75316420]  ;;  %9447 = vst [vmem:[#allocation1 + $0x1] ss:$2 sm:$0xff] %v8476_v14 }
 0x6cf   : > { %9224 = vst [vmem:[#allocation1 + $0x20] ss:$2 sm:$0xff] %v8370_v21  ;;  %v8278_v61 = vld [vmem:[#allocation3 + $0xf0] ss:$2 sm:$0xf] }
 0x6d0   : > { %9225 = vst [vmem:[#allocation1 + $0x21] ss:$2 sm:$0xff] %v8372_v35  ;;  %v8448_v31 = vld [vmem:[#allocation3 + $0x432] ss:$2 sm:$0xf] }
 0x6d1   : > { %v16430_v4 = vld.sshfl [vmem:[#allocation1 + $0x10] sm:$0xff pattern:$0x75316420]  ;;  %13203 = vrot.lane.b32.xlu0 %v13202_v29, %s13390_s29  ;;  %v8280_v21 = vld [vmem:[#allocation3 + $0x110] ss:$2 sm:$0xf] }
 0x6d2   : > { %9325 = vst [vmem:[#allocation1 + $0x10] ss:$2 sm:$0xff] %v8430_v25  ;;  %v8404_v35 = vld [vmem:[#allocation3 + $0xd2] ss:$2 sm:$0xf] }
 0x6d3   : > { %9326 = vst [vmem:[#allocation1 + $0x11] ss:$2 sm:$0xff] %v8432_v28  ;;  %v8973_v42 = vld.sshfl [vmem:[#allocation1 + $0x30] sm:$0xff pattern:$0x75316420] }
 0x6d4   : > { %9066 = vst [vmem:[#allocation1 + $0x30] ss:$2 sm:$0xff] %v8278_v61  ;;  %v8490_v62 = vld [vmem:[#allocation3 + $0x2a0] ss:$2 sm:$0xf]  ;;  %v13232_v61 = vpack.i.bf16 %v8973_v42, %v16367_v15 }
 0x6d5   : > { %v16439_v1 = vld.sshfl [vmem:[#allocation1] sm:$0xff pattern:$0x75316420]  ;;  %9068 = vst [vmem:[#allocation1 + $0x31] ss:$2 sm:$0xff] %v8280_v21 }
 0x6d6   : > { %v8492_v25 = vld [vmem:[#allocation3 + $0x2c0] ss:$2 sm:$0xf]  ;;  %9458 = vst [vmem:[#allocation1] ss:$2 sm:$0xff] %v8490_v62 }
 0x6d7   : > { %v16433_v3 = vld.sshfl [vmem:[#allocation1 + $0x20] sm:$0xff pattern:$0x75316420]  ;;  %9459 = vst [vmem:[#allocation1 + $0x1] ss:$2 sm:$0xff] %v8492_v25 }
 0x6d8   : > { %9236 = vst [vmem:[#allocation1 + $0x20] ss:$2 sm:$0xff] %v8386_v11  ;;  %v8462_v48 = vld [vmem:[#allocation3 + $0x60] ss:$2 sm:$0xf] }
 0x6d9   : > { %9237 = vst [vmem:[#allocation1 + $0x21] ss:$2 sm:$0xff] %v8388_v57  ;;  %v8402_v20 = vld [vmem:[#allocation3 + $0xb2] ss:$2 sm:$0xf]  ;;  %13218 = vrot.lane.b32.xlu0 %v13217_v54, %s13390_s29 }
 0x6da   : > { %v16436_v46 = vld.sshfl [vmem:[#allocation1 + $0x10] sm:$0xff pattern:$0x75316420]  ;;  %v8464_v28 = vld [vmem:[#allocation3 + $0x80] ss:$2 sm:$0xf] }
 0x6db   : > { %9337 = vst [vmem:[#allocation1 + $0x10] ss:$2 sm:$0xff] %v8446_v34  ;;  %v8294_v23 = vld [vmem:[#allocation3 + $0x230] ss:$2 sm:$0xf] }
 0x6dc   : > { %9338 = vst [vmem:[#allocation1 + $0x11] ss:$2 sm:$0xff] %v8448_v31  ;;  %v8296_v11 = vld [vmem:[#allocation3 + $0x250] ss:$2 sm:$0xf] }
 0x6dd   : > { %v9072_v57 = vld.sshfl [vmem:[#allocation1 + $0x30] sm:$0xff pattern:$0x75316420]  ;;  %v8506_v29 = vld [vmem:[#allocation3 + $0x3e0] ss:$2 sm:$0xf] }
 0x6de   : > { %9079 = vst [vmem:[#allocation1 + $0x30] ss:$2 sm:$0xff] %v8294_v23  ;;  %v13147_v34 = vpack.i.bf16 %v9072_v57, %v16376_v55  ;;  %v16449_v49 = vld.sshfl [vmem:[#allocation1] sm:$0xff pattern:$0x75316420]  ;;  %v13162_v55 = vpack.i.bf16 %v16350_v41, %v16323_v26 }
 0x6df   : > { %9080 = vst [vmem:[#allocation1 + $0x31] ss:$2 sm:$0xff] %v8296_v11  ;;  %v8508_v13 = vld [vmem:[#allocation3 + $0x400] ss:$2 sm:$0xf] }
 0x6e0   : > { %v16441_v10 = vld.sshfl [vmem:[#allocation1 + $0x20] sm:$0xff pattern:$0x75316420]  ;;  %13148 = vrot.lane.b32.xlu1 %v13147_v34, %s13392_s10  ;;  %9470 = vst [vmem:[#allocation1] ss:$2 sm:$0xff] %v8506_v29 }
 0x6e1   : > { %16997 = vst [vmem:[#allocation8_spill] sm:$0xff] %v16441_v10  ;;  %13233 = vrot.lane.b32.xlu0 %v13232_v61, %s13390_s29  ;;  %v8478_v31 = vld [vmem:[#allocation3 + $0x1a0] ss:$2 sm:$0xf] }
 0x6e2   : > { %9302 = vst [vmem:[#allocation1 + $0x21] ss:$2 sm:$0xff] %v8404_v35  ;;  %v8310_v21 = vld [vmem:[#allocation3 + $0x370] ss:$2 sm:$0xf] }
 0x6e3   : > { %9300 = vst [vmem:[#allocation1 + $0x20] ss:$2 sm:$0xff] %v8402_v20  ;;  %v16446_v14 = vld.sshfl [vmem:[#allocation1 + $0x10] sm:$0xff pattern:$0x75316420] }
 0x6e4   : > { %9431 = vst [vmem:[#allocation1 + $0x10] ss:$2 sm:$0xff] %v8462_v48  ;;  %v8312_v35 = vld [vmem:[#allocation3 + $0x390] ss:$2 sm:$0xf] }
 0x6e5   : > { %9433 = vst [vmem:[#allocation1 + $0x11] ss:$2 sm:$0xff] %v8464_v28  ;;  %v8480_v25 = vld [vmem:[#allocation3 + $0x1c0] ss:$2 sm:$0xf] }
 0x6e6   : > { %9471 = vst [vmem:[#allocation1 + $0x1] ss:$2 sm:$0xff] %v8508_v13  ;;  %v9084_v54 = vld.sshfl [vmem:[#allocation1 + $0x30] sm:$0xff pattern:$0x75316420] }
 0x6e7   : > { %9091 = vst [vmem:[#allocation1 + $0x30] ss:$2 sm:$0xff] %v8310_v21  ;;  %v8418_v15 = vld [vmem:[#allocation3 + $0x1f2] ss:$2 sm:$0xf] }
 0x6e8   : > { %9092 = vst [vmem:[#allocation1 + $0x31] ss:$2 sm:$0xff] %v8312_v35  ;;  %13163 = vrot.lane.b32.xlu1 %v13162_v55, %s13392_s10  ;;  %v8420_v28 = vld [vmem:[#allocation3 + $0x212] ss:$2 sm:$0xf]  ;;  %v11964_v35 = vld [vmem:[%s16985_s5 + $0x10] sm:$0xff] }
 0x6e9   : > { %v8522_v23 = vld [vmem:[#allocation3 + $0x21] ss:$2 sm:$0xf]  ;;  %v8326_v41 = vld [vmem:[#allocation3 + $0x4b0] ss:$2 sm:$0xf]  ;;  %10065 = vmatpush.bf16.msrb.mxu3 %v11964_v35 }
 0x6ea   : > { %v16457_v20 = vld.sshfl [vmem:[#allocation1 + $0x20] sm:$0xff pattern:$0x75316420]  ;;  %v8524_v26 = vld [vmem:[#allocation3 + $0x41] ss:$2 sm:$0xf] }
 0x6eb   : > { %9315 = vst [vmem:[#allocation1 + $0x20] ss:$2 sm:$0xff] %v8418_v15  ;;  %v8494_v11 = vld [vmem:[#allocation3 + $0x2e0] ss:$2 sm:$0xf] }
 0x6ec   : > { %v9443_v62 = vld.sshfl [vmem:[#allocation1 + $0x10] sm:$0xff pattern:$0x75316420]  ;;  %9316 = vst [vmem:[#allocation1 + $0x21] ss:$2 sm:$0xff] %v8420_v28 }
 0x6ed   : > { %9448 = vst [vmem:[#allocation1 + $0x10] ss:$2 sm:$0xff] %v8478_v31  ;;  %v13247_v48 = vpack.i.bf16 %v9443_v62, %v16422_v0  ;;  %v16460_v42 = vld.sshfl [vmem:[#allocation1] sm:$0xff pattern:$0x75316420]  ;;  %v13177_v0 = vpack.i.bf16 %v9084_v54, %v16385_v9  ;;  %v13124_v9 = vpop.permute.xlu2 %13123  ;;  %v13129_v54 = vpop.permute.xlu0 %13128 }
 0x6ee   : > { %9449 = vst [vmem:[#allocation1 + $0x11] ss:$2 sm:$0xff] %v8480_v25  ;;  %v8328_v57 = vld [vmem:[#allocation3 + $0x4d0] ss:$2 sm:$0xf]  ;;  %v13126_v28 = vunpack.i.h.bf16 %v13124_v9 }
 0x6ef   : > { %13248 = vrot.lane.b32.xlu0 %v13247_v48, %s13390_s29  ;;  %9562 = vst [vmem:[#allocation1] ss:$2 sm:$0xff] %v8522_v23  ;;  %v9096_v29 = vld.sshfl [vmem:[#allocation1 + $0x30] sm:$0xff pattern:$0x75316420]  ;;  %v13192_v48 = vpack.i.bf16 %v16361_v39, %v16331_v5  ;;  %v13125_v23 = vunpack.i.l.bf16 %v13124_v9  ;;  %v11962_v9 = vld [vmem:[%s16985_s5] sm:$0xff] }
 0x6f0   : > { %9564 = vst [vmem:[#allocation1 + $0x1] ss:$2 sm:$0xff] %v8524_v26  ;;  %13178 = vrot.lane.b32.xlu1 %v13177_v0, %s13392_s10  ;;  %v8496_v13 = vld [vmem:[#allocation3 + $0x300] ss:$2 sm:$0xf] }
 0x6f1   : > { %9103 = vst [vmem:[#allocation1 + $0x30] ss:$2 sm:$0xff] %v8326_v41  ;;  %v8538_v61 = vld [vmem:[#allocation3 + $0x161] ss:$2 sm:$0xf]  ;;  %v9768_v35 = vsel %vm1255_vm0, %v14962_v33, %v13125_v23  ;;  %v13207_v23 = vpack.i.bf16 %v9096_v29, %v16393_v53 }
 0x6f2   : > { %9104 = vst [vmem:[#allocation1 + $0x31] ss:$2 sm:$0xff] %v8328_v57  ;;  %v8434_v21 = vld [vmem:[#allocation3 + $0x332] ss:$2 sm:$0xf]  ;;  %v11963_v26 = vld [vmem:[%s16985_s5 + $0x8] sm:$0xff]  ;;  %v13130_v57 = vunpack.i.l.bf16 %v13129_v54 }
 0x6f3   : > { %v16467_v31 = vld.sshfl [vmem:[#allocation1 + $0x20] sm:$0xff pattern:$0x75316420]  ;;  %v8540_v25 = vld [vmem:[#allocation3 + $0x181] ss:$2 sm:$0xf]  ;;  %10066 = vmatpush.bf16.msrb.mxu3 %v11963_v26 }
 0x6f4   : > { %9327 = vst [vmem:[#allocation1 + $0x20] ss:$2 sm:$0xff] %v8434_v21  ;;  %v8436_v55 = vld [vmem:[#allocation3 + $0x352] ss:$2 sm:$0xf]  ;;  %v13134_v5 = vpop.permute.xlu1 %13133  ;;  %v9769_v21 = vsel %vm1255_vm0, %v15395_v63, %v13126_v28 }
 0x6f5   : > { %v16465_v34 = vld.sshfl [vmem:[#allocation1 + $0x10] sm:$0xff pattern:$0x75316420]  ;;  %v8342_v15 = vld [vmem:[#allocation3 + $0xf1] ss:$2 sm:$0xf] }
 0x6f6   : > { %9460 = vst [vmem:[#allocation1 + $0x10] ss:$2 sm:$0xff] %v8494_v11  ;;  %v8344_v41 = vld [vmem:[#allocation3 + $0x111] ss:$2 sm:$0xf]  ;;  %v13131_v11 = vunpack.i.h.bf16 %v13129_v54  ;;  %v13135_v54 = vunpack.i.l.bf16 %v13134_v5 }
 0x6f7   : > { %9461 = vst [vmem:[#allocation1 + $0x11] ss:$2 sm:$0xff] %v8496_v13  ;;  %v16472_v62 = vld.sshfl [vmem:[#allocation1] sm:$0xff pattern:$0x75316420]  ;;  %10067 = vmatpush.bf16.msrb.mxu3 %v11962_v9  ;;  %v13222_v9 = vpack.i.bf16 %v16370_v60, %v16338_v52 }
 0x6f8   : > { %9581 = vst [vmem:[#allocation1] ss:$2 sm:$0xff] %v8538_v61  ;;  %13193 = vrot.lane.b32.xlu1 %v13192_v48, %s13392_s10  ;;  %v8510_v13 = vld [vmem:[#allocation3 + $0x420] ss:$2 sm:$0xf]  ;;  %v9785_v48 = vsel %vm6789_vm10, %v9769_v21, %v13131_v11 }
 0x6f9   : > { %9582 = vst [vmem:[#allocation1 + $0x1] ss:$2 sm:$0xff] %v8540_v25  ;;  %v16479_v0 = vld.sshfl [vmem:[#allocation1 + $0x30] sm:$0xff pattern:$0x75316420]  ;;  %v13136_v25 = vunpack.i.h.bf16 %v13134_v5 }
 0x6fa   : > { %9328 = vst [vmem:[#allocation1 + $0x21] ss:$2 sm:$0xff] %v8436_v55  ;;  %v8512_v61 = vld [vmem:[#allocation3 + $0x440] ss:$2 sm:$0xf] }
 0x6fb   : > { %9201 = vst [vmem:[#allocation1 + $0x30] ss:$2 sm:$0xff] %v8342_v15  ;;  %v8554_v55 = vld [vmem:[#allocation3 + $0x2a1] ss:$2 sm:$0xf]  ;;  %v9784_v15 = vsel %vm6789_vm10, %v9768_v35, %v13130_v57  ;;  %v9801_v63 = vsel %vm6919_vm15, %v9785_v48, %v13136_v25 }
 0x6fc   : > { %9203 = vst [vmem:[#allocation1 + $0x31] ss:$2 sm:$0xff] %v8344_v41  ;;  %v8450_v26 = vld [vmem:[#allocation3 + $0x472] ss:$2 sm:$0xf]  ;;  %v9800_v28 = vsel %vm6919_vm15, %v9784_v15, %v13135_v54 }
 0x6fd   : > { %v9864_v41 = vpack.c.bf16 %v9801_v63, %v9800_v28  ;;  %v8452_v5 = vld [vmem:[#allocation3 + $0x492] ss:$2 sm:$0xf]  ;;  %v8556_v11 = vld [vmem:[#allocation3 + $0x2c1] ss:$2 sm:$0xf] }
 0x6fe   : > { %v16482_v39 = vld.sshfl [vmem:[#allocation1 + $0x10] sm:$0xff pattern:$0x75316420]  ;;  %v8526_v57 = vld [vmem:[#allocation3 + $0x61] ss:$2 sm:$0xf] }
 0x6ff   : > { %9472 = vst [vmem:[#allocation1 + $0x10] ss:$2 sm:$0xff] %v8510_v13  ;;  %v8358_v13 = vld [vmem:[#allocation3 + $0x231] ss:$2 sm:$0xf]  ;;  %10068 = vmatmul.bf16.vlgmr.msrb.gmra.mxu3 %v9864_v41  ;;  %v13237_v41 = vpack.i.bf16 %v16479_v0, %v16404_v19 }
 0x700   : > { %9473 = vst [vmem:[#allocation1 + $0x11] ss:$2 sm:$0xff] %v8512_v61  ;;  %v16495_v33 = vld.sshfl [vmem:[#allocation1] sm:$0xff pattern:$0x75316420]  ;;  %13208 = vrot.lane.b32.xlu1 %v13207_v23, %s13392_s10 }
 0x701   : > { %v16498_v10 = vld.sshfl [vmem:[#allocation1 + $0x20] sm:$0xff pattern:$0x75316420]  ;;  %9593 = vst [vmem:[#allocation1] ss:$2 sm:$0xff] %v8554_v55 }
 0x702   : > { %9339 = vst [vmem:[#allocation1 + $0x20] ss:$2 sm:$0xff] %v8450_v26  ;;  %v8360_v21 = vld [vmem:[#allocation3 + $0x251] ss:$2 sm:$0xf] }
 0x703   : > { %9340 = vst [vmem:[#allocation1 + $0x21] ss:$2 sm:$0xff] %v8452_v5  ;;  %v16501_v61 = vld.sshfl [vmem:[#allocation1 + $0x30] sm:$0xff pattern:$0x75316420] }
 0x704   : > { %9594 = vst [vmem:[#allocation1 + $0x1] ss:$2 sm:$0xff] %v8556_v11  ;;  %v8528_v29 = vld [vmem:[#allocation3 + $0x81] ss:$2 sm:$0xf] }
 0x705   : > { %9214 = vst [vmem:[#allocation1 + $0x30] ss:$2 sm:$0xff] %v8358_v13  ;;  %v8466_v35 = vld [vmem:[#allocation3 + $0xc0] ss:$2 sm:$0xf] }
 0x706   : > { %9215 = vst [vmem:[#allocation1 + $0x31] ss:$2 sm:$0xff] %v8360_v21  ;;  %v8468_v25 = vld [vmem:[#allocation3 + $0xe0] ss:$2 sm:$0xf] }
 0x707   : > { %v16503_v53 = vld.sshfl [vmem:[#allocation1 + $0x10] sm:$0xff pattern:$0x75316420]  ;;  %v8374_v55 = vld [vmem:[#allocation3 + $0x371] ss:$2 sm:$0xf] }
 0x708   : > { %9566 = vst [vmem:[#allocation1 + $0x10] ss:$2 sm:$0xff] %v8526_v57  ;;  %13223 = vrot.lane.b32.xlu1 %v13222_v9, %s13392_s10  ;;  %v8570_v15 = vld [vmem:[#allocation3 + $0x3e1] ss:$2 sm:$0xf] }
 0x709   : > { %9568 = vst [vmem:[#allocation1 + $0x11] ss:$2 sm:$0xff] %v8528_v29  ;;  %v8542_v26 = vld [vmem:[#allocation3 + $0x1a1] ss:$2 sm:$0xf] }
 0x70a   : > { %v16507_v54 = vld.sshfl [vmem:[#allocation1 + $0x20] sm:$0xff pattern:$0x75316420]  ;;  %v8376_v28 = vld [vmem:[#allocation3 + $0x391] ss:$2 sm:$0xf] }
 0x70b   : > { %9435 = vst [vmem:[#allocation1 + $0x20] ss:$2 sm:$0xff] %v8466_v35  ;;  %v16510_v48 = vld.sshfl [vmem:[#allocation1] sm:$0xff pattern:$0x75316420] }
 0x70c   : > { %9437 = vst [vmem:[#allocation1 + $0x21] ss:$2 sm:$0xff] %v8468_v25  ;;  %v8544_v52 = vld [vmem:[#allocation3 + $0x1c1] ss:$2 sm:$0xf] }
 0x70d   : > { %v16512_v63 = vld.sshfl [vmem:[#allocation1 + $0x30] sm:$0xff pattern:$0x75316420]  ;;  %9605 = vst [vmem:[#allocation1] ss:$2 sm:$0xff] %v8570_v15 }
 0x70e   : > { %9226 = vst [vmem:[#allocation1 + $0x30] ss:$2 sm:$0xff] %v8374_v55  ;;  %v8572_v60 = vld [vmem:[#allocation3 + $0x401] ss:$2 sm:$0xf] }
 0x70f   : > { %9227 = vst [vmem:[#allocation1 + $0x31] ss:$2 sm:$0xff] %v8376_v28  ;;  %v8482_v13 = vld [vmem:[#allocation3 + $0x200] ss:$2 sm:$0xf] }
 0x710   : > { %v9578_v23 = vld.sshfl [vmem:[#allocation1 + $0x10] sm:$0xff pattern:$0x75316420]  ;;  %9606 = vst [vmem:[#allocation1 + $0x1] ss:$2 sm:$0xff] %v8572_v60  ;;  %13238 = vrot.lane.b32.xlu1 %v13237_v41, %s13392_s10 }
 0x711   : > { %9583 = vst [vmem:[#allocation1 + $0x10] ss:$2 sm:$0xff] %v8542_v26  ;;  %v8484_v11 = vld [vmem:[#allocation3 + $0x220] ss:$2 sm:$0xf]  ;;  %v13252_v35 = vpack.i.bf16 %v9578_v23, %v16472_v62 }
 0x712   : > { %9584 = vst [vmem:[#allocation1 + $0x11] ss:$2 sm:$0xff] %v8544_v52  ;;  %v8390_v57 = vld [vmem:[#allocation3 + $0x4b1] ss:$2 sm:$0xf] }
 0x713   : > { %v16517_v5 = vld.sshfl [vmem:[#allocation1 + $0x20] sm:$0xff pattern:$0x75316420]  ;;  %v8392_v29 = vld [vmem:[#allocation3 + $0x4d1] ss:$2 sm:$0xf] }
 0x714   : > { %9450 = vst [vmem:[#allocation1 + $0x20] ss:$2 sm:$0xff] %v8482_v13  ;;  %v8558_v9 = vld [vmem:[#allocation3 + $0x2e1] ss:$2 sm:$0xf] }
 0x715   : > { %9451 = vst [vmem:[#allocation1 + $0x21] ss:$2 sm:$0xff] %v8484_v11  ;;  %v8586_v19 = vld [vmem:[#allocation3 + $0x22] ss:$2 sm:$0xf] }
 0x716   : > { %v16519_v21 = vld.sshfl [vmem:[#allocation1 + $0x30] sm:$0xff pattern:$0x75316420]  ;;  %v8560_v55 = vld [vmem:[#allocation3 + $0x301] ss:$2 sm:$0xf] }
 0x717   : > { %9238 = vst [vmem:[#allocation1 + $0x30] ss:$2 sm:$0xff] %v8390_v57  ;;  %v16524_v25 = vld.sshfl [vmem:[#allocation1] sm:$0xff pattern:$0x75316420] }
 0x718   : > { %9239 = vst [vmem:[#allocation1 + $0x31] ss:$2 sm:$0xff] %v8392_v29  ;;  %v8498_v15 = vld [vmem:[#allocation3 + $0x340] ss:$2 sm:$0xf]  ;;  %13253 = vrot.lane.b32.xlu1 %v13252_v35, %s13392_s10 }
 0x719   : > { %v16522_v0 = vld.sshfl [vmem:[#allocation1 + $0x10] sm:$0xff pattern:$0x75316420]  ;;  %9697 = vst [vmem:[#allocation1] ss:$2 sm:$0xff] %v8586_v19 }
 0x71a   : > { %9595 = vst [vmem:[#allocation1 + $0x10] ss:$2 sm:$0xff] %v8558_v9  ;;  %v8588_v26 = vld [vmem:[#allocation3 + $0x42] ss:$2 sm:$0xf] }
 0x71b   : > { %9596 = vst [vmem:[#allocation1 + $0x11] ss:$2 sm:$0xff] %v8560_v55  ;;  %v8500_v52 = vld [vmem:[#allocation3 + $0x360] ss:$2 sm:$0xf] }
 0x71c   : > { %v16527_v28 = vld.sshfl [vmem:[#allocation1 + $0x20] sm:$0xff pattern:$0x75316420]  ;;  %9699 = vst [vmem:[#allocation1 + $0x1] ss:$2 sm:$0xff] %v8588_v26 }
 0x71d   : > { %9462 = vst [vmem:[#allocation1 + $0x20] ss:$2 sm:$0xff] %v8498_v15  ;;  %v8408_v62 = vld [vmem:[#allocation3 + $0x112] ss:$2 sm:$0xf] }
 0x71e   : > { %9463 = vst [vmem:[#allocation1 + $0x21] ss:$2 sm:$0xff] %v8500_v52  ;;  %v8406_v60 = vld [vmem:[#allocation3 + $0xf2] ss:$2 sm:$0xf] }
 0x71f   : > { %v16529_v23 = vld.sshfl [vmem:[#allocation1 + $0x30] sm:$0xff pattern:$0x75316420]  ;;  %v8574_v41 = vld [vmem:[#allocation3 + $0x421] ss:$2 sm:$0xf] }
 0x720   : > { %16998 = vst [vmem:[#allocation9_spill] sm:$0xff] %v16529_v23  ;;  %v8576_v11 = vld [vmem:[#allocation3 + $0x441] ss:$2 sm:$0xf] }
 0x721   : > { %9306 = vst [vmem:[#allocation1 + $0x31] ss:$2 sm:$0xff] %v8408_v62  ;;  %v8514_v29 = vld [vmem:[#allocation3 + $0x480] ss:$2 sm:$0xf] }
 0x722   : > { %9304 = vst [vmem:[#allocation1 + $0x30] ss:$2 sm:$0xff] %v8406_v60  ;;  %v16531_v13 = vld.sshfl [vmem:[#allocation1 + $0x10] sm:$0xff pattern:$0x75316420] }
 0x723   : > { %9607 = vst [vmem:[#allocation1 + $0x10] ss:$2 sm:$0xff] %v8574_v41  ;;  %v8602_v35 = vld [vmem:[#allocation3 + $0x162] ss:$2 sm:$0xf] }
 0x724   : > { %9608 = vst [vmem:[#allocation1 + $0x11] ss:$2 sm:$0xff] %v8576_v11  ;;  %v8516_v9 = vld [vmem:[#allocation3 + $0x4a0] ss:$2 sm:$0xf] }
 0x725   : > { %v16535_v19 = vld.sshfl [vmem:[#allocation1 + $0x20] sm:$0xff pattern:$0x75316420]  ;;  %v8590_v52 = vld [vmem:[#allocation3 + $0x62] ss:$2 sm:$0xf] }
 0x726   : > { %9474 = vst [vmem:[#allocation1 + $0x20] ss:$2 sm:$0xff] %v8514_v29  ;;  %v16537_v55 = vld.sshfl [vmem:[#allocation1] sm:$0xff pattern:$0x75316420] }
 0x727   : > { %16999 = vst [vmem:[#allocation10_spill] sm:$0xff] %v16537_v55  ;;  %v8422_v15 = vld [vmem:[#allocation3 + $0x232] ss:$2 sm:$0xf] }
 0x728   : > { %9475 = vst [vmem:[#allocation1 + $0x21] ss:$2 sm:$0xff] %v8516_v9  ;;  %v8424_v62 = vld [vmem:[#allocation3 + $0x252] ss:$2 sm:$0xf] }
 0x729   : > { %v9310_v26 = vld.sshfl [vmem:[#allocation1 + $0x30] sm:$0xff pattern:$0x75316420]  ;;  %9716 = vst [vmem:[#allocation1] ss:$2 sm:$0xff] %v8602_v35 }
 0x72a   : > { %v13257_v60 = vpack.i.bf16 %v9310_v26, %v16457_v20  ;;  %9317 = vst [vmem:[#allocation1 + $0x30] ss:$2 sm:$0xff] %v8422_v15  ;;  %v8604_v57 = vld [vmem:[#allocation3 + $0x182] ss:$2 sm:$0xf]  ;;  %v11977_v20 = vld [vmem:[%s16985_s5 + $0x78] sm:$0xff] }
 0x72b   : > { %9318 = vst [vmem:[#allocation1 + $0x31] ss:$2 sm:$0xff] %v8424_v62  ;;  %v16541_v41 = vld.sshfl [vmem:[#allocation1 + $0x10] sm:$0xff pattern:$0x75316420]  ;;  %10109 = vmatpush.bf16.msra.mxu3 %v11977_v20 }
 0x72c   : > { %13258 = vrot.lane.b32.xlu2 %v13257_v60, %s13387_s24  ;;  %9717 = vst [vmem:[#allocation1 + $0x1] ss:$2 sm:$0xff] %v8604_v57  ;;  %v8592_v11 = vld [vmem:[#allocation3 + $0x82] ss:$2 sm:$0xf]  ;;  %v13272_v57 = vpack.i.bf16 %v16430_v4, %v16390_v12 }
 0x72d   : > { %9701 = vst [vmem:[#allocation1 + $0x10] ss:$2 sm:$0xff] %v8590_v52  ;;  %v8530_v9 = vld [vmem:[#allocation3 + $0xc1] ss:$2 sm:$0xf] }
 0x72e   : > { %9703 = vst [vmem:[#allocation1 + $0x11] ss:$2 sm:$0xff] %v8592_v11  ;;  %v8532_v23 = vld [vmem:[#allocation3 + $0xe1] ss:$2 sm:$0xf] }
 0x72f   : > { %v16545_v35 = vld.sshfl [vmem:[#allocation1 + $0x20] sm:$0xff pattern:$0x75316420]  ;;  %v8606_v60 = vld [vmem:[#allocation3 + $0x1a2] ss:$2 sm:$0xf] }
 0x730   : > { %9570 = vst [vmem:[#allocation1 + $0x20] ss:$2 sm:$0xff] %v8530_v9  ;;  %v8438_v15 = vld [vmem:[#allocation3 + $0x372] ss:$2 sm:$0xf] }
 0x731   : > { %9572 = vst [vmem:[#allocation1 + $0x21] ss:$2 sm:$0xff] %v8532_v23  ;;  %v8440_v26 = vld [vmem:[#allocation3 + $0x392] ss:$2 sm:$0xf] }
 0x732   : > { %v9322_v62 = vld.sshfl [vmem:[#allocation1 + $0x30] sm:$0xff pattern:$0x75316420]  ;;  %v8546_v9 = vld [vmem:[#allocation3 + $0x201] ss:$2 sm:$0xf] }
 0x733   : > { %9329 = vst [vmem:[#allocation1 + $0x30] ss:$2 sm:$0xff] %v8438_v15  ;;  %v16552_v52 = vld.sshfl [vmem:[#allocation1] sm:$0xff pattern:$0x75316420]  ;;  %v13287_v15 = vpack.i.bf16 %v9322_v62, %v16467_v31  ;;  %v11976_v62 = vld [vmem:[%s16985_s5 + $0x70] sm:$0xff] }
 0x734   : > { %17000 = vst [vmem:[#allocation11_spill] sm:$0xff] %v16552_v52  ;;  %v8608_v11 = vld [vmem:[#allocation3 + $0x1c2] ss:$2 sm:$0xf]  ;;  %13273 = vrot.lane.b32.xlu2 %v13272_v57, %s13387_s24  ;;  %10110 = vmatpush.bf16.msra.mxu3 %v11976_v62 }
 0x735   : > { %v8618_v29 = vld [vmem:[#allocation3 + $0x2a2] ss:$2 sm:$0xf]  ;;  %9330 = vst [vmem:[#allocation1 + $0x31] ss:$2 sm:$0xff] %v8440_v26 }
 0x736   : > { %v16555_v37 = vld.sshfl [vmem:[#allocation1 + $0x10] sm:$0xff pattern:$0x75316420]  ;;  %9728 = vst [vmem:[#allocation1] ss:$2 sm:$0xff] %v8618_v29 }
 0x737   : > { %9718 = vst [vmem:[#allocation1 + $0x10] ss:$2 sm:$0xff] %v8606_v60  ;;  %v8620_v12 = vld [vmem:[#allocation3 + $0x2c2] ss:$2 sm:$0xf] }
 0x738   : > { %9719 = vst [vmem:[#allocation1 + $0x11] ss:$2 sm:$0xff] %v8608_v11  ;;  %v16559_v4 = vld.sshfl [vmem:[#allocation1 + $0x20] sm:$0xff pattern:$0x75316420] }
 0x739   : > { %9729 = vst [vmem:[#allocation1 + $0x1] ss:$2 sm:$0xff] %v8620_v12  ;;  %v8548_v20 = vld [vmem:[#allocation3 + $0x221] ss:$2 sm:$0xf] }
 0x73a   : > { %9585 = vst [vmem:[#allocation1 + $0x20] ss:$2 sm:$0xff] %v8546_v9  ;;  %v8454_v57 = vld [vmem:[#allocation3 + $0x4b2] ss:$2 sm:$0xf] }
 0x73b   : > { %9586 = vst [vmem:[#allocation1 + $0x21] ss:$2 sm:$0xff] %v8548_v20  ;;  %v8456_v44 = vld [vmem:[#allocation3 + $0x4d2] ss:$2 sm:$0xf] }
 0x73c   : > { %v9334_v26 = vld.sshfl [vmem:[#allocation1 + $0x30] sm:$0xff pattern:$0x75316420]  ;;  %13288 = vrot.lane.b32.xlu2 %v13287_v15, %s13387_s24  ;;  %v8562_v11 = vld [vmem:[#allocation3 + $0x341] ss:$2 sm:$0xf] }
 0x73d   : > { %9341 = vst [vmem:[#allocation1 + $0x30] ss:$2 sm:$0xff] %v8454_v57  ;;  %v8622_v29 = vld [vmem:[#allocation3 + $0x2e2] ss:$2 sm:$0xf]  ;;  %v13302_v57 = vpack.i.bf16 %v16436_v46, %v16401_v24  ;;  %v13317_v46 = vpack.i.bf16 %v9334_v26, %v16498_v10  ;;  %v13332_v10 = vpack.i.bf16 %v16446_v14, %v16412_v18  ;;  %v13277_v18 = vpack.i.bf16 %v16465_v34, %v16439_v1 }
 0x73e   : > { %9342 = vst [vmem:[#allocation1 + $0x31] ss:$2 sm:$0xff] %v8456_v44  ;;  %v8624_v23 = vld [vmem:[#allocation3 + $0x302] ss:$2 sm:$0xf] }
 0x73f   : > { %v16563_v60 = vld.sshfl [vmem:[#allocation1 + $0x10] sm:$0xff pattern:$0x75316420]  ;;  %v8470_v44 = vld [vmem:[#allocation3 + $0x100] ss:$2 sm:$0xf] }
 0x740   : > { %17001 = vst [vmem:[#allocation12_spill] sm:$0xff] %v16563_v60  ;;  %v16567_v9 = vld.sshfl [vmem:[#allocation1] sm:$0xff pattern:$0x75316420] }
 0x741   : > { %9730 = vst [vmem:[#allocation1 + $0x10] ss:$2 sm:$0xff] %v8622_v29  ;;  %v8634_v31 = vld [vmem:[#allocation3 + $0x3e2] ss:$2 sm:$0xf] }
 0x742   : > { %17002 = vst [vmem:[#allocation13_spill] sm:$0xff] %v16567_v9  ;;  %v16572_v20 = vld.sshfl [vmem:[#allocation1 + $0x20] sm:$0xff pattern:$0x75316420] }
 0x743   : > { %9731 = vst [vmem:[#allocation1 + $0x11] ss:$2 sm:$0xff] %v8624_v23  ;;  %v8564_v15 = vld [vmem:[#allocation3 + $0x361] ss:$2 sm:$0xf] }
 0x744   : > { %9740 = vst [vmem:[#allocation1] ss:$2 sm:$0xff] %v8634_v31  ;;  %v8636_v12 = vld [vmem:[#allocation3 + $0x402] ss:$2 sm:$0xf]  ;;  %13303 = vrot.lane.b32.xlu2 %v13302_v57, %s13387_s24  ;;  %v13139_v57 = vpop.permute.xlu2 %13138 }
 0x745   : > { %9597 = vst [vmem:[#allocation1 + $0x20] ss:$2 sm:$0xff] %v8562_v11  ;;  %v9346_v29 = vld.sshfl [vmem:[#allocation1 + $0x30] sm:$0xff pattern:$0x75316420] }
 0x746   : > { %9598 = vst [vmem:[#allocation1 + $0x21] ss:$2 sm:$0xff] %v8564_v15  ;;  %v8472_v52 = vld [vmem:[#allocation3 + $0x120] ss:$2 sm:$0xf] }
 0x747   : > { %9741 = vst [vmem:[#allocation1 + $0x1] ss:$2 sm:$0xff] %v8636_v12  ;;  %v8638_v23 = vld [vmem:[#allocation3 + $0x422] ss:$2 sm:$0xf] }
 0x748   : > { %9439 = vst [vmem:[#allocation1 + $0x30] ss:$2 sm:$0xff] %v8470_v44  ;;  %v8640_v31 = vld [vmem:[#allocation3 + $0x442] ss:$2 sm:$0xf] }
 0x749   : > { %9441 = vst [vmem:[#allocation1 + $0x31] ss:$2 sm:$0xff] %v8472_v52  ;;  %v8578_v24 = vld [vmem:[#allocation3 + $0x481] ss:$2 sm:$0xf] }
 0x74a   : > { %v16577_v60 = vld.sshfl [vmem:[#allocation1 + $0x10] sm:$0xff pattern:$0x75316420]  ;;  %v8580_v62 = vld [vmem:[#allocation3 + $0x4a1] ss:$2 sm:$0xf] }
 0x74b   : > { %9742 = vst [vmem:[#allocation1 + $0x10] ss:$2 sm:$0xff] %v8638_v23  ;;  %v8486_v52 = vld [vmem:[#allocation3 + $0x240] ss:$2 sm:$0xf]  ;;  %v13144_v23 = vpop.permute.xlu0 %13143 }
 0x74c   : > { %9743 = vst [vmem:[#allocation1 + $0x11] ss:$2 sm:$0xff] %v8640_v31  ;;  %13318 = vrot.lane.b32.xlu2 %v13317_v46, %s13387_s24  ;;  %v8488_v44 = vld [vmem:[#allocation3 + $0x260] ss:$2 sm:$0xf]  ;;  %v13141_v31 = vunpack.i.h.bf16 %v13139_v57  ;;  %v13145_v9 = vunpack.i.l.bf16 %v13144_v23 }
 0x74d   : > { %v16582_v11 = vld.sshfl [vmem:[#allocation1 + $0x20] sm:$0xff pattern:$0x75316420]  ;;  %v8594_v26 = vld [vmem:[#allocation3 + $0xc2] ss:$2 sm:$0xf] }
 0x74e   : > { %9609 = vst [vmem:[#allocation1 + $0x20] ss:$2 sm:$0xff] %v8578_v24  ;;  %v13140_v24 = vunpack.i.l.bf16 %v13139_v57  ;;  %v8596_v46 = vld [vmem:[#allocation3 + $0xe2] ss:$2 sm:$0xf] }
 0x74f   : > { %9610 = vst [vmem:[#allocation1 + $0x21] ss:$2 sm:$0xff] %v8580_v62  ;;  %v13146_v62 = vunpack.i.h.bf16 %v13144_v23 }
 0x750   : > { %v9445_v12 = vld.sshfl [vmem:[#allocation1 + $0x30] sm:$0xff pattern:$0x75316420]  ;;  %v9770_v57 = vsel %vm1255_vm0, %v15139_v7, %v13140_v24 }
 0x751   : > { %v13262_v15 = vpack.i.bf16 %v9445_v12, %v16517_v5  ;;  %9452 = vst [vmem:[#allocation1 + $0x30] ss:$2 sm:$0xff] %v8486_v52  ;;  %v11975_v5 = vld [vmem:[%s16985_s5 + $0x68] sm:$0xff] }
 0x752   : > { %9453 = vst [vmem:[#allocation1 + $0x31] ss:$2 sm:$0xff] %v8488_v44  ;;  %v8502_v52 = vld [vmem:[#allocation3 + $0x380] ss:$2 sm:$0xf]  ;;  %v13149_v12 = vpop.permute.xlu1 %13148  ;;  %10111 = vmatpush.bf16.msra.mxu3 %v11975_v5  ;;  %v13347_v5 = vpack.i.bf16 %v9346_v29, %v16507_v54 }
 0x753   : > { %13263 = vrot.lane.b32.xlu0 %v13262_v15, %s13390_s29  ;;  %v8504_v44 = vld [vmem:[#allocation3 + $0x3a0] ss:$2 sm:$0xf]  ;;  %v9771_v15 = vsel %vm1255_vm0, %v15947_v40, %v13141_v31  ;;  %v13151_v23 = vunpack.i.h.bf16 %v13149_v12 }
 0x754   : > { %13333 = vrot.lane.b32.xlu2 %v13332_v10, %s13387_s24  ;;  %v13150_v10 = vunpack.i.l.bf16 %v13149_v12  ;;  %v8610_v31 = vld [vmem:[#allocation3 + $0x202] ss:$2 sm:$0xf] }
 0x755   : > { %v8612_v24 = vld [vmem:[#allocation3 + $0x222] ss:$2 sm:$0xf] }
 0x756   : > { %v16589_v55 = vld.sshfl [vmem:[#allocation1 + $0x20] sm:$0xff pattern:$0x75316420] }
 0x757   : > { %9705 = vst [vmem:[#allocation1 + $0x20] ss:$2 sm:$0xff] %v8594_v26  ;;  %v9787_v26 = vsel %vm6789_vm10, %v9771_v15, %v13146_v62  ;;  %v13154_v62 = vpop.permute.xlu2 %13153 }
 0x758   : > { %9707 = vst [vmem:[#allocation1 + $0x21] ss:$2 sm:$0xff] %v8596_v46  ;;  %v9786_v46 = vsel %vm6789_vm10, %v9770_v57, %v13145_v9  ;;  %v9803_v34 = vsel %vm6919_vm15, %v9787_v26, %v13151_v23  ;;  %v13156_v29 = vunpack.i.h.bf16 %v13154_v62  ;;  %v13155_v15 = vunpack.i.l.bf16 %v13154_v62 }
 0x759   : > { %v9457_v14 = vld.sshfl [vmem:[#allocation1 + $0x30] sm:$0xff pattern:$0x75316420]  ;;  %v9802_v1 = vsel %vm6919_vm15, %v9786_v46, %v13150_v10  ;;  %v13307_v62 = vpack.i.bf16 %v16482_v39, %v16449_v49 }
 0x75a   : > { %9464 = vst [vmem:[#allocation1 + $0x30] ss:$2 sm:$0xff] %v8502_v52  ;;  %v9867_v40 = vpack.c.bf16 %v9803_v34, %v9802_v1  ;;  %v13292_v9 = vpack.i.bf16 %v9457_v14, %v16527_v28  ;;  %v8518_v52 = vld [vmem:[#allocation3 + $0x4c0] ss:$2 sm:$0xf]  ;;  %v13164_v54 = vpop.permute.xlu1 %13163  ;;  %v11974_v28 = vld [vmem:[%s16985_s5 + $0x60] sm:$0xff]  ;;  %v9773_v46 = vsel %vm1255_vm0, %v16104_v45, %v13156_v29 }
 0x75b   : > { %13278 = vrot.lane.b32.xlu0 %v13277_v18, %s13390_s29  ;;  %9465 = vst [vmem:[#allocation1 + $0x31] ss:$2 sm:$0xff] %v8504_v44  ;;  %v13159_v18 = vpop.permute.xlu0 %13158  ;;  %v8520_v44 = vld [vmem:[#allocation3 + $0x4e0] ss:$2 sm:$0xf]  ;;  %v13166_v10 = vunpack.i.h.bf16 %v13164_v54  ;;  %v13165_v26 = vunpack.i.l.bf16 %v13164_v54  ;;  %10112 = vmatpush.bf16.msra.mxu3 %v11974_v28 }
 0x75c   : > { %13348 = vrot.lane.b32.xlu2 %v13347_v5, %s13387_s24  ;;  %10073 = vmatmul.bf16.gmra.mxu3 %v9867_v40  ;;  %v13161_v57 = vunpack.i.h.bf16 %v13159_v18  ;;  %v13160_v23 = vunpack.i.l.bf16 %v13159_v18  ;;  %v8626_v14 = vld [vmem:[#allocation3 + $0x342] ss:$2 sm:$0xf]  ;;  %v8534_v45 = vld [vmem:[#allocation3 + $0x101] ss:$2 sm:$0xf] }
 0x75d   : > { %v17003_v1 = vld [vmem:[#allocation5_spill] sm:$0xff]  ;;  %s11023_s24 = sshll.u32 %s17020_s12, 3 }
 0x75e   : > { %v9772_v34 = vsel %vm1255_vm0, %v17003_v1, %v13155_v15  ;;  %v8628_v40 = vld [vmem:[#allocation3 + $0x362] ss:$2 sm:$0xf]  ;;  %v8552_v1 = vld [vmem:[#allocation3 + $0x261] ss:$2 sm:$0xf]  ;;  %s337_s20 = scalar_lea.vmem %s16989_s9, %s11023_s24 }
 0x75f   : > { %v16608_v7 = vld.sshfl [vmem:[#allocation1 + $0x20] sm:$0xff pattern:$0x75316420]  ;;  %v8642_v29 = vld [vmem:[#allocation3 + $0x482] ss:$2 sm:$0xf]  ;;  %v13169_v15 = vpop.permute.xlu2 %13168 }
 0x760   : > { %9720 = vst [vmem:[#allocation1 + $0x20] ss:$2 sm:$0xff] %v8610_v31  ;;  %v9789_v31 = vsel %vm6789_vm10, %v9773_v46, %v13161_v57  ;;  %v8644_v57 = vld [vmem:[#allocation3 + $0x4a2] ss:$2 sm:$0xf]  ;;  %v13171_v28 = vunpack.i.h.bf16 %v13169_v15 }
 0x761   : > { %9721 = vst [vmem:[#allocation1 + $0x21] ss:$2 sm:$0xff] %v8612_v24  ;;  %v9788_v24 = vsel %vm6789_vm10, %v9772_v34, %v13160_v23 }
 0x762   : > { %v9469_v12 = vld.sshfl [vmem:[#allocation1 + $0x30] sm:$0xff pattern:$0x75316420] }
 0x763   : > { %13293 = vrot.lane.b32.xlu0 %v13292_v9, %s13390_s29  ;;  %9476 = vst [vmem:[#allocation1 + $0x30] ss:$2 sm:$0xff] %v8518_v52  ;;  %v9804_v9 = vsel %vm6919_vm15, %v9788_v24, %v13165_v26  ;;  %v9805_v52 = vsel %vm6919_vm15, %v9789_v31, %v13166_v10  ;;  %v13322_v49 = vpack.i.bf16 %v9469_v12, %v16535_v19  ;;  %v13174_v23 = vpop.permute.xlu0 %13173  ;;  %v13179_v10 = vpop.permute.xlu1 %13178  ;;  %v8550_v26 = vld [vmem:[#allocation3 + $0x241] ss:$2 sm:$0xf]  ;;  %v11973_v24 = vld [vmem:[%s16985_s5 + $0x58] sm:$0xff] }
 0x764   : > { %9477 = vst [vmem:[#allocation1 + $0x31] ss:$2 sm:$0xff] %v8520_v44  ;;  %v8536_v44 = vld [vmem:[#allocation3 + $0x121] ss:$2 sm:$0xf]  ;;  %v9870_v54 = vpack.c.bf16 %v9805_v52, %v9804_v9  ;;  %v13176_v34 = vunpack.i.h.bf16 %v13174_v23  ;;  %v13181_v19 = vunpack.i.h.bf16 %v13179_v10  ;;  %v13180_v12 = vunpack.i.l.bf16 %v13179_v10  ;;  %10113 = vmatpush.bf16.msra.mxu3 %v11973_v24 }
 0x768   : > { %v16619_v5 = vld.sshfl [vmem:[#allocation1 + $0x20] sm:$0xff pattern:$0x75316420] }
 0x769   : > { %9732 = vst [vmem:[#allocation1 + $0x20] ss:$2 sm:$0xff] %v8626_v14  ;;  %v13170_v14 = vunpack.i.l.bf16 %v13169_v15 }
 0x76a   : > { %9733 = vst [vmem:[#allocation1 + $0x21] ss:$2 sm:$0xff] %v8628_v40  ;;  %v13175_v40 = vunpack.i.l.bf16 %v13174_v23 }
 0x76b   : > { %13308 = vrot.lane.b32.xlu0 %v13307_v62, %s13390_s29  ;;  %v9481_v18 = vld.sshfl [vmem:[#allocation1 + $0x30] sm:$0xff pattern:$0x75316420]  ;;  %v9775_v62 = vsel %vm1255_vm0, %v16232_v58, %v13171_v28  ;;  %v9774_v9 = vsel %vm1255_vm0, %v15785_v27, %v13170_v14  ;;  %v13282_v58 = vpack.i.bf16 %v16522_v0, %v16495_v33  ;;  %v13194_v23 = vpop.permute.xlu1 %13193  ;;  %v8582_v0 = vld [vmem:[#allocation3 + $0x4c1] ss:$2 sm:$0xf] }
 0x76c   : > { %9574 = vst [vmem:[#allocation1 + $0x30] ss:$2 sm:$0xff] %v8534_v45  ;;  %10078 = vmatmul.bf16.gmra.mxu3 %v9870_v54  ;;  %v9791_v52 = vsel %vm6789_vm10, %v9775_v62, %v13176_v34  ;;  %v13337_v45 = vpack.i.bf16 %v16503_v53, %v16460_v42  ;;  %v13184_v42 = vpop.permute.xlu2 %13183  ;;  %v13352_v53 = vpack.i.bf16 %v9481_v18, %v16545_v35  ;;  %v11972_v35 = vld [vmem:[%s16985_s5 + $0x50] sm:$0xff] }
 0x76d   : > { %9576 = vst [vmem:[#allocation1 + $0x31] ss:$2 sm:$0xff] %v8536_v44  ;;  %v9807_v54 = vsel %vm6919_vm15, %v9791_v52, %v13181_v19  ;;  %v13186_v10 = vunpack.i.h.bf16 %v13184_v42  ;;  %10114 = vmatpush.bf16.msra.mxu3 %v11972_v35  ;;  %v17004_v52 = vpack.i.bf16 %v16531_v13, %v16510_v48 }
 0x76f   : > { %v9777_v18 = vsel %vm1255_vm0, %v16267_v6, %v13186_v10  ;;  %v8616_v10 = vld [vmem:[#allocation3 + $0x262] ss:$2 sm:$0xf] }
 0x771   : > { %v16629_v39 = vld.sshfl [vmem:[#allocation1 + $0x20] sm:$0xff pattern:$0x75316420] }
 0x772   : > { %9744 = vst [vmem:[#allocation1 + $0x20] ss:$2 sm:$0xff] %v8642_v29  ;;  %v8566_v29 = vld [vmem:[#allocation3 + $0x381] ss:$2 sm:$0xf] }
 0x773   : > { %13323 = vrot.lane.b32.xlu0 %v13322_v49, %s13390_s29  ;;  %9745 = vst [vmem:[#allocation1 + $0x21] ss:$2 sm:$0xff] %v8644_v57  ;;  %v8568_v49 = vld [vmem:[#allocation3 + $0x3a1] ss:$2 sm:$0xf]  ;;  %v13189_v57 = vpop.permute.xlu0 %13188 }
 0x774   : > { %v9580_v46 = vld.sshfl [vmem:[#allocation1 + $0x30] sm:$0xff pattern:$0x75316420]  ;;  %v13191_v28 = vunpack.i.h.bf16 %v13189_v57  ;;  %v13190_v14 = vunpack.i.l.bf16 %v13189_v57 }
 0x775   : > { %v13267_v31 = vpack.i.bf16 %v9580_v46, %v16559_v4  ;;  %9587 = vst [vmem:[#allocation1 + $0x30] ss:$2 sm:$0xff] %v8550_v26  ;;  %v9790_v4 = vsel %vm6789_vm10, %v9774_v9, %v13175_v40  ;;  %v13185_v26 = vunpack.i.l.bf16 %v13184_v42  ;;  %v13196_v46 = vunpack.i.h.bf16 %v13194_v23  ;;  %v8584_v40 = vld [vmem:[#allocation3 + $0x4e1] ss:$2 sm:$0xf] }
 0x776   : > { %9588 = vst [vmem:[#allocation1 + $0x31] ss:$2 sm:$0xff] %v8552_v1  ;;  %v9806_v44 = vsel %vm6919_vm15, %v9790_v4, %v13180_v12  ;;  %v13195_v1 = vunpack.i.l.bf16 %v13194_v23  ;;  %v8598_v9 = vld [vmem:[#allocation3 + $0x102] ss:$2 sm:$0xf]  ;;  %v13199_v4 = vpop.permute.xlu2 %13198 }
 0x777   : > { %13268 = vrot.lane.b32.xlu1 %v13267_v31, %s13392_s10  ;;  %v9873_v27 = vpack.c.bf16 %v9807_v54, %v9806_v44  ;;  %v9776_v31 = vsel %vm1255_vm0, %v16083_v16, %v13185_v26  ;;  %v8600_v16 = vld [vmem:[#allocation3 + $0x122] ss:$2 sm:$0xf]  ;;  %v13209_v44 = vpop.permute.xlu1 %13208  ;;  %v13201_v54 = vunpack.i.h.bf16 %v13199_v4 }
 0x778   : > { %v9792_v19 = vsel %vm6789_vm10, %v9776_v31, %v13190_v14  ;;  %v13211_v48 = vunpack.i.h.bf16 %v13209_v44  ;;  %v13210_v13 = vunpack.i.l.bf16 %v13209_v44  ;;  %v8614_v42 = vld [vmem:[#allocation3 + $0x242] ss:$2 sm:$0xf] }
 0x779   : > { %v9808_v12 = vsel %vm6919_vm15, %v9792_v19, %v13195_v1 }
 0x77b   : > { %13338 = vrot.lane.b32.xlu0 %v13337_v45, %s13390_s29  ;;  %v13204_v45 = vpop.permute.xlu0 %13203 }
 0x77c   : > { %10083 = vmatmul.bf16.gmra.mxu3 %v9873_v27  ;;  %v13205_v27 = vunpack.i.l.bf16 %v13204_v45 }
 0x77d   : > { %v9592_v15 = vld.sshfl [vmem:[#allocation1 + $0x30] sm:$0xff pattern:$0x75316420] }
 0x77e   : > { %9599 = vst [vmem:[#allocation1 + $0x30] ss:$2 sm:$0xff] %v8566_v29  ;;  %v13297_v33 = vpack.i.bf16 %v9592_v15, %v16572_v20  ;;  %v9793_v20 = vsel %vm6789_vm10, %v9777_v18, %v13191_v28  ;;  %v13200_v29 = vunpack.i.l.bf16 %v13199_v4  ;;  %v13206_v15 = vunpack.i.h.bf16 %v13204_v45  ;;  %v8646_v45 = vld [vmem:[#allocation3 + $0x4c2] ss:$2 sm:$0xf] }
 0x77f   : > { %13283 = vrot.lane.b32.xlu1 %v13282_v58, %s13392_s10  ;;  %9600 = vst [vmem:[#allocation1 + $0x31] ss:$2 sm:$0xff] %v8568_v49  ;;  %v9809_v24 = vsel %vm6919_vm15, %v9793_v20, %v13196_v46  ;;  %v11971_v58 = vld [vmem:[%s16985_s5 + $0x48] sm:$0xff]  ;;  %v13214_v46 = vpop.permute.xlu2 %13213  ;;  %v13224_v18 = vpop.permute.xlu1 %13223 }
 0x780   : > { %v9876_v62 = vpack.c.bf16 %v9809_v24, %v9808_v12  ;;  %10115 = vmatpush.bf16.msra.mxu3 %v11971_v58  ;;  %v9778_v57 = vsel %vm1255_vm0, %v16216_v8, %v13200_v29  ;;  %v17005_v8 = vpack.i.bf16 %v16541_v41, %v16524_v25  ;;  %v13216_v31 = vunpack.i.h.bf16 %v13214_v46 }
 0x781   : > { %v9794_v28 = vsel %vm6789_vm10, %v9778_v57, %v13205_v27  ;;  %v13215_v20 = vunpack.i.l.bf16 %v13214_v46  ;;  %v13226_v41 = vunpack.i.h.bf16 %v13224_v18  ;;  %v13225_v24 = vunpack.i.l.bf16 %v13224_v18 }
 0x782   : > { %v9810_v14 = vsel %vm6919_vm15, %v9794_v28, %v13210_v13 }
 0x783   : > { %13353 = vrot.lane.b32.xlu0 %v13352_v53, %s13390_s29  ;;  %v9779_v53 = vsel %vm1255_vm0, %v16313_v56, %v13201_v54 }
 0x784   : > { %v9795_v26 = vsel %vm6789_vm10, %v9779_v53, %v13206_v15 }
 0x786   : > { %v9604_v34 = vld.sshfl [vmem:[#allocation1 + $0x30] sm:$0xff pattern:$0x75316420] }
 0x787   : > { %13298 = vrot.lane.b32.xlu1 %v13297_v33, %s13392_s10  ;;  %9611 = vst [vmem:[#allocation1 + $0x30] ss:$2 sm:$0xff] %v8582_v0  ;;  %v13327_v49 = vpack.i.bf16 %v9604_v34, %v16582_v11  ;;  %v9811_v33 = vsel %vm6919_vm15, %v9795_v26, %v13211_v48  ;;  %v8630_v0 = vld [vmem:[#allocation3 + $0x382] ss:$2 sm:$0xf]  ;;  %v13229_v29 = vpop.permute.xlu2 %13228  ;;  %v13239_v15 = vpop.permute.xlu1 %13238 }
 0x788   : > { %9612 = vst [vmem:[#allocation1 + $0x31] ss:$2 sm:$0xff] %v8584_v40  ;;  %v9879_v56 = vpack.c.bf16 %v9811_v33, %v9810_v14  ;;  %v8632_v34 = vld [vmem:[#allocation3 + $0x3a2] ss:$2 sm:$0xf]  ;;  %v13219_v40 = vpop.permute.xlu0 %13218  ;;  %v13231_v27 = vunpack.i.h.bf16 %v13229_v29  ;;  %v13240_v53 = vunpack.i.l.bf16 %v13239_v15 }
 0x789   : > { %v13221_v19 = vunpack.i.h.bf16 %v13219_v40  ;;  %v13220_v12 = vunpack.i.l.bf16 %v13219_v40  ;;  %v11979_v26 = vld [vmem:[%s16985_s5 + $0x88] sm:$0xff] }
 0x78a   : > { %v9783_v57 = vsel %vm1255_vm0, %v16341_v22, %v13231_v27 }
 0x78c   : > { %10088 = vmatmul.bf16.gmra.mxu3 %v9876_v62  ;;  %v9781_v62 = vsel %vm1255_vm0, %v16279_v43, %v13216_v31  ;;  %v8648_v43 = vld [vmem:[#allocation3 + $0x4e2] ss:$2 sm:$0xf] }
 0x78f   : > { %13313 = vrot.lane.b32.xlu1 %v17004_v52, %s13392_s10  ;;  %v9616_v6 = vld.sshfl [vmem:[#allocation1 + $0x30] sm:$0xff pattern:$0x75316420]  ;;  %v11970_v52 = vld [vmem:[%s16985_s5 + $0x40] sm:$0xff]  ;;  %v13254_v46 = vpop.permute.xlu1 %13253 }
 0x790   : > { %9709 = vst [vmem:[#allocation1 + $0x30] ss:$2 sm:$0xff] %v8598_v9  ;;  %v13357_v25 = vpack.i.bf16 %v9616_v6, %v16589_v55  ;;  %v9780_v9 = vsel %vm1255_vm0, %v16260_v51, %v13215_v20  ;;  %10116 = vmatpush.bf16.msra.mxu3 %v11970_v52  ;;  %v13234_v58 = vpop.permute.xlu0 %13233  ;;  %v13256_v31 = vunpack.i.h.bf16 %v13254_v46  ;;  %v13255_v20 = vunpack.i.l.bf16 %v13254_v46  ;;  %v16731_v52 = vpop.f32.mrf.mxu3 }
 0x791   : > { %9711 = vst [vmem:[#allocation1 + $0x31] ss:$2 sm:$0xff] %v8600_v16  ;;  %v9797_v16 = vsel %vm6789_vm10, %v9781_v62, %v13221_v19  ;;  %v9796_v4 = vsel %vm6789_vm10, %v9780_v9, %v13220_v12  ;;  %v13236_v48 = vunpack.i.h.bf16 %v13234_v58  ;;  %v13235_v13 = vunpack.i.l.bf16 %v13234_v58 }
 0x792   : > { %v9812_v55 = vsel %vm6919_vm15, %v9796_v4, %v13225_v24  ;;  %v9813_v6 = vsel %vm6919_vm15, %v9797_v16, %v13226_v41 }
 0x793   : > { %v9882_v54 = vpack.c.bf16 %v9813_v6, %v9812_v55  ;;  %v9799_v28 = vsel %vm6789_vm10, %v9783_v57, %v13236_v48 }
 0x794   : > { %10164 = vmatpush.bf16.msrb.mxu3 %v11979_v26 }
 0x797   : > { %13328 = vrot.lane.b32.xlu1 %v13327_v49, %s13392_s10  ;;  %v13230_v49 = vunpack.i.l.bf16 %v13229_v29 }
 0x798   : > { %v16679_v23 = vld.sshfl [vmem:[#allocation1 + $0x30] sm:$0xff pattern:$0x75316420]  ;;  %v13249_v22 = vpop.permute.xlu0 %13248  ;;  %v16733_v16 = vpop.f32.mrf.mxu3 }
 0x799   : > { %v9869_v11 = vpack.c.bf16 %v16679_v23, %v16608_v7  ;;  %9722 = vst [vmem:[#allocation1 + $0x30] ss:$2 sm:$0xff] %v8614_v42  ;;  %v13241_v42 = vunpack.i.h.bf16 %v13239_v15  ;;  %v13251_v40 = vunpack.i.h.bf16 %v13249_v22  ;;  %v13250_v18 = vunpack.i.l.bf16 %v13249_v22 }
 0x79a   : > { %9723 = vst [vmem:[#allocation1 + $0x31] ss:$2 sm:$0xff] %v8616_v10  ;;  %v9782_v10 = vsel %vm1255_vm0, %v16302_v2, %v13230_v49 }
 0x79b   : > { %v9798_v14 = vsel %vm6789_vm10, %v9782_v10, %v13235_v13 }
 0x79c   : > { %10093 = vmatmul.bf16.gmra.mxu3 %v9879_v56  ;;  %v9814_v33 = vsel %vm6919_vm15, %v9798_v14, %v13240_v53  ;;  %v9815_v56 = vsel %vm6919_vm15, %v9799_v28, %v13241_v42 }
 0x79f   : > { %13343 = vrot.lane.b32.xlu1 %v17005_v8, %s13392_s10  ;;  %v9885_v8 = vpack.c.bf16 %v9815_v56, %v9814_v33 }
 0x7a1   : > { %v16691_v1 = vld.sshfl [vmem:[#allocation1 + $0x30] sm:$0xff pattern:$0x75316420] }
 0x7a2   : > { %v9875_v35 = vpack.c.bf16 %v16691_v1, %v16619_v5  ;;  %9734 = vst [vmem:[#allocation1 + $0x30] ss:$2 sm:$0xff] %v8630_v0  ;;  %v13244_v0 = vpop.permute.xlu2 %13243 }
 0x7a3   : > { %9735 = vst [vmem:[#allocation1 + $0x31] ss:$2 sm:$0xff] %v8632_v34  ;;  %v13246_v34 = vunpack.i.h.bf16 %v13244_v0  ;;  %v13245_v2 = vunpack.i.l.bf16 %v13244_v0 }
 0x7a5   : > { %v9817_v19 = vsel %vm1255_vm0, %v16378_v32, %v13246_v34  ;;  %v9816_v12 = vsel %vm1255_vm0, %v16346_v59, %v13245_v2 }
 0x7a6   : > { %v9832_v41 = vsel %vm6789_vm10, %v9816_v12, %v13250_v18 }
 0x7a7   : > { %13358 = vrot.lane.b32.xlu1 %v13357_v25, %s13392_s10  ;;  %v9833_v25 = vsel %vm6789_vm10, %v9817_v19, %v13251_v40  ;;  %v9848_v62 = vsel %vm6919_vm15, %v9832_v41, %v13255_v20  ;;  %v11978_v19 = vld [vmem:[%s16985_s5 + $0x80] sm:$0xff] }
 0x7a8   : > { %v9849_v24 = vsel %vm6919_vm15, %v9833_v25, %v13256_v31  ;;  %10165 = vmatpush.bf16.msrb.mxu3 %v11978_v19 }
 0x7a9   : > { %v9865_v9 = vpack.c.bf16 %v9849_v24, %v9848_v62 }
 0x7aa   : > { %v16708_v44 = vld.sshfl [vmem:[#allocation1 + $0x30] sm:$0xff pattern:$0x75316420]  ;;  %v13259_v32 = vpop.permute.xlu2 %13258 }
 0x7ab   : > { %v9881_v51 = vpack.c.bf16 %v16708_v44, %v16629_v39  ;;  %9746 = vst [vmem:[#allocation1 + $0x30] ss:$2 sm:$0xff] %v8646_v45  ;;  %v13261_v55 = vunpack.i.h.bf16 %v13259_v32  ;;  %v13260_v59 = vunpack.i.l.bf16 %v13259_v32 }
 0x7ac   : > { %9747 = vst [vmem:[#allocation1 + $0x31] ss:$2 sm:$0xff] %v8648_v43  ;;  %10098 = vmatmul.bf16.gmra.mxu3 %v9882_v54 }
 0x7ad   : > { %v9819_v29 = vsel %vm1255_vm0, %v16501_v61, %v13261_v55  ;;  %v9818_v58 = vsel %vm1255_vm0, %v16418_v47, %v13260_v59 }
 0x7b2   : > { %v13274_v10 = vpop.permute.xlu2 %13273 }
 0x7b3   : > { %v13276_v47 = vunpack.i.h.bf16 %v13274_v10  ;;  %v13275_v14 = vunpack.i.l.bf16 %v13274_v10 }
 0x7b5   : > { %v9821_v22 = vsel %vm1255_vm0, %v16387_v17, %v13276_v47  ;;  %v9820_v46 = vsel %vm1255_vm0, %v16352_v38, %v13275_v14 }
 0x7ba   : > { %v13289_v17 = vpop.permute.xlu2 %13288 }
 0x7bb   : > { %v13291_v41 = vunpack.i.h.bf16 %v13289_v17  ;;  %v13290_v24 = vunpack.i.l.bf16 %v13289_v17 }
 0x7bc   : > { %10103 = vmatmul.bf16.gmra.mxu3 %v9885_v8 }
 0x7bd   : > { %v9823_v55 = vsel %vm1255_vm0, %v16512_v63, %v13291_v41  ;;  %v9822_v59 = vsel %vm1255_vm0, %v16424_v36, %v13290_v24 }
 0x7c5   : > { %v13264_v45 = vpop.permute.xlu0 %13263 }
 0x7c6   : > { %v13266_v6 = vunpack.i.h.bf16 %v13264_v45  ;;  %v13265_v43 = vunpack.i.l.bf16 %v13264_v45 }
 0x7c8   : > { %v9835_v48 = vsel %vm6789_vm10, %v9819_v29, %v13266_v6  ;;  %v9834_v13 = vsel %vm6789_vm10, %v9818_v58, %v13265_v43 }
 0x7cc   : > { %10117 = vmatmul.bf16.vlgmr.msra.gmra.mxu3 %v9865_v9 }
 0x7cd   : > { %v13279_v26 = vpop.permute.xlu0 %13278 }
 0x7ce   : > { %v13281_v33 = vunpack.i.h.bf16 %v13279_v26  ;;  %v13280_v56 = vunpack.i.l.bf16 %v13279_v26 }
 0x7d0   : > { %v9837_v34 = vsel %vm6789_vm10, %v9821_v22, %v13281_v33  ;;  %v9836_v2 = vsel %vm6789_vm10, %v9820_v46, %v13280_v56 }
 0x7d5   : > { %v13294_v12 = vpop.permute.xlu0 %13293 }
 0x7d6   : > { %v13296_v62 = vunpack.i.h.bf16 %v13294_v12  ;;  %v13295_v9 = vunpack.i.l.bf16 %v13294_v12 }
 0x7d8   : > { %v9839_v6 = vsel %vm6789_vm10, %v9823_v55, %v13296_v62  ;;  %v9838_v43 = vsel %vm6789_vm10, %v9822_v59, %v13295_v9 }
 0x7df   : > { %v16735_v4 = vpop.f32.mrf.mxu3 }
 0x7e7   : > { %v16741_v49 = vpop.f32.mrf.mxu3 }
 0x7e9   : > { %v13269_v54 = vpop.permute.xlu1 %13268 }
 0x7ea   : > { %v13271_v15 = vunpack.i.h.bf16 %v13269_v54  ;;  %v13270_v27 = vunpack.i.l.bf16 %v13269_v54 }
 0x7ec   : > { %v9850_v42 = vsel %vm6919_vm15, %v9834_v13, %v13270_v27  ;;  %v9851_v53 = vsel %vm6919_vm15, %v9835_v48, %v13271_v15  ;;  %v13304_v27 = vpop.permute.xlu2 %13303  ;;  %v13309_v48 = vpop.permute.xlu0 %13308 }
 0x7ed   : > { %v9868_v57 = vpack.c.bf16 %v9851_v53, %v9850_v42  ;;  %v13306_v42 = vunpack.i.h.bf16 %v13304_v27  ;;  %v13305_v53 = vunpack.i.l.bf16 %v13304_v27  ;;  %v13311_v36 = vunpack.i.h.bf16 %v13309_v48 }
 0x7ef   : > { %10122 = vmatmul.bf16.gmra.mxu3 %v9868_v57  ;;  %v16747_v61 = vpop.f32.mrf.mxu3  ;;  %v13310_v57 = vunpack.i.l.bf16 %v13309_v48  ;;  %v9824_v47 = vsel %vm1255_vm0, %v16363_v30, %v13305_v53  ;;  %v17006_v48 = vld [vmem:[#allocation7_spill] sm:$0xff] }
 0x7f1   : > { %v13284_v28 = vpop.permute.xlu1 %13283  ;;  %v9840_v33 = vsel %vm6789_vm10, %v9824_v47, %v13310_v57 }
 0x7f2   : > { %v13286_v8 = vunpack.i.h.bf16 %v13284_v28  ;;  %v13285_v0 = vunpack.i.l.bf16 %v13284_v28  ;;  %v9825_v28 = vsel %vm1255_vm0, %v16395_v50, %v13306_v42  ;;  %v17007_v42 = vld [vmem:[#allocation6_spill] sm:$0xff] }
 0x7f3   : > { %v9841_v14 = vsel %vm6789_vm10, %v9825_v28, %v13311_v36 }
 0x7f4   : > { %v9852_v40 = vsel %vm6919_vm15, %v9836_v2, %v13285_v0  ;;  %v9853_v18 = vsel %vm6919_vm15, %v9837_v34, %v13286_v8  ;;  %v13319_v46 = vpop.permute.xlu2 %13318  ;;  %v13324_v34 = vpop.permute.xlu0 %13323 }
 0x7f5   : > { %v9871_v20 = vpack.c.bf16 %v9853_v18, %v9852_v40  ;;  %v13321_v40 = vunpack.i.h.bf16 %v13319_v46  ;;  %v13320_v18 = vunpack.i.l.bf16 %v13319_v46  ;;  %v13326_v30 = vunpack.i.h.bf16 %v13324_v34 }
 0x7f7   : > { %v16757_v31 = vpop.f32.mrf.mxu3  ;;  %v9827_v12 = vsel %vm1255_vm0, %v16519_v21, %v13321_v40 }
 0x7f8   : > { %v9843_v41 = vsel %vm6789_vm10, %v9827_v12, %v13326_v30  ;;  %v17008_v30 = vld [vmem:[#allocation9_spill] sm:$0xff] }
 0x7f9   : > { %v13299_v25 = vpop.permute.xlu1 %13298 }
 0x7fa   : > { %v13301_v32 = vunpack.i.h.bf16 %v13299_v25  ;;  %v13300_v45 = vunpack.i.l.bf16 %v13299_v25  ;;  %v9826_v25 = vsel %vm1255_vm0, %v16433_v3, %v13320_v18 }
 0x7fc   : > { %v9854_v54 = vsel %vm6919_vm15, %v9838_v43, %v13300_v45  ;;  %v9855_v29 = vsel %vm6919_vm15, %v9839_v6, %v13301_v32  ;;  %v13334_v55 = vpop.permute.xlu2 %13333  ;;  %v13339_v59 = vpop.permute.xlu0 %13338 }
 0x7fd   : > { %v9874_v15 = vpack.c.bf16 %v9855_v29, %v9854_v54  ;;  %v13336_v43 = vunpack.i.h.bf16 %v13334_v55  ;;  %v13335_v54 = vunpack.i.l.bf16 %v13334_v55  ;;  %v13341_v3 = vunpack.i.h.bf16 %v13339_v59 }
 0x7fe   : > { %v13340_v29 = vunpack.i.l.bf16 %v13339_v59 }
 0x7ff   : > { %10127 = vmatmul.bf16.gmra.mxu3 %v9871_v20  ;;  %v16762_v38 = vpop.f32.mrf.mxu3  ;;  %v13325_v20 = vunpack.i.l.bf16 %v13324_v34  ;;  %v9828_v53 = vsel %vm1255_vm0, %v17007_v42, %v13335_v54 }
 0x800   : > { %v9844_v57 = vsel %vm6789_vm10, %v9828_v53, %v13340_v29 }
 0x801   : > { %v13314_v63 = vpop.permute.xlu1 %13313  ;;  %v9842_v24 = vsel %vm6789_vm10, %v9826_v25, %v13325_v20 }
 0x802   : > { %v13316_v10 = vunpack.i.h.bf16 %v13314_v63  ;;  %v13315_v26 = vunpack.i.l.bf16 %v13314_v63  ;;  %v9829_v63 = vsel %vm1255_vm0, %v17006_v48, %v13336_v43  ;;  %v17010_v43 = vld [vmem:[#allocation10_spill] sm:$0xff] }
 0x803   : > { %v9845_v36 = vsel %vm6789_vm10, %v9829_v63, %v13341_v3  ;;  %v17011_v54 = vpack.c.bf16 %v16555_v37, %v17010_v43  ;;  %v17013_v63 = vld [vmem:[#allocation11_spill] sm:$0xff] }
 0x804   : > { %v9856_v56 = vsel %vm6919_vm15, %v9840_v33, %v13315_v26  ;;  %v9857_v8 = vsel %vm6919_vm15, %v9841_v14, %v13316_v10  ;;  %v13349_v14 = vpop.permute.xlu2 %13348  ;;  %v13354_v33 = vpop.permute.xlu0 %13353 }
 0x805   : > { %v9877_v22 = vpack.c.bf16 %v9857_v8, %v9856_v56  ;;  %v13350_v46 = vunpack.i.l.bf16 %v13349_v14  ;;  %v13356_v34 = vunpack.i.h.bf16 %v13354_v33 }
 0x807   : > { %v16772_v58 = vpop.f32.mrf.mxu3 }
 0x809   : > { %v13329_v50 = vpop.permute.xlu1 %13328 }
 0x80a   : > { %v13331_v19 = vunpack.i.h.bf16 %v13329_v50  ;;  %v13330_v17 = vunpack.i.l.bf16 %v13329_v50  ;;  %v13355_v50 = vunpack.i.l.bf16 %v13354_v33  ;;  %v9749_v33 = vld.sshfl [vmem:[#allocation1 + $0x10] sm:$0xff pattern:$0x75316420] }
 0x80c   : > { %v9858_v62 = vsel %vm6919_vm15, %v9842_v24, %v13330_v17  ;;  %v9859_v9 = vsel %vm6919_vm15, %v9843_v41, %v13331_v19  ;;  %v17009_v19 = vld [vmem:[#allocation8_spill] sm:$0xff] }
 0x80d   : > { %v9880_v45 = vpack.c.bf16 %v9859_v9, %v9858_v62  ;;  %v9830_v17 = vsel %vm1255_vm0, %v17009_v19, %v13350_v46  ;;  %v16823_v9 = vld [vmem:[%s16986_s6] ss:$0 sm:$0xff] }
 0x80e   : > { %v9846_v25 = vsel %vm6789_vm10, %v9830_v17, %v13355_v50  ;;  %v10070_v55 = vadd.f32 %v16823_v9, %v16731_v52  ;;  %v10075_v29 = vadd.f32 %v16823_v9, %v16735_v4  ;;  %v17012_v52 = vld [vmem:[#allocation12_spill] sm:$0xff]  ;;  %v10080_v37 = vadd.f32 %v16823_v9, %v16747_v61  ;;  %v17015_v61 = vld [vmem:[#allocation13_spill] sm:$0xff] }
 0x80f   : > { %10132 = vmatmul.bf16.gmra.mxu3 %v9874_v15  ;;  %v16774_v13 = vpop.f32.mrf.mxu3  ;;  %v17014_v42 = vpack.c.bf16 %v17012_v52, %v17013_v63  ;;  %v10085_v23 = vadd.f32 %v16823_v9, %v16762_v38  ;;  %v16895_v17 = vld [vmem:[%s16987_s7] sm:$0xff]  ;;  %v10077_v52 = vadd.f32 %v16823_v9, %v16741_v49 }
 0x811   : > { %v13344_v21 = vpop.permute.xlu1 %13343 }
 0x812   : > { %v13346_v15 = vunpack.i.h.bf16 %v13344_v21  ;;  %v13345_v27 = vunpack.i.l.bf16 %v13344_v21 }
 0x814   : > { %v9860_v10 = vsel %vm6919_vm15, %v9844_v57, %v13345_v27  ;;  %v9861_v26 = vsel %vm6919_vm15, %v9845_v36, %v13346_v15 }
 0x815   : > { %v9883_v47 = vpack.c.bf16 %v9861_v26, %v9860_v10  ;;  %v17016_v10 = vpack.c.bf16 %v16577_v60, %v17015_v61  ;;  %v10090_v26 = vadd.f32 %v16823_v9, %v16774_v13  ;;  %v9748_v13 = vld.sshfl [vmem:[#allocation1] sm:$0xff pattern:$0x75316420] }
 0x817   : > { %v16784_v0 = vpop.f32.mrf.mxu3 }
 0x819   : > { %v13359_v8 = vpop.permute.xlu1 %13358 }
 0x81a   : > { %v13361_v40 = vunpack.i.h.bf16 %v13359_v8  ;;  %v13360_v18 = vunpack.i.l.bf16 %v13359_v8  ;;  %v9884_v8 = vpack.c.bf16 %v9749_v33, %v9748_v13 }
 0x81c   : > { %v9862_v41 = vsel %vm6919_vm15, %v9846_v25, %v13360_v18 }
 0x81f   : > { %10137 = vmatmul.bf16.gmra.mxu3 %v9877_v22  ;;  %v16786_v2 = vpop.f32.mrf.mxu3  ;;  %v13351_v22 = vunpack.i.h.bf16 %v13349_v14 }
 0x821   : > { %v9831_v20 = vsel %vm1255_vm0, %v17008_v30, %v13351_v22 }
 0x822   : > { %v9847_v12 = vsel %vm6789_vm10, %v9831_v20, %v13356_v34 }
 0x823   : > { %v9863_v24 = vsel %vm6919_vm15, %v9847_v12, %v13361_v40  ;;  %v10072_v12 = vadd.f32 %v16823_v9, %v16733_v16 }
 0x827   : > { %v16796_v32 = vpop.f32.mrf.mxu3 }
 0x82f   : > { %10142 = vmatmul.bf16.gmra.mxu3 %v9880_v45  ;;  %v16798_v6 = vpop.f32.mrf.mxu3  ;;  %v9886_v45 = vpack.c.bf16 %v9863_v24, %v9862_v41 }
 0x830   : > { %v10100_v22 = vadd.f32 %v16823_v9, %v16798_v6 }
 0x837   : > { %v16808_v28 = vpop.f32.mrf.mxu3 }
 0x83f   : > { %10147 = vmatmul.bf16.gmra.mxu3 %v9883_v47  ;;  %v10104_v56 = vpop.f32.mrf.mxu3 }
 0x840   : > { %v10105_v50 = vadd.f32 %v16823_v9, %v10104_v56 }
 0x847   : > { %v16818_v62 = vpop.f32.mrf.mxu3 }
 0x84f   : > { %10152 = vmatmul.bf16.gmra.mxu3 %v9886_v45  ;;  %v10118_v59 = vpop.f32.mrf.mxu3 }
 0x850   : > { %v10119_v21 = vadd.f32 %v10118_v59, %v10070_v55 }
 0x857   : > { %v10120_v3 = vpop.f32.mrf.mxu3 }
 0x858   : > { %v10121_v41 = vadd.f32 %v10120_v3, %v10072_v12 }
 0x85f   : > { %11812 = vmatmul.msk.bf16.vlgmr.msrb.gmra.mxu3 %vm1255_vm0, %v17011_v54 }
 0x86f   : > { %11813 = vmatmul.msk.bf16.gmra.mxu3 %vm1255_vm0, %v9869_v11 }
 0x872   : > { %v10123_v15 = vpop.f32.mrf.mxu3 }
 0x873   : > { %v10124_v27 = vadd.f32 %v10123_v15, %v10075_v29 }
 0x87a   : > { %v16837_v48 = vpop.f32.mrf.mxu3 }
 0x87f   : > { %11814 = vmatmul.msk.bf16.gmra.mxu3 %vm1255_vm0, %v17014_v42 }
 0x882   : > { %v10128_v53 = vpop.f32.mrf.mxu3 }
 0x883   : > { %v16845_v36 = vadd.f32 %v10128_v53, %v10080_v37  ;;  %v10126_v37 = vadd.f32 %v16837_v48, %v10077_v52  ;;  %v10082_v48 = vadd.f32 %v16823_v9, %v16757_v31 }
 0x88a   : > { %v16847_v7 = vpop.f32.mrf.mxu3 }
 0x88b   : > { %v10131_v13 = vadd.f32 %v16847_v7, %v10082_v48  ;;  %v10087_v7 = vadd.f32 %v16823_v9, %v16772_v58 }
 0x88f   : > { %11815 = vmatmul.msk.bf16.gmra.mxu3 %vm1255_vm0, %v9875_v35  ;;  %v10095_v35 = vadd.f32 %v16823_v9, %v16786_v2  ;;  %v9750_v2 = vld.sshfl [vmem:[#allocation1 + $0x20] sm:$0xff pattern:$0x75316420] }
 0x892   : > { %v10133_v11 = vpop.f32.mrf.mxu3 }
 0x893   : > { %v16855_v4 = vadd.f32 %v10133_v11, %v10085_v23 }
 0x89a   : > { %v16857_v57 = vpop.f32.mrf.mxu3 }
 0x89f   : > { %11816 = vmatmul.msk.bf16.gmra.mxu3 %vm1255_vm0, %v17016_v10 }
 0x8a2   : > { %v10138_v47 = vpop.f32.mrf.mxu3 }
 0x8a3   : > { %v16865_v5 = vadd.f32 %v10138_v47, %v10090_v26 }
 0x8aa   : > { %v16867_v1 = vpop.f32.mrf.mxu3 }
 0x8af   : > { %11817 = vmatmul.msk.bf16.gmra.mxu3 %vm1255_vm0, %v9881_v51  ;;  %v9751_v51 = vld.sshfl [vmem:[#allocation1 + $0x30] sm:$0xff pattern:$0x75316420] }
 0x8b0   : > { %v9887_v34 = vpack.c.bf16 %v9751_v51, %v9750_v2 }
 0x8b2   : > { %v10143_v38 = vpop.f32.mrf.mxu3 }
 0x8b3   : > { %v16875_v60 = vadd.f32 %v10143_v38, %v10095_v35 }
 0x8ba   : > { %v16877_v14 = vpop.f32.mrf.mxu3 }
 0x8bf   : > { %11818 = vmatmul.msk.bf16.gmra.mxu3 %vm1255_vm0, %v9884_v8 }
 0x8c2   : > { %v10148_v46 = vpop.f32.mrf.mxu3 }
 0x8c3   : > { %v16882_v39 = vadd.f32 %v10148_v46, %v10100_v22 }
 0x8ca   : > { %v16884_v44 = vpop.f32.mrf.mxu3 }
 0x8cf   : > { %11819 = vmatmul.msk.bf16.gmra.mxu3 %vm1255_vm0, %v9887_v34 }
 0x8d2   : > { %v10153_v40 = vpop.f32.mrf.mxu3 }
 0x8d3   : > { %v16888_v18 = vadd.f32 %v10153_v40, %v10105_v50 }
 0x8da   : > { %v16890_v30 = vpop.f32.mrf.mxu3 }
 0x8e2   : > { %v10167_v20 = vpop.f32.mrf.mxu3 }
 0x8e3   : > { %v10168_v19 = vadd.f32 %v10167_v20, %v10119_v21  ;;  %v16904_v21 = vld [vmem:[%s16987_s7 + $0x8] sm:$0xff] }
 0x8e5   : > { %vm10207_vm15 = vcmp.ge.f32.partialorder %v10168_v19, 0.0  ;;  %v10223_v6 = vmul.f32 0.01, %v10168_v19 }
 0x8e7   : > { %v10239_v25 = vsel %vm10207_vm15, %v10168_v19, %v10223_v6  ;;  %v10136_v6 = vadd.f32 %v16857_v57, %v10087_v7  ;;  %v10092_v57 = vadd.f32 %v16823_v9, %v16784_v0 }
 0x8e8   : > { %v10257_v56 = vmul.f32 %v16895_v17, %v10239_v25 }
 0x8ea   : > { %v10169_v24 = vpop.f32.mrf.mxu3  ;;  %v10273_v45 = vsel %vm6789_vm10, %v10257_v56, 0.0 }
 0x8eb   : > { %v10170_v55 = vadd.f32 %v10169_v24, %v10121_v41  ;;  %10274 = vadd.xlane.f32.xlu2 %v10273_v45 }
 0x8ed   : > { %vm10208_vm0 = vcmp.ge.f32.partialorder %v10170_v55, 0.0  ;;  %v10224_v59 = vmul.f32 0.01, %v10170_v55 }
 0x8ef   : > { %v10240_v43 = vsel %vm10208_vm0, %v10170_v55, %v10224_v59 }
 0x8f0   : > { %v10258_v54 = vmul.f32 %v16904_v21, %v10240_v43 }
 0x8f2   : > { %v10172_v16 = vpop.f32.mrf.mxu3  ;;  %v10276_v29 = vsel %vm6789_vm10, %v10258_v54, 0.0 }
 0x8f3   : > { %v10173_v15 = vadd.f32 %v10172_v16, %v10124_v27  ;;  %10277 = vadd.xlane.f32.xlu0 %v10276_v29  ;;  %v10141_v16 = vadd.f32 %v16867_v1, %v10092_v57  ;;  %v10097_v1 = vadd.f32 %v16823_v9, %v16796_v32 }
 0x8f5   : > { %vm10209_vm7 = vcmp.ge.f32.partialorder %v10173_v15, 0.0  ;;  %v10225_v3 = vmul.f32 0.01, %v10173_v15 }
 0x8f7   : > { %v10241_v63 = vsel %vm10209_vm7, %v10173_v15, %v10225_v3  ;;  %vm10365_vm7 = vcmask 1041409  }
 0x8f8   : > { %v10259_v42 = vmul.f32 %v16895_v17, %v10241_v63 }
 0x8fa   : > { %v10174_v53 = vpop.f32.mrf.mxu3  ;;  %v10279_v23 = vsel %vm6789_vm10, %v10259_v42, 0.0 }
 0x8fb   : > { %v10175_v11 = vadd.f32 %v10174_v53, %v10126_v37  ;;  %10280 = vadd.xlane.f32.xlu1 %v10279_v23 }
 0x8fd   : > { %vm10210_vm11 = vcmp.ge.f32.partialorder %v10175_v11, 0.0  ;;  %v10226_v61 = vmul.f32 0.01, %v10175_v11 }
 0x8ff   : > { %v10242_v10 = vsel %vm10210_vm11, %v10175_v11, %v10226_v61  ;;  %v10146_v61 = vadd.f32 %v16877_v14, %v10097_v1  ;;  %v10102_v14 = vadd.f32 %v16823_v9, %v16808_v28  ;;  %vm10367_vm11 = vcmask 1042434  }
 0x900   : > { %v10260_v27 = vmul.f32 %v16904_v21, %v10242_v10 }
 0x902   : > { %v10177_v26 = vpop.f32.mrf.mxu3  ;;  %v10282_v47 = vsel %vm6789_vm10, %v10260_v27, 0.0 }
 0x903   : > { %v10178_v49 = vadd.f32 %v10177_v26, %v16845_v36  ;;  %10283 = vadd.xlane.f32.xlu2 %v10282_v47 }
 0x905   : > { %vm10211_vm2 = vcmp.ge.f32.partialorder %v10178_v49, 0.0  ;;  %v10227_v35 = vmul.f32 0.01, %v10178_v49 }
 0x907   : > { %v10243_v38 = vsel %vm10211_vm2, %v10178_v49, %v10227_v35  ;;  %vm10369_vm2 = vcmask 1043459  }
 0x908   : > { %v10261_v33 = vmul.f32 %v16895_v17, %v10243_v38 }
 0x90a   : > { %v10179_v8 = vpop.f32.mrf.mxu3  ;;  %v10285_v22 = vsel %vm6789_vm10, %v10261_v33, 0.0 }
 0x90b   : > { %v10180_v46 = vadd.f32 %v10179_v8, %v10131_v13  ;;  %10286 = vadd.xlane.f32.xlu2 %v10285_v22  ;;  %v10151_v8 = vadd.f32 %v16884_v44, %v10102_v14  ;;  %v10107_v44 = vadd.f32 %v16823_v9, %v16818_v62 }
 0x90d   : > { %vm10212_vm12 = vcmp.ge.f32.partialorder %v10180_v46, 0.0  ;;  %v10228_v51 = vmul.f32 0.01, %v10180_v46 }
 0x90f   : > { %v10244_v2 = vsel %vm10212_vm12, %v10180_v46, %v10228_v51  ;;  %vm10371_vm12 = vcmask 1044484  }
 0x910   : > { %v10262_v36 = vmul.f32 %v16904_v21, %v10244_v2 }
 0x912   : > { %v10182_v34 = vpop.f32.mrf.mxu3  ;;  %v10288_v50 = vsel %vm6789_vm10, %v10262_v36, 0.0 }
 0x913   : > { %v10183_v31 = vadd.f32 %v10182_v34, %v16855_v4  ;;  %10289 = vadd.xlane.f32.xlu0 %v10288_v50 }
 0x915   : > { %vm10213_vm8 = vcmp.ge.f32.partialorder %v10183_v31, 0.0  ;;  %v10229_v40 = vmul.f32 0.01, %v10183_v31 }
 0x917   : > { %v10245_v20 = vsel %vm10213_vm8, %v10183_v31, %v10229_v40  ;;  %vm10373_vm8 = vcmask 1045509  }
 0x918   : > { %v10263_v19 = vmul.f32 %v16895_v17, %v10245_v20  ;;  %v10156_v20 = vadd.f32 %v16890_v30, %v10107_v44 }
 0x91a   : > { %v10184_v12 = vpop.f32.mrf.mxu3  ;;  %v10291_v25 = vsel %vm6789_vm10, %v10263_v19, 0.0 }
 0x91b   : > { %v10185_v56 = vadd.f32 %v10184_v12, %v10136_v6  ;;  %10292 = vadd.xlane.f32.xlu1 %v10291_v25 }
 0x91d   : > { %vm10214_vm9 = vcmp.ge.f32.partialorder %v10185_v56, 0.0  ;;  %v10230_v41 = vmul.f32 0.01, %v10185_v56 }
 0x91f   : > { %v10246_v24 = vsel %vm10214_vm9, %v10185_v56, %v10230_v41  ;;  %vm10375_vm9 = vcmask 1046534  }
 0x920   : > { %v10264_v4 = vmul.f32 %v16904_v21, %v10246_v24 }
 0x922   : > { %v10187_v45 = vpop.f32.mrf.mxu3  ;;  %v10294_v55 = vsel %vm6789_vm10, %v10264_v4, 0.0 }
 0x923   : > { %v10188_v58 = vadd.f32 %v10187_v45, %v16865_v5  ;;  %10295 = vadd.xlane.f32.xlu2 %v10294_v55 }
 0x925   : > { %vm10215_vm14 = vcmp.ge.f32.partialorder %v10188_v58, 0.0  ;;  %v10231_v59 = vmul.f32 0.01, %v10188_v58 }
 0x927   : > { %v10247_v43 = vsel %vm10215_vm14, %v10188_v58, %v10231_v59  ;;  %v10337_v59 = vlaneseq  ;;  %vm10377_vm14 = vcmask 1047559  }
 0x928   : > { %v10265_v54 = vmul.f32 %v16895_v17, %v10247_v43 }
 0x92a   : > { %v10189_v29 = vpop.f32.mrf.mxu3  ;;  %v10297_v15 = vsel %vm6789_vm10, %v10265_v54, 0.0  ;;  %v10338_v54 = vand.u32 127, %v10337_v59 }
 0x92b   : > { %v10190_v3 = vadd.f32 %v10189_v29, %v10141_v16  ;;  %10298 = vadd.xlane.f32.xlu0 %v10297_v15 }
 0x92c   : > { %v10340_v16 = vadd.s32 4294967288, %v10338_v54 }
 0x92d   : > { %vm10216_vm3 = vcmp.ge.f32.partialorder %v10190_v3, 0.0  ;;  %v10232_v52 = vmul.f32 0.01, %v10190_v3 }
 0x92f   : > { %v10248_v63 = vsel %vm10216_vm3, %v10190_v3, %v10232_v52  ;;  %vm10388_vm3 = vcmask 7168  }
 0x930   : > { %v10266_v5 = vmul.f32 %v16904_v21, %v10248_v63 }
 0x932   : > { %v10192_v42 = vpop.f32.mrf.mxu3  ;;  %v10300_v37 = vsel %vm6789_vm10, %v10266_v5, 0.0 }
 0x933   : > { %v10193_v0 = vadd.f32 %v10192_v42, %v16875_v60  ;;  %10301 = vadd.xlane.f32.xlu1 %v10300_v37 }
 0x935   : > { %vm10217_vm13 = vcmp.ge.f32.partialorder %v10193_v0, 0.0  ;;  %v10233_v53 = vmul.f32 0.01, %v10193_v0 }
 0x937   : > { %v10249_v23 = vsel %vm10217_vm13, %v10193_v0, %v10233_v53 }
 0x938   : > { %v10267_v11 = vmul.f32 %v16895_v17, %v10249_v23 }
 0x93a   : > { %v10194_v10 = vpop.f32.mrf.mxu3  ;;  %v10303_v27 = vsel %vm6789_vm10, %v10267_v11, 0.0 }
 0x93b   : > { %v10195_v26 = vadd.f32 %v10194_v10, %v10146_v61  ;;  %10304 = vadd.xlane.f32.xlu2 %v10303_v27 }
 0x93d   : > { %vm10218_vm4 = vcmp.ge.f32.partialorder %v10195_v26, 0.0  ;;  %v10234_v47 = vmul.f32 0.01, %v10195_v26 }
 0x93f   : > { %v10250_v49 = vsel %vm10218_vm4, %v10195_v26, %v10234_v47 }
 0x940   : > { %v10268_v60 = vmul.f32 %v16904_v21, %v10250_v49 }
 0x942   : > { %v10197_v35 = vpop.f32.mrf.mxu3  ;;  %v10306_v48 = vsel %vm6789_vm10, %v10268_v60, 0.0 }
 0x943   : > { %v10198_v32 = vadd.f32 %v10197_v35, %v16882_v39  ;;  %10307 = vadd.xlane.f32.xlu0 %v10306_v48 }
 0x945   : > { %vm10219_vm5 = vcmp.ge.f32.partialorder %v10198_v32, 0.0  ;;  %v10235_v38 = vmul.f32 0.01, %v10198_v32 }
 0x947   : > { %v10251_v33 = vsel %vm10219_vm5, %v10198_v32, %v10235_v38 }
 0x948   : > { %v10269_v13 = vmul.f32 %v16895_v17, %v10251_v33 }
 0x94a   : > { %v10199_v22 = vpop.f32.mrf.mxu3  ;;  %v10309_v46 = vsel %vm6789_vm10, %v10269_v13, 0.0 }
 0x94b   : > { %v10200_v51 = vadd.f32 %v10199_v22, %v10151_v8  ;;  %10310 = vadd.xlane.f32.xlu1 %v10309_v46 }
 0x94d   : > { %vm10220_vm6 = vcmp.ge.f32.partialorder %v10200_v51, 0.0  ;;  %v10236_v2 = vmul.f32 0.01, %v10200_v51 }
 0x94f   : > { %v10252_v36 = vsel %vm10220_vm6, %v10200_v51, %v10236_v2 }
 0x950   : > { %v10270_v39 = vmul.f32 %v16904_v21, %v10252_v36 }
 0x952   : > { %v10202_v34 = vpop.f32.mrf.mxu3  ;;  %v10312_v50 = vsel %vm6789_vm10, %v10270_v39, 0.0 }
 0x953   : > { %v10203_v28 = vadd.f32 %v10202_v34, %v16888_v18  ;;  %10313 = vadd.xlane.f32.xlu2 %v10312_v50 }
 0x955   : > { %vm10221_vm15 = vcmp.ge.f32.partialorder %v10203_v28, 0.0  ;;  %v10237_v31 = vmul.f32 0.01, %v10203_v28 }
 0x957   : > { %v10253_v40 = vsel %vm10221_vm15, %v10203_v28, %v10237_v31  ;;  %v13365_v28 = vld [vmem:[#allocation4] ss:$0 sm:$0xff] }
 0x958   : > { %v10271_v7 = vmul.f32 %v16895_v17, %v10253_v40 }
 0x95a   : > { %v10204_v19 = vpop.f32.mrf.mxu3  ;;  %v10315_v6 = vsel %vm6789_vm10, %v10271_v7, 0.0 }
 0x95b   : > { %v10205_v12 = vadd.f32 %v10204_v19, %v10156_v20  ;;  %10316 = vadd.xlane.f32.xlu0 %v10315_v6 }
 0x95d   : > { %vm10222_vm0 = vcmp.ge.f32.partialorder %v10205_v12, 0.0  ;;  %v10238_v25 = vmul.f32 0.01, %v10205_v12 }
 0x95e   : > { %v10275_v24 = vpop.xlane.xlu2 %10274 }
 0x95f   : > { %v10254_v56 = vsel %vm10222_vm0, %v10205_v12, %v10238_v25  ;;  %v10339_v53 = vperm.slane %v10275_v24, %v10338_v54 }
 0x960   : > { %v10272_v18 = vmul.f32 %v16904_v21, %v10254_v56 }
 0x962   : > { %v10318_v41 = vsel %vm6789_vm10, %v10272_v18, 0.0  ;;  %vm10342_vm10 = vcmask 130112  }
 0x963   : > { %10319 = vadd.xlane.f32.xlu1 %v10318_v41 }
 0x966   : > { %v10278_v9 = vpop.xlane.xlu0 %10277 }
 0x967   : > { %v10341_v52 = vperm.slane %v10278_v9, %v10340_v16 }
 0x969   : > { %v10343_v26 = vsel %vm10342_vm10, %v10341_v52, %v10339_v53 }
 0x96e   : > { %v10281_v4 = vpop.xlane.xlu1 %10280 }
 0x96f   : > { %v10344_v63 = vperm.slane %v10281_v4, %v10338_v54 }
 0x976   : > { %v10284_v62 = vpop.xlane.xlu2 %10283 }
 0x977   : > { %v10345_v15 = vperm.slane %v10284_v62, %v10340_v16 }
 0x979   : > { %v10346_v1 = vsel %vm10342_vm10, %v10345_v15, %v10344_v63 }
 0x97a   : > { %v10366_v60 = vsel %vm10365_vm7, %v10346_v1, %v10343_v26 }
 0x97e   : > { %v10287_v17 = vpop.xlane.xlu2 %10286 }
 0x97f   : > { %v10347_v37 = vperm.slane %v10287_v17, %v10338_v54 }
 0x986   : > { %v10290_v45 = vpop.xlane.xlu0 %10289 }
 0x987   : > { %v10348_v21 = vperm.slane %v10290_v45, %v10340_v16 }
 0x989   : > { %v10349_v61 = vsel %vm10342_vm10, %v10348_v21, %v10347_v37 }
 0x98a   : > { %v10368_v38 = vsel %vm10367_vm11, %v10349_v61, %v10366_v60 }
 0x98e   : > { %v10293_v30 = vpop.xlane.xlu1 %10292 }
 0x98f   : > { %v10350_v23 = vperm.slane %v10293_v30, %v10338_v54 }
 0x996   : > { %v10296_v55 = vpop.xlane.xlu2 %10295 }
 0x997   : > { %v10351_v5 = vperm.slane %v10296_v55, %v10340_v16 }
 0x999   : > { %v10352_v47 = vsel %vm10342_vm10, %v10351_v5, %v10350_v23 }
 0x99a   : > { %v10370_v33 = vsel %vm10369_vm2, %v10352_v47, %v10368_v38 }
 0x99e   : > { %v10299_v58 = vpop.xlane.xlu0 %10298 }
 0x99f   : > { %v10353_v10 = vperm.slane %v10299_v58, %v10338_v54 }
 0x9a6   : > { %v10302_v57 = vpop.xlane.xlu1 %10301 }
 0x9a7   : > { %v10354_v0 = vperm.slane %v10302_v57, %v10340_v16 }
 0x9a9   : > { %v10355_v35 = vsel %vm10342_vm10, %v10354_v0, %v10353_v10 }
 0x9aa   : > { %v10372_v22 = vsel %vm10371_vm12, %v10355_v35, %v10370_v33 }
 0x9ae   : > { %v10305_v43 = vpop.xlane.xlu2 %10304 }
 0x9af   : > { %v10356_v49 = vperm.slane %v10305_v43, %v10338_v54 }
 0x9b6   : > { %v10308_v29 = vpop.xlane.xlu0 %10307 }
 0x9b7   : > { %v10357_v11 = vperm.slane %v10308_v29, %v10340_v16 }
 0x9b9   : > { %v10358_v14 = vsel %vm10342_vm10, %v10357_v11, %v10356_v49 }
 0x9ba   : > { %v10374_v2 = vsel %vm10373_vm8, %v10358_v14, %v10372_v22 }
 0x9be   : > { %v10311_v3 = vpop.xlane.xlu1 %10310 }
 0x9bf   : > { %v10359_v48 = vperm.slane %v10311_v3, %v10338_v54 }
 0x9c6   : > { %v10314_v42 = vpop.xlane.xlu2 %10313 }
 0x9c7   : > { %v10360_v27 = vperm.slane %v10314_v42, %v10340_v16 }
 0x9c9   : > { %v10361_v13 = vsel %vm10342_vm10, %v10360_v27, %v10359_v48 }
 0x9ca   : > { %v10376_v39 = vsel %vm10375_vm9, %v10361_v13, %v10374_v2 }
 0x9ce   : > { %v10317_v32 = vpop.xlane.xlu0 %10316 }
 0x9cf   : > { %v10362_v46 = vperm.slane %v10317_v32, %v10338_v54 }
 0x9d6   : > { %v10320_v8 = vpop.xlane.xlu1 %10319 }
 0x9d7   : > { %v10363_v51 = vperm.slane %v10320_v8, %v10340_v16 }
 0x9d9   : > { %v10364_v36 = vsel %vm10342_vm10, %v10363_v51, %v10362_v46 }
 0x9da   : > { %v10378_v34 = vsel %vm10377_vm14, %v10364_v36, %v10376_v39 }
 0x9db   : > { %v10380_v50 = vsel %vm3057_vm1, %v10378_v34, 0.0 }
 0x9dc   : > { %10381 = vadd.xlane.f32.xlu2 %v10380_v50 }
 0xa4f   : > { %v10382_v31 = vpop.xlane.xlu2 %10381 }
 0xa50   : > { %v10387_v44 = vadd.f32 %v13365_v28, %v10382_v31 }
 0xa52   : > { %10389 = vst.msk [vmem:[%s337_s20] sm:$0xff] %vm10388_vm3, %v10387_v44 }
 0xa53 PF: > { %s21_s11 = sadd.s32 1, %s13383_s11  }
 0xa54   : > { %p18_p5 = scmp.ge.s32.totalorder %s21_s11, 4  }
 0xa56   :  { %20 = sbr.rel (!%p18_p5) target bundleno = 3 (0x3), region = 1013 }

</bundles_post_ra>
